<compile_context>
chip_gen: v5e
topology: v5e:2x2
jax: 0.10.0
libtpu: 0.0.40
codegen_flags: <defaults>
</compile_context>

<pallas_src>
import functools
import math

import jax
import jax.numpy as jnp
from jax import lax
from jax.experimental import pallas as pl
from jax.experimental.pallas import tpu as pltpu

# fixed "cubic" downsample kernel from diffusers Downsample1d
_CUBIC = [-0.01171875, -0.03515625, 0.11328125, 0.43359375,
          0.43359375, 0.11328125, -0.03515625, -0.01171875]

_GN_EPS = 1e-5


# ----------------------------------------------------------------------------
# in-kernel math helpers
# ----------------------------------------------------------------------------
def _erf(x):
    # float32-accurate erf (A&S 7.1.26, |err| < 1.5e-7) built only from
    # exp/abs/where so it always lowers in Mosaic (torch nn.GELU() default is
    # the exact erf-based GELU).
    p = 0.3275911
    a1, a2, a3, a4, a5 = (0.254829592, -0.284496736, 1.421413741,
                          -1.453152027, 1.061405429)
    sign = jnp.where(x >= 0.0, 1.0, -1.0)
    ax = jnp.abs(x)
    t = 1.0 / (1.0 + p * ax)
    poly = ((((a5 * t + a4) * t + a3) * t + a2) * t + a1) * t
    return sign * (1.0 - poly * jnp.exp(-ax * ax))


def _gelu(x):
    # exact (erf) GELU, matching torch.nn.GELU() default.
    # TODO(synk): optionally switch to tanh-GELU (EUP tanh) / bf16 matmuls when
    # bit-fidelity to torch is not required.
    return 0.5 * x * (1.0 + _erf(x * 0.7071067811865476))


def _group_norm1(x, w, b, eps=_GN_EPS):
    # GroupNorm(num_groups=1) for one sample: normalize over all of (C, L).
    mean = jnp.mean(x)
    var = jnp.mean((x - mean) ** 2)
    return (x - mean) * lax.rsqrt(var + eps) * w + b


def _make_shift_mats(lo):
    # M[d][i, j] = 1 where j == i + d:  (x @ M[d]) shifts each row of a (C, lo)
    # block by d lanes with zero fill (built once, reused by all 6 convs).
    row = lax.broadcasted_iota(jnp.int32, (lo, lo), 0)
    col = lax.broadcasted_iota(jnp.int32, (lo, lo), 1)
    return {d: (col - row == d).astype(jnp.float32) for d in (-2, -1, 1, 2)}


def _conv5(x, w_flat, b, shift):
    # conv1d(kernel=5, padding=2) as one im2col matmul with K = 5*C_in.
    # Rows of x5 are tap-major to match w_flat[:, t*C + ci] = w_torch[co, ci, t].
    taps = [x if t == 2 else
            jnp.dot(x, shift[2 - t], preferred_element_type=jnp.float32)
            for t in range(5)]
    x5 = jnp.concatenate(taps, axis=0)                       # (5*C, L)
    return jnp.dot(w_flat, x5, preferred_element_type=jnp.float32) + b


# ----------------------------------------------------------------------------
# fused kernel: per-sample Downsample1d -> 3 x (ResConvBlock -> CrossAttention)
# ----------------------------------------------------------------------------
def _fused_block_kernel(n_layers, has_skip, num_heads, *refs):
    it = iter(refs)
    xe_ref = next(it)       # (1, C_in, Lh_pad) even phase of reflect-padded x
    xo_ref = next(it)       # (1, C_in, Lh_pad) odd  phase
    kv_ref = next(it)       # (1, S, 128)   encoder hidden states
    kvT_ref = next(it)      # (1, 128, S)   pre-transposed encoder hidden states
    resnets = []
    for i in range(n_layers):
        ws = tuple(next(it) for _ in range(8))
        skip = next(it) if has_skip[i] else None
        resnets.append((ws, skip))
    attns = [tuple(next(it) for _ in range(8)) for _ in range(n_layers)]
    o_ref = next(it)        # (1, C_out, Lo)

    lo = o_ref.shape[-1]
    shift = _make_shift_mats(lo)

    # ---- Downsample1d('cubic'): reflect-pad(3) + depthwise conv(k=8, stride=2)
    # (even/odd de-interleave was done host-side so the stride-2 conv becomes
    #  4 contiguous shifted weighted sums per phase)
    xe = xe_ref[0]
    xo = xo_ref[0]
    h = jnp.zeros((xe.shape[0], lo), jnp.float32)
    for s in range(4):
        h = h + _CUBIC[2 * s] * xe[:, s:s + lo]
        h = h + _CUBIC[2 * s + 1] * xo[:, s:s + lo]

    kv = kv_ref[0]          # (S, 128)
    kvT = kvT_ref[0]        # (128, S)

    for i in range(n_layers):
        (w1, b1, g1w, g1b, w2, b2, g2w, g2b), skip = resnets[i]
        aq, cq, akT, ck, av, cv, wo, bo = attns[i]

        # ---------------- ResConvBlock ----------------
        x_in = h
        t1 = _conv5(x_in, w1[...], b1[...], shift)
        t1 = _gelu(_group_norm1(t1, g1w[...], g1b[...]))
        t2 = _conv5(t1, w2[...], b2[...], shift)
        t2 = _gelu(_group_norm1(t2, g2w[...], g2b[...]))
        if skip is not None:
            res = jnp.dot(skip[...], x_in, preferred_element_type=jnp.float32)
        else:
            res = x_in
        h = t2 + res                                             # (C, Lo)

        # ------- CrossAttentionLayer + 2-head MHA (transposed layout) -------
        # projection Linear + in_proj folded host-side; scale folded into aq.
        qT = jnp.dot(aq[...], h, preferred_element_type=jnp.float32) + cq[...]   # (D, Lo)
        k = jnp.dot(kv, akT[...], preferred_element_type=jnp.float32) + ck[...]  # (S, D)
        vT = jnp.dot(av[...], kvT, preferred_element_type=jnp.float32) + cv[...] # (D, S)

        d_model = qT.shape[0]
        hd = d_model // num_heads
        o_heads = []
        for n in range(num_heads):
            qh = qT[n * hd:(n + 1) * hd, :]       # (hd, Lo)
            kh = k[:, n * hd:(n + 1) * hd]        # (S, hd)
            vh = vT[n * hd:(n + 1) * hd, :]       # (hd, S)
            sT = jnp.dot(kh, qh, preferred_element_type=jnp.float32)   # (S, Lo)
            sT = sT - jnp.max(sT, axis=0, keepdims=True)
            e = jnp.exp(sT)
            probs = e * pl.reciprocal(jnp.sum(e, axis=0, keepdims=True),
                                      approx=True)
            o_heads.append(jnp.dot(vh, probs,
                                   preferred_element_type=jnp.float32))  # (hd, Lo)
        oT = jnp.concatenate(o_heads, axis=0)                            # (D, Lo)
        h = jnp.dot(wo[...], oT, preferred_element_type=jnp.float32) + bo[...]

    o_ref[0] = h


# ----------------------------------------------------------------------------
# wrapper
# ----------------------------------------------------------------------------
def _whole_spec(shape):
    n = len(shape)
    return pl.BlockSpec(shape, lambda b: (0,) * n)


def _cost_estimate(batch, lo, seq, enc_dim, params, num_heads, inputs, c_out):
    flops = 0
    trans = 0
    for rp, ap in zip(params["resnets"], params["attentions"]):
        cmid, k1 = rp["w1"].shape
        cout, k2 = rp["w2"].shape
        cin = k1 // 5
        flops += 2 * lo * (cmid * k1 + cout * k2)            # the two convs
        flops += 2 * 4 * lo * lo * (cin + cmid)              # shift matmuls
        if "skip" in rp:
            flops += 2 * lo * cout * cin
        trans += (cmid + cout) * lo                          # one exp per GELU
        d_model, dq = ap["aq"].shape
        flops += 2 * lo * d_model * dq + 2 * 2 * seq * enc_dim * d_model
        flops += 2 * 2 * lo * seq * d_model                  # scores + attn@V
        flops += 2 * lo * d_model * d_model                  # out projection
        trans += lo * seq * num_heads                        # softmax exps
    bytes_accessed = sum(math.prod(a.shape) * a.dtype.itemsize for a in inputs)
    bytes_accessed += batch * c_out * lo * 4
    return pl.CostEstimate(flops=batch * flops, transcendentals=batch * trans,
                           bytes_accessed=int(bytes_accessed))


@functools.partial(jax.jit, static_argnames=("num_heads",))
def cross_attn_down_block_forward(hidden_states, encoder_hidden_states, params,
                                  num_heads=2):
    """hidden_states: (B, C_in, L); encoder_hidden_states: (B, S, 128)."""
    B, C_in, L = hidden_states.shape
    S, enc_dim = encoder_hidden_states.shape[1], encoder_hidden_states.shape[2]
    Lo = (L + 2 * 3 - 8) // 2 + 1            # == L // 2 for even L

    # reflect-pad(3) + even/odd de-interleave (host side) so the stride-2
    # downsample conv becomes contiguous shifted sums inside the kernel.
    # TODO(synk): fold the pad/de-interleave into the kernel with strided
    # pl.ds loads to save one HBM round trip of the input.
    xp = jnp.pad(hidden_states, ((0, 0), (0, 0), (3, 3)), mode="reflect")
    xe = xp[:, :, 0::2]
    xo = xp[:, :, 1::2]
    Lh_pad = ((max(xe.shape[-1], xo.shape[-1]) + 127) // 128) * 128
    xe = jnp.pad(xe, ((0, 0), (0, 0), (0, Lh_pad - xe.shape[-1])))
    xo = jnp.pad(xo, ((0, 0), (0, 0), (0, Lh_pad - xo.shape[-1])))
    ehsT = jnp.transpose(encoder_hidden_states, (0, 2, 1))   # (B, 128, S), tiny

    inputs = [xe, xo, encoder_hidden_states, ehsT]
    in_specs = [pl.BlockSpec((1, C_in, Lh_pad), lambda b: (b, 0, 0)),
                pl.BlockSpec((1, C_in, Lh_pad), lambda b: (b, 0, 0)),
                pl.BlockSpec((1, S, enc_dim), lambda b: (b, 0, 0)),
                pl.BlockSpec((1, enc_dim, S), lambda b: (b, 0, 0))]

    has_skip = []
    for rp in params["resnets"]:
        has_skip.append("skip" in rp)
        for name in ("w1", "b1", "g1w", "g1b", "w2", "b2", "g2w", "g2b"):
            inputs.append(rp[name])
            in_specs.append(_whole_spec(rp[name].shape))
        if "skip" in rp:
            inputs.append(rp["skip"])
            in_specs.append(_whole_spec(rp["skip"].shape))
    for ap in params["attentions"]:
        for name in ("aq", "cq", "akT", "ck", "av", "cv", "wo", "bo"):
            inputs.append(ap[name])
            in_specs.append(_whole_spec(ap[name].shape))

    n_layers = len(params["resnets"])
    C_out = params["resnets"][-1]["w2"].shape[0]

    out = pl.pallas_call(
        functools.partial(_fused_block_kernel, n_layers, tuple(has_skip),
                          num_heads),
        out_shape=jax.ShapeDtypeStruct((B, C_out, Lo), jnp.float32),
        grid=(B,),
        in_specs=in_specs,
        out_specs=pl.BlockSpec((1, C_out, Lo), lambda b: (b, 0, 0)),
        compiler_params=pltpu.CompilerParams(
            dimension_semantics=("parallel",)),   # batch shards across TCs (v7x)
        cost_estimate=_cost_estimate(B, Lo, S, enc_dim, params, num_heads,
                                     inputs, C_out),
    )(*inputs)
    return out, (out,)


# ----------------------------------------------------------------------------
# parameters: torch-layout init + host-side fusion for the kernel
# ----------------------------------------------------------------------------
def init_torch_params(key, in_channels, mid_channels, out_channels, enc_dim=128):
    """Random parameters in the PyTorch module's native layout."""
    keys = iter(jax.random.split(key, 256))

    def nrm(shape, scale=0.1):
        return jax.random.normal(next(keys), shape, jnp.float32) * scale

    def resblock(cin, cmid, cout):
        p = {"conv1_w": nrm((cmid, cin, 5)), "conv1_b": nrm((cmid,)),
             "gn1_w": jnp.ones((cmid,), jnp.float32),
             "gn1_b": jnp.zeros((cmid,), jnp.float32),
             "conv2_w": nrm((cout, cmid, 5)), "conv2_b": nrm((cout,)),
             "gn2_w": jnp.ones((cout,), jnp.float32),
             "gn2_b": jnp.zeros((cout,), jnp.float32)}
        if cin != cout:
            p["skip_w"] = nrm((cout, cin, 1))          # conv_skip (1x1, no bias)
        return p

    def attention(qdim, kvdim, d):
        return {"pq_w": nrm((d, qdim)), "pq_b": nrm((d,)),
                "pk_w": nrm((d, kvdim)), "pk_b": nrm((d,)),
                "pv_w": nrm((d, kvdim)), "pv_b": nrm((d,)),
                "in_proj_w": nrm((3 * d, d)), "in_proj_b": nrm((3 * d,)),
                "out_w": nrm((d, d)), "out_b": nrm((d,))}

    return {
        "resnets": [resblock(in_channels, mid_channels, mid_channels),
                    resblock(mid_channels, mid_channels, mid_channels),
                    resblock(mid_channels, mid_channels, out_channels)],
        "attentions": [attention(mid_channels, enc_dim, mid_channels),
                       attention(mid_channels, enc_dim, mid_channels),
                       attention(out_channels, enc_dim, out_channels)],
    }


def prepare_params(tp, num_heads=2):
    """Host-side fusion of the torch-layout parameters:
    - conv weights flattened to im2col layout (C_out, 5*C_in),
    - CrossAttentionLayer projections folded into the MHA in_proj,
      with the 1/sqrt(head_dim) scale folded into the fused query weight."""

    def prep_res(rp):
        cmid = rp["conv1_w"].shape[0]
        cout = rp["conv2_w"].shape[0]
        p = {"w1": jnp.transpose(rp["conv1_w"], (0, 2, 1)).reshape(cmid, -1),
             "b1": rp["conv1_b"].reshape(-1, 1),
             "g1w": rp["gn1_w"].reshape(-1, 1),
             "g1b": rp["gn1_b"].reshape(-1, 1),
             "w2": jnp.transpose(rp["conv2_w"], (0, 2, 1)).reshape(cout, -1),
             "b2": rp["conv2_b"].reshape(-1, 1),
             "g2w": rp["gn2_w"].reshape(-1, 1),
             "g2b": rp["gn2_b"].reshape(-1, 1)}
        if "skip_w" in rp:
            p["skip"] = rp["skip_w"][:, :, 0]
        return p

    def prep_attn(ap):
        d = ap["out_w"].shape[0]
        scale = 1.0 / math.sqrt(d // num_heads)
        wq_i, wk_i, wv_i = jnp.split(ap["in_proj_w"], 3, axis=0)
        bq_i, bk_i, bv_i = jnp.split(ap["in_proj_b"], 3, axis=0)
        aq = scale * (wq_i @ ap["pq_w"])                     # (D, Dq)
        cq = scale * (wq_i @ ap["pq_b"] + bq_i)              # (D,)
        ak = wk_i @ ap["pk_w"]                               # (D, 128)
        ck = wk_i @ ap["pk_b"] + bk_i
        av = wv_i @ ap["pv_w"]                               # (D, 128)
        cv = wv_i @ ap["pv_b"] + bv_i
        return {"aq": aq, "cq": cq.reshape(-1, 1),
                "akT": ak.T, "ck": ck.reshape(1, -1),
                "av": av, "cv": cv.reshape(-1, 1),
                "wo": ap["out_w"], "bo": ap["out_b"].reshape(-1, 1)}

    return {"resnets": [prep_res(rp) for rp in tp["resnets"]],
            "attentions": [prep_attn(ap) for ap in tp["attentions"]]}


if __name__ == "__main__":
    key = jax.random.PRNGKey(0)
    k_x, k_e, k_p = jax.random.split(key, 3)

    B, C_in, L = 2, 16, 256              # L chosen so the downsampled length
    mid_channels, out_channels = 32, 32  # (128) is lane-dense for the output
    S, enc_dim = 8, 128                  # encoder_hidden_states: (B, S, 128)

    hidden_states = jax.random.normal(k_x, (B, C_in, L), jnp.float32)
    encoder_hidden_states = jax.random.normal(k_e, (B, S, enc_dim), jnp.float32)

    torch_params = init_torch_params(k_p, C_in, mid_channels, out_channels,
                                     enc_dim)
    params = prepare_params(torch_params, num_heads=2)

    out, states = cross_attn_down_block_forward(
        hidden_states, encoder_hidden_states, params)
    jax.block_until_ready(out)

    assert out.shape == (B, out_channels, L // 2), out.shape
    assert states[0].shape == out.shape
    print("KERNEL_OK")
</pallas_src>

<mosaic_0001>
module attributes {stable_mosaic.version = 11 : i64} {
  func.func @_fused_block_kernel(%arg0: i32, %arg1: memref<1x16x256xf32, #tpu.memory_space<vmem>>, %arg2: memref<1x16x256xf32, #tpu.memory_space<vmem>>, %arg3: memref<1x8x128xf32, #tpu.memory_space<vmem>>, %arg4: memref<1x128x8xf32, #tpu.memory_space<vmem>>, %arg5: memref<32x80xf32, #tpu.memory_space<vmem>>, %arg6: memref<32x1xf32, #tpu.memory_space<vmem>>, %arg7: memref<32x1xf32, #tpu.memory_space<vmem>>, %arg8: memref<32x1xf32, #tpu.memory_space<vmem>>, %arg9: memref<32x160xf32, #tpu.memory_space<vmem>>, %arg10: memref<32x1xf32, #tpu.memory_space<vmem>>, %arg11: memref<32x1xf32, #tpu.memory_space<vmem>>, %arg12: memref<32x1xf32, #tpu.memory_space<vmem>>, %arg13: memref<32x16xf32, #tpu.memory_space<vmem>>, %arg14: memref<32x160xf32, #tpu.memory_space<vmem>>, %arg15: memref<32x1xf32, #tpu.memory_space<vmem>>, %arg16: memref<32x1xf32, #tpu.memory_space<vmem>>, %arg17: memref<32x1xf32, #tpu.memory_space<vmem>>, %arg18: memref<32x160xf32, #tpu.memory_space<vmem>>, %arg19: memref<32x1xf32, #tpu.memory_space<vmem>>, %arg20: memref<32x1xf32, #tpu.memory_space<vmem>>, %arg21: memref<32x1xf32, #tpu.memory_space<vmem>>, %arg22: memref<32x160xf32, #tpu.memory_space<vmem>>, %arg23: memref<32x1xf32, #tpu.memory_space<vmem>>, %arg24: memref<32x1xf32, #tpu.memory_space<vmem>>, %arg25: memref<32x1xf32, #tpu.memory_space<vmem>>, %arg26: memref<32x160xf32, #tpu.memory_space<vmem>>, %arg27: memref<32x1xf32, #tpu.memory_space<vmem>>, %arg28: memref<32x1xf32, #tpu.memory_space<vmem>>, %arg29: memref<32x1xf32, #tpu.memory_space<vmem>>, %arg30: memref<32x32xf32, #tpu.memory_space<vmem>>, %arg31: memref<32x1xf32, #tpu.memory_space<vmem>>, %arg32: memref<128x32xf32, #tpu.memory_space<vmem>>, %arg33: memref<1x32xf32, #tpu.memory_space<vmem>>, %arg34: memref<32x128xf32, #tpu.memory_space<vmem>>, %arg35: memref<32x1xf32, #tpu.memory_space<vmem>>, %arg36: memref<32x32xf32, #tpu.memory_space<vmem>>, %arg37: memref<32x1xf32, #tpu.memory_space<vmem>>, %arg38: memref<32x32xf32, #tpu.memory_space<vmem>>, %arg39: memref<32x1xf32, #tpu.memory_space<vmem>>, %arg40: memref<128x32xf32, #tpu.memory_space<vmem>>, %arg41: memref<1x32xf32, #tpu.memory_space<vmem>>, %arg42: memref<32x128xf32, #tpu.memory_space<vmem>>, %arg43: memref<32x1xf32, #tpu.memory_space<vmem>>, %arg44: memref<32x32xf32, #tpu.memory_space<vmem>>, %arg45: memref<32x1xf32, #tpu.memory_space<vmem>>, %arg46: memref<32x32xf32, #tpu.memory_space<vmem>>, %arg47: memref<32x1xf32, #tpu.memory_space<vmem>>, %arg48: memref<128x32xf32, #tpu.memory_space<vmem>>, %arg49: memref<1x32xf32, #tpu.memory_space<vmem>>, %arg50: memref<32x128xf32, #tpu.memory_space<vmem>>, %arg51: memref<32x1xf32, #tpu.memory_space<vmem>>, %arg52: memref<32x32xf32, #tpu.memory_space<vmem>>, %arg53: memref<32x1xf32, #tpu.memory_space<vmem>>, %arg54: memref<1x32x128xf32, #tpu.memory_space<vmem>>) attributes {dimension_semantics = [#tpu.dimension_semantics<parallel>], iteration_bounds = array<i64: 2>, scalar_prefetch = 0 : i64, scratch_operands = 0 : i64, tpu.core_type = #tpu.core_type<tc>, window_params = [{transform_indices = @transform_0, window_bounds = array<i64: 1, 16, 256>}, {transform_indices = @transform_1, window_bounds = array<i64: 1, 16, 256>}, {transform_indices = @transform_2, window_bounds = array<i64: 1, 8, 128>}, {transform_indices = @transform_3, window_bounds = array<i64: 1, 128, 8>}, {pipeline_mode = #tpu.pipeline_mode<synchronous>, transform_indices = @transform_4, window_bounds = array<i64: 32, 80>}, {pipeline_mode = #tpu.pipeline_mode<synchronous>, transform_indices = @transform_5, window_bounds = array<i64: 32, 1>}, {pipeline_mode = #tpu.pipeline_mode<synchronous>, transform_indices = @transform_6, window_bounds = array<i64: 32, 1>}, {pipeline_mode = #tpu.pipeline_mode<synchronous>, transform_indices = @transform_7, window_bounds = array<i64: 32, 1>}, {pipeline_mode = #tpu.pipeline_mode<synchronous>, transform_indices = @transform_8, window_bounds = array<i64: 32, 160>}, {pipeline_mode = #tpu.pipeline_mode<synchronous>, transform_indices = @transform_9, window_bounds = array<i64: 32, 1>}, {pipeline_mode = #tpu.pipeline_mode<synchronous>, transform_indices = @transform_10, window_bounds = array<i64: 32, 1>}, {pipeline_mode = #tpu.pipeline_mode<synchronous>, transform_indices = @transform_11, window_bounds = array<i64: 32, 1>}, {pipeline_mode = #tpu.pipeline_mode<synchronous>, transform_indices = @transform_12, window_bounds = array<i64: 32, 16>}, {pipeline_mode = #tpu.pipeline_mode<synchronous>, transform_indices = @transform_13, window_bounds = array<i64: 32, 160>}, {pipeline_mode = #tpu.pipeline_mode<synchronous>, transform_indices = @transform_14, window_bounds = array<i64: 32, 1>}, {pipeline_mode = #tpu.pipeline_mode<synchronous>, transform_indices = @transform_15, window_bounds = array<i64: 32, 1>}, {pipeline_mode = #tpu.pipeline_mode<synchronous>, transform_indices = @transform_16, window_bounds = array<i64: 32, 1>}, {pipeline_mode = #tpu.pipeline_mode<synchronous>, transform_indices = @transform_17, window_bounds = array<i64: 32, 160>}, {pipeline_mode = #tpu.pipeline_mode<synchronous>, transform_indices = @transform_18, window_bounds = array<i64: 32, 1>}, {pipeline_mode = #tpu.pipeline_mode<synchronous>, transform_indices = @transform_19, window_bounds = array<i64: 32, 1>}, {pipeline_mode = #tpu.pipeline_mode<synchronous>, transform_indices = @transform_20, window_bounds = array<i64: 32, 1>}, {pipeline_mode = #tpu.pipeline_mode<synchronous>, transform_indices = @transform_21, window_bounds = array<i64: 32, 160>}, {pipeline_mode = #tpu.pipeline_mode<synchronous>, transform_indices = @transform_22, window_bounds = array<i64: 32, 1>}, {pipeline_mode = #tpu.pipeline_mode<synchronous>, transform_indices = @transform_23, window_bounds = array<i64: 32, 1>}, {pipeline_mode = #tpu.pipeline_mode<synchronous>, transform_indices = @transform_24, window_bounds = array<i64: 32, 1>}, {pipeline_mode = #tpu.pipeline_mode<synchronous>, transform_indices = @transform_25, window_bounds = array<i64: 32, 160>}, {pipeline_mode = #tpu.pipeline_mode<synchronous>, transform_indices = @transform_26, window_bounds = array<i64: 32, 1>}, {pipeline_mode = #tpu.pipeline_mode<synchronous>, transform_indices = @transform_27, window_bounds = array<i64: 32, 1>}, {pipeline_mode = #tpu.pipeline_mode<synchronous>, transform_indices = @transform_28, window_bounds = array<i64: 32, 1>}, {pipeline_mode = #tpu.pipeline_mode<synchronous>, transform_indices = @transform_29, window_bounds = array<i64: 32, 32>}, {pipeline_mode = #tpu.pipeline_mode<synchronous>, transform_indices = @transform_30, window_bounds = array<i64: 32, 1>}, {pipeline_mode = #tpu.pipeline_mode<synchronous>, transform_indices = @transform_31, window_bounds = array<i64: 128, 32>}, {pipeline_mode = #tpu.pipeline_mode<synchronous>, transform_indices = @transform_32, window_bounds = array<i64: 1, 32>}, {pipeline_mode = #tpu.pipeline_mode<synchronous>, transform_indices = @transform_33, window_bounds = array<i64: 32, 128>}, {pipeline_mode = #tpu.pipeline_mode<synchronous>, transform_indices = @transform_34, window_bounds = array<i64: 32, 1>}, {pipeline_mode = #tpu.pipeline_mode<synchronous>, transform_indices = @transform_35, window_bounds = array<i64: 32, 32>}, {pipeline_mode = #tpu.pipeline_mode<synchronous>, transform_indices = @transform_36, window_bounds = array<i64: 32, 1>}, {pipeline_mode = #tpu.pipeline_mode<synchronous>, transform_indices = @transform_37, window_bounds = array<i64: 32, 32>}, {pipeline_mode = #tpu.pipeline_mode<synchronous>, transform_indices = @transform_38, window_bounds = array<i64: 32, 1>}, {pipeline_mode = #tpu.pipeline_mode<synchronous>, transform_indices = @transform_39, window_bounds = array<i64: 128, 32>}, {pipeline_mode = #tpu.pipeline_mode<synchronous>, transform_indices = @transform_40, window_bounds = array<i64: 1, 32>}, {pipeline_mode = #tpu.pipeline_mode<synchronous>, transform_indices = @transform_41, window_bounds = array<i64: 32, 128>}, {pipeline_mode = #tpu.pipeline_mode<synchronous>, transform_indices = @transform_42, window_bounds = array<i64: 32, 1>}, {pipeline_mode = #tpu.pipeline_mode<synchronous>, transform_indices = @transform_43, window_bounds = array<i64: 32, 32>}, {pipeline_mode = #tpu.pipeline_mode<synchronous>, transform_indices = @transform_44, window_bounds = array<i64: 32, 1>}, {pipeline_mode = #tpu.pipeline_mode<synchronous>, transform_indices = @transform_45, window_bounds = array<i64: 32, 32>}, {pipeline_mode = #tpu.pipeline_mode<synchronous>, transform_indices = @transform_46, window_bounds = array<i64: 32, 1>}, {pipeline_mode = #tpu.pipeline_mode<synchronous>, transform_indices = @transform_47, window_bounds = array<i64: 128, 32>}, {pipeline_mode = #tpu.pipeline_mode<synchronous>, transform_indices = @transform_48, window_bounds = array<i64: 1, 32>}, {pipeline_mode = #tpu.pipeline_mode<synchronous>, transform_indices = @transform_49, window_bounds = array<i64: 32, 128>}, {pipeline_mode = #tpu.pipeline_mode<synchronous>, transform_indices = @transform_50, window_bounds = array<i64: 32, 1>}, {pipeline_mode = #tpu.pipeline_mode<synchronous>, transform_indices = @transform_51, window_bounds = array<i64: 32, 32>}, {pipeline_mode = #tpu.pipeline_mode<synchronous>, transform_indices = @transform_52, window_bounds = array<i64: 32, 1>}, {transform_indices = @transform_53, window_bounds = array<i64: 1, 32, 128>}]} {
    %0 = tpu.iota {dimensions = array<i32: 0>} : vector<128x128xi32>
    %1 = tpu.iota {dimensions = array<i32: 1>} : vector<128x128xi32>
    %2 = arith.subi %1, %0 : vector<128x128xi32>
    %c-2_i32 = arith.constant -2 : i32
    %3 = vector.broadcast %c-2_i32 : i32 to vector<128x128xi32>
    %4 = arith.cmpi eq, %2, %3 : vector<128x128xi32>
    %5 = arith.extui %4 : vector<128x128xi1> to vector<128x128xi32>
    %6 = arith.sitofp %5 : vector<128x128xi32> to vector<128x128xf32>
    %7 = arith.subi %1, %0 : vector<128x128xi32>
    %c-1_i32 = arith.constant -1 : i32
    %8 = vector.broadcast %c-1_i32 : i32 to vector<128x128xi32>
    %9 = arith.cmpi eq, %7, %8 : vector<128x128xi32>
    %10 = arith.extui %9 : vector<128x128xi1> to vector<128x128xi32>
    %11 = arith.sitofp %10 : vector<128x128xi32> to vector<128x128xf32>
    %12 = arith.subi %1, %0 : vector<128x128xi32>
    %c1_i32 = arith.constant 1 : i32
    %13 = vector.broadcast %c1_i32 : i32 to vector<128x128xi32>
    %14 = arith.cmpi eq, %12, %13 : vector<128x128xi32>
    %15 = arith.extui %14 : vector<128x128xi1> to vector<128x128xi32>
    %16 = arith.sitofp %15 : vector<128x128xi32> to vector<128x128xf32>
    %17 = arith.subi %1, %0 : vector<128x128xi32>
    %c2_i32 = arith.constant 2 : i32
    %18 = vector.broadcast %c2_i32 : i32 to vector<128x128xi32>
    %19 = arith.cmpi eq, %17, %18 : vector<128x128xi32>
    %20 = arith.extui %19 : vector<128x128xi1> to vector<128x128xi32>
    %21 = arith.sitofp %20 : vector<128x128xi32> to vector<128x128xf32>
    %c0 = arith.constant 0 : index
    %c0_0 = arith.constant 0 : index
    %c0_1 = arith.constant 0 : index
    %22 = vector.load %arg1[%c0, %c0_0, %c0_1] : memref<1x16x256xf32, #tpu.memory_space<vmem>>, vector<1x16x256xf32>
    %23 = vector.shape_cast %22 : vector<1x16x256xf32> to vector<16x256xf32>
    %c0_2 = arith.constant 0 : index
    %c0_3 = arith.constant 0 : index
    %c0_4 = arith.constant 0 : index
    %24 = vector.load %arg2[%c0_2, %c0_3, %c0_4] : memref<1x16x256xf32, #tpu.memory_space<vmem>>, vector<1x16x256xf32>
    %25 = vector.shape_cast %24 : vector<1x16x256xf32> to vector<16x256xf32>
    %cst = arith.constant 0.000000e+00 : f32
    %26 = vector.broadcast %cst : f32 to vector<16x128xf32>
    %27 = vector.extract_strided_slice %23 {offsets = [0, 0], sizes = [16, 128], strides = [1, 1]} : vector<16x256xf32> to vector<16x128xf32>
    %cst_5 = arith.constant -0.01171875 : f32
    %28 = vector.broadcast %cst_5 : f32 to vector<16x128xf32>
    %29 = arith.mulf %28, %27 : vector<16x128xf32>
    %30 = arith.addf %26, %29 : vector<16x128xf32>
    %31 = vector.extract_strided_slice %25 {offsets = [0, 0], sizes = [16, 128], strides = [1, 1]} : vector<16x256xf32> to vector<16x128xf32>
    %cst_6 = arith.constant -0.03515625 : f32
    %32 = vector.broadcast %cst_6 : f32 to vector<16x128xf32>
    %33 = arith.mulf %32, %31 : vector<16x128xf32>
    %34 = arith.addf %30, %33 : vector<16x128xf32>
    %35 = vector.extract_strided_slice %23 {offsets = [0, 1], sizes = [16, 128], strides = [1, 1]} : vector<16x256xf32> to vector<16x128xf32>
    %cst_7 = arith.constant 0.11328125 : f32
    %36 = vector.broadcast %cst_7 : f32 to vector<16x128xf32>
    %37 = arith.mulf %36, %35 : vector<16x128xf32>
    %38 = arith.addf %34, %37 : vector<16x128xf32>
    %39 = vector.extract_strided_slice %25 {offsets = [0, 1], sizes = [16, 128], strides = [1, 1]} : vector<16x256xf32> to vector<16x128xf32>
    %cst_8 = arith.constant 0.43359375 : f32
    %40 = vector.broadcast %cst_8 : f32 to vector<16x128xf32>
    %41 = arith.mulf %40, %39 : vector<16x128xf32>
    %42 = arith.addf %38, %41 : vector<16x128xf32>
    %43 = vector.extract_strided_slice %23 {offsets = [0, 2], sizes = [16, 128], strides = [1, 1]} : vector<16x256xf32> to vector<16x128xf32>
    %cst_9 = arith.constant 0.43359375 : f32
    %44 = vector.broadcast %cst_9 : f32 to vector<16x128xf32>
    %45 = arith.mulf %44, %43 : vector<16x128xf32>
    %46 = arith.addf %42, %45 : vector<16x128xf32>
    %47 = vector.extract_strided_slice %25 {offsets = [0, 2], sizes = [16, 128], strides = [1, 1]} : vector<16x256xf32> to vector<16x128xf32>
    %cst_10 = arith.constant 0.11328125 : f32
    %48 = vector.broadcast %cst_10 : f32 to vector<16x128xf32>
    %49 = arith.mulf %48, %47 : vector<16x128xf32>
    %50 = arith.addf %46, %49 : vector<16x128xf32>
    %51 = vector.extract_strided_slice %23 {offsets = [0, 3], sizes = [16, 128], strides = [1, 1]} : vector<16x256xf32> to vector<16x128xf32>
    %cst_11 = arith.constant -0.03515625 : f32
    %52 = vector.broadcast %cst_11 : f32 to vector<16x128xf32>
    %53 = arith.mulf %52, %51 : vector<16x128xf32>
    %54 = arith.addf %50, %53 : vector<16x128xf32>
    %55 = vector.extract_strided_slice %25 {offsets = [0, 3], sizes = [16, 128], strides = [1, 1]} : vector<16x256xf32> to vector<16x128xf32>
    %cst_12 = arith.constant -0.01171875 : f32
    %56 = vector.broadcast %cst_12 : f32 to vector<16x128xf32>
    %57 = arith.mulf %56, %55 : vector<16x128xf32>
    %58 = arith.addf %54, %57 : vector<16x128xf32>
    %c0_13 = arith.constant 0 : index
    %c0_14 = arith.constant 0 : index
    %c0_15 = arith.constant 0 : index
    %59 = vector.load %arg3[%c0_13, %c0_14, %c0_15] : memref<1x8x128xf32, #tpu.memory_space<vmem>>, vector<1x8x128xf32>
    %60 = vector.shape_cast %59 : vector<1x8x128xf32> to vector<8x128xf32>
    %c0_16 = arith.constant 0 : index
    %c0_17 = arith.constant 0 : index
    %c0_18 = arith.constant 0 : index
    %61 = vector.load %arg4[%c0_16, %c0_17, %c0_18] : memref<1x128x8xf32, #tpu.memory_space<vmem>>, vector<1x128x8xf32>
    %62 = vector.shape_cast %61 : vector<1x128x8xf32> to vector<128x8xf32>
    %c0_19 = arith.constant 0 : index
    %c0_20 = arith.constant 0 : index
    %63 = vector.load %arg5[%c0_19, %c0_20] : memref<32x80xf32, #tpu.memory_space<vmem>>, vector<32x80xf32>
    %c0_21 = arith.constant 0 : index
    %c0_22 = arith.constant 0 : index
    %64 = vector.load %arg6[%c0_21, %c0_22] : memref<32x1xf32, #tpu.memory_space<vmem>>, vector<32x1xf32>
    %cst_23 = arith.constant dense<0.000000e+00> : vector<16x128xf32>
    %65 = tpu.matmul %58, %21, %cst_23 {dimension_numbers = #tpu.dot_dimension_numbers<[1], [0], [0], [1], [0, 0, 1, 1], [], []>} : vector<16x128xf32>, vector<128x128xf32>, vector<16x128xf32> -> vector<16x128xf32>
    %cst_24 = arith.constant dense<0.000000e+00> : vector<16x128xf32>
    %66 = tpu.matmul %58, %16, %cst_24 {dimension_numbers = #tpu.dot_dimension_numbers<[1], [0], [0], [1], [0, 0, 1, 1], [], []>} : vector<16x128xf32>, vector<128x128xf32>, vector<16x128xf32> -> vector<16x128xf32>
    %cst_25 = arith.constant dense<0.000000e+00> : vector<16x128xf32>
    %67 = tpu.matmul %58, %11, %cst_25 {dimension_numbers = #tpu.dot_dimension_numbers<[1], [0], [0], [1], [0, 0, 1, 1], [], []>} : vector<16x128xf32>, vector<128x128xf32>, vector<16x128xf32> -> vector<16x128xf32>
    %cst_26 = arith.constant dense<0.000000e+00> : vector<16x128xf32>
    %68 = tpu.matmul %58, %6, %cst_26 {dimension_numbers = #tpu.dot_dimension_numbers<[1], [0], [0], [1], [0, 0, 1, 1], [], []>} : vector<16x128xf32>, vector<128x128xf32>, vector<16x128xf32> -> vector<16x128xf32>
    %69 = tpu.concatenate %65, %66, %58, %67, %68 in 0 : vector<16x128xf32>, vector<16x128xf32>, vector<16x128xf32>, vector<16x128xf32>, vector<16x128xf32> -> vector<80x128xf32>
    %cst_27 = arith.constant dense<0.000000e+00> : vector<32x128xf32>
    %70 = tpu.matmul %63, %69, %cst_27 {dimension_numbers = #tpu.dot_dimension_numbers<[1], [0], [0], [1], [0, 0, 1, 1], [], []>} : vector<32x80xf32>, vector<80x128xf32>, vector<32x128xf32> -> vector<32x128xf32>
    %71 = vector.broadcast %64 : vector<32x1xf32> to vector<32x128xf32>
    %72 = arith.addf %70, %71 : vector<32x128xf32>
    %c0_28 = arith.constant 0 : index
    %c0_29 = arith.constant 0 : index
    %73 = vector.load %arg7[%c0_28, %c0_29] : memref<32x1xf32, #tpu.memory_space<vmem>>, vector<32x1xf32>
    %c0_30 = arith.constant 0 : index
    %c0_31 = arith.constant 0 : index
    %74 = vector.load %arg8[%c0_30, %c0_31] : memref<32x1xf32, #tpu.memory_space<vmem>>, vector<32x1xf32>
    %75 = vector.shape_cast %72 : vector<32x128xf32> to vector<1x32x128xf32>
    %cst_32 = arith.constant dense<0.000000e+00> : vector<1xf32>
    %76 = vector.multi_reduction <add>, %75, %cst_32 [1, 2] : vector<1x32x128xf32> to vector<1xf32>
    %77 = vector.shape_cast %76 : vector<1xf32> to vector<1x1x1xf32>
    %78 = vector.extract %77[0, 0, 0] : f32 from vector<1x1x1xf32>
    %cst_33 = arith.constant 4.096000e+03 : f32
    %79 = arith.divf %78, %cst_33 : f32
    %80 = vector.broadcast %79 : f32 to vector<32x128xf32>
    %81 = arith.subf %72, %80 : vector<32x128xf32>
    %82 = arith.mulf %81, %81 : vector<32x128xf32>
    %83 = vector.shape_cast %82 : vector<32x128xf32> to vector<1x32x128xf32>
    %cst_34 = arith.constant dense<0.000000e+00> : vector<1xf32>
    %84 = vector.multi_reduction <add>, %83, %cst_34 [1, 2] : vector<1x32x128xf32> to vector<1xf32>
    %85 = vector.shape_cast %84 : vector<1xf32> to vector<1x1x1xf32>
    %86 = vector.extract %85[0, 0, 0] : f32 from vector<1x1x1xf32>
    %cst_35 = arith.constant 4.096000e+03 : f32
    %87 = arith.divf %86, %cst_35 : f32
    %88 = vector.broadcast %79 : f32 to vector<32x128xf32>
    %89 = arith.subf %72, %88 : vector<32x128xf32>
    %cst_36 = arith.constant 9.99999974E-6 : f32
    %90 = arith.addf %87, %cst_36 : f32
    %91 = math.rsqrt %90 : f32
    %92 = vector.broadcast %91 : f32 to vector<32x128xf32>
    %93 = arith.mulf %89, %92 : vector<32x128xf32>
    %94 = vector.broadcast %73 : vector<32x1xf32> to vector<32x128xf32>
    %95 = arith.mulf %93, %94 : vector<32x128xf32>
    %96 = vector.broadcast %74 : vector<32x1xf32> to vector<32x128xf32>
    %97 = arith.addf %95, %96 : vector<32x128xf32>
    %cst_37 = arith.constant 5.000000e-01 : f32
    %98 = vector.broadcast %cst_37 : f32 to vector<32x128xf32>
    %99 = arith.mulf %98, %97 : vector<32x128xf32>
    %cst_38 = arith.constant 0.707106769 : f32
    %100 = vector.broadcast %cst_38 : f32 to vector<32x128xf32>
    %101 = arith.mulf %97, %100 : vector<32x128xf32>
    %cst_39 = arith.constant 0.000000e+00 : f32
    %102 = vector.broadcast %cst_39 : f32 to vector<32x128xf32>
    %103 = arith.cmpf oge, %101, %102 : vector<32x128xf32>
    %cst_40 = arith.constant 1.000000e+00 : f32
    %cst_41 = arith.constant -1.000000e+00 : f32
    %104 = vector.broadcast %cst_40 : f32 to vector<32x128xf32>
    %105 = vector.broadcast %cst_41 : f32 to vector<32x128xf32>
    %106 = arith.select %103, %104, %105 : vector<32x128xi1>, vector<32x128xf32>
    %107 = math.absf %101 : vector<32x128xf32>
    %cst_42 = arith.constant 0.327591091 : f32
    %108 = vector.broadcast %cst_42 : f32 to vector<32x128xf32>
    %109 = arith.mulf %108, %107 : vector<32x128xf32>
    %cst_43 = arith.constant 1.000000e+00 : f32
    %110 = vector.broadcast %cst_43 : f32 to vector<32x128xf32>
    %111 = arith.addf %110, %109 : vector<32x128xf32>
    %cst_44 = arith.constant 1.000000e+00 : f32
    %112 = vector.broadcast %cst_44 : f32 to vector<32x128xf32>
    %113 = arith.divf %112, %111 : vector<32x128xf32>
    %cst_45 = arith.constant 1.06140542 : f32
    %114 = vector.broadcast %cst_45 : f32 to vector<32x128xf32>
    %115 = arith.mulf %114, %113 : vector<32x128xf32>
    %cst_46 = arith.constant -1.45315206 : f32
    %116 = vector.broadcast %cst_46 : f32 to vector<32x128xf32>
    %117 = arith.addf %115, %116 : vector<32x128xf32>
    %118 = arith.mulf %117, %113 : vector<32x128xf32>
    %cst_47 = arith.constant 1.42141378 : f32
    %119 = vector.broadcast %cst_47 : f32 to vector<32x128xf32>
    %120 = arith.addf %118, %119 : vector<32x128xf32>
    %121 = arith.mulf %120, %113 : vector<32x128xf32>
    %cst_48 = arith.constant -0.284496725 : f32
    %122 = vector.broadcast %cst_48 : f32 to vector<32x128xf32>
    %123 = arith.addf %121, %122 : vector<32x128xf32>
    %124 = arith.mulf %123, %113 : vector<32x128xf32>
    %cst_49 = arith.constant 0.254829586 : f32
    %125 = vector.broadcast %cst_49 : f32 to vector<32x128xf32>
    %126 = arith.addf %124, %125 : vector<32x128xf32>
    %127 = arith.mulf %126, %113 : vector<32x128xf32>
    %cst_50 = arith.constant 0.000000e+00 : f32
    %128 = vector.broadcast %cst_50 : f32 to vector<32x128xf32>
    %129 = arith.subf %128, %107 : vector<32x128xf32>
    %130 = arith.mulf %129, %107 : vector<32x128xf32>
    %131 = math.exp %130 : vector<32x128xf32>
    %132 = arith.mulf %127, %131 : vector<32x128xf32>
    %cst_51 = arith.constant 1.000000e+00 : f32
    %133 = vector.broadcast %cst_51 : f32 to vector<32x128xf32>
    %134 = arith.subf %133, %132 : vector<32x128xf32>
    %135 = arith.mulf %106, %134 : vector<32x128xf32>
    %cst_52 = arith.constant 1.000000e+00 : f32
    %136 = vector.broadcast %cst_52 : f32 to vector<32x128xf32>
    %137 = arith.addf %136, %135 : vector<32x128xf32>
    %138 = arith.mulf %99, %137 : vector<32x128xf32>
    %c0_53 = arith.constant 0 : index
    %c0_54 = arith.constant 0 : index
    %139 = vector.load %arg9[%c0_53, %c0_54] : memref<32x160xf32, #tpu.memory_space<vmem>>, vector<32x160xf32>
    %c0_55 = arith.constant 0 : index
    %c0_56 = arith.constant 0 : index
    %140 = vector.load %arg10[%c0_55, %c0_56] : memref<32x1xf32, #tpu.memory_space<vmem>>, vector<32x1xf32>
    %cst_57 = arith.constant dense<0.000000e+00> : vector<32x128xf32>
    %141 = tpu.matmul %138, %21, %cst_57 {dimension_numbers = #tpu.dot_dimension_numbers<[1], [0], [0], [1], [0, 0, 1, 1], [], []>} : vector<32x128xf32>, vector<128x128xf32>, vector<32x128xf32> -> vector<32x128xf32>
    %cst_58 = arith.constant dense<0.000000e+00> : vector<32x128xf32>
    %142 = tpu.matmul %138, %16, %cst_58 {dimension_numbers = #tpu.dot_dimension_numbers<[1], [0], [0], [1], [0, 0, 1, 1], [], []>} : vector<32x128xf32>, vector<128x128xf32>, vector<32x128xf32> -> vector<32x128xf32>
    %cst_59 = arith.constant dense<0.000000e+00> : vector<32x128xf32>
    %143 = tpu.matmul %138, %11, %cst_59 {dimension_numbers = #tpu.dot_dimension_numbers<[1], [0], [0], [1], [0, 0, 1, 1], [], []>} : vector<32x128xf32>, vector<128x128xf32>, vector<32x128xf32> -> vector<32x128xf32>
    %cst_60 = arith.constant dense<0.000000e+00> : vector<32x128xf32>
    %144 = tpu.matmul %138, %6, %cst_60 {dimension_numbers = #tpu.dot_dimension_numbers<[1], [0], [0], [1], [0, 0, 1, 1], [], []>} : vector<32x128xf32>, vector<128x128xf32>, vector<32x128xf32> -> vector<32x128xf32>
    %145 = tpu.concatenate %141, %142, %138, %143, %144 in 0 : vector<32x128xf32>, vector<32x128xf32>, vector<32x128xf32>, vector<32x128xf32>, vector<32x128xf32> -> vector<160x128xf32>
    %cst_61 = arith.constant dense<0.000000e+00> : vector<32x128xf32>
    %146 = tpu.matmul %139, %145, %cst_61 {dimension_numbers = #tpu.dot_dimension_numbers<[1], [0], [0], [1], [0, 0, 1, 1], [], []>} : vector<32x160xf32>, vector<160x128xf32>, vector<32x128xf32> -> vector<32x128xf32>
    %147 = vector.broadcast %140 : vector<32x1xf32> to vector<32x128xf32>
    %148 = arith.addf %146, %147 : vector<32x128xf32>
    %c0_62 = arith.constant 0 : index
    %c0_63 = arith.constant 0 : index
    %149 = vector.load %arg11[%c0_62, %c0_63] : memref<32x1xf32, #tpu.memory_space<vmem>>, vector<32x1xf32>
    %c0_64 = arith.constant 0 : index
    %c0_65 = arith.constant 0 : index
    %150 = vector.load %arg12[%c0_64, %c0_65] : memref<32x1xf32, #tpu.memory_space<vmem>>, vector<32x1xf32>
    %151 = vector.shape_cast %148 : vector<32x128xf32> to vector<1x32x128xf32>
    %cst_66 = arith.constant dense<0.000000e+00> : vector<1xf32>
    %152 = vector.multi_reduction <add>, %151, %cst_66 [1, 2] : vector<1x32x128xf32> to vector<1xf32>
    %153 = vector.shape_cast %152 : vector<1xf32> to vector<1x1x1xf32>
    %154 = vector.extract %153[0, 0, 0] : f32 from vector<1x1x1xf32>
    %cst_67 = arith.constant 4.096000e+03 : f32
    %155 = arith.divf %154, %cst_67 : f32
    %156 = vector.broadcast %155 : f32 to vector<32x128xf32>
    %157 = arith.subf %148, %156 : vector<32x128xf32>
    %158 = arith.mulf %157, %157 : vector<32x128xf32>
    %159 = vector.shape_cast %158 : vector<32x128xf32> to vector<1x32x128xf32>
    %cst_68 = arith.constant dense<0.000000e+00> : vector<1xf32>
    %160 = vector.multi_reduction <add>, %159, %cst_68 [1, 2] : vector<1x32x128xf32> to vector<1xf32>
    %161 = vector.shape_cast %160 : vector<1xf32> to vector<1x1x1xf32>
    %162 = vector.extract %161[0, 0, 0] : f32 from vector<1x1x1xf32>
    %cst_69 = arith.constant 4.096000e+03 : f32
    %163 = arith.divf %162, %cst_69 : f32
    %164 = vector.broadcast %155 : f32 to vector<32x128xf32>
    %165 = arith.subf %148, %164 : vector<32x128xf32>
    %cst_70 = arith.constant 9.99999974E-6 : f32
    %166 = arith.addf %163, %cst_70 : f32
    %167 = math.rsqrt %166 : f32
    %168 = vector.broadcast %167 : f32 to vector<32x128xf32>
    %169 = arith.mulf %165, %168 : vector<32x128xf32>
    %170 = vector.broadcast %149 : vector<32x1xf32> to vector<32x128xf32>
    %171 = arith.mulf %169, %170 : vector<32x128xf32>
    %172 = vector.broadcast %150 : vector<32x1xf32> to vector<32x128xf32>
    %173 = arith.addf %171, %172 : vector<32x128xf32>
    %cst_71 = arith.constant 5.000000e-01 : f32
    %174 = vector.broadcast %cst_71 : f32 to vector<32x128xf32>
    %175 = arith.mulf %174, %173 : vector<32x128xf32>
    %cst_72 = arith.constant 0.707106769 : f32
    %176 = vector.broadcast %cst_72 : f32 to vector<32x128xf32>
    %177 = arith.mulf %173, %176 : vector<32x128xf32>
    %cst_73 = arith.constant 0.000000e+00 : f32
    %178 = vector.broadcast %cst_73 : f32 to vector<32x128xf32>
    %179 = arith.cmpf oge, %177, %178 : vector<32x128xf32>
    %cst_74 = arith.constant 1.000000e+00 : f32
    %cst_75 = arith.constant -1.000000e+00 : f32
    %180 = vector.broadcast %cst_74 : f32 to vector<32x128xf32>
    %181 = vector.broadcast %cst_75 : f32 to vector<32x128xf32>
    %182 = arith.select %179, %180, %181 : vector<32x128xi1>, vector<32x128xf32>
    %183 = math.absf %177 : vector<32x128xf32>
    %cst_76 = arith.constant 0.327591091 : f32
    %184 = vector.broadcast %cst_76 : f32 to vector<32x128xf32>
    %185 = arith.mulf %184, %183 : vector<32x128xf32>
    %cst_77 = arith.constant 1.000000e+00 : f32
    %186 = vector.broadcast %cst_77 : f32 to vector<32x128xf32>
    %187 = arith.addf %186, %185 : vector<32x128xf32>
    %cst_78 = arith.constant 1.000000e+00 : f32
    %188 = vector.broadcast %cst_78 : f32 to vector<32x128xf32>
    %189 = arith.divf %188, %187 : vector<32x128xf32>
    %cst_79 = arith.constant 1.06140542 : f32
    %190 = vector.broadcast %cst_79 : f32 to vector<32x128xf32>
    %191 = arith.mulf %190, %189 : vector<32x128xf32>
    %cst_80 = arith.constant -1.45315206 : f32
    %192 = vector.broadcast %cst_80 : f32 to vector<32x128xf32>
    %193 = arith.addf %191, %192 : vector<32x128xf32>
    %194 = arith.mulf %193, %189 : vector<32x128xf32>
    %cst_81 = arith.constant 1.42141378 : f32
    %195 = vector.broadcast %cst_81 : f32 to vector<32x128xf32>
    %196 = arith.addf %194, %195 : vector<32x128xf32>
    %197 = arith.mulf %196, %189 : vector<32x128xf32>
    %cst_82 = arith.constant -0.284496725 : f32
    %198 = vector.broadcast %cst_82 : f32 to vector<32x128xf32>
    %199 = arith.addf %197, %198 : vector<32x128xf32>
    %200 = arith.mulf %199, %189 : vector<32x128xf32>
    %cst_83 = arith.constant 0.254829586 : f32
    %201 = vector.broadcast %cst_83 : f32 to vector<32x128xf32>
    %202 = arith.addf %200, %201 : vector<32x128xf32>
    %203 = arith.mulf %202, %189 : vector<32x128xf32>
    %cst_84 = arith.constant 0.000000e+00 : f32
    %204 = vector.broadcast %cst_84 : f32 to vector<32x128xf32>
    %205 = arith.subf %204, %183 : vector<32x128xf32>
    %206 = arith.mulf %205, %183 : vector<32x128xf32>
    %207 = math.exp %206 : vector<32x128xf32>
    %208 = arith.mulf %203, %207 : vector<32x128xf32>
    %cst_85 = arith.constant 1.000000e+00 : f32
    %209 = vector.broadcast %cst_85 : f32 to vector<32x128xf32>
    %210 = arith.subf %209, %208 : vector<32x128xf32>
    %211 = arith.mulf %182, %210 : vector<32x128xf32>
    %cst_86 = arith.constant 1.000000e+00 : f32
    %212 = vector.broadcast %cst_86 : f32 to vector<32x128xf32>
    %213 = arith.addf %212, %211 : vector<32x128xf32>
    %214 = arith.mulf %175, %213 : vector<32x128xf32>
    %c0_87 = arith.constant 0 : index
    %c0_88 = arith.constant 0 : index
    %215 = vector.load %arg13[%c0_87, %c0_88] : memref<32x16xf32, #tpu.memory_space<vmem>>, vector<32x16xf32>
    %cst_89 = arith.constant dense<0.000000e+00> : vector<32x128xf32>
    %216 = tpu.matmul %215, %58, %cst_89 {dimension_numbers = #tpu.dot_dimension_numbers<[1], [0], [0], [1], [0, 0, 1, 1], [], []>} : vector<32x16xf32>, vector<16x128xf32>, vector<32x128xf32> -> vector<32x128xf32>
    %217 = arith.addf %214, %216 : vector<32x128xf32>
    %c0_90 = arith.constant 0 : index
    %c0_91 = arith.constant 0 : index
    %218 = vector.load %arg30[%c0_90, %c0_91] : memref<32x32xf32, #tpu.memory_space<vmem>>, vector<32x32xf32>
    %cst_92 = arith.constant dense<0.000000e+00> : vector<32x128xf32>
    %219 = tpu.matmul %218, %217, %cst_92 {dimension_numbers = #tpu.dot_dimension_numbers<[1], [0], [0], [1], [0, 0, 1, 1], [], []>} : vector<32x32xf32>, vector<32x128xf32>, vector<32x128xf32> -> vector<32x128xf32>
    %c0_93 = arith.constant 0 : index
    %c0_94 = arith.constant 0 : index
    %220 = vector.load %arg31[%c0_93, %c0_94] : memref<32x1xf32, #tpu.memory_space<vmem>>, vector<32x1xf32>
    %221 = vector.broadcast %220 : vector<32x1xf32> to vector<32x128xf32>
    %222 = arith.addf %219, %221 : vector<32x128xf32>
    %c0_95 = arith.constant 0 : index
    %c0_96 = arith.constant 0 : index
    %223 = vector.load %arg32[%c0_95, %c0_96] : memref<128x32xf32, #tpu.memory_space<vmem>>, vector<128x32xf32>
    %cst_97 = arith.constant dense<0.000000e+00> : vector<8x32xf32>
    %224 = tpu.matmul %60, %223, %cst_97 {dimension_numbers = #tpu.dot_dimension_numbers<[1], [0], [0], [1], [0, 0, 1, 1], [], []>} : vector<8x128xf32>, vector<128x32xf32>, vector<8x32xf32> -> vector<8x32xf32>
    %c0_98 = arith.constant 0 : index
    %c0_99 = arith.constant 0 : index
    %225 = vector.load %arg33[%c0_98, %c0_99] : memref<1x32xf32, #tpu.memory_space<vmem>>, vector<1x32xf32>
    %226 = vector.broadcast %225 : vector<1x32xf32> to vector<8x32xf32>
    %227 = arith.addf %224, %226 : vector<8x32xf32>
    %c0_100 = arith.constant 0 : index
    %c0_101 = arith.constant 0 : index
    %228 = vector.load %arg34[%c0_100, %c0_101] : memref<32x128xf32, #tpu.memory_space<vmem>>, vector<32x128xf32>
    %cst_102 = arith.constant dense<0.000000e+00> : vector<32x8xf32>
    %229 = tpu.matmul %228, %62, %cst_102 {dimension_numbers = #tpu.dot_dimension_numbers<[1], [0], [0], [1], [0, 0, 1, 1], [], []>} : vector<32x128xf32>, vector<128x8xf32>, vector<32x8xf32> -> vector<32x8xf32>
    %c0_103 = arith.constant 0 : index
    %c0_104 = arith.constant 0 : index
    %230 = vector.load %arg35[%c0_103, %c0_104] : memref<32x1xf32, #tpu.memory_space<vmem>>, vector<32x1xf32>
    %231 = vector.broadcast %230 : vector<32x1xf32> to vector<32x8xf32>
    %232 = arith.addf %229, %231 : vector<32x8xf32>
    %233 = vector.extract_strided_slice %222 {offsets = [0, 0], sizes = [16, 128], strides = [1, 1]} : vector<32x128xf32> to vector<16x128xf32>
    %234 = vector.extract_strided_slice %227 {offsets = [0, 0], sizes = [8, 16], strides = [1, 1]} : vector<8x32xf32> to vector<8x16xf32>
    %235 = vector.extract_strided_slice %232 {offsets = [0, 0], sizes = [16, 8], strides = [1, 1]} : vector<32x8xf32> to vector<16x8xf32>
    %cst_105 = arith.constant dense<0.000000e+00> : vector<8x128xf32>
    %236 = tpu.matmul %234, %233, %cst_105 {dimension_numbers = #tpu.dot_dimension_numbers<[1], [0], [0], [1], [0, 0, 1, 1], [], []>} : vector<8x16xf32>, vector<16x128xf32>, vector<8x128xf32> -> vector<8x128xf32>
    %cst_106 = arith.constant dense<0xFF800000> : vector<128xf32>
    %237 = vector.multi_reduction <maximumf>, %236, %cst_106 [0] : vector<8x128xf32> to vector<128xf32>
    %238 = vector.shape_cast %237 : vector<128xf32> to vector<1x128xf32>
    %239 = vector.broadcast %238 : vector<1x128xf32> to vector<8x128xf32>
    %240 = arith.subf %236, %239 : vector<8x128xf32>
    %241 = math.exp %240 : vector<8x128xf32>
    %cst_107 = arith.constant dense<0.000000e+00> : vector<128xf32>
    %242 = vector.multi_reduction <add>, %241, %cst_107 [0] : vector<8x128xf32> to vector<128xf32>
    %243 = vector.shape_cast %242 : vector<128xf32> to vector<1x128xf32>
    %244 = tpu.reciprocal %243 {approx = true} : vector<1x128xf32> -> vector<1x128xf32>
    %245 = vector.broadcast %244 : vector<1x128xf32> to vector<8x128xf32>
    %246 = arith.mulf %241, %245 : vector<8x128xf32>
    %cst_108 = arith.constant dense<0.000000e+00> : vector<16x128xf32>
    %247 = tpu.matmul %235, %246, %cst_108 {dimension_numbers = #tpu.dot_dimension_numbers<[1], [0], [0], [1], [0, 0, 1, 1], [], []>} : vector<16x8xf32>, vector<8x128xf32>, vector<16x128xf32> -> vector<16x128xf32>
    %248 = vector.extract_strided_slice %222 {offsets = [16, 0], sizes = [16, 128], strides = [1, 1]} : vector<32x128xf32> to vector<16x128xf32>
    %249 = vector.extract_strided_slice %227 {offsets = [0, 16], sizes = [8, 16], strides = [1, 1]} : vector<8x32xf32> to vector<8x16xf32>
    %250 = vector.extract_strided_slice %232 {offsets = [16, 0], sizes = [16, 8], strides = [1, 1]} : vector<32x8xf32> to vector<16x8xf32>
    %cst_109 = arith.constant dense<0.000000e+00> : vector<8x128xf32>
    %251 = tpu.matmul %249, %248, %cst_109 {dimension_numbers = #tpu.dot_dimension_numbers<[1], [0], [0], [1], [0, 0, 1, 1], [], []>} : vector<8x16xf32>, vector<16x128xf32>, vector<8x128xf32> -> vector<8x128xf32>
    %cst_110 = arith.constant dense<0xFF800000> : vector<128xf32>
    %252 = vector.multi_reduction <maximumf>, %251, %cst_110 [0] : vector<8x128xf32> to vector<128xf32>
    %253 = vector.shape_cast %252 : vector<128xf32> to vector<1x128xf32>
    %254 = vector.broadcast %253 : vector<1x128xf32> to vector<8x128xf32>
    %255 = arith.subf %251, %254 : vector<8x128xf32>
    %256 = math.exp %255 : vector<8x128xf32>
    %cst_111 = arith.constant dense<0.000000e+00> : vector<128xf32>
    %257 = vector.multi_reduction <add>, %256, %cst_111 [0] : vector<8x128xf32> to vector<128xf32>
    %258 = vector.shape_cast %257 : vector<128xf32> to vector<1x128xf32>
    %259 = tpu.reciprocal %258 {approx = true} : vector<1x128xf32> -> vector<1x128xf32>
    %260 = vector.broadcast %259 : vector<1x128xf32> to vector<8x128xf32>
    %261 = arith.mulf %256, %260 : vector<8x128xf32>
    %cst_112 = arith.constant dense<0.000000e+00> : vector<16x128xf32>
    %262 = tpu.matmul %250, %261, %cst_112 {dimension_numbers = #tpu.dot_dimension_numbers<[1], [0], [0], [1], [0, 0, 1, 1], [], []>} : vector<16x8xf32>, vector<8x128xf32>, vector<16x128xf32> -> vector<16x128xf32>
    %263 = tpu.concatenate %247, %262 in 0 : vector<16x128xf32>, vector<16x128xf32> -> vector<32x128xf32>
    %c0_113 = arith.constant 0 : index
    %c0_114 = arith.constant 0 : index
    %264 = vector.load %arg36[%c0_113, %c0_114] : memref<32x32xf32, #tpu.memory_space<vmem>>, vector<32x32xf32>
    %cst_115 = arith.constant dense<0.000000e+00> : vector<32x128xf32>
    %265 = tpu.matmul %264, %263, %cst_115 {dimension_numbers = #tpu.dot_dimension_numbers<[1], [0], [0], [1], [0, 0, 1, 1], [], []>} : vector<32x32xf32>, vector<32x128xf32>, vector<32x128xf32> -> vector<32x128xf32>
    %c0_116 = arith.constant 0 : index
    %c0_117 = arith.constant 0 : index
    %266 = vector.load %arg37[%c0_116, %c0_117] : memref<32x1xf32, #tpu.memory_space<vmem>>, vector<32x1xf32>
    %267 = vector.broadcast %266 : vector<32x1xf32> to vector<32x128xf32>
    %268 = arith.addf %265, %267 : vector<32x128xf32>
    %c0_118 = arith.constant 0 : index
    %c0_119 = arith.constant 0 : index
    %269 = vector.load %arg14[%c0_118, %c0_119] : memref<32x160xf32, #tpu.memory_space<vmem>>, vector<32x160xf32>
    %c0_120 = arith.constant 0 : index
    %c0_121 = arith.constant 0 : index
    %270 = vector.load %arg15[%c0_120, %c0_121] : memref<32x1xf32, #tpu.memory_space<vmem>>, vector<32x1xf32>
    %cst_122 = arith.constant dense<0.000000e+00> : vector<32x128xf32>
    %271 = tpu.matmul %268, %21, %cst_122 {dimension_numbers = #tpu.dot_dimension_numbers<[1], [0], [0], [1], [0, 0, 1, 1], [], []>} : vector<32x128xf32>, vector<128x128xf32>, vector<32x128xf32> -> vector<32x128xf32>
    %cst_123 = arith.constant dense<0.000000e+00> : vector<32x128xf32>
    %272 = tpu.matmul %268, %16, %cst_123 {dimension_numbers = #tpu.dot_dimension_numbers<[1], [0], [0], [1], [0, 0, 1, 1], [], []>} : vector<32x128xf32>, vector<128x128xf32>, vector<32x128xf32> -> vector<32x128xf32>
    %cst_124 = arith.constant dense<0.000000e+00> : vector<32x128xf32>
    %273 = tpu.matmul %268, %11, %cst_124 {dimension_numbers = #tpu.dot_dimension_numbers<[1], [0], [0], [1], [0, 0, 1, 1], [], []>} : vector<32x128xf32>, vector<128x128xf32>, vector<32x128xf32> -> vector<32x128xf32>
    %cst_125 = arith.constant dense<0.000000e+00> : vector<32x128xf32>
    %274 = tpu.matmul %268, %6, %cst_125 {dimension_numbers = #tpu.dot_dimension_numbers<[1], [0], [0], [1], [0, 0, 1, 1], [], []>} : vector<32x128xf32>, vector<128x128xf32>, vector<32x128xf32> -> vector<32x128xf32>
    %275 = tpu.concatenate %271, %272, %268, %273, %274 in 0 : vector<32x128xf32>, vector<32x128xf32>, vector<32x128xf32>, vector<32x128xf32>, vector<32x128xf32> -> vector<160x128xf32>
    %cst_126 = arith.constant dense<0.000000e+00> : vector<32x128xf32>
    %276 = tpu.matmul %269, %275, %cst_126 {dimension_numbers = #tpu.dot_dimension_numbers<[1], [0], [0], [1], [0, 0, 1, 1], [], []>} : vector<32x160xf32>, vector<160x128xf32>, vector<32x128xf32> -> vector<32x128xf32>
    %277 = vector.broadcast %270 : vector<32x1xf32> to vector<32x128xf32>
    %278 = arith.addf %276, %277 : vector<32x128xf32>
    %c0_127 = arith.constant 0 : index
    %c0_128 = arith.constant 0 : index
    %279 = vector.load %arg16[%c0_127, %c0_128] : memref<32x1xf32, #tpu.memory_space<vmem>>, vector<32x1xf32>
    %c0_129 = arith.constant 0 : index
    %c0_130 = arith.constant 0 : index
    %280 = vector.load %arg17[%c0_129, %c0_130] : memref<32x1xf32, #tpu.memory_space<vmem>>, vector<32x1xf32>
    %281 = vector.shape_cast %278 : vector<32x128xf32> to vector<1x32x128xf32>
    %cst_131 = arith.constant dense<0.000000e+00> : vector<1xf32>
    %282 = vector.multi_reduction <add>, %281, %cst_131 [1, 2] : vector<1x32x128xf32> to vector<1xf32>
    %283 = vector.shape_cast %282 : vector<1xf32> to vector<1x1x1xf32>
    %284 = vector.extract %283[0, 0, 0] : f32 from vector<1x1x1xf32>
    %cst_132 = arith.constant 4.096000e+03 : f32
    %285 = arith.divf %284, %cst_132 : f32
    %286 = vector.broadcast %285 : f32 to vector<32x128xf32>
    %287 = arith.subf %278, %286 : vector<32x128xf32>
    %288 = arith.mulf %287, %287 : vector<32x128xf32>
    %289 = vector.shape_cast %288 : vector<32x128xf32> to vector<1x32x128xf32>
    %cst_133 = arith.constant dense<0.000000e+00> : vector<1xf32>
    %290 = vector.multi_reduction <add>, %289, %cst_133 [1, 2] : vector<1x32x128xf32> to vector<1xf32>
    %291 = vector.shape_cast %290 : vector<1xf32> to vector<1x1x1xf32>
    %292 = vector.extract %291[0, 0, 0] : f32 from vector<1x1x1xf32>
    %cst_134 = arith.constant 4.096000e+03 : f32
    %293 = arith.divf %292, %cst_134 : f32
    %294 = vector.broadcast %285 : f32 to vector<32x128xf32>
    %295 = arith.subf %278, %294 : vector<32x128xf32>
    %cst_135 = arith.constant 9.99999974E-6 : f32
    %296 = arith.addf %293, %cst_135 : f32
    %297 = math.rsqrt %296 : f32
    %298 = vector.broadcast %297 : f32 to vector<32x128xf32>
    %299 = arith.mulf %295, %298 : vector<32x128xf32>
    %300 = vector.broadcast %279 : vector<32x1xf32> to vector<32x128xf32>
    %301 = arith.mulf %299, %300 : vector<32x128xf32>
    %302 = vector.broadcast %280 : vector<32x1xf32> to vector<32x128xf32>
    %303 = arith.addf %301, %302 : vector<32x128xf32>
    %cst_136 = arith.constant 5.000000e-01 : f32
    %304 = vector.broadcast %cst_136 : f32 to vector<32x128xf32>
    %305 = arith.mulf %304, %303 : vector<32x128xf32>
    %cst_137 = arith.constant 0.707106769 : f32
    %306 = vector.broadcast %cst_137 : f32 to vector<32x128xf32>
    %307 = arith.mulf %303, %306 : vector<32x128xf32>
    %cst_138 = arith.constant 0.000000e+00 : f32
    %308 = vector.broadcast %cst_138 : f32 to vector<32x128xf32>
    %309 = arith.cmpf oge, %307, %308 : vector<32x128xf32>
    %cst_139 = arith.constant 1.000000e+00 : f32
    %cst_140 = arith.constant -1.000000e+00 : f32
    %310 = vector.broadcast %cst_139 : f32 to vector<32x128xf32>
    %311 = vector.broadcast %cst_140 : f32 to vector<32x128xf32>
    %312 = arith.select %309, %310, %311 : vector<32x128xi1>, vector<32x128xf32>
    %313 = math.absf %307 : vector<32x128xf32>
    %cst_141 = arith.constant 0.327591091 : f32
    %314 = vector.broadcast %cst_141 : f32 to vector<32x128xf32>
    %315 = arith.mulf %314, %313 : vector<32x128xf32>
    %cst_142 = arith.constant 1.000000e+00 : f32
    %316 = vector.broadcast %cst_142 : f32 to vector<32x128xf32>
    %317 = arith.addf %316, %315 : vector<32x128xf32>
    %cst_143 = arith.constant 1.000000e+00 : f32
    %318 = vector.broadcast %cst_143 : f32 to vector<32x128xf32>
    %319 = arith.divf %318, %317 : vector<32x128xf32>
    %cst_144 = arith.constant 1.06140542 : f32
    %320 = vector.broadcast %cst_144 : f32 to vector<32x128xf32>
    %321 = arith.mulf %320, %319 : vector<32x128xf32>
    %cst_145 = arith.constant -1.45315206 : f32
    %322 = vector.broadcast %cst_145 : f32 to vector<32x128xf32>
    %323 = arith.addf %321, %322 : vector<32x128xf32>
    %324 = arith.mulf %323, %319 : vector<32x128xf32>
    %cst_146 = arith.constant 1.42141378 : f32
    %325 = vector.broadcast %cst_146 : f32 to vector<32x128xf32>
    %326 = arith.addf %324, %325 : vector<32x128xf32>
    %327 = arith.mulf %326, %319 : vector<32x128xf32>
    %cst_147 = arith.constant -0.284496725 : f32
    %328 = vector.broadcast %cst_147 : f32 to vector<32x128xf32>
    %329 = arith.addf %327, %328 : vector<32x128xf32>
    %330 = arith.mulf %329, %319 : vector<32x128xf32>
    %cst_148 = arith.constant 0.254829586 : f32
    %331 = vector.broadcast %cst_148 : f32 to vector<32x128xf32>
    %332 = arith.addf %330, %331 : vector<32x128xf32>
    %333 = arith.mulf %332, %319 : vector<32x128xf32>
    %cst_149 = arith.constant 0.000000e+00 : f32
    %334 = vector.broadcast %cst_149 : f32 to vector<32x128xf32>
    %335 = arith.subf %334, %313 : vector<32x128xf32>
    %336 = arith.mulf %335, %313 : vector<32x128xf32>
    %337 = math.exp %336 : vector<32x128xf32>
    %338 = arith.mulf %333, %337 : vector<32x128xf32>
    %cst_150 = arith.constant 1.000000e+00 : f32
    %339 = vector.broadcast %cst_150 : f32 to vector<32x128xf32>
    %340 = arith.subf %339, %338 : vector<32x128xf32>
    %341 = arith.mulf %312, %340 : vector<32x128xf32>
    %cst_151 = arith.constant 1.000000e+00 : f32
    %342 = vector.broadcast %cst_151 : f32 to vector<32x128xf32>
    %343 = arith.addf %342, %341 : vector<32x128xf32>
    %344 = arith.mulf %305, %343 : vector<32x128xf32>
    %c0_152 = arith.constant 0 : index
    %c0_153 = arith.constant 0 : index
    %345 = vector.load %arg18[%c0_152, %c0_153] : memref<32x160xf32, #tpu.memory_space<vmem>>, vector<32x160xf32>
    %c0_154 = arith.constant 0 : index
    %c0_155 = arith.constant 0 : index
    %346 = vector.load %arg19[%c0_154, %c0_155] : memref<32x1xf32, #tpu.memory_space<vmem>>, vector<32x1xf32>
    %cst_156 = arith.constant dense<0.000000e+00> : vector<32x128xf32>
    %347 = tpu.matmul %344, %21, %cst_156 {dimension_numbers = #tpu.dot_dimension_numbers<[1], [0], [0], [1], [0, 0, 1, 1], [], []>} : vector<32x128xf32>, vector<128x128xf32>, vector<32x128xf32> -> vector<32x128xf32>
    %cst_157 = arith.constant dense<0.000000e+00> : vector<32x128xf32>
    %348 = tpu.matmul %344, %16, %cst_157 {dimension_numbers = #tpu.dot_dimension_numbers<[1], [0], [0], [1], [0, 0, 1, 1], [], []>} : vector<32x128xf32>, vector<128x128xf32>, vector<32x128xf32> -> vector<32x128xf32>
    %cst_158 = arith.constant dense<0.000000e+00> : vector<32x128xf32>
    %349 = tpu.matmul %344, %11, %cst_158 {dimension_numbers = #tpu.dot_dimension_numbers<[1], [0], [0], [1], [0, 0, 1, 1], [], []>} : vector<32x128xf32>, vector<128x128xf32>, vector<32x128xf32> -> vector<32x128xf32>
    %cst_159 = arith.constant dense<0.000000e+00> : vector<32x128xf32>
    %350 = tpu.matmul %344, %6, %cst_159 {dimension_numbers = #tpu.dot_dimension_numbers<[1], [0], [0], [1], [0, 0, 1, 1], [], []>} : vector<32x128xf32>, vector<128x128xf32>, vector<32x128xf32> -> vector<32x128xf32>
    %351 = tpu.concatenate %347, %348, %344, %349, %350 in 0 : vector<32x128xf32>, vector<32x128xf32>, vector<32x128xf32>, vector<32x128xf32>, vector<32x128xf32> -> vector<160x128xf32>
    %cst_160 = arith.constant dense<0.000000e+00> : vector<32x128xf32>
    %352 = tpu.matmul %345, %351, %cst_160 {dimension_numbers = #tpu.dot_dimension_numbers<[1], [0], [0], [1], [0, 0, 1, 1], [], []>} : vector<32x160xf32>, vector<160x128xf32>, vector<32x128xf32> -> vector<32x128xf32>
    %353 = vector.broadcast %346 : vector<32x1xf32> to vector<32x128xf32>
    %354 = arith.addf %352, %353 : vector<32x128xf32>
    %c0_161 = arith.constant 0 : index
    %c0_162 = arith.constant 0 : index
    %355 = vector.load %arg20[%c0_161, %c0_162] : memref<32x1xf32, #tpu.memory_space<vmem>>, vector<32x1xf32>
    %c0_163 = arith.constant 0 : index
    %c0_164 = arith.constant 0 : index
    %356 = vector.load %arg21[%c0_163, %c0_164] : memref<32x1xf32, #tpu.memory_space<vmem>>, vector<32x1xf32>
    %357 = vector.shape_cast %354 : vector<32x128xf32> to vector<1x32x128xf32>
    %cst_165 = arith.constant dense<0.000000e+00> : vector<1xf32>
    %358 = vector.multi_reduction <add>, %357, %cst_165 [1, 2] : vector<1x32x128xf32> to vector<1xf32>
    %359 = vector.shape_cast %358 : vector<1xf32> to vector<1x1x1xf32>
    %360 = vector.extract %359[0, 0, 0] : f32 from vector<1x1x1xf32>
    %cst_166 = arith.constant 4.096000e+03 : f32
    %361 = arith.divf %360, %cst_166 : f32
    %362 = vector.broadcast %361 : f32 to vector<32x128xf32>
    %363 = arith.subf %354, %362 : vector<32x128xf32>
    %364 = arith.mulf %363, %363 : vector<32x128xf32>
    %365 = vector.shape_cast %364 : vector<32x128xf32> to vector<1x32x128xf32>
    %cst_167 = arith.constant dense<0.000000e+00> : vector<1xf32>
    %366 = vector.multi_reduction <add>, %365, %cst_167 [1, 2] : vector<1x32x128xf32> to vector<1xf32>
    %367 = vector.shape_cast %366 : vector<1xf32> to vector<1x1x1xf32>
    %368 = vector.extract %367[0, 0, 0] : f32 from vector<1x1x1xf32>
    %cst_168 = arith.constant 4.096000e+03 : f32
    %369 = arith.divf %368, %cst_168 : f32
    %370 = vector.broadcast %361 : f32 to vector<32x128xf32>
    %371 = arith.subf %354, %370 : vector<32x128xf32>
    %cst_169 = arith.constant 9.99999974E-6 : f32
    %372 = arith.addf %369, %cst_169 : f32
    %373 = math.rsqrt %372 : f32
    %374 = vector.broadcast %373 : f32 to vector<32x128xf32>
    %375 = arith.mulf %371, %374 : vector<32x128xf32>
    %376 = vector.broadcast %355 : vector<32x1xf32> to vector<32x128xf32>
    %377 = arith.mulf %375, %376 : vector<32x128xf32>
    %378 = vector.broadcast %356 : vector<32x1xf32> to vector<32x128xf32>
    %379 = arith.addf %377, %378 : vector<32x128xf32>
    %cst_170 = arith.constant 5.000000e-01 : f32
    %380 = vector.broadcast %cst_170 : f32 to vector<32x128xf32>
    %381 = arith.mulf %380, %379 : vector<32x128xf32>
    %cst_171 = arith.constant 0.707106769 : f32
    %382 = vector.broadcast %cst_171 : f32 to vector<32x128xf32>
    %383 = arith.mulf %379, %382 : vector<32x128xf32>
    %cst_172 = arith.constant 0.000000e+00 : f32
    %384 = vector.broadcast %cst_172 : f32 to vector<32x128xf32>
    %385 = arith.cmpf oge, %383, %384 : vector<32x128xf32>
    %cst_173 = arith.constant 1.000000e+00 : f32
    %cst_174 = arith.constant -1.000000e+00 : f32
    %386 = vector.broadcast %cst_173 : f32 to vector<32x128xf32>
    %387 = vector.broadcast %cst_174 : f32 to vector<32x128xf32>
    %388 = arith.select %385, %386, %387 : vector<32x128xi1>, vector<32x128xf32>
    %389 = math.absf %383 : vector<32x128xf32>
    %cst_175 = arith.constant 0.327591091 : f32
    %390 = vector.broadcast %cst_175 : f32 to vector<32x128xf32>
    %391 = arith.mulf %390, %389 : vector<32x128xf32>
    %cst_176 = arith.constant 1.000000e+00 : f32
    %392 = vector.broadcast %cst_176 : f32 to vector<32x128xf32>
    %393 = arith.addf %392, %391 : vector<32x128xf32>
    %cst_177 = arith.constant 1.000000e+00 : f32
    %394 = vector.broadcast %cst_177 : f32 to vector<32x128xf32>
    %395 = arith.divf %394, %393 : vector<32x128xf32>
    %cst_178 = arith.constant 1.06140542 : f32
    %396 = vector.broadcast %cst_178 : f32 to vector<32x128xf32>
    %397 = arith.mulf %396, %395 : vector<32x128xf32>
    %cst_179 = arith.constant -1.45315206 : f32
    %398 = vector.broadcast %cst_179 : f32 to vector<32x128xf32>
    %399 = arith.addf %397, %398 : vector<32x128xf32>
    %400 = arith.mulf %399, %395 : vector<32x128xf32>
    %cst_180 = arith.constant 1.42141378 : f32
    %401 = vector.broadcast %cst_180 : f32 to vector<32x128xf32>
    %402 = arith.addf %400, %401 : vector<32x128xf32>
    %403 = arith.mulf %402, %395 : vector<32x128xf32>
    %cst_181 = arith.constant -0.284496725 : f32
    %404 = vector.broadcast %cst_181 : f32 to vector<32x128xf32>
    %405 = arith.addf %403, %404 : vector<32x128xf32>
    %406 = arith.mulf %405, %395 : vector<32x128xf32>
    %cst_182 = arith.constant 0.254829586 : f32
    %407 = vector.broadcast %cst_182 : f32 to vector<32x128xf32>
    %408 = arith.addf %406, %407 : vector<32x128xf32>
    %409 = arith.mulf %408, %395 : vector<32x128xf32>
    %cst_183 = arith.constant 0.000000e+00 : f32
    %410 = vector.broadcast %cst_183 : f32 to vector<32x128xf32>
    %411 = arith.subf %410, %389 : vector<32x128xf32>
    %412 = arith.mulf %411, %389 : vector<32x128xf32>
    %413 = math.exp %412 : vector<32x128xf32>
    %414 = arith.mulf %409, %413 : vector<32x128xf32>
    %cst_184 = arith.constant 1.000000e+00 : f32
    %415 = vector.broadcast %cst_184 : f32 to vector<32x128xf32>
    %416 = arith.subf %415, %414 : vector<32x128xf32>
    %417 = arith.mulf %388, %416 : vector<32x128xf32>
    %cst_185 = arith.constant 1.000000e+00 : f32
    %418 = vector.broadcast %cst_185 : f32 to vector<32x128xf32>
    %419 = arith.addf %418, %417 : vector<32x128xf32>
    %420 = arith.mulf %381, %419 : vector<32x128xf32>
    %421 = arith.addf %420, %268 : vector<32x128xf32>
    %c0_186 = arith.constant 0 : index
    %c0_187 = arith.constant 0 : index
    %422 = vector.load %arg38[%c0_186, %c0_187] : memref<32x32xf32, #tpu.memory_space<vmem>>, vector<32x32xf32>
    %cst_188 = arith.constant dense<0.000000e+00> : vector<32x128xf32>
    %423 = tpu.matmul %422, %421, %cst_188 {dimension_numbers = #tpu.dot_dimension_numbers<[1], [0], [0], [1], [0, 0, 1, 1], [], []>} : vector<32x32xf32>, vector<32x128xf32>, vector<32x128xf32> -> vector<32x128xf32>
    %c0_189 = arith.constant 0 : index
    %c0_190 = arith.constant 0 : index
    %424 = vector.load %arg39[%c0_189, %c0_190] : memref<32x1xf32, #tpu.memory_space<vmem>>, vector<32x1xf32>
    %425 = vector.broadcast %424 : vector<32x1xf32> to vector<32x128xf32>
    %426 = arith.addf %423, %425 : vector<32x128xf32>
    %c0_191 = arith.constant 0 : index
    %c0_192 = arith.constant 0 : index
    %427 = vector.load %arg40[%c0_191, %c0_192] : memref<128x32xf32, #tpu.memory_space<vmem>>, vector<128x32xf32>
    %cst_193 = arith.constant dense<0.000000e+00> : vector<8x32xf32>
    %428 = tpu.matmul %60, %427, %cst_193 {dimension_numbers = #tpu.dot_dimension_numbers<[1], [0], [0], [1], [0, 0, 1, 1], [], []>} : vector<8x128xf32>, vector<128x32xf32>, vector<8x32xf32> -> vector<8x32xf32>
    %c0_194 = arith.constant 0 : index
    %c0_195 = arith.constant 0 : index
    %429 = vector.load %arg41[%c0_194, %c0_195] : memref<1x32xf32, #tpu.memory_space<vmem>>, vector<1x32xf32>
    %430 = vector.broadcast %429 : vector<1x32xf32> to vector<8x32xf32>
    %431 = arith.addf %428, %430 : vector<8x32xf32>
    %c0_196 = arith.constant 0 : index
    %c0_197 = arith.constant 0 : index
    %432 = vector.load %arg42[%c0_196, %c0_197] : memref<32x128xf32, #tpu.memory_space<vmem>>, vector<32x128xf32>
    %cst_198 = arith.constant dense<0.000000e+00> : vector<32x8xf32>
    %433 = tpu.matmul %432, %62, %cst_198 {dimension_numbers = #tpu.dot_dimension_numbers<[1], [0], [0], [1], [0, 0, 1, 1], [], []>} : vector<32x128xf32>, vector<128x8xf32>, vector<32x8xf32> -> vector<32x8xf32>
    %c0_199 = arith.constant 0 : index
    %c0_200 = arith.constant 0 : index
    %434 = vector.load %arg43[%c0_199, %c0_200] : memref<32x1xf32, #tpu.memory_space<vmem>>, vector<32x1xf32>
    %435 = vector.broadcast %434 : vector<32x1xf32> to vector<32x8xf32>
    %436 = arith.addf %433, %435 : vector<32x8xf32>
    %437 = vector.extract_strided_slice %426 {offsets = [0, 0], sizes = [16, 128], strides = [1, 1]} : vector<32x128xf32> to vector<16x128xf32>
    %438 = vector.extract_strided_slice %431 {offsets = [0, 0], sizes = [8, 16], strides = [1, 1]} : vector<8x32xf32> to vector<8x16xf32>
    %439 = vector.extract_strided_slice %436 {offsets = [0, 0], sizes = [16, 8], strides = [1, 1]} : vector<32x8xf32> to vector<16x8xf32>
    %cst_201 = arith.constant dense<0.000000e+00> : vector<8x128xf32>
    %440 = tpu.matmul %438, %437, %cst_201 {dimension_numbers = #tpu.dot_dimension_numbers<[1], [0], [0], [1], [0, 0, 1, 1], [], []>} : vector<8x16xf32>, vector<16x128xf32>, vector<8x128xf32> -> vector<8x128xf32>
    %cst_202 = arith.constant dense<0xFF800000> : vector<128xf32>
    %441 = vector.multi_reduction <maximumf>, %440, %cst_202 [0] : vector<8x128xf32> to vector<128xf32>
    %442 = vector.shape_cast %441 : vector<128xf32> to vector<1x128xf32>
    %443 = vector.broadcast %442 : vector<1x128xf32> to vector<8x128xf32>
    %444 = arith.subf %440, %443 : vector<8x128xf32>
    %445 = math.exp %444 : vector<8x128xf32>
    %cst_203 = arith.constant dense<0.000000e+00> : vector<128xf32>
    %446 = vector.multi_reduction <add>, %445, %cst_203 [0] : vector<8x128xf32> to vector<128xf32>
    %447 = vector.shape_cast %446 : vector<128xf32> to vector<1x128xf32>
    %448 = tpu.reciprocal %447 {approx = true} : vector<1x128xf32> -> vector<1x128xf32>
    %449 = vector.broadcast %448 : vector<1x128xf32> to vector<8x128xf32>
    %450 = arith.mulf %445, %449 : vector<8x128xf32>
    %cst_204 = arith.constant dense<0.000000e+00> : vector<16x128xf32>
    %451 = tpu.matmul %439, %450, %cst_204 {dimension_numbers = #tpu.dot_dimension_numbers<[1], [0], [0], [1], [0, 0, 1, 1], [], []>} : vector<16x8xf32>, vector<8x128xf32>, vector<16x128xf32> -> vector<16x128xf32>
    %452 = vector.extract_strided_slice %426 {offsets = [16, 0], sizes = [16, 128], strides = [1, 1]} : vector<32x128xf32> to vector<16x128xf32>
    %453 = vector.extract_strided_slice %431 {offsets = [0, 16], sizes = [8, 16], strides = [1, 1]} : vector<8x32xf32> to vector<8x16xf32>
    %454 = vector.extract_strided_slice %436 {offsets = [16, 0], sizes = [16, 8], strides = [1, 1]} : vector<32x8xf32> to vector<16x8xf32>
    %cst_205 = arith.constant dense<0.000000e+00> : vector<8x128xf32>
    %455 = tpu.matmul %453, %452, %cst_205 {dimension_numbers = #tpu.dot_dimension_numbers<[1], [0], [0], [1], [0, 0, 1, 1], [], []>} : vector<8x16xf32>, vector<16x128xf32>, vector<8x128xf32> -> vector<8x128xf32>
    %cst_206 = arith.constant dense<0xFF800000> : vector<128xf32>
    %456 = vector.multi_reduction <maximumf>, %455, %cst_206 [0] : vector<8x128xf32> to vector<128xf32>
    %457 = vector.shape_cast %456 : vector<128xf32> to vector<1x128xf32>
    %458 = vector.broadcast %457 : vector<1x128xf32> to vector<8x128xf32>
    %459 = arith.subf %455, %458 : vector<8x128xf32>
    %460 = math.exp %459 : vector<8x128xf32>
    %cst_207 = arith.constant dense<0.000000e+00> : vector<128xf32>
    %461 = vector.multi_reduction <add>, %460, %cst_207 [0] : vector<8x128xf32> to vector<128xf32>
    %462 = vector.shape_cast %461 : vector<128xf32> to vector<1x128xf32>
    %463 = tpu.reciprocal %462 {approx = true} : vector<1x128xf32> -> vector<1x128xf32>
    %464 = vector.broadcast %463 : vector<1x128xf32> to vector<8x128xf32>
    %465 = arith.mulf %460, %464 : vector<8x128xf32>
    %cst_208 = arith.constant dense<0.000000e+00> : vector<16x128xf32>
    %466 = tpu.matmul %454, %465, %cst_208 {dimension_numbers = #tpu.dot_dimension_numbers<[1], [0], [0], [1], [0, 0, 1, 1], [], []>} : vector<16x8xf32>, vector<8x128xf32>, vector<16x128xf32> -> vector<16x128xf32>
    %467 = tpu.concatenate %451, %466 in 0 : vector<16x128xf32>, vector<16x128xf32> -> vector<32x128xf32>
    %c0_209 = arith.constant 0 : index
    %c0_210 = arith.constant 0 : index
    %468 = vector.load %arg44[%c0_209, %c0_210] : memref<32x32xf32, #tpu.memory_space<vmem>>, vector<32x32xf32>
    %cst_211 = arith.constant dense<0.000000e+00> : vector<32x128xf32>
    %469 = tpu.matmul %468, %467, %cst_211 {dimension_numbers = #tpu.dot_dimension_numbers<[1], [0], [0], [1], [0, 0, 1, 1], [], []>} : vector<32x32xf32>, vector<32x128xf32>, vector<32x128xf32> -> vector<32x128xf32>
    %c0_212 = arith.constant 0 : index
    %c0_213 = arith.constant 0 : index
    %470 = vector.load %arg45[%c0_212, %c0_213] : memref<32x1xf32, #tpu.memory_space<vmem>>, vector<32x1xf32>
    %471 = vector.broadcast %470 : vector<32x1xf32> to vector<32x128xf32>
    %472 = arith.addf %469, %471 : vector<32x128xf32>
    %c0_214 = arith.constant 0 : index
    %c0_215 = arith.constant 0 : index
    %473 = vector.load %arg22[%c0_214, %c0_215] : memref<32x160xf32, #tpu.memory_space<vmem>>, vector<32x160xf32>
    %c0_216 = arith.constant 0 : index
    %c0_217 = arith.constant 0 : index
    %474 = vector.load %arg23[%c0_216, %c0_217] : memref<32x1xf32, #tpu.memory_space<vmem>>, vector<32x1xf32>
    %cst_218 = arith.constant dense<0.000000e+00> : vector<32x128xf32>
    %475 = tpu.matmul %472, %21, %cst_218 {dimension_numbers = #tpu.dot_dimension_numbers<[1], [0], [0], [1], [0, 0, 1, 1], [], []>} : vector<32x128xf32>, vector<128x128xf32>, vector<32x128xf32> -> vector<32x128xf32>
    %cst_219 = arith.constant dense<0.000000e+00> : vector<32x128xf32>
    %476 = tpu.matmul %472, %16, %cst_219 {dimension_numbers = #tpu.dot_dimension_numbers<[1], [0], [0], [1], [0, 0, 1, 1], [], []>} : vector<32x128xf32>, vector<128x128xf32>, vector<32x128xf32> -> vector<32x128xf32>
    %cst_220 = arith.constant dense<0.000000e+00> : vector<32x128xf32>
    %477 = tpu.matmul %472, %11, %cst_220 {dimension_numbers = #tpu.dot_dimension_numbers<[1], [0], [0], [1], [0, 0, 1, 1], [], []>} : vector<32x128xf32>, vector<128x128xf32>, vector<32x128xf32> -> vector<32x128xf32>
    %cst_221 = arith.constant dense<0.000000e+00> : vector<32x128xf32>
    %478 = tpu.matmul %472, %6, %cst_221 {dimension_numbers = #tpu.dot_dimension_numbers<[1], [0], [0], [1], [0, 0, 1, 1], [], []>} : vector<32x128xf32>, vector<128x128xf32>, vector<32x128xf32> -> vector<32x128xf32>
    %479 = tpu.concatenate %475, %476, %472, %477, %478 in 0 : vector<32x128xf32>, vector<32x128xf32>, vector<32x128xf32>, vector<32x128xf32>, vector<32x128xf32> -> vector<160x128xf32>
    %cst_222 = arith.constant dense<0.000000e+00> : vector<32x128xf32>
    %480 = tpu.matmul %473, %479, %cst_222 {dimension_numbers = #tpu.dot_dimension_numbers<[1], [0], [0], [1], [0, 0, 1, 1], [], []>} : vector<32x160xf32>, vector<160x128xf32>, vector<32x128xf32> -> vector<32x128xf32>
    %481 = vector.broadcast %474 : vector<32x1xf32> to vector<32x128xf32>
    %482 = arith.addf %480, %481 : vector<32x128xf32>
    %c0_223 = arith.constant 0 : index
    %c0_224 = arith.constant 0 : index
    %483 = vector.load %arg24[%c0_223, %c0_224] : memref<32x1xf32, #tpu.memory_space<vmem>>, vector<32x1xf32>
    %c0_225 = arith.constant 0 : index
    %c0_226 = arith.constant 0 : index
    %484 = vector.load %arg25[%c0_225, %c0_226] : memref<32x1xf32, #tpu.memory_space<vmem>>, vector<32x1xf32>
    %485 = vector.shape_cast %482 : vector<32x128xf32> to vector<1x32x128xf32>
    %cst_227 = arith.constant dense<0.000000e+00> : vector<1xf32>
    %486 = vector.multi_reduction <add>, %485, %cst_227 [1, 2] : vector<1x32x128xf32> to vector<1xf32>
    %487 = vector.shape_cast %486 : vector<1xf32> to vector<1x1x1xf32>
    %488 = vector.extract %487[0, 0, 0] : f32 from vector<1x1x1xf32>
    %cst_228 = arith.constant 4.096000e+03 : f32
    %489 = arith.divf %488, %cst_228 : f32
    %490 = vector.broadcast %489 : f32 to vector<32x128xf32>
    %491 = arith.subf %482, %490 : vector<32x128xf32>
    %492 = arith.mulf %491, %491 : vector<32x128xf32>
    %493 = vector.shape_cast %492 : vector<32x128xf32> to vector<1x32x128xf32>
    %cst_229 = arith.constant dense<0.000000e+00> : vector<1xf32>
    %494 = vector.multi_reduction <add>, %493, %cst_229 [1, 2] : vector<1x32x128xf32> to vector<1xf32>
    %495 = vector.shape_cast %494 : vector<1xf32> to vector<1x1x1xf32>
    %496 = vector.extract %495[0, 0, 0] : f32 from vector<1x1x1xf32>
    %cst_230 = arith.constant 4.096000e+03 : f32
    %497 = arith.divf %496, %cst_230 : f32
    %498 = vector.broadcast %489 : f32 to vector<32x128xf32>
    %499 = arith.subf %482, %498 : vector<32x128xf32>
    %cst_231 = arith.constant 9.99999974E-6 : f32
    %500 = arith.addf %497, %cst_231 : f32
    %501 = math.rsqrt %500 : f32
    %502 = vector.broadcast %501 : f32 to vector<32x128xf32>
    %503 = arith.mulf %499, %502 : vector<32x128xf32>
    %504 = vector.broadcast %483 : vector<32x1xf32> to vector<32x128xf32>
    %505 = arith.mulf %503, %504 : vector<32x128xf32>
    %506 = vector.broadcast %484 : vector<32x1xf32> to vector<32x128xf32>
    %507 = arith.addf %505, %506 : vector<32x128xf32>
    %cst_232 = arith.constant 5.000000e-01 : f32
    %508 = vector.broadcast %cst_232 : f32 to vector<32x128xf32>
    %509 = arith.mulf %508, %507 : vector<32x128xf32>
    %cst_233 = arith.constant 0.707106769 : f32
    %510 = vector.broadcast %cst_233 : f32 to vector<32x128xf32>
    %511 = arith.mulf %507, %510 : vector<32x128xf32>
    %cst_234 = arith.constant 0.000000e+00 : f32
    %512 = vector.broadcast %cst_234 : f32 to vector<32x128xf32>
    %513 = arith.cmpf oge, %511, %512 : vector<32x128xf32>
    %cst_235 = arith.constant 1.000000e+00 : f32
    %cst_236 = arith.constant -1.000000e+00 : f32
    %514 = vector.broadcast %cst_235 : f32 to vector<32x128xf32>
    %515 = vector.broadcast %cst_236 : f32 to vector<32x128xf32>
    %516 = arith.select %513, %514, %515 : vector<32x128xi1>, vector<32x128xf32>
    %517 = math.absf %511 : vector<32x128xf32>
    %cst_237 = arith.constant 0.327591091 : f32
    %518 = vector.broadcast %cst_237 : f32 to vector<32x128xf32>
    %519 = arith.mulf %518, %517 : vector<32x128xf32>
    %cst_238 = arith.constant 1.000000e+00 : f32
    %520 = vector.broadcast %cst_238 : f32 to vector<32x128xf32>
    %521 = arith.addf %520, %519 : vector<32x128xf32>
    %cst_239 = arith.constant 1.000000e+00 : f32
    %522 = vector.broadcast %cst_239 : f32 to vector<32x128xf32>
    %523 = arith.divf %522, %521 : vector<32x128xf32>
    %cst_240 = arith.constant 1.06140542 : f32
    %524 = vector.broadcast %cst_240 : f32 to vector<32x128xf32>
    %525 = arith.mulf %524, %523 : vector<32x128xf32>
    %cst_241 = arith.constant -1.45315206 : f32
    %526 = vector.broadcast %cst_241 : f32 to vector<32x128xf32>
    %527 = arith.addf %525, %526 : vector<32x128xf32>
    %528 = arith.mulf %527, %523 : vector<32x128xf32>
    %cst_242 = arith.constant 1.42141378 : f32
    %529 = vector.broadcast %cst_242 : f32 to vector<32x128xf32>
    %530 = arith.addf %528, %529 : vector<32x128xf32>
    %531 = arith.mulf %530, %523 : vector<32x128xf32>
    %cst_243 = arith.constant -0.284496725 : f32
    %532 = vector.broadcast %cst_243 : f32 to vector<32x128xf32>
    %533 = arith.addf %531, %532 : vector<32x128xf32>
    %534 = arith.mulf %533, %523 : vector<32x128xf32>
    %cst_244 = arith.constant 0.254829586 : f32
    %535 = vector.broadcast %cst_244 : f32 to vector<32x128xf32>
    %536 = arith.addf %534, %535 : vector<32x128xf32>
    %537 = arith.mulf %536, %523 : vector<32x128xf32>
    %cst_245 = arith.constant 0.000000e+00 : f32
    %538 = vector.broadcast %cst_245 : f32 to vector<32x128xf32>
    %539 = arith.subf %538, %517 : vector<32x128xf32>
    %540 = arith.mulf %539, %517 : vector<32x128xf32>
    %541 = math.exp %540 : vector<32x128xf32>
    %542 = arith.mulf %537, %541 : vector<32x128xf32>
    %cst_246 = arith.constant 1.000000e+00 : f32
    %543 = vector.broadcast %cst_246 : f32 to vector<32x128xf32>
    %544 = arith.subf %543, %542 : vector<32x128xf32>
    %545 = arith.mulf %516, %544 : vector<32x128xf32>
    %cst_247 = arith.constant 1.000000e+00 : f32
    %546 = vector.broadcast %cst_247 : f32 to vector<32x128xf32>
    %547 = arith.addf %546, %545 : vector<32x128xf32>
    %548 = arith.mulf %509, %547 : vector<32x128xf32>
    %c0_248 = arith.constant 0 : index
    %c0_249 = arith.constant 0 : index
    %549 = vector.load %arg26[%c0_248, %c0_249] : memref<32x160xf32, #tpu.memory_space<vmem>>, vector<32x160xf32>
    %c0_250 = arith.constant 0 : index
    %c0_251 = arith.constant 0 : index
    %550 = vector.load %arg27[%c0_250, %c0_251] : memref<32x1xf32, #tpu.memory_space<vmem>>, vector<32x1xf32>
    %cst_252 = arith.constant dense<0.000000e+00> : vector<32x128xf32>
    %551 = tpu.matmul %548, %21, %cst_252 {dimension_numbers = #tpu.dot_dimension_numbers<[1], [0], [0], [1], [0, 0, 1, 1], [], []>} : vector<32x128xf32>, vector<128x128xf32>, vector<32x128xf32> -> vector<32x128xf32>
    %cst_253 = arith.constant dense<0.000000e+00> : vector<32x128xf32>
    %552 = tpu.matmul %548, %16, %cst_253 {dimension_numbers = #tpu.dot_dimension_numbers<[1], [0], [0], [1], [0, 0, 1, 1], [], []>} : vector<32x128xf32>, vector<128x128xf32>, vector<32x128xf32> -> vector<32x128xf32>
    %cst_254 = arith.constant dense<0.000000e+00> : vector<32x128xf32>
    %553 = tpu.matmul %548, %11, %cst_254 {dimension_numbers = #tpu.dot_dimension_numbers<[1], [0], [0], [1], [0, 0, 1, 1], [], []>} : vector<32x128xf32>, vector<128x128xf32>, vector<32x128xf32> -> vector<32x128xf32>
    %cst_255 = arith.constant dense<0.000000e+00> : vector<32x128xf32>
    %554 = tpu.matmul %548, %6, %cst_255 {dimension_numbers = #tpu.dot_dimension_numbers<[1], [0], [0], [1], [0, 0, 1, 1], [], []>} : vector<32x128xf32>, vector<128x128xf32>, vector<32x128xf32> -> vector<32x128xf32>
    %555 = tpu.concatenate %551, %552, %548, %553, %554 in 0 : vector<32x128xf32>, vector<32x128xf32>, vector<32x128xf32>, vector<32x128xf32>, vector<32x128xf32> -> vector<160x128xf32>
    %cst_256 = arith.constant dense<0.000000e+00> : vector<32x128xf32>
    %556 = tpu.matmul %549, %555, %cst_256 {dimension_numbers = #tpu.dot_dimension_numbers<[1], [0], [0], [1], [0, 0, 1, 1], [], []>} : vector<32x160xf32>, vector<160x128xf32>, vector<32x128xf32> -> vector<32x128xf32>
    %557 = vector.broadcast %550 : vector<32x1xf32> to vector<32x128xf32>
    %558 = arith.addf %556, %557 : vector<32x128xf32>
    %c0_257 = arith.constant 0 : index
    %c0_258 = arith.constant 0 : index
    %559 = vector.load %arg28[%c0_257, %c0_258] : memref<32x1xf32, #tpu.memory_space<vmem>>, vector<32x1xf32>
    %c0_259 = arith.constant 0 : index
    %c0_260 = arith.constant 0 : index
    %560 = vector.load %arg29[%c0_259, %c0_260] : memref<32x1xf32, #tpu.memory_space<vmem>>, vector<32x1xf32>
    %561 = vector.shape_cast %558 : vector<32x128xf32> to vector<1x32x128xf32>
    %cst_261 = arith.constant dense<0.000000e+00> : vector<1xf32>
    %562 = vector.multi_reduction <add>, %561, %cst_261 [1, 2] : vector<1x32x128xf32> to vector<1xf32>
    %563 = vector.shape_cast %562 : vector<1xf32> to vector<1x1x1xf32>
    %564 = vector.extract %563[0, 0, 0] : f32 from vector<1x1x1xf32>
    %cst_262 = arith.constant 4.096000e+03 : f32
    %565 = arith.divf %564, %cst_262 : f32
    %566 = vector.broadcast %565 : f32 to vector<32x128xf32>
    %567 = arith.subf %558, %566 : vector<32x128xf32>
    %568 = arith.mulf %567, %567 : vector<32x128xf32>
    %569 = vector.shape_cast %568 : vector<32x128xf32> to vector<1x32x128xf32>
    %cst_263 = arith.constant dense<0.000000e+00> : vector<1xf32>
    %570 = vector.multi_reduction <add>, %569, %cst_263 [1, 2] : vector<1x32x128xf32> to vector<1xf32>
    %571 = vector.shape_cast %570 : vector<1xf32> to vector<1x1x1xf32>
    %572 = vector.extract %571[0, 0, 0] : f32 from vector<1x1x1xf32>
    %cst_264 = arith.constant 4.096000e+03 : f32
    %573 = arith.divf %572, %cst_264 : f32
    %574 = vector.broadcast %565 : f32 to vector<32x128xf32>
    %575 = arith.subf %558, %574 : vector<32x128xf32>
    %cst_265 = arith.constant 9.99999974E-6 : f32
    %576 = arith.addf %573, %cst_265 : f32
    %577 = math.rsqrt %576 : f32
    %578 = vector.broadcast %577 : f32 to vector<32x128xf32>
    %579 = arith.mulf %575, %578 : vector<32x128xf32>
    %580 = vector.broadcast %559 : vector<32x1xf32> to vector<32x128xf32>
    %581 = arith.mulf %579, %580 : vector<32x128xf32>
    %582 = vector.broadcast %560 : vector<32x1xf32> to vector<32x128xf32>
    %583 = arith.addf %581, %582 : vector<32x128xf32>
    %cst_266 = arith.constant 5.000000e-01 : f32
    %584 = vector.broadcast %cst_266 : f32 to vector<32x128xf32>
    %585 = arith.mulf %584, %583 : vector<32x128xf32>
    %cst_267 = arith.constant 0.707106769 : f32
    %586 = vector.broadcast %cst_267 : f32 to vector<32x128xf32>
    %587 = arith.mulf %583, %586 : vector<32x128xf32>
    %cst_268 = arith.constant 0.000000e+00 : f32
    %588 = vector.broadcast %cst_268 : f32 to vector<32x128xf32>
    %589 = arith.cmpf oge, %587, %588 : vector<32x128xf32>
    %cst_269 = arith.constant 1.000000e+00 : f32
    %cst_270 = arith.constant -1.000000e+00 : f32
    %590 = vector.broadcast %cst_269 : f32 to vector<32x128xf32>
    %591 = vector.broadcast %cst_270 : f32 to vector<32x128xf32>
    %592 = arith.select %589, %590, %591 : vector<32x128xi1>, vector<32x128xf32>
    %593 = math.absf %587 : vector<32x128xf32>
    %cst_271 = arith.constant 0.327591091 : f32
    %594 = vector.broadcast %cst_271 : f32 to vector<32x128xf32>
    %595 = arith.mulf %594, %593 : vector<32x128xf32>
    %cst_272 = arith.constant 1.000000e+00 : f32
    %596 = vector.broadcast %cst_272 : f32 to vector<32x128xf32>
    %597 = arith.addf %596, %595 : vector<32x128xf32>
    %cst_273 = arith.constant 1.000000e+00 : f32
    %598 = vector.broadcast %cst_273 : f32 to vector<32x128xf32>
    %599 = arith.divf %598, %597 : vector<32x128xf32>
    %cst_274 = arith.constant 1.06140542 : f32
    %600 = vector.broadcast %cst_274 : f32 to vector<32x128xf32>
    %601 = arith.mulf %600, %599 : vector<32x128xf32>
    %cst_275 = arith.constant -1.45315206 : f32
    %602 = vector.broadcast %cst_275 : f32 to vector<32x128xf32>
    %603 = arith.addf %601, %602 : vector<32x128xf32>
    %604 = arith.mulf %603, %599 : vector<32x128xf32>
    %cst_276 = arith.constant 1.42141378 : f32
    %605 = vector.broadcast %cst_276 : f32 to vector<32x128xf32>
    %606 = arith.addf %604, %605 : vector<32x128xf32>
    %607 = arith.mulf %606, %599 : vector<32x128xf32>
    %cst_277 = arith.constant -0.284496725 : f32
    %608 = vector.broadcast %cst_277 : f32 to vector<32x128xf32>
    %609 = arith.addf %607, %608 : vector<32x128xf32>
    %610 = arith.mulf %609, %599 : vector<32x128xf32>
    %cst_278 = arith.constant 0.254829586 : f32
    %611 = vector.broadcast %cst_278 : f32 to vector<32x128xf32>
    %612 = arith.addf %610, %611 : vector<32x128xf32>
    %613 = arith.mulf %612, %599 : vector<32x128xf32>
    %cst_279 = arith.constant 0.000000e+00 : f32
    %614 = vector.broadcast %cst_279 : f32 to vector<32x128xf32>
    %615 = arith.subf %614, %593 : vector<32x128xf32>
    %616 = arith.mulf %615, %593 : vector<32x128xf32>
    %617 = math.exp %616 : vector<32x128xf32>
    %618 = arith.mulf %613, %617 : vector<32x128xf32>
    %cst_280 = arith.constant 1.000000e+00 : f32
    %619 = vector.broadcast %cst_280 : f32 to vector<32x128xf32>
    %620 = arith.subf %619, %618 : vector<32x128xf32>
    %621 = arith.mulf %592, %620 : vector<32x128xf32>
    %cst_281 = arith.constant 1.000000e+00 : f32
    %622 = vector.broadcast %cst_281 : f32 to vector<32x128xf32>
    %623 = arith.addf %622, %621 : vector<32x128xf32>
    %624 = arith.mulf %585, %623 : vector<32x128xf32>
    %625 = arith.addf %624, %472 : vector<32x128xf32>
    %c0_282 = arith.constant 0 : index
    %c0_283 = arith.constant 0 : index
    %626 = vector.load %arg46[%c0_282, %c0_283] : memref<32x32xf32, #tpu.memory_space<vmem>>, vector<32x32xf32>
    %cst_284 = arith.constant dense<0.000000e+00> : vector<32x128xf32>
    %627 = tpu.matmul %626, %625, %cst_284 {dimension_numbers = #tpu.dot_dimension_numbers<[1], [0], [0], [1], [0, 0, 1, 1], [], []>} : vector<32x32xf32>, vector<32x128xf32>, vector<32x128xf32> -> vector<32x128xf32>
    %c0_285 = arith.constant 0 : index
    %c0_286 = arith.constant 0 : index
    %628 = vector.load %arg47[%c0_285, %c0_286] : memref<32x1xf32, #tpu.memory_space<vmem>>, vector<32x1xf32>
    %629 = vector.broadcast %628 : vector<32x1xf32> to vector<32x128xf32>
    %630 = arith.addf %627, %629 : vector<32x128xf32>
    %c0_287 = arith.constant 0 : index
    %c0_288 = arith.constant 0 : index
    %631 = vector.load %arg48[%c0_287, %c0_288] : memref<128x32xf32, #tpu.memory_space<vmem>>, vector<128x32xf32>
    %cst_289 = arith.constant dense<0.000000e+00> : vector<8x32xf32>
    %632 = tpu.matmul %60, %631, %cst_289 {dimension_numbers = #tpu.dot_dimension_numbers<[1], [0], [0], [1], [0, 0, 1, 1], [], []>} : vector<8x128xf32>, vector<128x32xf32>, vector<8x32xf32> -> vector<8x32xf32>
    %c0_290 = arith.constant 0 : index
    %c0_291 = arith.constant 0 : index
    %633 = vector.load %arg49[%c0_290, %c0_291] : memref<1x32xf32, #tpu.memory_space<vmem>>, vector<1x32xf32>
    %634 = vector.broadcast %633 : vector<1x32xf32> to vector<8x32xf32>
    %635 = arith.addf %632, %634 : vector<8x32xf32>
    %c0_292 = arith.constant 0 : index
    %c0_293 = arith.constant 0 : index
    %636 = vector.load %arg50[%c0_292, %c0_293] : memref<32x128xf32, #tpu.memory_space<vmem>>, vector<32x128xf32>
    %cst_294 = arith.constant dense<0.000000e+00> : vector<32x8xf32>
    %637 = tpu.matmul %636, %62, %cst_294 {dimension_numbers = #tpu.dot_dimension_numbers<[1], [0], [0], [1], [0, 0, 1, 1], [], []>} : vector<32x128xf32>, vector<128x8xf32>, vector<32x8xf32> -> vector<32x8xf32>
    %c0_295 = arith.constant 0 : index
    %c0_296 = arith.constant 0 : index
    %638 = vector.load %arg51[%c0_295, %c0_296] : memref<32x1xf32, #tpu.memory_space<vmem>>, vector<32x1xf32>
    %639 = vector.broadcast %638 : vector<32x1xf32> to vector<32x8xf32>
    %640 = arith.addf %637, %639 : vector<32x8xf32>
    %641 = vector.extract_strided_slice %630 {offsets = [0, 0], sizes = [16, 128], strides = [1, 1]} : vector<32x128xf32> to vector<16x128xf32>
    %642 = vector.extract_strided_slice %635 {offsets = [0, 0], sizes = [8, 16], strides = [1, 1]} : vector<8x32xf32> to vector<8x16xf32>
    %643 = vector.extract_strided_slice %640 {offsets = [0, 0], sizes = [16, 8], strides = [1, 1]} : vector<32x8xf32> to vector<16x8xf32>
    %cst_297 = arith.constant dense<0.000000e+00> : vector<8x128xf32>
    %644 = tpu.matmul %642, %641, %cst_297 {dimension_numbers = #tpu.dot_dimension_numbers<[1], [0], [0], [1], [0, 0, 1, 1], [], []>} : vector<8x16xf32>, vector<16x128xf32>, vector<8x128xf32> -> vector<8x128xf32>
    %cst_298 = arith.constant dense<0xFF800000> : vector<128xf32>
    %645 = vector.multi_reduction <maximumf>, %644, %cst_298 [0] : vector<8x128xf32> to vector<128xf32>
    %646 = vector.shape_cast %645 : vector<128xf32> to vector<1x128xf32>
    %647 = vector.broadcast %646 : vector<1x128xf32> to vector<8x128xf32>
    %648 = arith.subf %644, %647 : vector<8x128xf32>
    %649 = math.exp %648 : vector<8x128xf32>
    %cst_299 = arith.constant dense<0.000000e+00> : vector<128xf32>
    %650 = vector.multi_reduction <add>, %649, %cst_299 [0] : vector<8x128xf32> to vector<128xf32>
    %651 = vector.shape_cast %650 : vector<128xf32> to vector<1x128xf32>
    %652 = tpu.reciprocal %651 {approx = true} : vector<1x128xf32> -> vector<1x128xf32>
    %653 = vector.broadcast %652 : vector<1x128xf32> to vector<8x128xf32>
    %654 = arith.mulf %649, %653 : vector<8x128xf32>
    %cst_300 = arith.constant dense<0.000000e+00> : vector<16x128xf32>
    %655 = tpu.matmul %643, %654, %cst_300 {dimension_numbers = #tpu.dot_dimension_numbers<[1], [0], [0], [1], [0, 0, 1, 1], [], []>} : vector<16x8xf32>, vector<8x128xf32>, vector<16x128xf32> -> vector<16x128xf32>
    %656 = vector.extract_strided_slice %630 {offsets = [16, 0], sizes = [16, 128], strides = [1, 1]} : vector<32x128xf32> to vector<16x128xf32>
    %657 = vector.extract_strided_slice %635 {offsets = [0, 16], sizes = [8, 16], strides = [1, 1]} : vector<8x32xf32> to vector<8x16xf32>
    %658 = vector.extract_strided_slice %640 {offsets = [16, 0], sizes = [16, 8], strides = [1, 1]} : vector<32x8xf32> to vector<16x8xf32>
    %cst_301 = arith.constant dense<0.000000e+00> : vector<8x128xf32>
    %659 = tpu.matmul %657, %656, %cst_301 {dimension_numbers = #tpu.dot_dimension_numbers<[1], [0], [0], [1], [0, 0, 1, 1], [], []>} : vector<8x16xf32>, vector<16x128xf32>, vector<8x128xf32> -> vector<8x128xf32>
    %cst_302 = arith.constant dense<0xFF800000> : vector<128xf32>
    %660 = vector.multi_reduction <maximumf>, %659, %cst_302 [0] : vector<8x128xf32> to vector<128xf32>
    %661 = vector.shape_cast %660 : vector<128xf32> to vector<1x128xf32>
    %662 = vector.broadcast %661 : vector<1x128xf32> to vector<8x128xf32>
    %663 = arith.subf %659, %662 : vector<8x128xf32>
    %664 = math.exp %663 : vector<8x128xf32>
    %cst_303 = arith.constant dense<0.000000e+00> : vector<128xf32>
    %665 = vector.multi_reduction <add>, %664, %cst_303 [0] : vector<8x128xf32> to vector<128xf32>
    %666 = vector.shape_cast %665 : vector<128xf32> to vector<1x128xf32>
    %667 = tpu.reciprocal %666 {approx = true} : vector<1x128xf32> -> vector<1x128xf32>
    %668 = vector.broadcast %667 : vector<1x128xf32> to vector<8x128xf32>
    %669 = arith.mulf %664, %668 : vector<8x128xf32>
    %cst_304 = arith.constant dense<0.000000e+00> : vector<16x128xf32>
    %670 = tpu.matmul %658, %669, %cst_304 {dimension_numbers = #tpu.dot_dimension_numbers<[1], [0], [0], [1], [0, 0, 1, 1], [], []>} : vector<16x8xf32>, vector<8x128xf32>, vector<16x128xf32> -> vector<16x128xf32>
    %671 = tpu.concatenate %655, %670 in 0 : vector<16x128xf32>, vector<16x128xf32> -> vector<32x128xf32>
    %c0_305 = arith.constant 0 : index
    %c0_306 = arith.constant 0 : index
    %672 = vector.load %arg52[%c0_305, %c0_306] : memref<32x32xf32, #tpu.memory_space<vmem>>, vector<32x32xf32>
    %cst_307 = arith.constant dense<0.000000e+00> : vector<32x128xf32>
    %673 = tpu.matmul %672, %671, %cst_307 {dimension_numbers = #tpu.dot_dimension_numbers<[1], [0], [0], [1], [0, 0, 1, 1], [], []>} : vector<32x32xf32>, vector<32x128xf32>, vector<32x128xf32> -> vector<32x128xf32>
    %c0_308 = arith.constant 0 : index
    %c0_309 = arith.constant 0 : index
    %674 = vector.load %arg53[%c0_308, %c0_309] : memref<32x1xf32, #tpu.memory_space<vmem>>, vector<32x1xf32>
    %675 = vector.broadcast %674 : vector<32x1xf32> to vector<32x128xf32>
    %676 = arith.addf %673, %675 : vector<32x128xf32>
    %c0_310 = arith.constant 0 : index
    %c0_311 = arith.constant 0 : index
    %c0_312 = arith.constant 0 : index
    %677 = vector.load %arg54[%c0_310, %c0_311, %c0_312] : memref<1x32x128xf32, #tpu.memory_space<vmem>>, vector<1x32x128xf32>
    %678 = vector.shape_cast %677 : vector<1x32x128xf32> to vector<32x128xf32>
    %679 = vector.shape_cast %676 : vector<32x128xf32> to vector<1x32x128xf32>
    tpu.vector_store %arg54[%c0_310, %c0_311, %c0_312], %679 {strides = array<i32>} : memref<1x32x128xf32, #tpu.memory_space<vmem>>, vector<1x32x128xf32>,
    return
  }
  func.func @transform_0(%arg0: i32) -> (i32, i32, i32) {
    %c0_i32 = arith.constant 0 : i32
    %c0_i32_0 = arith.constant 0 : i32
    %c0_i32_1 = arith.constant 0 : i32
    return %arg0, %c0_i32, %c0_i32_0 : i32, i32, i32
  }
  func.func @transform_1(%arg0: i32) -> (i32, i32, i32) {
    %c0_i32 = arith.constant 0 : i32
    %c0_i32_0 = arith.constant 0 : i32
    %c0_i32_1 = arith.constant 0 : i32
    return %arg0, %c0_i32, %c0_i32_0 : i32, i32, i32
  }
  func.func @transform_2(%arg0: i32) -> (i32, i32, i32) {
    %c0_i32 = arith.constant 0 : i32
    %c0_i32_0 = arith.constant 0 : i32
    %c0_i32_1 = arith.constant 0 : i32
    return %arg0, %c0_i32, %c0_i32_0 : i32, i32, i32
  }
  func.func @transform_3(%arg0: i32) -> (i32, i32, i32) {
    %c0_i32 = arith.constant 0 : i32
    %c0_i32_0 = arith.constant 0 : i32
    %c0_i32_1 = arith.constant 0 : i32
    return %arg0, %c0_i32, %c0_i32_0 : i32, i32, i32
  }
  func.func @transform_4(%arg0: i32) -> (i32, i32) {
    %c0_i32 = arith.constant 0 : i32
    %c0_i32_0 = arith.constant 0 : i32
    %c0_i32_1 = arith.constant 0 : i32
    return %c0_i32, %c0_i32_0 : i32, i32
  }
  func.func @transform_5(%arg0: i32) -> (i32, i32) {
    %c0_i32 = arith.constant 0 : i32
    %c0_i32_0 = arith.constant 0 : i32
    %c0_i32_1 = arith.constant 0 : i32
    return %c0_i32, %c0_i32_0 : i32, i32
  }
  func.func @transform_6(%arg0: i32) -> (i32, i32) {
    %c0_i32 = arith.constant 0 : i32
    %c0_i32_0 = arith.constant 0 : i32
    %c0_i32_1 = arith.constant 0 : i32
    return %c0_i32, %c0_i32_0 : i32, i32
  }
  func.func @transform_7(%arg0: i32) -> (i32, i32) {
    %c0_i32 = arith.constant 0 : i32
    %c0_i32_0 = arith.constant 0 : i32
    %c0_i32_1 = arith.constant 0 : i32
    return %c0_i32, %c0_i32_0 : i32, i32
  }
  func.func @transform_8(%arg0: i32) -> (i32, i32) {
    %c0_i32 = arith.constant 0 : i32
    %c0_i32_0 = arith.constant 0 : i32
    %c0_i32_1 = arith.constant 0 : i32
    return %c0_i32, %c0_i32_0 : i32, i32
  }
  func.func @transform_9(%arg0: i32) -> (i32, i32) {
    %c0_i32 = arith.constant 0 : i32
    %c0_i32_0 = arith.constant 0 : i32
    %c0_i32_1 = arith.constant 0 : i32
    return %c0_i32, %c0_i32_0 : i32, i32
  }
  func.func @transform_10(%arg0: i32) -> (i32, i32) {
    %c0_i32 = arith.constant 0 : i32
    %c0_i32_0 = arith.constant 0 : i32
    %c0_i32_1 = arith.constant 0 : i32
    return %c0_i32, %c0_i32_0 : i32, i32
  }
  func.func @transform_11(%arg0: i32) -> (i32, i32) {
    %c0_i32 = arith.constant 0 : i32
    %c0_i32_0 = arith.constant 0 : i32
    %c0_i32_1 = arith.constant 0 : i32
    return %c0_i32, %c0_i32_0 : i32, i32
  }
  func.func @transform_12(%arg0: i32) -> (i32, i32) {
    %c0_i32 = arith.constant 0 : i32
    %c0_i32_0 = arith.constant 0 : i32
    %c0_i32_1 = arith.constant 0 : i32
    return %c0_i32, %c0_i32_0 : i32, i32
  }
  func.func @transform_13(%arg0: i32) -> (i32, i32) {
    %c0_i32 = arith.constant 0 : i32
    %c0_i32_0 = arith.constant 0 : i32
    %c0_i32_1 = arith.constant 0 : i32
    return %c0_i32, %c0_i32_0 : i32, i32
  }
  func.func @transform_14(%arg0: i32) -> (i32, i32) {
    %c0_i32 = arith.constant 0 : i32
    %c0_i32_0 = arith.constant 0 : i32
    %c0_i32_1 = arith.constant 0 : i32
    return %c0_i32, %c0_i32_0 : i32, i32
  }
  func.func @transform_15(%arg0: i32) -> (i32, i32) {
    %c0_i32 = arith.constant 0 : i32
    %c0_i32_0 = arith.constant 0 : i32
    %c0_i32_1 = arith.constant 0 : i32
    return %c0_i32, %c0_i32_0 : i32, i32
  }
  func.func @transform_16(%arg0: i32) -> (i32, i32) {
    %c0_i32 = arith.constant 0 : i32
    %c0_i32_0 = arith.constant 0 : i32
    %c0_i32_1 = arith.constant 0 : i32
    return %c0_i32, %c0_i32_0 : i32, i32
  }
  func.func @transform_17(%arg0: i32) -> (i32, i32) {
    %c0_i32 = arith.constant 0 : i32
    %c0_i32_0 = arith.constant 0 : i32
    %c0_i32_1 = arith.constant 0 : i32
    return %c0_i32, %c0_i32_0 : i32, i32
  }
  func.func @transform_18(%arg0: i32) -> (i32, i32) {
    %c0_i32 = arith.constant 0 : i32
    %c0_i32_0 = arith.constant 0 : i32
    %c0_i32_1 = arith.constant 0 : i32
    return %c0_i32, %c0_i32_0 : i32, i32
  }
  func.func @transform_19(%arg0: i32) -> (i32, i32) {
    %c0_i32 = arith.constant 0 : i32
    %c0_i32_0 = arith.constant 0 : i32
    %c0_i32_1 = arith.constant 0 : i32
    return %c0_i32, %c0_i32_0 : i32, i32
  }
  func.func @transform_20(%arg0: i32) -> (i32, i32) {
    %c0_i32 = arith.constant 0 : i32
    %c0_i32_0 = arith.constant 0 : i32
    %c0_i32_1 = arith.constant 0 : i32
    return %c0_i32, %c0_i32_0 : i32, i32
  }
  func.func @transform_21(%arg0: i32) -> (i32, i32) {
    %c0_i32 = arith.constant 0 : i32
    %c0_i32_0 = arith.constant 0 : i32
    %c0_i32_1 = arith.constant 0 : i32
    return %c0_i32, %c0_i32_0 : i32, i32
  }
  func.func @transform_22(%arg0: i32) -> (i32, i32) {
    %c0_i32 = arith.constant 0 : i32
    %c0_i32_0 = arith.constant 0 : i32
    %c0_i32_1 = arith.constant 0 : i32
    return %c0_i32, %c0_i32_0 : i32, i32
  }
  func.func @transform_23(%arg0: i32) -> (i32, i32) {
    %c0_i32 = arith.constant 0 : i32
    %c0_i32_0 = arith.constant 0 : i32
    %c0_i32_1 = arith.constant 0 : i32
    return %c0_i32, %c0_i32_0 : i32, i32
  }
  func.func @transform_24(%arg0: i32) -> (i32, i32) {
    %c0_i32 = arith.constant 0 : i32
    %c0_i32_0 = arith.constant 0 : i32
    %c0_i32_1 = arith.constant 0 : i32
    return %c0_i32, %c0_i32_0 : i32, i32
  }
  func.func @transform_25(%arg0: i32) -> (i32, i32) {
    %c0_i32 = arith.constant 0 : i32
    %c0_i32_0 = arith.constant 0 : i32
    %c0_i32_1 = arith.constant 0 : i32
    return %c0_i32, %c0_i32_0 : i32, i32
  }
  func.func @transform_26(%arg0: i32) -> (i32, i32) {
    %c0_i32 = arith.constant 0 : i32
    %c0_i32_0 = arith.constant 0 : i32
    %c0_i32_1 = arith.constant 0 : i32
    return %c0_i32, %c0_i32_0 : i32, i32
  }
  func.func @transform_27(%arg0: i32) -> (i32, i32) {
    %c0_i32 = arith.constant 0 : i32
    %c0_i32_0 = arith.constant 0 : i32
    %c0_i32_1 = arith.constant 0 : i32
    return %c0_i32, %c0_i32_0 : i32, i32
  }
  func.func @transform_28(%arg0: i32) -> (i32, i32) {
    %c0_i32 = arith.constant 0 : i32
    %c0_i32_0 = arith.constant 0 : i32
    %c0_i32_1 = arith.constant 0 : i32
    return %c0_i32, %c0_i32_0 : i32, i32
  }
  func.func @transform_29(%arg0: i32) -> (i32, i32) {
    %c0_i32 = arith.constant 0 : i32
    %c0_i32_0 = arith.constant 0 : i32
    %c0_i32_1 = arith.constant 0 : i32
    return %c0_i32, %c0_i32_0 : i32, i32
  }
  func.func @transform_30(%arg0: i32) -> (i32, i32) {
    %c0_i32 = arith.constant 0 : i32
    %c0_i32_0 = arith.constant 0 : i32
    %c0_i32_1 = arith.constant 0 : i32
    return %c0_i32, %c0_i32_0 : i32, i32
  }
  func.func @transform_31(%arg0: i32) -> (i32, i32) {
    %c0_i32 = arith.constant 0 : i32
    %c0_i32_0 = arith.constant 0 : i32
    %c0_i32_1 = arith.constant 0 : i32
    return %c0_i32, %c0_i32_0 : i32, i32
  }
  func.func @transform_32(%arg0: i32) -> (i32, i32) {
    %c0_i32 = arith.constant 0 : i32
    %c0_i32_0 = arith.constant 0 : i32
    %c0_i32_1 = arith.constant 0 : i32
    return %c0_i32, %c0_i32_0 : i32, i32
  }
  func.func @transform_33(%arg0: i32) -> (i32, i32) {
    %c0_i32 = arith.constant 0 : i32
    %c0_i32_0 = arith.constant 0 : i32
    %c0_i32_1 = arith.constant 0 : i32
    return %c0_i32, %c0_i32_0 : i32, i32
  }
  func.func @transform_34(%arg0: i32) -> (i32, i32) {
    %c0_i32 = arith.constant 0 : i32
    %c0_i32_0 = arith.constant 0 : i32
    %c0_i32_1 = arith.constant 0 : i32
    return %c0_i32, %c0_i32_0 : i32, i32
  }
  func.func @transform_35(%arg0: i32) -> (i32, i32) {
    %c0_i32 = arith.constant 0 : i32
    %c0_i32_0 = arith.constant 0 : i32
    %c0_i32_1 = arith.constant 0 : i32
    return %c0_i32, %c0_i32_0 : i32, i32
  }
  func.func @transform_36(%arg0: i32) -> (i32, i32) {
    %c0_i32 = arith.constant 0 : i32
    %c0_i32_0 = arith.constant 0 : i32
    %c0_i32_1 = arith.constant 0 : i32
    return %c0_i32, %c0_i32_0 : i32, i32
  }
  func.func @transform_37(%arg0: i32) -> (i32, i32) {
    %c0_i32 = arith.constant 0 : i32
    %c0_i32_0 = arith.constant 0 : i32
    %c0_i32_1 = arith.constant 0 : i32
    return %c0_i32, %c0_i32_0 : i32, i32
  }
  func.func @transform_38(%arg0: i32) -> (i32, i32) {
    %c0_i32 = arith.constant 0 : i32
    %c0_i32_0 = arith.constant 0 : i32
    %c0_i32_1 = arith.constant 0 : i32
    return %c0_i32, %c0_i32_0 : i32, i32
  }
  func.func @transform_39(%arg0: i32) -> (i32, i32) {
    %c0_i32 = arith.constant 0 : i32
    %c0_i32_0 = arith.constant 0 : i32
    %c0_i32_1 = arith.constant 0 : i32
    return %c0_i32, %c0_i32_0 : i32, i32
  }
  func.func @transform_40(%arg0: i32) -> (i32, i32) {
    %c0_i32 = arith.constant 0 : i32
    %c0_i32_0 = arith.constant 0 : i32
    %c0_i32_1 = arith.constant 0 : i32
    return %c0_i32, %c0_i32_0 : i32, i32
  }
  func.func @transform_41(%arg0: i32) -> (i32, i32) {
    %c0_i32 = arith.constant 0 : i32
    %c0_i32_0 = arith.constant 0 : i32
    %c0_i32_1 = arith.constant 0 : i32
    return %c0_i32, %c0_i32_0 : i32, i32
  }
  func.func @transform_42(%arg0: i32) -> (i32, i32) {
    %c0_i32 = arith.constant 0 : i32
    %c0_i32_0 = arith.constant 0 : i32
    %c0_i32_1 = arith.constant 0 : i32
    return %c0_i32, %c0_i32_0 : i32, i32
  }
  func.func @transform_43(%arg0: i32) -> (i32, i32) {
    %c0_i32 = arith.constant 0 : i32
    %c0_i32_0 = arith.constant 0 : i32
    %c0_i32_1 = arith.constant 0 : i32
    return %c0_i32, %c0_i32_0 : i32, i32
  }
  func.func @transform_44(%arg0: i32) -> (i32, i32) {
    %c0_i32 = arith.constant 0 : i32
    %c0_i32_0 = arith.constant 0 : i32
    %c0_i32_1 = arith.constant 0 : i32
    return %c0_i32, %c0_i32_0 : i32, i32
  }
  func.func @transform_45(%arg0: i32) -> (i32, i32) {
    %c0_i32 = arith.constant 0 : i32
    %c0_i32_0 = arith.constant 0 : i32
    %c0_i32_1 = arith.constant 0 : i32
    return %c0_i32, %c0_i32_0 : i32, i32
  }
  func.func @transform_46(%arg0: i32) -> (i32, i32) {
    %c0_i32 = arith.constant 0 : i32
    %c0_i32_0 = arith.constant 0 : i32
    %c0_i32_1 = arith.constant 0 : i32
    return %c0_i32, %c0_i32_0 : i32, i32
  }
  func.func @transform_47(%arg0: i32) -> (i32, i32) {
    %c0_i32 = arith.constant 0 : i32
    %c0_i32_0 = arith.constant 0 : i32
    %c0_i32_1 = arith.constant 0 : i32
    return %c0_i32, %c0_i32_0 : i32, i32
  }
  func.func @transform_48(%arg0: i32) -> (i32, i32) {
    %c0_i32 = arith.constant 0 : i32
    %c0_i32_0 = arith.constant 0 : i32
    %c0_i32_1 = arith.constant 0 : i32
    return %c0_i32, %c0_i32_0 : i32, i32
  }
  func.func @transform_49(%arg0: i32) -> (i32, i32) {
    %c0_i32 = arith.constant 0 : i32
    %c0_i32_0 = arith.constant 0 : i32
    %c0_i32_1 = arith.constant 0 : i32
    return %c0_i32, %c0_i32_0 : i32, i32
  }
  func.func @transform_50(%arg0: i32) -> (i32, i32) {
    %c0_i32 = arith.constant 0 : i32
    %c0_i32_0 = arith.constant 0 : i32
    %c0_i32_1 = arith.constant 0 : i32
    return %c0_i32, %c0_i32_0 : i32, i32
  }
  func.func @transform_51(%arg0: i32) -> (i32, i32) {
    %c0_i32 = arith.constant 0 : i32
    %c0_i32_0 = arith.constant 0 : i32
    %c0_i32_1 = arith.constant 0 : i32
    return %c0_i32, %c0_i32_0 : i32, i32
  }
  func.func @transform_52(%arg0: i32) -> (i32, i32) {
    %c0_i32 = arith.constant 0 : i32
    %c0_i32_0 = arith.constant 0 : i32
    %c0_i32_1 = arith.constant 0 : i32
    return %c0_i32, %c0_i32_0 : i32, i32
  }
  func.func @transform_53(%arg0: i32) -> (i32, i32, i32) {
    %c0_i32 = arith.constant 0 : i32
    %c0_i32_0 = arith.constant 0 : i32
    %c0_i32_1 = arith.constant 0 : i32
    return %arg0, %c0_i32, %c0_i32_0 : i32, i32, i32
  }
}

</mosaic_0001>

<bundles_post_ra>
// kernel: cross_attn_down_block_forward.1
= control target key start
LH: loop header
LB: loop body
LE: loop exit
PB: predicated region body
PF: predicated region fallthrough
CT: control target
= control target key end

     0   :  { %s7150_s6 = smov 1   ;;  %s7151_s10 = smov 2   ;;  %s9928_s0 = inlined_call_operand.smem [shape: u32[54], index: -1, kind: input, shape index: {}] }
   0x1   :  { %s7219_s5 = sld [smem:[%s9928_s0]]   ;;  %s7152_s14 = smov 3  }
   0x2   :  { %s7224_s9 = sld [smem:[%s9928_s0 + %s7150_s6]]   ;;  %s7153_s18 = smov 4  }
   0x3   :  { %s7229_s13 = sld [smem:[%s9928_s0 + %s7151_s10]]   ;;  %s7154_s22 = smov 5  }
   0x4   :  { %s7234_s17 = sld [smem:[%s9928_s0 + %s7152_s14]]   ;;  %s7155_s26 = smov 6  }
   0x5   :  { %s7239_s21 = sld [smem:[%s9928_s0 + %s7153_s18]]   ;;  %s7156_s30 = smov 7  }
   0x6   :  { %s7244_s25 = sld [smem:[%s9928_s0 + %s7154_s22]]   ;;  %s7157_s4 = smov 8  }
   0x7   :  { %10062 = sst [smem:[#allocation2_spill]] %s7219_s5  ;;  %s7158_s10 = smov 9  }
   0x8   :  { %10063 = sst [smem:[#allocation3_spill]] %s7224_s9  ;;  %s7159_s15 = smov 10  }
   0x9   :  { %10064 = sst [smem:[#allocation4_spill]] %s7229_s13  ;;  %s7160_s20 = smov 11  }
   0xa   :  { %s7249_s29 = sld [smem:[%s9928_s0 + %s7155_s26]]   ;;  %s7161_s26 = smov 12  }
   0xb   :  { %s7254_s3 = sld [smem:[%s9928_s0 + %s7156_s30]]   ;;  %s7162_s1 = smov 13  }
   0xc   :  { %s7259_s8 = sld [smem:[%s9928_s0 + %s7157_s4]]   ;;  %s7163_s7 = smov 14  }
   0xd   :  { %s7264_s14 = sld [smem:[%s9928_s0 + %s7158_s10]]   ;;  %s7165_s22 = smov 16  }
   0xe   :  { %s7269_s19 = sld [smem:[%s9928_s0 + %s7159_s15]]   ;;  %s7164_s15 = smov 15  }
   0xf   :  { %s7274_s24 = sld [smem:[%s9928_s0 + %s7160_s20]]   ;;  %s7166_s28 = smov 17  }
  0x10   :  { %s7279_s30 = sld [smem:[%s9928_s0 + %s7161_s26]]  }
  0x11   :  { %10065 = sst [smem:[#allocation5_spill]] %s7254_s3 }
  0x12   :  { %10066 = sst [smem:[#allocation6_spill]] %s7259_s8 }
  0x13   :  { %10067 = sst [smem:[#allocation7_spill]] %s7264_s14 }
  0x14   :  { %s7284_s6 = sld [smem:[%s9928_s0 + %s7162_s1]]  }
  0x15   :  { %s7289_s12 = sld [smem:[%s9928_s0 + %s7163_s7]]   ;;  %s7167_s7 = smov 18  }
  0x16   :  { %10068 = sst [smem:[#allocation8_spill]] %s7279_s30 }
  0x17   :  { %s7294_s20 = sld [smem:[%s9928_s0 + %s7164_s15]]   ;;  %s7168_s15 = smov 19  }
  0x18   :  { %s7299_s27 = sld [smem:[%s9928_s0 + %s7165_s22]]   ;;  %s7169_s22 = smov 20  }
  0x19   :  { %s7304_s4 = sld [smem:[%s9928_s0 + %s7166_s28]]   ;;  %s7170_s28 = smov 21  }
  0x1a   :  { %10069 = sst [smem:[#allocation9_spill]] %s7284_s6 }
  0x1b   :  { %10070 = sst [smem:[#allocation10_spill]] %s7289_s12 }
  0x1c   :  { %s7309_s6 = sld [smem:[%s9928_s0 + %s7167_s7]]   ;;  %s7171_s7 = smov 22  }
  0x1d   :  { %10071 = sst [smem:[#allocation11_spill]] %s7294_s20 }
  0x1e   :  { %10072 = sst [smem:[#allocation12_spill]] %s7299_s27 }
  0x1f   :  { %10073 = sst [smem:[#allocation13_spill]] %s7304_s4 }
  0x20   :  { %s7314_s30 = sld [smem:[%s9928_s0 + %s7168_s15]]   ;;  %s7172_s15 = smov 23  }
  0x21   :  { %s7319_s27 = sld [smem:[%s9928_s0 + %s7169_s22]]   ;;  %s7173_s22 = smov 24  }
  0x22   :  { %10074 = sst [smem:[#allocation14_spill]] %s7309_s6 }
  0x23   :  { %s7324_s4 = sld [smem:[%s9928_s0 + %s7170_s28]]   ;;  %s7174_s28 = smov 25  }
  0x24   :  { %s7329_s6 = sld [smem:[%s9928_s0 + %s7171_s7]]   ;;  %s7175_s7 = smov 26  }
  0x26   :  { %10075 = sst [smem:[#allocation15_spill]] %s7314_s30 }
  0x27   :  { %10076 = sst [smem:[#allocation16_spill]] %s7319_s27 }
  0x28   :  { %s7334_s30 = sld [smem:[%s9928_s0 + %s7172_s15]]   ;;  %s7176_s15 = smov 27  }
  0x29   :  { %10077 = sst [smem:[#allocation17_spill]] %s7324_s4 }
  0x2a   :  { %10078 = sst [smem:[#allocation18_spill]] %s7329_s6 }
  0x2b   :  { %s7339_s27 = sld [smem:[%s9928_s0 + %s7173_s22]]   ;;  %s7177_s22 = smov 28  }
  0x2c   :  { %s7344_s4 = sld [smem:[%s9928_s0 + %s7174_s28]]   ;;  %s7178_s28 = smov 29  }
  0x2d   :  { %s7349_s6 = sld [smem:[%s9928_s0 + %s7175_s7]]   ;;  %s7179_s7 = smov 30  }
  0x2e   :  { %10079 = sst [smem:[#allocation19_spill]] %s7334_s30 }
  0x2f   :  { %s7354_s30 = sld [smem:[%s9928_s0 + %s7176_s15]]   ;;  %s7180_s15 = smov 31  }
  0x31   :  { %10080 = sst [smem:[#allocation20_spill]] %s7339_s27 }
  0x32   :  { %10081 = sst [smem:[#allocation21_spill]] %s7344_s4 }
  0x33   :  { %10082 = sst [smem:[#allocation22_spill]] %s7349_s6 }
  0x34   :  { %s7359_s27 = sld [smem:[%s9928_s0 + %s7177_s22]]   ;;  %s7181_s22 = smov 32  }
  0x35   :  { %10083 = sst [smem:[#allocation23_spill]] %s7354_s30 }
  0x36   :  { %s7364_s4 = sld [smem:[%s9928_s0 + %s7178_s28]]   ;;  %s7182_s28 = smov 33  }
  0x37   :  { %s7369_s6 = sld [smem:[%s9928_s0 + %s7179_s7]]   ;;  %s7183_s7 = smov 34  }
  0x38   :  { %s7374_s30 = sld [smem:[%s9928_s0 + %s7180_s15]]   ;;  %s7184_s15 = smov 35  }
  0x39   :  { %s7389_s20 = sld [smem:[%s9928_s0 + %s7183_s7]]   ;;  %s7187_s7 = smov 38  }
  0x3a   :  { %10084 = sst [smem:[#allocation24_spill]] %s7359_s27 }
  0x3b   :  { %s7379_s27 = sld [smem:[%s9928_s0 + %s7181_s22]]   ;;  %s7185_s22 = smov 36  }
  0x3c   :  { %10085 = sst [smem:[#allocation25_spill]] %s7364_s4 }
  0x3d   :  { %10086 = sst [smem:[#allocation26_spill]] %s7369_s6 }
  0x3e   :  { %s7384_s4 = sld [smem:[%s9928_s0 + %s7182_s28]]   ;;  %s7186_s28 = smov 37  }
  0x3f   :  { %10089 = sst [smem:[#allocation29_spill]] %s7389_s20 }
  0x40   :  { %s7394_s12 = sld [smem:[%s9928_s0 + %s7184_s15]]   ;;  %s7188_s15 = smov 39  }
  0x41   :  { %10087 = sst [smem:[#allocation27_spill]] %s7379_s27 }
  0x42   :  { %s7399_s27 = sld [smem:[%s9928_s0 + %s7185_s22]]   ;;  %s7189_s22 = smov 40  }
  0x43   :  { %s7409_s20 = sld [smem:[%s9928_s0 + %s7187_s7]]   ;;  %s7191_s7 = smov 42  }
  0x44   :  { %10088 = sst [smem:[#allocation28_spill]] %s7384_s4 }
  0x45   :  { %s7404_s4 = sld [smem:[%s9928_s0 + %s7186_s28]]   ;;  %s7190_s28 = smov 41  }
  0x46   :  { %10090 = sst [smem:[#allocation30_spill]] %s7394_s12 }
  0x47   :  { %s7414_s12 = sld [smem:[%s9928_s0 + %s7188_s15]]   ;;  %s7192_s15 = smov 43  }
  0x48   :  { %10091 = sst [smem:[#allocation31_spill]] %s7399_s27 }
  0x49   :  { %10093 = sst [smem:[#allocation33_spill]] %s7409_s20 }
  0x4a   :  { %s7419_s27 = sld [smem:[%s9928_s0 + %s7189_s22]]   ;;  %s7193_s22 = smov 44  }
  0x4b   :  { %10092 = sst [smem:[#allocation32_spill]] %s7404_s4 }
  0x4c   :  { %s7424_s4 = sld [smem:[%s9928_s0 + %s7190_s28]]   ;;  %s7194_s28 = smov 45  }
  0x4d   :  { %10094 = sst [smem:[#allocation34_spill]] %s7414_s12 }
  0x4e   :  { %s7429_s20 = sld [smem:[%s9928_s0 + %s7191_s7]]   ;;  %s7195_s7 = smov 46  }
  0x4f   :  { %s7434_s12 = sld [smem:[%s9928_s0 + %s7192_s15]]   ;;  %s7196_s15 = smov 47  }
  0x50   :  { %10095 = sst [smem:[#allocation35_spill]] %s7419_s27 }
  0x51   :  { %s7439_s27 = sld [smem:[%s9928_s0 + %s7193_s22]]   ;;  %s7197_s22 = smov 48  }
  0x52   :  { %10096 = sst [smem:[#allocation36_spill]] %s7424_s4 }
  0x53   :  { %s7444_s4 = sld [smem:[%s9928_s0 + %s7194_s28]]   ;;  %s7198_s28 = smov 49  }
  0x54   :  { %10097 = sst [smem:[#allocation37_spill]] %s7429_s20 }
  0x55   :  { %10098 = sst [smem:[#allocation38_spill]] %s7434_s12 }
  0x56   :  { %s7449_s20 = sld [smem:[%s9928_s0 + %s7195_s7]]   ;;  %s7199_s7 = smov 50  }
  0x57   :  { %10099 = sst [smem:[#allocation39_spill]] %s7439_s27 }
  0x58   :  { %s7454_s12 = sld [smem:[%s9928_s0 + %s7196_s15]]   ;;  %s7200_s15 = smov 51  }
  0x59   :  { %10100 = sst [smem:[#allocation40_spill]] %s7444_s4 }
  0x5a   :  { %s7459_s27 = sld [smem:[%s9928_s0 + %s7197_s22]]   ;;  %s7201_s22 = smov 52  }
  0x5b   :  { %s7464_s4 = sld [smem:[%s9928_s0 + %s7198_s28]]   ;;  %s7202_s28 = smov 53  }
  0x5c   :  { %10101 = sst [smem:[#allocation41_spill]] %s7449_s20 }
  0x5d   :  { %s7469_s20 = sld [smem:[%s9928_s0 + %s7199_s7]]   ;;  %s7486_s7 = smov 0  }
  0x5e   :  { %10102 = sst [smem:[#allocation42_spill]] %s7454_s12 }
  0x5f   :  { %s7474_s12 = sld [smem:[%s9928_s0 + %s7200_s15]]  }
  0x60   :  { %10103 = sst [smem:[#allocation43_spill]] %s7459_s27 }
  0x61   :  { %10104 = sst [smem:[#allocation44_spill]] %s7464_s4 }
  0x62   :  { %s7479_s27 = sld [smem:[%s9928_s0 + %s7201_s22]]  }
  0x63   :  { %s7484_s4 = sld [smem:[%s9928_s0 + %s7202_s28]]  }
  0x64 LB: > { %s10105_s14 = sld [smem:[#allocation7_spill]]  ;;  %s6319_s10 = sadd.s32 4294967295, %s7148_s7   ;;  %s7148_s7 = sphi %s7486_s7, %s117_s7  }
  0x65   : > { %s10106_s6 = sld [smem:[#allocation26_spill]]  ;;  %p6323_p0 = scmp.ge.s32.totalorder %s7148_s7, 1 }
  0x66   : > { %s10107_s8 = sld [smem:[#allocation6_spill]]  ;;  %p1470_p1 = scmp.lt.s32.totalorder %s7148_s7, 3 }
  0x67   : > { %s10108_s3 = sld [smem:[#allocation5_spill]] }
  0x68   : > { %p1471_p2 = pnand %p6323_p0, %p1470_p1 }
  0x6a   : > { %1474 = sbr.rel (%p1471_p2) target bundleno = 7234 (0x1c42), region = 232 }
  0x6f   : > { %p1608_p3 = scmp.lt.s32.totalorder %s6319_s10, 1  ;;  %s10109_s9 = sld [smem:[#allocation3_spill]]  ;;  %v1632_v32 = vlaneseq  ;;  %v10033_v37 = vmov 1.0  }
  0x70   : > { %s10110_s5 = sld [smem:[#allocation2_spill]]  ;;  %s7203_s16 = smov 127  }
  0x71   : > { %s10466_s10 = smov (!%p1608_p3, %s6319_s10), 1  ;;  %s7204_s18 = smov 126   ;;  %v7545_v33 = vshrl.u32 %v1632_v32, 7  ;;  %v7547_v34 = vand.u32 127, %v1632_v32 }
  0x72   : > { %s7497_s0 = sshll.u32 %s10466_s10, 5  ;;  %s7205_s22 = smov 125  }
  0x73   : > { %v1648_v35 = vadd.s32 120, %v7545_v33  ;;  %v1647_v38 = vadd.s32 112, %v7545_v33  ;;  %v1646_v40 = vadd.s32 104, %v7545_v33  ;;  %v1645_v41 = vadd.s32 96, %v7545_v33  ;;  %s10159_s13 = sld [smem:[#allocation4_spill]] }
  0x74   : > { %v1644_v42 = vadd.s32 88, %v7545_v33  ;;  %v1643_v46 = vadd.s32 80, %v7545_v33  ;;  %v1642_v48 = vadd.s32 72, %v7545_v33  ;;  %v1641_v50 = vadd.s32 64, %v7545_v33 }
  0x75   : > { %s7501_s11 = scalar_lea.vmem %s10109_s9, %s7497_s0  ;;  %v7551_v36 = vsub.s32 %v7547_v34, %v1648_v35  ;;  %v7559_v39 = vsub.s32 %v7547_v34, %v1647_v38  ;;  %v7566_v43 = vsub.s32 %v7547_v34, %v1646_v40  ;;  %v7572_v44 = vsub.s32 %v7547_v34, %v1645_v41 }
  0x76   : > { %v7504_v0 = vld [vmem:[%s7501_s11] sm:$0xff]  ;;  %s1612_s15 = scalar_lea.vmem %s10110_s5, %s7497_s0  ;;  %v1864_v5 = vld [vmem:[%s7501_s11 + $0x8] sm:$0xff]  ;;  %v1866_v18 = vld [vmem:[%s7501_s11 + $0x18] sm:$0xff]  ;;  %v7575_v45 = vsub.s32 %v7547_v34, %v1644_v42  ;;  %v7588_v47 = vsub.s32 %v7547_v34, %v1643_v46  ;;  %v7596_v49 = vsub.s32 %v7547_v34, %v1642_v48  ;;  %v7604_v51 = vsub.s32 %v7547_v34, %v1641_v50  ;;  %s10184_s5 = sld [smem:[#allocation33_spill]] }
  0x77   : > { %v1898_v1 = vmul.f32 0.43359375, %v7504_v0  ;;  %v7509_v2 = vld [vmem:[%s1612_s15] sm:$0xff]  ;;  %v1860_v6 = vld [vmem:[%s1612_s15 + $0x8] sm:$0xff]  ;;  %v1899_v7 = vmul.f32 0.43359375, %v1864_v5  ;;  %v7520_v10 = vld [vmem:[%s1612_s15 + $0x10] sm:$0xff]  ;;  %v1944_v11 = vmul.f32 0.11328125, %v1864_v5 }
  0x78   : > { %v1875_v3 = vmul.f32 0.11328125, %v7509_v2  ;;  %v1920_v4 = vmul.f32 0.43359375, %v7509_v2  ;;  %v1876_v8 = vmul.f32 0.11328125, %v1860_v6  ;;  %v1921_v9 = vmul.f32 0.43359375, %v1860_v6  ;;  %v1862_v14 = vld [vmem:[%s1612_s15 + $0x18] sm:$0xff]  ;;  %v7531_v19 = vld [vmem:[%s7501_s11 + $0x10] sm:$0xff] }
  0x79   : > { %1906 = vrot.lane.b32.xlu1 %v1898_v1, %s7203_s16  ;;  %v1943_v12 = vmul.f32 0.11328125, %v7504_v0  ;;  %v1877_v13 = vmul.f32 0.11328125, %v7520_v10  ;;  %v1965_v15 = vmul.f32 -0.03515625, %v7509_v2  ;;  %v1878_v16 = vmul.f32 0.11328125, %v1862_v14 }
  0x7a   : > { %1883 = vrot.lane.b32.xlu0 %v1875_v3, %s7203_s16  ;;  %1928 = vrot.lane.b32.xlu2 %v1920_v4, %s7204_s18  ;;  %v1966_v17 = vmul.f32 -0.03515625, %v1860_v6  ;;  %v1901_v20 = vmul.f32 0.43359375, %v1866_v18  ;;  %v1900_v21 = vmul.f32 0.43359375, %v7531_v19  ;;  %v1988_v22 = vmul.f32 -0.01171875, %v7504_v0 }
  0x7b   : > { %v1922_v23 = vmul.f32 0.43359375, %v7520_v10  ;;  %v1989_v24 = vmul.f32 -0.01171875, %v1864_v5  ;;  %v1923_v25 = vmul.f32 0.43359375, %v1862_v14  ;;  %v1946_v26 = vmul.f32 0.11328125, %v1866_v18 }
  0x7c   : > { %v1945_v27 = vmul.f32 0.11328125, %v7531_v19  ;;  %v1967_v28 = vmul.f32 -0.03515625, %v7520_v10  ;;  %v1990_v29 = vmul.f32 -0.01171875, %v7531_v19  ;;  %v1968_v30 = vmul.f32 -0.03515625, %v1862_v14 }
  0x7d   : > { %v1991_v31 = vmul.f32 -0.01171875, %v1866_v18  ;;  %vm9970_vm0 = vcmp.eq.s32.totalorder %v7551_v36, 4294967294  ;;  %vm9969_vm1 = vcmp.eq.s32.totalorder %v7559_v39, 4294967294  ;;  %vm9968_vm2 = vcmp.eq.s32.totalorder %v7566_v43, 4294967294 }
  0x7e   : > { %6445 = vmatpush.msk.msra.mxu3 %vm9970_vm0, %v10033_v37  ;;  %vm9967_vm3 = vcmp.eq.s32.totalorder %v7572_v44, 4294967294  ;;  %vm9966_vm4 = vcmp.eq.s32.totalorder %v7575_v45, 4294967294  ;;  %vm9965_vm5 = vcmp.eq.s32.totalorder %v7588_v47, 4294967294  ;;  %vm9963_vm6 = vcmp.eq.s32.totalorder %v7596_v49, 4294967294 }
  0x7f   : > { %v1640_v52 = vadd.s32 56, %v7545_v33  ;;  %vm9989_vm7 = vcmp.eq.s32.totalorder %v7551_v36, 2  ;;  %vm9987_vm8 = vcmp.eq.s32.totalorder %v7551_v36, 1  ;;  %vm9998_vm9 = vcmp.eq.s32.totalorder %v7551_v36, 4294967295 }
  0x80   : > { %6446 = vmatpush.msk.msra.mxu3 %vm9969_vm1, %v10033_v37  ;;  %vm9983_vm10 = vcmp.eq.s32.totalorder %v7559_v39, 2  ;;  %6397 = vmatpush.msk.msra.mxu0 %vm9989_vm7, %v10033_v37  ;;  %vm9962_vm11 = vcmp.eq.s32.totalorder %v7604_v51, 4294967294  ;;  %vm9982_vm12 = vcmp.eq.s32.totalorder %v7559_v39, 1  ;;  %vm10001_vm13 = vcmp.eq.s32.totalorder %v7559_v39, 4294967295 }
  0x81   : > { %1908 = vrot.lane.b32.xlu1 %v1899_v7, %s7203_s16  ;;  %6413 = vmatpush.msk.msra.mxu1 %vm9987_vm8, %v10033_v37  ;;  %v7624_v53 = vsub.s32 %v7547_v34, %v1640_v52  ;;  %v1639_v54 = vadd.s32 48, %v7545_v33  ;;  %v1638_v55 = vadd.s32 40, %v7545_v33  ;;  %vm9980_vm15 = vcmp.eq.s32.totalorder %v7566_v43, 2 }
  0x82   : > { %1885 = vrot.lane.b32.xlu0 %v1876_v8, %s7203_s16  ;;  %1930 = vrot.lane.b32.xlu2 %v1921_v9, %s7204_s18  ;;  %v1637_v58 = vadd.s32 32, %v7545_v33  ;;  %vm9979_vm1 = vcmp.eq.s32.totalorder %v7575_v45, 2  ;;  %vm9978_vm0 = vcmp.eq.s32.totalorder %v7575_v45, 1  ;;  %v1636_v61 = vadd.s32 24, %v7545_v33 }
  0x83   : > { %6447 = vmatpush.msk.msra.mxu3 %vm9968_vm2, %v10033_v37  ;;  %6429 = vmatpush.msk.msra.mxu2 %vm9998_vm9, %v10033_v37  ;;  %vm9964_vm14 = vcmp.eq.s32.totalorder %v7624_v53, 4294967294  ;;  %v7651_v56 = vsub.s32 %v7547_v34, %v1639_v54  ;;  %v7660_v57 = vsub.s32 %v7547_v34, %v1638_v55  ;;  %v1635_v62 = vadd.s32 16, %v7545_v33 }
  0x84   : > { %6398 = vmatpush.msk.msra.mxu0 %vm9983_vm10, %v10033_v37  ;;  %6414 = vmatpush.msk.msra.mxu1 %vm9982_vm12, %v10033_v37  ;;  %v7689_v60 = vsub.s32 %v7547_v34, %v1637_v58  ;;  %v7716_v63 = vsub.s32 %v7547_v34, %v1636_v61  ;;  %v1634_v3 = vadd.s32 8, %v7545_v33  ;;  %vm9991_vm12 = vcmp.eq.s32.totalorder %v7604_v51, 1 }
  0x85   : > { %6448 = vmatpush.msk.msra.mxu3 %vm9967_vm3, %v10033_v37  ;;  %6430 = vmatpush.msk.msra.mxu2 %vm10001_vm13, %v10033_v37  ;;  %vm10007_vm3 = vcmp.eq.s32.totalorder %v7572_v44, 4294967295  ;;  %vm9975_vm2 = vcmp.eq.s32.totalorder %v7660_v57, 4294967294  ;;  %v7719_v1 = vsub.s32 %v7547_v34, %v1635_v62  ;;  %vm10021_vm10 = vcmp.eq.s32.totalorder %v7604_v51, 4294967295 }
  0x86   : > { %6399 = vmatpush.msk.msra.mxu0 %vm9980_vm15, %v10033_v37  ;;  %v7737_v4 = vsub.s32 %v7547_v34, %v1634_v3  ;;  %v7759_v5 = vsub.s32 %v7547_v34, %v7545_v33  ;;  %vm10015_vm8 = vcmp.eq.s32.totalorder %v7624_v53, 4294967295  ;;  %v1868_v42 = vmul.f32 -0.01171875, %v7520_v10 }
  0x87   : > { %6449 = vmatpush.msk.msra.mxu3 %vm9966_vm4, %v10033_v37  ;;  %vm9974_vm4 = vcmp.eq.s32.totalorder %v7572_v44, 1  ;;  %10111 = vst [vmem:[#allocation45_spill] sm:$0xff] %v7719_v1  ;;  %vm9990_vm15 = vcmp.eq.s32.totalorder %v7719_v1, 4294967294  ;;  %v1872_v46 = vmul.f32 -0.03515625, %v7531_v19 }
  0x88   : > { %10112 = vst [vmem:[#allocation46_spill] sm:$0xff] %v7737_v4  ;;  %vm9995_vm7 = vcmp.eq.s32.totalorder %v7759_v5, 4294967294 }
  0x89   : > { %1953 = vrot.lane.b32.xlu1 %v1944_v11, %s7204_s18  ;;  %6450 = vmatpush.msk.msra.mxu3 %vm9965_vm5, %v10033_v37  ;;  %vm9973_vm5 = vcmp.eq.s32.totalorder %v7572_v44, 2  ;;  %10113 = vst [vmem:[#allocation47_spill] sm:$0xff] %v7759_v5  ;;  %v1874_v52 = vadd.f32 %v1872_v46, %v1868_v42 }
  0x8a   : > { %1951 = vrot.lane.b32.xlu0 %v1943_v12, %s7204_s18  ;;  %1887 = vrot.lane.b32.xlu2 %v1877_v13, %s7203_s16 }
  0x8b   : > { %6451 = vmatpush.msk.msra.mxu3 %vm9963_vm6, %v10033_v37  ;;  %vm10004_vm6 = vcmp.eq.s32.totalorder %v7566_v43, 4294967295  ;;  %6400 = vmatpush.msk.msra.mxu0 %vm9973_vm5, %v10033_v37  ;;  %vm9981_vm5 = vcmp.eq.s32.totalorder %v7588_v47, 1 }
  0x8c   : > { %6431 = vmatpush.msk.msra.mxu2 %vm10004_vm6, %v10033_v37 }
  0x8d   : > { %6452 = vmatpush.msk.msra.mxu3 %vm9962_vm11, %v10033_v37  ;;  %vm9971_vm11 = vcmp.eq.s32.totalorder %v7566_v43, 1  ;;  %6401 = vmatpush.msk.msra.mxu0 %vm9979_vm1, %v10033_v37  ;;  %vm9985_vm1 = vcmp.eq.s32.totalorder %v7716_v63, 4294967294 }
  0x8e   : > { %6415 = vmatpush.msk.msra.mxu1 %vm9971_vm11, %v10033_v37  ;;  %vm10010_vm11 = vcmp.eq.s32.totalorder %v7575_v45, 4294967295  ;;  %6432 = vmatpush.msk.msra.mxu2 %vm10007_vm3, %v10033_v37 }
  0x8f   : > { %6453 = vmatpush.msk.msra.mxu3 %vm9964_vm14, %v10033_v37  ;;  %vm9972_vm14 = vcmp.eq.s32.totalorder %v7651_v56, 4294967294 }
  0x90   : > { %6416 = vmatpush.msk.msra.mxu1 %vm9974_vm4, %v10033_v37  ;;  %vm10011_vm4 = vcmp.eq.s32.totalorder %v7588_v47, 4294967295  ;;  %6433 = vmatpush.msk.msra.mxu2 %vm10010_vm11, %v10033_v37 }
  0x91   : > { %1973 = vrot.lane.b32.xlu1 %v1965_v15, %s7205_s22  ;;  %6454 = vmatpush.msk.msra.mxu3 %vm9972_vm14, %v10033_v37  ;;  %vm9977_vm14 = vcmp.eq.s32.totalorder %v7588_v47, 2 }
  0x92   : > { %1889 = vrot.lane.b32.xlu0 %v1878_v16, %s7203_s16  ;;  %1975 = vrot.lane.b32.xlu2 %v1966_v17, %s7205_s22  ;;  %v1871_v16 = vmul.f32 -0.03515625, %v7504_v0  ;;  %v1867_v17 = vmul.f32 -0.01171875, %v7509_v2 }
  0x93   : > { %6455 = vmatpush.msk.msra.mxu3 %vm9975_vm2, %v10033_v37  ;;  %6417 = vmatpush.msk.msra.mxu1 %vm9978_vm0, %v10033_v37  ;;  %vm9976_vm2 = vcmp.eq.s32.totalorder %v7689_v60, 4294967294  ;;  %vm10013_vm0 = vcmp.eq.s32.totalorder %v7596_v49, 4294967295 }
  0x94   : > { %6402 = vmatpush.msk.msra.mxu0 %vm9977_vm14, %v10033_v37  ;;  %6434 = vmatpush.msk.msra.mxu2 %vm10011_vm4, %v10033_v37  ;;  %vm9986_vm14 = vcmp.eq.s32.totalorder %v7596_v49, 1  ;;  %v1873_v2 = vadd.f32 %v1871_v16, %v1867_v17  ;;  %v2189_v16 = vld [vmem:[%s7249_s29] sm:$0xff] }
  0x95   : > { %6456 = vmatpush.msk.msra.mxu3 %vm9976_vm2, %v10033_v37  ;;  %6418 = vmatpush.msk.msra.mxu1 %vm9981_vm5, %v10033_v37  ;;  %vm9984_vm2 = vcmp.eq.s32.totalorder %v7596_v49, 2  ;;  %vm9988_vm5 = vcmp.eq.s32.totalorder %v7604_v51, 2  ;;  %v2193_v17 = vld [vmem:[%s10108_s3] sm:$0xff] }
  0x96   : > { %6403 = vmatpush.msk.msra.mxu0 %vm9984_vm2, %v10033_v37  ;;  %vm9994_vm2 = vcmp.eq.s32.totalorder %v7624_v53, 2  ;;  %6435 = vmatpush.msk.msra.mxu2 %vm10013_vm0, %v10033_v37 }
  0x97   : > { %6457 = vmatpush.msk.msra.mxu3 %vm9985_vm1, %v10033_v37  ;;  %6419 = vmatpush.msk.msra.mxu1 %vm9986_vm14, %v10033_v37  ;;  %vm9992_vm1 = vcmp.eq.s32.totalorder %v7737_v4, 4294967294  ;;  %vm9993_vm14 = vcmp.eq.s32.totalorder %v7624_v53, 1 }
  0x98   : > { %6404 = vmatpush.msk.msra.mxu0 %vm9988_vm5, %v10033_v37  ;;  %vm9997_vm5 = vcmp.eq.s32.totalorder %v7651_v56, 2  ;;  %6436 = vmatpush.msk.msra.mxu2 %vm10021_vm10, %v10033_v37 }
  0x99   : > { %1912 = vrot.lane.b32.xlu1 %v1901_v20, %s7203_s16  ;;  %6458 = vmatpush.msk.msra.mxu3 %vm9990_vm15, %v10033_v37  ;;  %vm9996_vm15 = vcmp.eq.s32.totalorder %v7651_v56, 1 }
  0x9a   : > { %1910 = vrot.lane.b32.xlu0 %v1900_v21, %s7203_s16  ;;  %1996 = vrot.lane.b32.xlu2 %v1988_v22, %s7205_s22  ;;  %s6855_s16 = sshll.u32 %s10466_s10, 7 }
  0x9b   : > { %6420 = vmatpush.msk.msra.mxu1 %vm9991_vm12, %v10033_v37  ;;  %6405 = vmatpush.msk.msra.mxu0 %vm9994_vm2, %v10033_v37  ;;  %vm10014_vm12 = vcmp.eq.s32.totalorder %v7651_v56, 4294967295  ;;  %vm10002_vm2 = vcmp.eq.s32.totalorder %v7660_v57, 4294967295 }
  0x9c   : > { %6459 = vmatpush.msk.msra.mxu3 %vm9992_vm1, %v10033_v37  ;;  %6437 = vmatpush.msk.msra.mxu2 %vm10015_vm8, %v10033_v37  ;;  %vm9999_vm1 = vcmp.eq.s32.totalorder %v7660_v57, 2 }
  0x9d   : > { %6421 = vmatpush.msk.msra.mxu1 %vm9993_vm14, %v10033_v37  ;;  %6406 = vmatpush.msk.msra.mxu0 %vm9997_vm5, %v10033_v37  ;;  %vm10000_vm14 = vcmp.eq.s32.totalorder %v7660_v57, 1  ;;  %vm10020_vm5 = vcmp.eq.s32.totalorder %v7689_v60, 4294967295 }
  0x9e   : > { %6460 = vmatpush.msk.msra.mxu3 %vm9995_vm7, %v10033_v37  ;;  %6438 = vmatpush.msk.msra.mxu2 %vm10014_vm12, %v10033_v37  ;;  %vm10054_vm7 = vcmp.eq.s32.totalorder %v7689_v60, 2 }
  0x9f   : > { %6422 = vmatpush.msk.msra.mxu1 %vm9996_vm15, %v10033_v37  ;;  %6407 = vmatpush.msk.msra.mxu0 %vm9999_vm1, %v10033_v37  ;;  %vm10003_vm15 = vcmp.eq.s32.totalorder %v7689_v60, 1  ;;  %vm10005_vm1 = vcmp.eq.s32.totalorder %v7716_v63, 1 }
  0xa0   : > { %6497 = vmatpush.msk.msrb.mxu3 %vm9998_vm9, %v10033_v37  ;;  %6439 = vmatpush.msk.msra.mxu2 %vm10002_vm2, %v10033_v37  ;;  %vm10006_vm9 = vcmp.eq.s32.totalorder %v7716_v63, 2  ;;  %vm10008_vm2 = vcmp.eq.s32.totalorder %v7719_v1, 1 }
  0xa1   : > { %1932 = vrot.lane.b32.xlu1 %v1922_v23, %s7204_s18  ;;  %6423 = vmatpush.msk.msra.mxu1 %vm10000_vm14, %v10033_v37  ;;  %vm10019_vm14 = vcmp.eq.s32.totalorder %v7716_v63, 4294967295 }
  0xa2   : > { %1998 = vrot.lane.b32.xlu0 %v1989_v24, %s7205_s22  ;;  %1934 = vrot.lane.b32.xlu2 %v1923_v25, %s7204_s18 }
  0xa3   : > { %6498 = vmatpush.msk.msrb.mxu3 %vm10001_vm13, %v10033_v37  ;;  %6408 = vmatpush.msk.msra.mxu0 %vm10054_vm7, %v10033_v37  ;;  %vm10009_vm13 = vcmp.eq.s32.totalorder %v7719_v1, 2 }
  0xa4   : > { %6424 = vmatpush.msk.msra.mxu1 %vm10003_vm15, %v10033_v37  ;;  %6440 = vmatpush.msk.msra.mxu2 %vm10020_vm5, %v10033_v37  ;;  %vm10018_vm15 = vcmp.eq.s32.totalorder %v7719_v1, 4294967295 }
  0xa5   : > { %6499 = vmatpush.msk.msrb.mxu3 %vm10004_vm6, %v10033_v37  ;;  %6409 = vmatpush.msk.msra.mxu0 %vm10006_vm9, %v10033_v37  ;;  %vm10053_vm6 = vcmp.eq.s32.totalorder %v7737_v4, 2  ;;  %vm10017_vm9 = vcmp.eq.s32.totalorder %v7737_v4, 4294967295 }
  0xa6   : > { %6425 = vmatpush.msk.msra.mxu1 %vm10005_vm1, %v10033_v37  ;;  %6441 = vmatpush.msk.msra.mxu2 %vm10019_vm14, %v10033_v37  ;;  %vm10022_vm1 = vcmp.eq.s32.totalorder %v7737_v4, 1 }
  0xa7   : > { %6500 = vmatpush.msk.msrb.mxu3 %vm10007_vm3, %v10033_v37  ;;  %6410 = vmatpush.msk.msra.mxu0 %vm10009_vm13, %v10033_v37  ;;  %vm10023_vm3 = vcmp.eq.s32.totalorder %v7759_v5, 2  ;;  %vm10016_vm13 = vcmp.eq.s32.totalorder %v7759_v5, 4294967295 }
  0xa8   : > { %6426 = vmatpush.msk.msra.mxu1 %vm10008_vm2, %v10033_v37  ;;  %6442 = vmatpush.msk.msra.mxu2 %vm10018_vm15, %v10033_v37  ;;  %vm10012_vm2 = vcmp.eq.s32.totalorder %v7759_v5, 1 }
  0xa9   : > { %1957 = vrot.lane.b32.xlu1 %v1946_v26, %s7204_s18  ;;  %6501 = vmatpush.msk.msrb.mxu3 %vm10010_vm11, %v10033_v37  ;;  %vm10114_vm11 = vcmp.eq.s32.totalorder %v7551_v36, 2 }
  0xaa   : > { %1955 = vrot.lane.b32.xlu0 %v1945_v27, %s7204_s18  ;;  %1977 = vrot.lane.b32.xlu2 %v1967_v28, %s7205_s22  ;;  %v2032_v27 = vld [vmem:[%s7244_s25 + $0x8] sm:$0xff]  ;;  %s8241_s18 = scalar_lea.vmem %s7234_s17, %s6855_s16  ;;  %s10179_s16 = sld [smem:[#allocation11_spill]] }
  0xab   : > { %6411 = vmatpush.msk.msra.mxu0 %vm10053_vm6, %v10033_v37  ;;  %6427 = vmatpush.msk.msra.mxu1 %vm10022_vm1, %v10033_v37 }
  0xac   : > { %6443 = vmatpush.msk.msra.mxu2 %vm10017_vm9, %v10033_v37  ;;  %6502 = vmatpush.msk.msrb.mxu3 %vm10011_vm4, %v10033_v37  ;;  %vm10115_vm4 = vcmp.eq.s32.totalorder %v7551_v36, 1 }
  0xad   : > { %6412 = vmatpush.msk.msra.mxu0 %vm10023_vm3, %v10033_v37  ;;  %6428 = vmatpush.msk.msra.mxu1 %vm10012_vm2, %v10033_v37  ;;  %vm10116_vm2 = vcmp.eq.s32.totalorder %v7559_v39, 2 }
  0xae   : > { %6444 = vmatpush.msk.msra.mxu2 %vm10016_vm13, %v10033_v37  ;;  %6503 = vmatpush.msk.msrb.mxu3 %vm10013_vm0, %v10033_v37  ;;  %vm10117_vm0 = vcmp.eq.s32.totalorder %v7559_v39, 1 }
  0xaf   : > { %6465 = vmatpush.msk.msrb.mxu1 %vm10114_vm11, %v10033_v37  ;;  %vm10119_vm11 = vcmp.eq.s32.totalorder %v7566_v43, 1 }
  0xb0   : > { %6481 = vmatpush.msk.msrb.mxu2 %vm10115_vm4, %v10033_v37  ;;  %6504 = vmatpush.msk.msrb.mxu3 %vm10021_vm10, %v10033_v37  ;;  %vm10118_vm4 = vcmp.eq.s32.totalorder %v7566_v43, 2 }
  0xb1   : > { %2000 = vrot.lane.b32.xlu1 %v1990_v29, %s7205_s22  ;;  %6466 = vmatpush.msk.msrb.mxu1 %vm10116_vm2, %v10033_v37  ;;  %vm10121_vm2 = vcmp.eq.s32.totalorder %v7572_v44, 1 }
  0xb2   : > { %1979 = vrot.lane.b32.xlu0 %v1968_v30, %s7205_s22  ;;  %2002 = vrot.lane.b32.xlu2 %v1991_v31, %s7205_s22  ;;  %v7207_v30 = vmov 0   ;;  %s6328_s22 = sshll.u32 %s10466_s10, 3  ;;  %s10160_s10 = sld [smem:[#allocation28_spill]] }
  0xb3   : > { %6482 = vmatpush.msk.msrb.mxu2 %vm10117_vm0, %v10033_v37  ;;  %6505 = vmatpush.msk.msrb.mxu3 %vm10015_vm8, %v10033_v37  ;;  %vm10120_vm0 = vcmp.eq.s32.totalorder %v7572_v44, 2  ;;  %vm10124_vm8 = vcmp.eq.s32.totalorder %v7575_v45, 1 }
  0xb4   : > { %6467 = vmatpush.msk.msrb.mxu1 %vm10118_vm4, %v10033_v37  ;;  %vm10122_vm4 = vcmp.eq.s32.totalorder %v7660_v57, 4294967295  ;;  %6969 = vset.pattern.permute.xlu1 %v7207_v30 }
  0xb5   : > { %6483 = vmatpush.msk.msrb.mxu2 %vm10119_vm11, %v10033_v37  ;;  %6506 = vmatpush.msk.msrb.mxu3 %vm10014_vm12, %v10033_v37  ;;  %vm1891_vm11 = vcmask 1039360   ;;  %vm10123_vm12 = vcmp.eq.s32.totalorder %v7575_v45, 2 }
  0xb6   : > { %6468 = vmatpush.msk.msrb.mxu1 %vm10120_vm0, %v10033_v37  ;;  %vm10125_vm0 = vcmp.eq.s32.totalorder %v7588_v47, 2  ;;  %6968 = vset.pattern.permute.xlu0 %v7207_v30 }
  0xb7   : > { %6484 = vmatpush.msk.msrb.mxu2 %vm10121_vm2, %v10033_v37  ;;  %6507 = vmatpush.msk.msrb.mxu3 %vm10122_vm4, %v10033_v37  ;;  %vm10126_vm2 = vcmp.eq.s32.totalorder %v7588_v47, 1  ;;  %vm10129_vm4 = vcmp.eq.s32.totalorder %v7604_v51, 2 }
  0xb8   : > { %6469 = vmatpush.msk.msrb.mxu1 %vm10123_vm12, %v10033_v37  ;;  %vm10128_vm12 = vcmp.eq.s32.totalorder %v7596_v49, 1  ;;  %6970 = vset.pattern.permute.xlu2 %v7207_v30  ;;  %v2483_v30 = vld [vmem:[%s10105_s14 + $0x8] sm:$0xff] }
  0xb9   : > { %6485 = vmatpush.msk.msrb.mxu2 %vm10124_vm8, %v10033_v37  ;;  %6508 = vmatpush.msk.msrb.mxu3 %vm10020_vm5, %v10033_v37  ;;  %vm10127_vm8 = vcmp.eq.s32.totalorder %v7596_v49, 2 }
  0xba   : > { %6470 = vmatpush.msk.msrb.mxu1 %vm10125_vm0, %v10033_v37  ;;  %vm10130_vm0 = vcmp.eq.s32.totalorder %v7604_v51, 1  ;;  %2134 = vperm.xlu1 %6969, %v2032_v27   ;;  %v2482_v27 = vld [vmem:[%s10105_s14] sm:$0xff] }
  0xbb   : > { %6486 = vmatpush.msk.msrb.mxu2 %vm10126_vm2, %v10033_v37  ;;  %6509 = vmatpush.msk.msrb.mxu3 %vm10019_vm14, %v10033_v37  ;;  %vm10131_vm2 = vcmp.eq.s32.totalorder %v7624_v53, 2 }
  0xbc   : > { %6471 = vmatpush.msk.msrb.mxu1 %vm10127_vm8, %v10033_v37  ;;  %vm10132_vm8 = vcmp.eq.s32.totalorder %v7624_v53, 1 }
  0xbd   : > { %6487 = vmatpush.msk.msrb.mxu2 %vm10128_vm12, %v10033_v37  ;;  %6510 = vmatpush.msk.msrb.mxu3 %vm10018_vm15, %v10033_v37  ;;  %vm1936_vm12 = vcmask 1031168  }
  0xbe   : > { %6472 = vmatpush.msk.msrb.mxu1 %vm10129_vm4, %v10033_v37  ;;  %vm10133_vm4 = vcmp.eq.s32.totalorder %v7651_v56, 2 }
  0xbf   : > { %6488 = vmatpush.msk.msrb.mxu2 %vm10130_vm0, %v10033_v37  ;;  %6511 = vmatpush.msk.msrb.mxu3 %vm10017_vm9, %v10033_v37  ;;  %vm10134_vm0 = vcmp.eq.s32.totalorder %v7651_v56, 1 }
  0xc0   : > { %6473 = vmatpush.msk.msrb.mxu1 %vm10131_vm2, %v10033_v37  ;;  %vm1981_vm2 = vcmask 1022976  }
  0xc1   : > { %6489 = vmatpush.msk.msrb.mxu2 %vm10132_vm8, %v10033_v37  ;;  %6512 = vmatpush.msk.msrb.mxu3 %vm10016_vm13, %v10033_v37  ;;  %vm10135_vm8 = vcmp.eq.s32.totalorder %v7660_v57, 2  ;;  %vm10136_vm13 = vcmp.eq.s32.totalorder %v7660_v57, 1 }
  0xc2   : > { %6474 = vmatpush.msk.msrb.mxu1 %vm10133_vm4, %v10033_v37  ;;  %vm10138_vm4 = vcmp.eq.s32.totalorder %v7716_v63, 2 }
  0xc3   : > { %6490 = vmatpush.msk.msrb.mxu2 %vm10134_vm0, %v10033_v37  ;;  %vm10139_vm0 = vcmp.eq.s32.totalorder %v7716_v63, 1 }
  0xc4   : > { %6475 = vmatpush.msk.msrb.mxu1 %vm10135_vm8, %v10033_v37  ;;  %vm10140_vm8 = vcmp.eq.s32.totalorder %v7719_v1, 2 }
  0xc5   : > { %6491 = vmatpush.msk.msrb.mxu2 %vm10136_vm13, %v10033_v37  ;;  %vm10137_vm13 = vcmp.eq.s32.totalorder %v7689_v60, 1 }
  0xc6   : > { %6476 = vmatpush.msk.msrb.mxu1 %vm10054_vm7, %v10033_v37 }
  0xc7   : > { %6492 = vmatpush.msk.msrb.mxu2 %vm10137_vm13, %v10033_v37  ;;  %vm10141_vm13 = vcmp.eq.s32.totalorder %v7719_v1, 1 }
  0xc8   : > { %6477 = vmatpush.msk.msrb.mxu1 %vm10138_vm4, %v10033_v37  ;;  %vm10142_vm4 = vcmp.eq.s32.totalorder %v7759_v5, 1 }
  0xc9   : > { %6493 = vmatpush.msk.msrb.mxu2 %vm10139_vm0, %v10033_v37  ;;  %vm10145_vm0 = vcmp.eq.s32.totalorder %v7566_v43, 4294967294 }
  0xca   : > { %6478 = vmatpush.msk.msrb.mxu1 %vm10140_vm8, %v10033_v37  ;;  %vm10146_vm8 = vcmp.eq.s32.totalorder %v7572_v44, 4294967294 }
  0xcb   : > { %6494 = vmatpush.msk.msrb.mxu2 %vm10141_vm13, %v10033_v37  ;;  %vm10147_vm13 = vcmp.eq.s32.totalorder %v7575_v45, 4294967294 }
  0xcc   : > { %6479 = vmatpush.msk.msrb.mxu1 %vm10053_vm6, %v10033_v37 }
  0xcd   : > { %6495 = vmatpush.msk.msrb.mxu2 %vm10022_vm1, %v10033_v37 }
  0xce   : > { %6480 = vmatpush.msk.msrb.mxu1 %vm10023_vm3, %v10033_v37 }
  0xcf   : > { %6496 = vmatpush.msk.msrb.mxu2 %vm10142_vm4, %v10033_v37  ;;  %vm10148_vm4 = vcmp.eq.s32.totalorder %v7588_v47, 4294967294 }
  0xd4   : > { %v7680_v59 = vpop.permute.xlu2 %1928 }
  0xdc   : > { %v7777_v6 = vpop.permute.xlu2 %1930 }
  0xdd   : > { %v1937_v28 = vsel %vm1936_vm12, %v7680_v59, %v7777_v6 }
  0xe4   : > { %v7843_v9 = vpop.permute.xlu2 %1887 }
  0xeb   : > { %v7786_v7 = vpop.permute.xlu1 %1906 }
  0xec   : > { %v7794_v8 = vpop.permute.xlu0 %1883  ;;  %v1976_v15 = vpop.permute.xlu2 %1975 }
  0xf3   : > { %v1909_v11 = vpop.permute.xlu1 %1908 }
  0xf4   : > { %v1886_v12 = vpop.permute.xlu0 %1885  ;;  %v1997_v21 = vpop.permute.xlu2 %1996  ;;  %v1914_v23 = vsel %vm1891_vm11, %v7786_v7, %v1909_v11 }
  0xf5   : > { %v1892_v20 = vsel %vm1891_vm11, %v7794_v8, %v1886_v12 }
  0xf6   : > { %v1896_v22 = vadd.f32 %v1892_v20, %v1873_v2  ;;  %v2194_v2 = vld [vmem:[%s10108_s3 + $0x8] sm:$0xff] }
  0xf8   : > { %v1918_v25 = vadd.f32 %v1914_v23, %v1896_v22  ;;  %v2192_v22 = vld [vmem:[%s7249_s29 + $0x18] sm:$0xff]  ;;  %v2031_v23 = vld [vmem:[%s7244_s25] sm:$0xff] }
  0xf9   : > { %2129 = vperm.xlu0 %6968, %v2031_v23  }
  0xfa   : > { %v1941_v31 = vadd.f32 %v1937_v28, %v1918_v25 }
  0xfb   : > { %v1954_v13 = vpop.permute.xlu1 %1953 }
  0xfc   : > { %v1952_v14 = vpop.permute.xlu0 %1951  ;;  %v1935_v32 = vpop.permute.xlu2 %1934 }
  0xfd   : > { %v1959_v29 = vsel %vm1936_vm12, %v1952_v14, %v1954_v13 }
  0xfe   : > { %v1963_v34 = vadd.f32 %v1959_v29, %v1941_v31  ;;  %v2033_v31 = vld [vmem:[%s7244_s25 + $0x10] sm:$0xff] }
  0xff   : > { %2139 = vperm.xlu2 %6970, %v2033_v31  }
 0x103   : > { %v1974_v0 = vpop.permute.xlu1 %1973 }
 0x104   : > { %v1890_v18 = vpop.permute.xlu0 %1889  ;;  %v1982_v33 = vsel %vm1981_vm2, %v1974_v0, %v1976_v15  ;;  %v1978_v50 = vpop.permute.xlu2 %1977  ;;  %v2034_v15 = vld [vmem:[%s7244_s25 + $0x18] sm:$0xff]  ;;  %v2190_v0 = vld [vmem:[%s7249_s29 + $0x8] sm:$0xff] }
 0x105   : > { %v1986_v38 = vadd.f32 %v1982_v33, %v1963_v34  ;;  %v1893_v10 = vsel %vm1891_vm11, %v7843_v9, %v1890_v18  ;;  %2144 = vperm.xlu1 %6969, %v2034_v15   ;;  %v2191_v18 = vld [vmem:[%s7249_s29 + $0x10] sm:$0xff]  ;;  %v2027_v33 = vld [vmem:[%s7239_s21] sm:$0xff]  ;;  %v2028_v34 = vld [vmem:[%s7239_s21 + $0x8] sm:$0xff] }
 0x106   : > { %v1897_v58 = vadd.f32 %v1893_v10, %v1874_v52 }
 0x10b   : > { %v1913_v24 = vpop.permute.xlu1 %1912 }
 0x10c   : > { %v1911_v26 = vpop.permute.xlu0 %1910  ;;  %v2003_v6 = vpop.permute.xlu2 %2002 }
 0x10d   : > { %v1915_v55 = vsel %vm1891_vm11, %v1911_v26, %v1913_v24  ;;  %2268 = vperm.xlu1 %6969, %v2189_v16   ;;  %vm2147_vm11 = vcmask 654336  }
 0x10e   : > { %v1919_v61 = vadd.f32 %v1915_v55, %v1897_v58 }
 0x113   : > { %v1933_v35 = vpop.permute.xlu1 %1932 }
 0x114   : > { %v1999_v40 = vpop.permute.xlu0 %1998  ;;  %v1938_v59 = vsel %vm1936_vm12, %v1933_v35, %v1935_v32  ;;  %v2029_v35 = vld [vmem:[%s7239_s21 + $0x10] sm:$0xff] }
 0x115   : > { %v2004_v41 = vsel %vm1981_vm2, %v1997_v21, %v1999_v40  ;;  %v1942_v3 = vadd.f32 %v1938_v59, %v1919_v61  ;;  %2292 = vperm.xlu1 %6969, %v2193_v17  }
 0x116   : > { %v2008_v48 = vadd.f32 %v2004_v41, %v1986_v38  ;;  %v2030_v38 = vld [vmem:[%s7239_s21 + $0x18] sm:$0xff] }
 0x118   : > { %2051 = vmatmul.f32.vlgmr.msra.gmra.mxu0 %v2008_v48  ;;  %2074 = vmatmul.f32.vlgmr.msra.gmra.mxu1 %v2008_v48 }
 0x119   : > { %2097 = vmatmul.f32.vlgmr.msra.gmra.mxu2 %v2008_v48  ;;  %2120 = vmatmul.f32.vlgmr.msra.gmra.mxu3 %v2008_v48 }
 0x11b   : > { %v1958_v19 = vpop.permute.xlu1 %1957 }
 0x11c   : > { %v1956_v54 = vpop.permute.xlu0 %1955 }
 0x11d   : > { %v1960_v62 = vsel %vm1936_vm12, %v1956_v54, %v1958_v19  ;;  %2273 = vperm.xlu1 %6969, %v2190_v0   ;;  %vm10143_vm12 = vcmp.eq.s32.totalorder %v7551_v36, 4294967294 }
 0x11e   : > { %v1964_v8 = vadd.f32 %v1960_v62, %v1942_v3  ;;  %v2195_v3 = vld [vmem:[%s10108_s3 + $0x10] sm:$0xff] }
 0x123   : > { %v2001_v7 = vpop.permute.xlu1 %2000 }
 0x124   : > { %v1980_v11 = vpop.permute.xlu0 %1979  ;;  %v2005_v12 = vsel %vm1981_vm2, %v2001_v7, %v2003_v6  ;;  %v2484_v6 = vld [vmem:[%s10105_s14 + $0x10] sm:$0xff]  ;;  %v7208_v7 = vmov 4096.0  }
 0x125   : > { %v1983_v9 = vsel %vm1981_vm2, %v1978_v50, %v1980_v11  ;;  %2297 = vperm.xlu1 %6969, %v2194_v2   ;;  %vm10144_vm2 = vcmp.eq.s32.totalorder %v7559_v39, 4294967294  ;;  %6974 = vrcp.f32 %v7208_v7 }
 0x126   : > { %v1987_v13 = vadd.f32 %v1983_v9, %v1964_v8 }
 0x128   : > { %v2009_v14 = vadd.f32 %v2005_v12, %v1987_v13 }
 0x12a   : > { %2054 = vmatmul.f32.gmra.mxu0 %v2009_v14  ;;  %2077 = vmatmul.f32.gmra.mxu1 %v2009_v14 }
 0x12b   : > { %2100 = vmatmul.f32.gmra.mxu2 %v2009_v14  ;;  %2123 = vmatmul.f32.gmra.mxu3 %v2009_v14  ;;  %v6975_v8 = vpop.eup %6974 }
 0x12c   : > { %3009 = vmatpush.msra.mxu3 %v2009_v14  ;;  %v2135_v42 = vpop.permute.xlu1 %2134  ;;  %v2210_v11 = vmul.f32 4096.0, %v6975_v8 }
 0x12d   : > { %2278 = vperm.xlu1 %6969, %v2191_v18  }
 0x12e   : > { %3010 = vmatpush.msra.mxu3 %v2008_v48  ;;  %v2211_v9 = vsub.f32 1.0, %v2210_v11 }
 0x130   : > { %v2212_v15 = vmul.f32 %v6975_v8, %v2211_v9 }
 0x132   : > { %v2213_v0 = vadd.f32 %v6975_v8, %v2212_v15 }
 0x135   : > { %2283 = vperm.xlu1 %6969, %v2192_v22  }
 0x13d   : > { %2604 = vperm.xlu1 %6969, %v2482_v27  }
 0x145   : > { %2609 = vperm.xlu1 %6969, %v2483_v30  }
 0x159   : > { %v2140_v50 = vpop.permute.xlu2 %2139 }
 0x177   : > { %v2145_v55 = vpop.permute.xlu1 %2144 }
 0x195   : > { %v2075_v25 = vpop.f32.mrf.mxu1  ;;  %v2052_v28 = vpop.f32.mrf.mxu0 }
 0x19c   : > { %v2121_v20 = vpop.f32.mrf.mxu3  ;;  %v2098_v21 = vpop.f32.mrf.mxu2 }
 0x1a7   : > { %v2078_v29 = vpop.f32.mrf.mxu1  ;;  %v2055_v32 = vpop.f32.mrf.mxu0 }
 0x1ae   : > { %v2124_v24 = vpop.f32.mrf.mxu3  ;;  %v2101_v26 = vpop.f32.mrf.mxu2 }
 0x1af   : > { %2166 = vmatpush.msrb.mxu0 %v2124_v24 }
 0x1b1   : > { %2167 = vmatpush.msrb.mxu0 %v2121_v20 }
 0x1b3   : > { %2168 = vmatpush.msrb.mxu0 %v2101_v26 }
 0x1b5   : > { %2169 = vmatpush.msrb.mxu0 %v2098_v21 }
 0x1b7   : > { %2170 = vmatpush.msrb.mxu0 %v2009_v14 }
 0x1b9   : > { %2171 = vmatpush.msrb.mxu0 %v2008_v48  ;;  %v2130_v48 = vpop.permute.xlu0 %2129 }
 0x1bb   : > { %2172 = vmatpush.msrb.mxu0 %v2078_v29 }
 0x1bd   : > { %2173 = vmatpush.msrb.mxu0 %v2075_v25 }
 0x1bf   : > { %2174 = vmatpush.msrb.mxu0 %v2055_v32 }
 0x1c1   : > { %2175 = vmatpush.msrb.mxu0 %v2052_v28 }
 0x1c2   : > { %6461 = vmatmul.msk.f32.vlgmr.msrb.gmra.mxu0 %vm2147_vm11, %v2027_v33  ;;  %v2196_v33 = vld [vmem:[%s10108_s3 + $0x18] sm:$0xff]  ;;  %s10183_s3 = sld [smem:[#allocation16_spill]] }
 0x1c3   : > { %6513 = vmatpush.msk.msra.mxu0 %vm10143_vm12, %v10033_v37  ;;  %vm10149_vm12 = vcmp.eq.s32.totalorder %v7596_v49, 4294967294 }
 0x1c5   : > { %6514 = vmatpush.msk.msra.mxu0 %vm10144_vm2, %v10033_v37  ;;  %vm10150_vm2 = vcmp.eq.s32.totalorder %v7604_v51, 4294967294 }
 0x1c7   : > { %6515 = vmatpush.msk.msra.mxu0 %vm10145_vm0, %v10033_v37  ;;  %vm10151_vm0 = vcmp.eq.s32.totalorder %v7624_v53, 4294967294 }
 0x1c9   : > { %6516 = vmatpush.msk.msra.mxu0 %vm10146_vm8, %v10033_v37  ;;  %vm10152_vm8 = vcmp.eq.s32.totalorder %v7651_v56, 4294967294 }
 0x1ca   : > { %6462 = vmatmul.msk.f32.gmra.mxu0 %vm2147_vm11, %v2028_v34  ;;  %v2485_v34 = vld [vmem:[%s10105_s14 + $0x18] sm:$0xff] }
 0x1cb   : > { %6517 = vmatpush.msk.msra.mxu0 %vm10147_vm13, %v10033_v37  ;;  %vm10153_vm13 = vcmp.eq.s32.totalorder %v7660_v57, 4294967294 }
 0x1cd   : > { %6518 = vmatpush.msk.msra.mxu0 %vm10148_vm4, %v10033_v37  ;;  %vm10154_vm4 = vcmp.eq.s32.totalorder %v7689_v60, 4294967294 }
 0x1cf   : > { %6519 = vmatpush.msk.msra.mxu0 %vm10149_vm12, %v10033_v37  ;;  %vm10155_vm12 = vcmp.eq.s32.totalorder %v7716_v63, 4294967294 }
 0x1d1   : > { %6520 = vmatpush.msk.msra.mxu0 %vm10150_vm2, %v10033_v37  ;;  %vm10156_vm2 = vcmp.eq.s32.totalorder %v7719_v1, 4294967294 }
 0x1d2   : > { %6463 = vmatmul.msk.f32.gmra.mxu0 %vm2147_vm11, %v2029_v35  ;;  %v2696_v35 = vld [vmem:[%s7269_s19 + $0x18] sm:$0xff] }
 0x1d3   : > { %6521 = vmatpush.msk.msra.mxu0 %vm10151_vm0, %v10033_v37  ;;  %vm10157_vm0 = vcmp.eq.s32.totalorder %v7737_v4, 4294967294 }
 0x1d5   : > { %6522 = vmatpush.msk.msra.mxu0 %vm10152_vm8, %v10033_v37  ;;  %vm10158_vm8 = vcmp.eq.s32.totalorder %v7759_v5, 4294967294 }
 0x1d7   : > { %6523 = vmatpush.msk.msra.mxu0 %vm10153_vm13, %v10033_v37 }
 0x1d9   : > { %6524 = vmatpush.msk.msra.mxu0 %vm10154_vm4, %v10033_v37 }
 0x1da   : > { %6464 = vmatmul.msk.f32.gmra.mxu0 %vm2147_vm11, %v2030_v38  ;;  %vm2214_vm11 = vweird.f32 %v6975_v8  ;;  %v2695_v38 = vld [vmem:[%s7269_s19 + $0x10] sm:$0xff] }
 0x1db   : > { %6525 = vmatpush.msk.msra.mxu0 %vm10155_vm12, %v10033_v37  ;;  %v2215_v20 = vsel %vm2214_vm11, %v6975_v8, %v2213_v0 }
 0x1dd   : > { %6526 = vmatpush.msk.msra.mxu0 %vm10156_vm2, %v10033_v37 }
 0x1df   : > { %6527 = vmatpush.msk.msra.mxu0 %vm10157_vm0, %v10033_v37 }
 0x1e1   : > { %6528 = vmatpush.msk.msra.mxu0 %vm10158_vm8, %v10033_v37 }
 0x23f   : > { %v2177_v40 = vpop.f32.mrf.mxu0 }
 0x240   : > { %v2178_v10 = vadd.f32 %v2177_v40, %v2130_v48  ;;  %v2700_v40 = vld [vmem:[%s7274_s24 + $0x18] sm:$0xff]  ;;  %v3033_v48 = vld [vmem:[%s10106_s6 + $0x8] sm:$0xff] }
 0x247   : > { %v2180_v41 = vpop.f32.mrf.mxu0 }
 0x248   : > { %v2181_v52 = vadd.f32 %v2180_v41, %v2135_v42  ;;  %v2694_v41 = vld [vmem:[%s7269_s19 + $0x8] sm:$0xff]  ;;  %v2699_v42 = vld [vmem:[%s7274_s24 + $0x10] sm:$0xff] }
 0x24a   : > { %v2197_v54 = vadd.f32 %v2181_v52, %v2178_v10 }
 0x24f   : > { %v2183_v46 = vpop.f32.mrf.mxu0 }
 0x250   : > { %v2184_v19 = vadd.f32 %v2183_v46, %v2140_v50  ;;  %v2697_v46 = vld [vmem:[%s7274_s24] sm:$0xff] }
 0x251   : > { %v3032_v50 = vld [vmem:[%s10106_s6] sm:$0xff] }
 0x252   : > { %v2198_v61 = vadd.f32 %v2197_v54, %v2184_v19 }
 0x257   : > { %v2186_v58 = vpop.f32.mrf.mxu0 }
 0x258   : > { %v2187_v59 = vadd.f32 %v2186_v58, %v2145_v55 }
 0x25a   : > { %v2199_v62 = vadd.f32 %v2198_v61, %v2187_v59 }
 0x25c   : > { %2200 = vadd.xlane.f32.xlu2 %v2199_v62 }
 0x274   : > { %2302 = vperm.xlu2 %6970, %v2195_v3  }
 0x27c   : > { %2614 = vperm.xlu2 %6970, %v2484_v6  }
 0x2cf   : > { %v2201_v12 = vpop.xlane.xlu2 %2200 }
 0x2d0   : > { %v2202_v13 = vrot.slane %v2201_v12, 4 }
 0x2d2   : > { %v2203_v14 = vadd.f32 %v2202_v13, %v2201_v12  ;;  %v2269_v12 = vpop.permute.xlu1 %2268 }
 0x2d4   : > { %v2204_v16 = vrot.slane %v2203_v14, 2 }
 0x2d6   : > { %v2205_v17 = vadd.f32 %v2204_v16, %v2203_v14 }
 0x2d8   : > { %v2206_v2 = vrot.slane %v2205_v17, 1 }
 0x2da   : > { %v2207_v18 = vadd.f32 %v2206_v2, %v2205_v17  ;;  %v2293_v13 = vpop.permute.xlu1 %2292 }
 0x2dc   : > { %6861 = vpush %v2207_v18 }
 0x2dd   : > { %6863 = vpush %v2215_v20 }
 0x2e2   : > { %v2274_v14 = vpop.permute.xlu1 %2273 }
 0x2ea   : > { %v2298_v15 = vpop.permute.xlu1 %2297 }
 0x2f2   : > { %v2279_v16 = vpop.permute.xlu1 %2278 }
 0x30d   : > { %s6862_s23 = spop %6861 }
 0x30e   : > { %s8114_s26 = spop %6863 }
 0x30f   : > { %s2217_s28 = smul.f32 %s8114_s26, %s6862_s23  ;;  %s8267_s23 = scalar_lea.vmem %s10159_s13, %s6328_s22 }
 0x310   : > { %s10180_s22 = sld [smem:[#allocation12_spill]] }
 0x311   : > { %v2218_v21 = vstv %s2217_s28  ;;  %s10172_s28 = sld [smem:[#allocation27_spill]] }
 0x312   : > { %v8117_v22 = vsub.f32 %v2178_v10, %v2218_v21  ;;  %v8119_v23 = vsub.f32 %v2181_v52, %v2218_v21  ;;  %v8121_v24 = vsub.f32 %v2184_v19, %v2218_v21  ;;  %v8123_v25 = vsub.f32 %v2187_v59, %v2218_v21  ;;  %v2284_v21 = vpop.permute.xlu1 %2283  ;;  %s10308_s13 = sld [smem:[#allocation36_spill]] }
 0x314   : > { %v2223_v26 = vmul.f32 %v8117_v22, %v8117_v22  ;;  %v2224_v27 = vmul.f32 %v8119_v23, %v8119_v23  ;;  %v2225_v28 = vmul.f32 %v8121_v24, %v8121_v24  ;;  %v2226_v30 = vmul.f32 %v8123_v25, %v8123_v25 }
 0x316   : > { %v2227_v29 = vadd.f32 %v2224_v27, %v2223_v26 }
 0x318   : > { %v2228_v31 = vadd.f32 %v2227_v29, %v2225_v28 }
 0x31a   : > { %v2229_v32 = vadd.f32 %v2228_v31, %v2226_v30  ;;  %v2303_v30 = vpop.permute.xlu2 %2302 }
 0x31c   : > { %2230 = vadd.xlane.f32.xlu0 %v2229_v32 }
 0x330   : > { %2307 = vperm.xlu0 %6968, %v2196_v33  }
 0x338   : > { %2619 = vperm.xlu0 %6968, %v2485_v34  }
 0x340   : > { %2787 = vperm.xlu0 %6968, %v2696_v35  }
 0x348   : > { %2782 = vperm.xlu0 %6968, %v2695_v38  }
 0x350   : > { %2811 = vperm.xlu0 %6968, %v2700_v40  }
 0x358   : > { %2777 = vperm.xlu0 %6968, %v2694_v41  }
 0x360   : > { %2806 = vperm.xlu0 %6968, %v2699_v42  }
 0x368   : > { %2796 = vperm.xlu0 %6968, %v2697_v46  }
 0x370   : > { %3043 = vperm.xlu0 %6968, %v3033_v48  }
 0x378   : > { %3038 = vperm.xlu0 %6968, %v3032_v50  }
 0x38f   : > { %v2231_v52 = vpop.xlane.xlu0 %2230 }
 0x390   : > { %v2232_v10 = vrot.slane %v2231_v52, 4 }
 0x392   : > { %v2233_v19 = vadd.f32 %v2232_v10, %v2231_v52 }
 0x394   : > { %v2234_v54 = vrot.slane %v2233_v19, 2 }
 0x396   : > { %v2235_v55 = vadd.f32 %v2234_v54, %v2233_v19 }
 0x398   : > { %v2236_v58 = vrot.slane %v2235_v55, 1 }
 0x39a   : > { %v2237_v59 = vadd.f32 %v2236_v58, %v2235_v55 }
 0x39c   : > { %6865 = vpush %v2237_v59 }
 0x3a2   : > { %v2308_v31 = vpop.permute.xlu0 %2307 }
 0x3cd   : > { %s6866_s1 = spop %6865 }
 0x3ce   : > { %s2247_s2 = smul.f32 %s6866_s1, %s8114_s26  ;;  %s10174_s1 = sld [smem:[#allocation29_spill]] }
 0x3d0   : > { %s2248_s11 = sadd.f32 1e-05, %s2247_s2 }
 0x3d1   : > { %s10176_s2 = sld [smem:[#allocation31_spill]] }
 0x3d2   : > { %v2249_v61 = vstv %s2248_s11  ;;  %s10177_s11 = sld [smem:[#allocation10_spill]] }
 0x3d3   : > { %6976 = vrsqrt.f32 %v2249_v61  ;;  %vm2256_vm4 = vweird.f32 %v2249_v61 }
 0x3d9   : > { %v6977_v62 = vpop.eup %6976 }
 0x3da   : > { %v2251_v3 = vmul.f32 %v6977_v62, %v2249_v61  ;;  %vm2257_vm13 = vweird.f32 %v6977_v62 }
 0x3db   : > { %vm2258_vm12 = vmor %vm2256_vm4, %vm2257_vm13 }
 0x3dc   : > { %v2252_v6 = vmul.f32 %v6977_v62, %v2251_v3 }
 0x3de   : > { %v2253_v7 = vmul.f32 0.5, %v2252_v6 }
 0x3e0   : > { %v2254_v8 = vsub.f32 1.5, %v2253_v7 }
 0x3e2   : > { %v2255_v11 = vmul.f32 %v6977_v62, %v2254_v8 }
 0x3e4   : > { %v2259_v9 = vsel %vm2258_vm12, %v6977_v62, %v2255_v11 }
 0x3e5   : > { %6867 = vpush %v2259_v9 }
 0x416   : > { %s6868_s15 = spop %6867 }
 0x417   : > { %v2261_v17 = vstv %s6868_s15  ;;  %s10024_s15 = smov 112  }
 0x418   : > { %v2262_v0 = vmul.f32 %v2261_v17, %v8117_v22  ;;  %v2263_v2 = vmul.f32 %v2261_v17, %v8119_v23  ;;  %v2264_v18 = vmul.f32 %v2261_v17, %v8121_v24  ;;  %v2265_v20 = vmul.f32 %v2261_v17, %v8123_v25 }
 0x41a   : > { %v2286_v26 = vmul.f32 %v2269_v12, %v2262_v0  ;;  %v2287_v27 = vmul.f32 %v2274_v14, %v2263_v2  ;;  %v2288_v28 = vmul.f32 %v2279_v16, %v2264_v18  ;;  %v2289_v29 = vmul.f32 %v2284_v21, %v2265_v20 }
 0x41c   : > { %v8148_v32 = vadd.f32 %v2293_v13, %v2286_v26  ;;  %v8150_v33 = vadd.f32 %v2298_v15, %v2287_v27  ;;  %v8152_v34 = vadd.f32 %v2303_v30, %v2288_v28  ;;  %v8154_v22 = vadd.f32 %v2308_v31, %v2289_v29 }
 0x41e   : > { %v8157_v23 = vmul.f32 0.70710677, %v8148_v32  ;;  %v8160_v24 = vmul.f32 0.70710677, %v8150_v33  ;;  %v8163_v25 = vmul.f32 0.70710677, %v8152_v34 }
 0x41f   : > { %v8166_v35 = vmul.f32 0.70710677, %v8154_v22 }
 0x420   : > { %v8169_v38 = vand.u32 2147483647, %v8157_v23  ;;  %v8172_v40 = vand.u32 2147483647, %v8160_v24  ;;  %v8175_v41 = vand.u32 2147483647, %v8163_v25 }
 0x421   : > { %v8178_v42 = vand.u32 2147483647, %v8166_v35 }
 0x422   : > { %v2334_v46 = vmul.f32 0.3275911, %v8169_v38  ;;  %v2335_v48 = vmul.f32 0.3275911, %v8172_v40  ;;  %v2336_v50 = vmul.f32 0.3275911, %v8175_v41 }
 0x423   : > { %v2337_v52 = vmul.f32 0.3275911, %v8178_v42  ;;  %v2438_v62 = vsub.f32 0.0, %v8169_v38  ;;  %v2439_v7 = vsub.f32 0.0, %v8172_v40 }
 0x424   : > { %v2338_v10 = vadd.f32 1.0, %v2334_v46  ;;  %v2339_v19 = vadd.f32 1.0, %v2335_v48  ;;  %v2340_v54 = vadd.f32 1.0, %v2336_v50 }
 0x425   : > { %v8184_v55 = vadd.f32 1.0, %v2337_v52 }
 0x426   : > { %6978 = vrcp.f32 %v2338_v10  ;;  %v2353_v59 = vand.u32 2147483648, %v2338_v10  ;;  %v2368_v61 = vand.u32 2147483648, %v2339_v19  ;;  %vm2347_vm2 = vweird.f32 %v2338_v10 }
 0x427   : > { %6980 = vrcp.f32 %v2339_v19  ;;  %vm2362_vm0 = vweird.f32 %v2339_v19  ;;  %vm2377_vm8 = vweird.f32 %v2340_v54  ;;  %v2383_v9 = vand.u32 2147483648, %v2340_v54 }
 0x428   : > { %6982 = vrcp.f32 %v2340_v54  ;;  %vm2392_vm11 = vweird.f32 %v8184_v55  ;;  %v2398_v15 = vand.u32 2147483648, %v8184_v55  ;;  %v2351_v16 = vand.u32 2147483647, %v2338_v10 }
 0x429   : > { %6984 = vrcp.f32 %v8184_v55  ;;  %v2354_v2 = vor.u32 1.1754944e-38, %v2353_v59  ;;  %v2369_v18 = vor.u32 1.1754944e-38, %v2368_v61  ;;  %v2366_v26 = vand.u32 2147483647, %v2339_v19 }
 0x42a   : > { %v2381_v29 = vand.u32 2147483647, %v2340_v54  ;;  %vm2352_vm12 = vcmp.eq.f32.partialorder %v2351_v16, 8.507059e+37  ;;  %v2396_v50 = vand.u32 2147483647, %v8184_v55  ;;  %v2384_v61 = vor.u32 1.1754944e-38, %v2383_v9 }
 0x42b   : > { %vm2367_vm10 = vcmp.eq.f32.partialorder %v2366_v26, 8.507059e+37 }
 0x42c   : > { %v6979_v58 = vpop.eup %6978  ;;  %vm2382_vm3 = vcmp.eq.f32.partialorder %v2381_v29, 8.507059e+37 }
 0x42d   : > { %v6981_v3 = vpop.eup %6980  ;;  %v2343_v6 = vmul.f32 %v6979_v58, %v2338_v10  ;;  %vm2348_vm13 = vweird.f32 %v6979_v58 }
 0x42e   : > { %v6983_v8 = vpop.eup %6982  ;;  %v2358_v11 = vmul.f32 %v6981_v3, %v2339_v19  ;;  %vm2363_vm4 = vweird.f32 %v6981_v3  ;;  %vm2349_vm15 = vmor %vm2347_vm2, %vm2348_vm13  ;;  %vm10165_vm13 = vcmp.eq.s32.totalorder %v7575_v45, 2 }
 0x42f   : > { %v6985_v12 = vpop.eup %6984  ;;  %v2344_v13 = vsub.f32 1.0, %v2343_v6  ;;  %v2373_v14 = vmul.f32 %v6983_v8, %v2340_v54  ;;  %vm2378_vm9 = vweird.f32 %v6983_v8  ;;  %vm2364_vm5 = vmor %vm2362_vm0, %vm2363_vm4  ;;  %v2442_v54 = vmul.f32 %v2438_v62, %v8169_v38 }
 0x430   : > { %v2359_v17 = vsub.f32 1.0, %v2358_v11  ;;  %v2388_v0 = vmul.f32 %v6985_v12, %v8184_v55  ;;  %vm2393_vm14 = vweird.f32 %v6985_v12  ;;  %vm2379_vm1 = vmor %vm2377_vm8, %vm2378_vm9  ;;  %vm2325_vm9 = vcmp.ge.f32.partialorder %v8166_v35, 0.0 }
 0x431   : > { %v2345_v20 = vmul.f32 %v6979_v58, %v2344_v13  ;;  %v2374_v21 = vsub.f32 1.0, %v2373_v14  ;;  %vm2394_vm2 = vmor %vm2392_vm11, %vm2393_vm14  ;;  %v2446_v29 = vmul.f32 1.442695, %v2442_v54  ;;  %vm10161_vm14 = vcmp.eq.s32.totalorder %v7551_v36, 2 }
 0x432   : > { %v2360_v27 = vmul.f32 %v6981_v3, %v2359_v17  ;;  %v2389_v28 = vsub.f32 1.0, %v2388_v0  ;;  %v2399_v17 = vor.u32 1.1754944e-38, %v2398_v15  ;;  %vm10162_vm0 = vcmp.eq.s32.totalorder %v7559_v39, 2 }
 0x433   : > { %v2375_v30 = vmul.f32 %v6983_v8, %v2374_v21  ;;  %v2346_v31 = vadd.f32 %v6979_v58, %v2345_v20  ;;  %6986 = vpow2.f32 %v2446_v29  ;;  %vm10163_vm8 = vcmp.eq.s32.totalorder %v7566_v43, 2 }
 0x434   : > { %v2390_v46 = vmul.f32 %v6985_v12, %v2389_v28  ;;  %v2361_v48 = vadd.f32 %v6981_v3, %v2360_v27  ;;  %vm10164_vm11 = vcmp.eq.s32.totalorder %v7572_v44, 2  ;;  %vm10166_vm4 = vcmp.eq.s32.totalorder %v7588_v47, 2 }
 0x435   : > { %v2350_v52 = vsel %vm2349_vm15, %v6979_v58, %v2346_v31  ;;  %v2376_v59 = vadd.f32 %v6983_v8, %v2375_v30  ;;  %vm2397_vm15 = vcmp.eq.f32.partialorder %v2396_v50, 8.507059e+37 }
 0x436   : > { %v2355_v6 = vsel %vm2352_vm12, %v2354_v2, %v2350_v52  ;;  %v2365_v11 = vsel %vm2364_vm5, %v6981_v3, %v2361_v48  ;;  %v2391_v13 = vadd.f32 %v6985_v12, %v2390_v46  ;;  %vm2324_vm5 = vcmp.ge.f32.partialorder %v8163_v25, 0.0 }
 0x437   : > { %v2402_v14 = vmul.f32 1.0614054, %v2355_v6  ;;  %v2370_v16 = vsel %vm2367_vm10, %v2369_v18, %v2365_v11  ;;  %v2380_v10 = vsel %vm2379_vm1, %v6983_v8, %v2376_v59  ;;  %v2443_v8 = vmul.f32 %v2439_v7, %v8172_v40 }
 0x438   : > { %v2403_v58 = vmul.f32 1.0614054, %v2370_v16  ;;  %v2385_v19 = vsel %vm2382_vm3, %v2384_v61, %v2380_v10  ;;  %v2395_v0 = vsel %vm2394_vm2, %v6985_v12, %v2391_v13  ;;  %v2440_v12 = vsub.f32 0.0, %v8175_v41 }
 0x439   : > { %v2406_v20 = vadd.f32 -1.4531521, %v2402_v14  ;;  %v2404_v9 = vmul.f32 1.0614054, %v2385_v19  ;;  %v8199_v2 = vsel %vm2397_vm15, %v2399_v17, %v2395_v0  ;;  %v2448_v46 = vmul.f32 1.442695, %v2443_v8  ;;  %v6987_v54 = vpop.eup %6986 }
 0x43a   : > { %v2407_v3 = vadd.f32 -1.4531521, %v2403_v58  ;;  %v2405_v21 = vmul.f32 1.0614054, %v8199_v2  ;;  %v2444_v40 = vmul.f32 %v2440_v12, %v8175_v41  ;;  %v2441_v58 = vsub.f32 0.0, %v8178_v42 }
 0x43b   : > { %v2410_v18 = vmul.f32 %v2406_v20, %v2355_v6  ;;  %v2408_v26 = vadd.f32 -1.4531521, %v2404_v9  ;;  %6988 = vpow2.f32 %v2448_v46  ;;  %vm2322_vm1 = vcmp.ge.f32.partialorder %v8157_v23, 0.0 }
 0x43c   : > { %v2411_v55 = vmul.f32 %v2407_v3, %v2370_v16  ;;  %v2409_v27 = vadd.f32 -1.4531521, %v2405_v21  ;;  %v2450_v0 = vmul.f32 1.442695, %v2444_v40  ;;  %vm2323_vm3 = vcmp.ge.f32.partialorder %v8160_v24, 0.0 }
 0x43d   : > { %v2414_v15 = vadd.f32 1.4214138, %v2410_v18  ;;  %v2412_v28 = vmul.f32 %v2408_v26, %v2385_v19  ;;  %v2445_v26 = vmul.f32 %v2441_v58, %v8178_v42  ;;  %v2314_v23 = vmul.f32 0.5, %v8148_v32 }
 0x43e   : > { %v2415_v30 = vadd.f32 1.4214138, %v2411_v55  ;;  %v2413_v31 = vmul.f32 %v2409_v27, %v8199_v2  ;;  %6990 = vpow2.f32 %v2450_v0  ;;  %v2317_v58 = vmul.f32 0.5, %v8154_v22  ;;  %v2475_v22 = vld [vmem:[%s10107_s8 + $0x8] sm:$0xff] }
 0x43f   : > { %v2418_v48 = vmul.f32 %v2414_v15, %v2355_v6  ;;  %v2416_v38 = vadd.f32 1.4214138, %v2412_v28  ;;  %v10045_v15 = vmov -1.0   ;;  %vm2622_vm10 = vcmask 261120  }
 0x440   : > { %v2419_v62 = vmul.f32 %v2415_v30, %v2370_v16  ;;  %v2417_v59 = vadd.f32 1.4214138, %v2413_v31  ;;  %v2326_v28 = vsel %vm2322_vm1, 1.0, %v10045_v15  ;;  %v2452_v30 = vmul.f32 1.442695, %v2445_v26 }
 0x441   : > { %v2422_v50 = vadd.f32 -0.28449672, %v2418_v48  ;;  %v2420_v52 = vmul.f32 %v2416_v38, %v2385_v19  ;;  %v6989_v21 = vpop.eup %6988  ;;  %v2327_v42 = vsel %vm2323_vm3, 1.0, %v10045_v15  ;;  %v2328_v40 = vsel %vm2324_vm5, 1.0, %v10045_v15 }
 0x442   : > { %v2423_v7 = vadd.f32 -0.28449672, %v2419_v62  ;;  %v2421_v17 = vmul.f32 %v2417_v59, %v8199_v2  ;;  %6992 = vpow2.f32 %v2452_v30  ;;  %vm10167_vm12 = vcmp.eq.s32.totalorder %v7596_v49, 2 }
 0x443   : > { %v2426_v61 = vmul.f32 %v2422_v50, %v2355_v6  ;;  %v2424_v11 = vadd.f32 -0.28449672, %v2420_v52  ;;  %v2315_v52 = vmul.f32 0.5, %v8150_v33  ;;  %vm10168_vm2 = vcmp.eq.s32.totalorder %v7604_v51, 2 }
 0x444   : > { %v2427_v13 = vmul.f32 %v2423_v7, %v2370_v16  ;;  %v2425_v18 = vadd.f32 -0.28449672, %v2421_v17  ;;  %v6991_v46 = vpop.eup %6990  ;;  %vm10169_vm15 = vcmp.eq.s32.totalorder %v7624_v53, 2  ;;  %vm10170_vm1 = vcmp.eq.s32.totalorder %v7651_v56, 2 }
 0x445   : > { %v2430_v14 = vadd.f32 0.2548296, %v2426_v61  ;;  %v2428_v10 = vmul.f32 %v2424_v11, %v2385_v19  ;;  %vm10171_vm3 = vcmp.eq.s32.totalorder %v7660_v57, 2  ;;  %vm10173_vm5 = vcmp.eq.s32.totalorder %v7716_v63, 2 }
 0x446   : > { %v2431_v20 = vadd.f32 0.2548296, %v2427_v13 }
 0x447   : > { %v2434_v9 = vmul.f32 %v2430_v14, %v2355_v6  ;;  %v2432_v8 = vadd.f32 0.2548296, %v2428_v10  ;;  %v2316_v14 = vmul.f32 0.5, %v8152_v34 }
 0x448   : > { %v2435_v3 = vmul.f32 %v2431_v20, %v2370_v16  ;;  %v2429_v16 = vmul.f32 %v2425_v18, %v8199_v2  ;;  %v6993_v59 = vpop.eup %6992 }
 0x449   : > { %v2454_v41 = vmul.f32 %v6987_v54, %v2434_v9  ;;  %v2436_v29 = vmul.f32 %v2432_v8, %v2385_v19 }
 0x44a   : > { %v2455_v55 = vmul.f32 %v6989_v21, %v2435_v3  ;;  %v2433_v24 = vadd.f32 0.2548296, %v2429_v16  ;;  %v2481_v16 = vld [vmem:[%s10107_s8 + $0x38] sm:$0xff] }
 0x44b   : > { %v2458_v27 = vsub.f32 1.0, %v2454_v41  ;;  %v2456_v62 = vmul.f32 %v6991_v46, %v2436_v29  ;;  %v3111_v46 = vld [vmem:[%s7374_s30 + $0x70] sm:$0xff] }
 0x44c   : > { %v2459_v6 = vsub.f32 1.0, %v2455_v55  ;;  %v2437_v50 = vmul.f32 %v2433_v24, %v8199_v2  ;;  %v2329_v2 = vsel %vm2325_vm9, 1.0, %v10045_v15  ;;  %v3109_v24 = vld [vmem:[%s7374_s30 + $0x60] sm:$0xff]  ;;  %vm10175_vm9 = vcmp.eq.s32.totalorder %v7719_v1, 2 }
 0x44d   : > { %v2462_v12 = vmul.f32 %v2458_v27, %v2326_v28  ;;  %v2460_v19 = vsub.f32 1.0, %v2456_v62  ;;  %v2477_v28 = vld [vmem:[%s10107_s8 + $0x18] sm:$0xff]  ;;  %v2024_v62 = vld [vmem:[%s8241_s18 + $0x68] sm:$0xff] }
 0x44e   : > { %v2463_v38 = vmul.f32 %v2459_v6, %v2327_v42  ;;  %v2457_v11 = vmul.f32 %v6993_v59, %v2437_v50  ;;  %v2479_v6 = vld [vmem:[%s10107_s8 + $0x28] sm:$0xff]  ;;  %v2026_v42 = vld [vmem:[%s8241_s18 + $0x78] sm:$0xff]  ;;  %v3107_v50 = vld [vmem:[%s7374_s30 + $0x50] sm:$0xff] }
 0x44f   : > { %v2466_v31 = vadd.f32 1.0, %v2462_v12  ;;  %v2464_v61 = vmul.f32 %v2460_v19, %v2328_v40  ;;  %v3108_v19 = vld [vmem:[%s7374_s30 + $0x58] sm:$0xff]  ;;  %v3105_v59 = vld [vmem:[%s7374_s30 + $0x40] sm:$0xff] }
 0x450   : > { %v2467_v32 = vadd.f32 1.0, %v2463_v38  ;;  %v2461_v25 = vsub.f32 1.0, %v2457_v11  ;;  %v3110_v38 = vld [vmem:[%s7374_s30 + $0x68] sm:$0xff]  ;;  %v2478_v40 = vld [vmem:[%s10107_s8 + $0x20] sm:$0xff] }
 0x451   : > { %v8216_v48 = vmul.f32 %v2466_v31, %v2314_v23  ;;  %v2468_v13 = vadd.f32 1.0, %v2464_v61  ;;  %v2474_v23 = vld [vmem:[%s10107_s8] sm:$0xff]  ;;  %v3112_v31 = vld [vmem:[%s7374_s30 + $0x78] sm:$0xff]  ;;  %v3103_v61 = vld [vmem:[%s7374_s30 + $0x30] sm:$0xff] }
 0x452   : > { %v2471_v7 = vmul.f32 %v2467_v32, %v2315_v52  ;;  %v2465_v33 = vmul.f32 %v2461_v25, %v2329_v2  ;;  %v2476_v32 = vld [vmem:[%s10107_s8 + $0x10] sm:$0xff]  ;;  %v3106_v52 = vld [vmem:[%s7374_s30 + $0x48] sm:$0xff] }
 0x453   : > { %2502 = vmatmul.f32.vlgmr.msrb.gmra.mxu1 %v8216_v48  ;;  %2531 = vmatmul.f32.vlgmr.msrb.gmra.mxu2 %v8216_v48  ;;  %v2472_v10 = vmul.f32 %v2468_v13, %v2316_v14  ;;  %v3102_v11 = vld [vmem:[%s7374_s30 + $0x28] sm:$0xff]  ;;  %v3101_v13 = vld [vmem:[%s7374_s30 + $0x20] sm:$0xff]  ;;  %v2480_v25 = vld [vmem:[%s10107_s8 + $0x30] sm:$0xff] }
 0x454   : > { %2560 = vmatmul.f32.vlgmr.msrb.gmra.mxu3 %v8216_v48  ;;  %2589 = vmatmul.f32.vlgmr.msra.gmra.mxu0 %v8216_v48  ;;  %v2469_v17 = vadd.f32 1.0, %v2465_v33  ;;  %v3100_v14 = vld [vmem:[%s7374_s30 + $0x18] sm:$0xff]  ;;  %v3099_v2 = vld [vmem:[%s7374_s30 + $0x10] sm:$0xff]  ;;  %v3097_v33 = vld [vmem:[%s7374_s30] sm:$0xff] }
 0x456   : > { %v2473_v0 = vmul.f32 %v2469_v17, %v2317_v58  ;;  %v2010_v17 = vld [vmem:[%s8267_s23] sm:$0xff] }
 0x457   : > { %v2023_v58 = vld [vmem:[%s8241_s18 + $0x60] sm:$0xff] }
 0x45b   : > { %2505 = vmatmul.f32.gmra.mxu1 %v2471_v7  ;;  %2534 = vmatmul.f32.gmra.mxu2 %v2471_v7 }
 0x45c   : > { %2563 = vmatmul.f32.gmra.mxu3 %v2471_v7  ;;  %2592 = vmatmul.f32.gmra.mxu0 %v2471_v7 }
 0x463   : > { %2508 = vmatmul.f32.gmra.mxu1 %v2472_v10  ;;  %2537 = vmatmul.f32.gmra.mxu2 %v2472_v10 }
 0x464   : > { %2566 = vmatmul.f32.gmra.mxu3 %v2472_v10  ;;  %2595 = vmatmul.f32.gmra.mxu0 %v2472_v10 }
 0x46b   : > { %2511 = vmatmul.f32.gmra.mxu1 %v2473_v0  ;;  %2540 = vmatmul.f32.gmra.mxu2 %v2473_v0 }
 0x46c   : > { %2569 = vmatmul.f32.gmra.mxu3 %v2473_v0  ;;  %2598 = vmatmul.f32.gmra.mxu0 %v2473_v0 }
 0x4d0   : > { %v2503_v41 = vpop.f32.mrf.mxu1 }
 0x4d1   : > { %v2590_v35 = vpop.f32.mrf.mxu0 }
 0x4d6   : > { %v2532_v54 = vpop.f32.mrf.mxu2 }
 0x4d7   : > { %v2561_v20 = vpop.f32.mrf.mxu3 }
 0x4d8   : > { %v2506_v55 = vpop.f32.mrf.mxu1 }
 0x4d9   : > { %v2593_v34 = vpop.f32.mrf.mxu0 }
 0x4de   : > { %v2535_v18 = vpop.f32.mrf.mxu2 }
 0x4df   : > { %v2564_v9 = vpop.f32.mrf.mxu3 }
 0x4e0   : > { %v2509_v12 = vpop.f32.mrf.mxu1 }
 0x4e1   : > { %v2596_v3 = vpop.f32.mrf.mxu0 }
 0x4e6   : > { %v2538_v27 = vpop.f32.mrf.mxu2 }
 0x4e7   : > { %v2567_v21 = vpop.f32.mrf.mxu3 }
 0x4e8   : > { %v2512_v30 = vpop.f32.mrf.mxu1 }
 0x4e9   : > { %v2599_v8 = vpop.f32.mrf.mxu0 }
 0x4ea   : > { %2676 = vmatpush.msra.mxu2 %v2599_v8  ;;  %v2013_v8 = vld [vmem:[%s8241_s18 + $0x10] sm:$0xff] }
 0x4ec   : > { %2677 = vmatpush.msra.mxu2 %v2596_v3  ;;  %v2016_v3 = vld [vmem:[%s8241_s18 + $0x28] sm:$0xff] }
 0x4ee   : > { %2678 = vmatpush.msra.mxu2 %v2593_v34  ;;  %v2541_v29 = vpop.f32.mrf.mxu2  ;;  %v2019_v34 = vld [vmem:[%s8241_s18 + $0x40] sm:$0xff] }
 0x4ef   : > { %v2570_v26 = vpop.f32.mrf.mxu3 }
 0x4f0   : > { %2635 = vmatpush.msra.mxu1 %v2570_v26  ;;  %2679 = vmatpush.msra.mxu2 %v2590_v35  ;;  %v2021_v35 = vld [vmem:[%s8241_s18 + $0x50] sm:$0xff] }
 0x4f1   : > { %6529 = vmatmul.msk.f32.vlgmr.msra.gmra.mxu2 %vm2622_vm10, %v2475_v22  ;;  %v2011_v22 = vld [vmem:[%s8241_s18] sm:$0xff] }
 0x4f2   : > { %2636 = vmatpush.msra.mxu1 %v2567_v21  ;;  %3165 = vmatpush.msrb.mxu2 %v2026_v42  ;;  %v2015_v21 = vld [vmem:[%s8241_s18 + $0x20] sm:$0xff]  ;;  %v2615_v42 = vpop.permute.xlu2 %2614 }
 0x4f4   : > { %2637 = vmatpush.msra.mxu1 %v2564_v9  ;;  %v2018_v9 = vld [vmem:[%s8241_s18 + $0x38] sm:$0xff] }
 0x4f6   : > { %2638 = vmatpush.msra.mxu1 %v2561_v20  ;;  %v2020_v20 = vld [vmem:[%s8241_s18 + $0x48] sm:$0xff] }
 0x4f8   : > { %2639 = vmatpush.msra.mxu1 %v2473_v0  ;;  %v2022_v0 = vld [vmem:[%s8241_s18 + $0x58] sm:$0xff] }
 0x4f9   : > { %6530 = vmatmul.msk.f32.gmra.mxu2 %vm2622_vm10, %v2477_v28  ;;  %v3138_v28 = vld [vmem:[%s10160_s10 + $0x8] sm:$0xff] }
 0x4fa   : > { %2640 = vmatpush.msra.mxu1 %v2472_v10  ;;  %v3098_v10 = vld [vmem:[%s7374_s30 + $0x8] sm:$0xff] }
 0x4fc   : > { %2641 = vmatpush.msra.mxu1 %v2471_v7  ;;  %v3104_v7 = vld [vmem:[%s7374_s30 + $0x38] sm:$0xff] }
 0x4fe   : > { %2642 = vmatpush.msra.mxu1 %v8216_v48  ;;  %v2025_v48 = vld [vmem:[%s8241_s18 + $0x70] sm:$0xff] }
 0x4ff   : > { %3166 = vmatpush.msrb.mxu2 %v2025_v48 }
 0x500   : > { %2643 = vmatpush.msra.mxu1 %v2541_v29 }
 0x501   : > { %6531 = vmatmul.msk.f32.gmra.mxu2 %vm2622_vm10, %v2479_v6  ;;  %v2605_v6 = vpop.permute.xlu1 %2604 }
 0x502   : > { %2644 = vmatpush.msra.mxu1 %v2538_v27  ;;  %3167 = vmatpush.msrb.mxu2 %v2024_v62  ;;  %v3140_v62 = vld [vmem:[%s10160_s10 + $0x18] sm:$0xff] }
 0x504   : > { %2645 = vmatpush.msra.mxu1 %v2535_v18  ;;  %3168 = vmatpush.msrb.mxu2 %v2023_v58  ;;  %v2012_v18 = vld [vmem:[%s8241_s18 + $0x8] sm:$0xff]  ;;  %v3411_v58 = vld [vmem:[%s10177_s11] sm:$0xff] }
 0x506   : > { %2646 = vmatpush.msra.mxu1 %v2532_v54  ;;  %3169 = vmatpush.msrb.mxu2 %v2022_v0  ;;  %v2017_v54 = vld [vmem:[%s8241_s18 + $0x30] sm:$0xff] }
 0x507   : > { %v3034_v0 = vld [vmem:[%s10106_s6 + $0x10] sm:$0xff] }
 0x508   : > { %2647 = vmatpush.msra.mxu1 %v2512_v30  ;;  %3170 = vmatpush.msrb.mxu2 %v2021_v35  ;;  %v3414_v35 = vld [vmem:[%s10177_s11 + $0x18] sm:$0xff] }
 0x509   : > { %6532 = vmatmul.msk.f32.gmra.mxu2 %vm2622_vm10, %v2481_v16  ;;  %v3139_v16 = vld [vmem:[%s10160_s10 + $0x10] sm:$0xff] }
 0x50a   : > { %2648 = vmatpush.msra.mxu1 %v2509_v12  ;;  %3171 = vmatpush.msrb.mxu2 %v2020_v20  ;;  %v3144_v20 = vld [vmem:[%s10174_s1 + $0x18] sm:$0xff] }
 0x50c   : > { %2649 = vmatpush.msra.mxu1 %v2506_v55  ;;  %3172 = vmatpush.msrb.mxu2 %v2019_v34  ;;  %v3137_v55 = vld [vmem:[%s10160_s10] sm:$0xff]  ;;  %s10306_s10 = sld [smem:[#allocation19_spill]] }
 0x50d   : > { %v3621_v34 = vld [vmem:[%s10179_s16] sm:$0xff] }
 0x50e   : > { %2650 = vmatpush.msra.mxu1 %v2503_v41  ;;  %3173 = vmatpush.msrb.mxu2 %v2018_v9  ;;  %v2014_v41 = vld [vmem:[%s8241_s18 + $0x18] sm:$0xff]  ;;  %v3338_v9 = vld [vmem:[%s10176_s2] sm:$0xff] }
 0x50f   : > { %2651 = vmatmul.f32.vlgmr.msra.gmra.mxu1 %v2474_v23  ;;  %v2610_v23 = vpop.permute.xlu1 %2609 }
 0x510   : > { %3117 = vmatpush.msrb.mxu1 %v3112_v31  ;;  %3174 = vmatpush.msrb.mxu2 %v2017_v54  ;;  %v3625_v54 = vld [vmem:[%s10180_s22] sm:$0xff] }
 0x512   : > { %3118 = vmatpush.msrb.mxu1 %v3111_v46  ;;  %3175 = vmatpush.msrb.mxu2 %v2016_v3  ;;  %v3341_v3 = vld [vmem:[%s10176_s2 + $0x18] sm:$0xff] }
 0x514   : > { %3119 = vmatpush.msrb.mxu1 %v3110_v38  ;;  %3176 = vmatpush.msrb.mxu2 %v2015_v21  ;;  %v3622_v21 = vld [vmem:[%s10179_s16 + $0x8] sm:$0xff] }
 0x516   : > { %3120 = vmatpush.msrb.mxu1 %v3109_v24  ;;  %3177 = vmatpush.msrb.mxu2 %v2014_v41  ;;  %v3413_v41 = vld [vmem:[%s10177_s11 + $0x10] sm:$0xff] }
 0x517   : > { %2654 = vmatmul.f32.gmra.mxu1 %v2476_v32  ;;  %v2620_v32 = vpop.permute.xlu0 %2619 }
 0x518   : > { %3121 = vmatpush.msrb.mxu1 %v3108_v19  ;;  %3178 = vmatpush.msrb.mxu2 %v2013_v8  ;;  %v3626_v8 = vld [vmem:[%s10180_s22 + $0x8] sm:$0xff] }
 0x51a   : > { %3122 = vmatpush.msrb.mxu1 %v3107_v50  ;;  %3179 = vmatpush.msrb.mxu2 %v2012_v18  ;;  %v3623_v18 = vld [vmem:[%s10179_s16 + $0x10] sm:$0xff] }
 0x51c   : > { %3123 = vmatpush.msrb.mxu1 %v3106_v52  ;;  %3180 = vmatpush.msrb.mxu2 %v2011_v22  ;;  %v3628_v22 = vld [vmem:[%s10180_s22 + $0x18] sm:$0xff] }
 0x51d   : > { %3181 = vmatmul.f32.vlgmr.msrb.gmra.mxu2 %v3137_v55 }
 0x51e   : > { %3124 = vmatpush.msrb.mxu1 %v3105_v59  ;;  %6551 = vmatpush.msk.msra.mxu2 %vm10161_vm14, %v10033_v37  ;;  %vm10178_vm14 = vcmp.eq.s32.totalorder %v7759_v5, 2 }
 0x51f   : > { %2657 = vmatmul.f32.gmra.mxu1 %v2478_v40 }
 0x520   : > { %3125 = vmatpush.msrb.mxu1 %v3104_v7  ;;  %6552 = vmatpush.msk.msra.mxu2 %vm10162_vm0, %v10033_v37  ;;  %vm10055_vm0 = vcmask 130048  }
 0x522   : > { %3126 = vmatpush.msrb.mxu1 %v3103_v61  ;;  %6553 = vmatpush.msk.msra.mxu2 %vm10163_vm8, %v10033_v37 }
 0x524   : > { %3127 = vmatpush.msrb.mxu1 %v3102_v11  ;;  %6554 = vmatpush.msk.msra.mxu2 %vm10164_vm11, %v10033_v37 }
 0x525   : > { %3184 = vmatmul.f32.gmra.mxu2 %v3138_v28 }
 0x526   : > { %3128 = vmatpush.msrb.mxu1 %v3101_v13  ;;  %6555 = vmatpush.msk.msra.mxu2 %vm10165_vm13, %v10033_v37 }
 0x527   : > { %2660 = vmatmul.f32.gmra.mxu1 %v2480_v25  ;;  %v6971_v25 = vld [vmem:[%s10172_s28] ss:$0 sm:$0xff]  ;;  %s10181_s28 = sld [smem:[#allocation14_spill]] }
 0x528   : > { %3129 = vmatpush.msrb.mxu1 %v3100_v14  ;;  %6556 = vmatpush.msk.msra.mxu2 %vm10166_vm4, %v10033_v37 }
 0x52a   : > { %3130 = vmatpush.msrb.mxu1 %v3099_v2  ;;  %6557 = vmatpush.msk.msra.mxu2 %vm10167_vm12, %v10033_v37 }
 0x52c   : > { %3131 = vmatpush.msrb.mxu1 %v3098_v10  ;;  %6558 = vmatpush.msk.msra.mxu2 %vm10168_vm2, %v10033_v37  ;;  %v3141_v10 = vld [vmem:[%s10174_s1] sm:$0xff] }
 0x52d   : > { %3187 = vmatmul.f32.gmra.mxu2 %v3139_v16  ;;  %v3915_v55 = vld [vmem:[%s10181_s28 + $0x8] sm:$0xff] }
 0x52e   : > { %3132 = vmatpush.msrb.mxu1 %v3097_v33  ;;  %6559 = vmatpush.msk.msra.mxu2 %vm10169_vm15, %v10033_v37  ;;  %v3339_v33 = vld [vmem:[%s10176_s2 + $0x8] sm:$0xff] }
 0x52f   : > { %3133 = vmatmul.f32.vlgmr.msrb.gmra.mxu1 %v2010_v17  ;;  %v2693_v17 = vld [vmem:[%s7269_s19] sm:$0xff] }
 0x530   : > { %6560 = vmatpush.msk.msra.mxu2 %vm10170_vm1, %v10033_v37 }
 0x532   : > { %6561 = vmatpush.msk.msra.mxu2 %vm10171_vm3, %v10033_v37 }
 0x534   : > { %6562 = vmatpush.msk.msra.mxu2 %vm10054_vm7, %v10033_v37 }
 0x535   : > { %3190 = vmatmul.f32.gmra.mxu2 %v3140_v62  ;;  %v4128_v62 = vld [vmem:[%s10183_s3] sm:$0xff] }
 0x536   : > { %6563 = vmatpush.msk.msra.mxu2 %vm10173_vm5, %v10033_v37 }
 0x538   : > { %6564 = vmatpush.msk.msra.mxu2 %vm10175_vm9, %v10033_v37 }
 0x53a   : > { %6565 = vmatpush.msk.msra.mxu2 %vm10053_vm6, %v10033_v37 }
 0x53c   : > { %6566 = vmatpush.msk.msra.mxu2 %vm10178_vm14, %v10033_v37 }
 0x574   : > { %v2681_v26 = vpop.f32.mrf.mxu2 }
 0x57c   : > { %v2684_v12 = vpop.f32.mrf.mxu2 }
 0x584   : > { %v2687_v30 = vpop.f32.mrf.mxu2 }
 0x58c   : > { %v2652_v27 = vpop.f32.mrf.mxu1  ;;  %v2690_v59 = vpop.f32.mrf.mxu2 }
 0x58d   : > { %v2653_v48 = vadd.f32 %v2652_v27, %v2605_v6  ;;  %v3917_v27 = vld [vmem:[%s10181_s28 + $0x18] sm:$0xff] }
 0x58f   : > { %v8329_v19 = vadd.f32 %v2681_v26, %v2653_v48  ;;  %v3914_v26 = vld [vmem:[%s10181_s28] sm:$0xff] }
 0x594   : > { %v2655_v29 = vpop.f32.mrf.mxu1 }
 0x595   : > { %v2656_v46 = vadd.f32 %v2655_v29, %v2610_v23 }
 0x597   : > { %v8324_v24 = vadd.f32 %v2684_v12, %v2656_v46 }
 0x599   : > { %v2701_v40 = vadd.f32 %v8324_v24, %v8329_v19 }
 0x59c   : > { %v2658_v31 = vpop.f32.mrf.mxu1 }
 0x59d   : > { %v2659_v38 = vadd.f32 %v2658_v31, %v2615_v42  ;;  %v4131_v42 = vld [vmem:[%s10183_s3 + $0x18] sm:$0xff] }
 0x59f   : > { %v8331_v50 = vadd.f32 %v2687_v30, %v2659_v38  ;;  %v4130_v38 = vld [vmem:[%s10183_s3 + $0x10] sm:$0xff] }
 0x5a1   : > { %v2702_v11 = vadd.f32 %v2701_v40, %v8331_v50 }
 0x5a4   : > { %v2661_v52 = vpop.f32.mrf.mxu1 }
 0x5a5   : > { %v2662_v7 = vadd.f32 %v2661_v52, %v2620_v32  ;;  %v4418_v32 = vld [vmem:[%s10184_s5 + $0x8] sm:$0xff]  ;;  %v4417_v52 = vld [vmem:[%s10184_s5] sm:$0xff] }
 0x5a7   : > { %v8341_v61 = vadd.f32 %v2690_v59, %v2662_v7 }
 0x5a9   : > { %v2703_v13 = vadd.f32 %v2702_v11, %v8341_v61 }
 0x5ab   : > { %2704 = vadd.xlane.f32.xlu1 %v2703_v13 }
 0x5ac   : > { %v3134_v14 = vpop.f32.mrf.mxu1 }
 0x5ad   : > { %v8349_v2 = vadd.f32 %v6971_v25, %v3134_v14 }
 0x5af   : > { %3264 = vrot.lane.b32.xlu0 %v8349_v2, %s10024_s15  ;;  %s10182_s15 = sld [smem:[#allocation15_spill]] }
 0x5b5   : > { %v4127_v28 = vld [vmem:[%s10182_s15 + $0x18] sm:$0xff]  ;;  %v4126_v30 = vld [vmem:[%s10182_s15 + $0x10] sm:$0xff]  ;;  %v4125_v48 = vld [vmem:[%s10182_s15 + $0x8] sm:$0xff] }
 0x5b7   : > { %3147 = vperm.xlu0 %6968, %v3141_v10  }
 0x5bf   : > { %3349 = vperm.xlu0 %6968, %v3339_v33  }
 0x5c4   : > { %2772 = vperm.xlu1 %6969, %v2693_v17   ;;  %v3035_v17 = vld [vmem:[%s10106_s6 + $0x18] sm:$0xff] }
 0x5c7   : > { %3533 = vperm.xlu0 %6968, %v3411_v58   ;;  %v3143_v58 = vld [vmem:[%s10174_s1 + $0x10] sm:$0xff] }
 0x5cc   : > { %3048 = vperm.xlu1 %6969, %v3034_v0   ;;  %v3142_v0 = vld [vmem:[%s10174_s1 + $0x8] sm:$0xff] }
 0x5cf   : > { %3548 = vperm.xlu0 %6968, %v3414_v35   ;;  %v3340_v35 = vld [vmem:[%s10176_s2 + $0x10] sm:$0xff] }
 0x5d4   : > { %3162 = vperm.xlu1 %6969, %v3144_v20   ;;  %v3412_v20 = vld [vmem:[%s10177_s11 + $0x8] sm:$0xff]  ;;  %s10307_s11 = sld [smem:[#allocation20_spill]] }
 0x5d7   : > { %3700 = vperm.xlu0 %6968, %v3621_v34  }
 0x5dc   : > { %3344 = vperm.xlu1 %6969, %v3338_v9  }
 0x5df   : > { %3724 = vperm.xlu0 %6968, %v3625_v54  }
 0x5e4   : > { %3359 = vperm.xlu1 %6969, %v3341_v3  }
 0x5e7   : > { %3705 = vperm.xlu0 %6968, %v3622_v21  }
 0x5ec   : > { %3543 = vperm.xlu1 %6969, %v3413_v41  }
 0x5ef   : > { %3729 = vperm.xlu0 %6968, %v3626_v8  }
 0x5f7   : > { %3710 = vperm.xlu0 %6968, %v3623_v18  }
 0x5ff   : > { %3739 = vperm.xlu0 %6968, %v3628_v22  }
 0x607   : > { %4036 = vperm.xlu0 %6968, %v3914_v26  }
 0x60f   : > { %4041 = vperm.xlu0 %6968, %v3915_v55  }
 0x617   : > { %4051 = vperm.xlu0 %6968, %v3917_v27  }
 0x61e   : > { %v2705_v12 = vpop.xlane.xlu1 %2704 }
 0x61f   : > { %v2706_v6 = vrot.slane %v2705_v12, 4  ;;  %4218 = vperm.xlu0 %6968, %v4127_v28  }
 0x621   : > { %v2707_v29 = vadd.f32 %v2706_v6, %v2705_v12 }
 0x623   : > { %v2708_v16 = vrot.slane %v2707_v29, 2 }
 0x625   : > { %v2709_v23 = vadd.f32 %v2708_v16, %v2707_v29 }
 0x627   : > { %4213 = vperm.xlu0 %6968, %v4126_v30   ;;  %v2710_v31 = vrot.slane %v2709_v23, 1 }
 0x629   : > { %v2711_v46 = vadd.f32 %v2710_v31, %v2709_v23  ;;  %v2788_v31 = vpop.permute.xlu0 %2787 }
 0x62b   : > { %6869 = vpush %v2711_v46 }
 0x62f   : > { %4242 = vperm.xlu0 %6968, %v4131_v42  }
 0x631   : > { %v2783_v46 = vpop.permute.xlu0 %2782 }
 0x637   : > { %4208 = vperm.xlu0 %6968, %v4125_v48  }
 0x639   : > { %v2812_v42 = vpop.permute.xlu0 %2811 }
 0x63f   : > { %4237 = vperm.xlu0 %6968, %v4130_v38  }
 0x641   : > { %v2778_v48 = vpop.permute.xlu0 %2777 }
 0x647   : > { %4227 = vperm.xlu0 %6968, %v4128_v62  }
 0x649   : > { %v2807_v38 = vpop.permute.xlu0 %2806 }
 0x64f   : > { %4428 = vperm.xlu0 %6968, %v4418_v32  }
 0x657   : > { %4423 = vperm.xlu0 %6968, %v4417_v52  }
 0x65c   : > { %s6870_s8 = spop %6869 }
 0x65d   : > { %s2721_s9 = smul.f32 %s6870_s8, %s8114_s26 }
 0x65f   : > { %v2722_v59 = vstv %s2721_s9  ;;  %s10185_s9 = sld [smem:[#allocation8_spill]] }
 0x660   : > { %v8382_v40 = vsub.f32 %v8329_v19, %v2722_v59  ;;  %v8385_v7 = vsub.f32 %v8324_v24, %v2722_v59  ;;  %v8388_v11 = vsub.f32 %v8331_v50, %v2722_v59  ;;  %v8391_v13 = vsub.f32 %v8341_v61, %v2722_v59  ;;  %v2698_v61 = vld [vmem:[%s7274_s24 + $0x8] sm:$0xff] }
 0x662   : > { %v2727_v25 = vmul.f32 %v8382_v40, %v8382_v40  ;;  %v2728_v14 = vmul.f32 %v8385_v7, %v8385_v7  ;;  %v2729_v19 = vmul.f32 %v8388_v11, %v8388_v11  ;;  %v2730_v50 = vmul.f32 %v8391_v13, %v8391_v13 }
 0x664   : > { %v2731_v24 = vadd.f32 %v2728_v14, %v2727_v25  ;;  %v2773_v14 = vpop.permute.xlu1 %2772 }
 0x665   : > { %v2978_v54 = vld [vmem:[%s10185_s9] sm:$0xff]  ;;  %v2979_v8 = vld [vmem:[%s10185_s9 + $0x8] sm:$0xff]  ;;  %v2980_v26 = vld [vmem:[%s10185_s9 + $0x10] sm:$0xff] }
 0x666   : > { %v2732_v10 = vadd.f32 %v2731_v24, %v2729_v19  ;;  %6533 = vmatmul.msk.f32.vlgmr.msra.gmra.mxu3 %vm10055_vm0, %v2978_v54  ;;  %v2981_v55 = vld [vmem:[%s10185_s9 + $0x18] sm:$0xff]  ;;  %s10304_s9 = sld [smem:[#allocation39_spill]] }
 0x668   : > { %v2733_v33 = vadd.f32 %v2732_v10, %v2730_v50  ;;  %v2797_v10 = vpop.permute.xlu0 %2796 }
 0x66a   : > { %2734 = vadd.xlane.f32.xlu2 %v2733_v33 }
 0x66e   : > { %6534 = vmatmul.msk.f32.gmra.mxu3 %vm10055_vm0, %v2979_v8 }
 0x676   : > { %6535 = vmatmul.msk.f32.gmra.mxu3 %vm10055_vm0, %v2980_v26 }
 0x67e   : > { %6536 = vmatmul.msk.f32.gmra.mxu3 %vm10055_vm0, %v2981_v55 }
 0x682   : > { %2801 = vperm.xlu2 %6970, %v2698_v61  }
 0x68a   : > { %3053 = vperm.xlu2 %6970, %v3035_v17  }
 0x692   : > { %3157 = vperm.xlu2 %6970, %v3143_v58  }
 0x69a   : > { %3152 = vperm.xlu2 %6970, %v3142_v0  }
 0x6a2   : > { %3354 = vperm.xlu2 %6970, %v3340_v35  }
 0x6aa   : > { %3538 = vperm.xlu2 %6970, %v3412_v20  }
 0x6dd   : > { %v2735_v34 = vpop.xlane.xlu2 %2734 }
 0x6de   : > { %v2736_v9 = vrot.slane %v2735_v34, 4 }
 0x6e0   : > { %v2737_v3 = vadd.f32 %v2736_v9, %v2735_v34 }
 0x6e2   : > { %v2738_v21 = vrot.slane %v2737_v3, 2 }
 0x6e4   : > { %v2739_v41 = vadd.f32 %v2738_v21, %v2737_v3 }
 0x6e5   : > { %v2802_v33 = vpop.permute.xlu2 %2801 }
 0x6e6   : > { %v2740_v18 = vrot.slane %v2739_v41, 1 }
 0x6e8   : > { %v2741_v22 = vadd.f32 %v2740_v18, %v2739_v41 }
 0x6ea   : > { %6871 = vpush %v2741_v22 }
 0x71b   : > { %s6872_s8 = spop %6871 }
 0x71c   : > { %s2751_s1 = smul.f32 %s6872_s8, %s8114_s26 }
 0x71e   : > { %s2752_s2 = sadd.f32 1e-05, %s2751_s1 }
 0x71f   : > { %s10186_s1 = sld [smem:[#allocation25_spill]] }
 0x720   : > { %v2753_v27 = vstv %s2752_s2  ;;  %s10228_s2 = sld [smem:[#allocation30_spill]] }
 0x721   : > { %6994 = vrsqrt.f32 %v2753_v27  ;;  %vm2760_vm11 = vweird.f32 %v2753_v27 }
 0x727   : > { %v6995_v28 = vpop.eup %6994 }
 0x728   : > { %v2755_v12 = vmul.f32 %v6995_v28, %v2753_v27  ;;  %vm2761_vm8 = vweird.f32 %v6995_v28 }
 0x729   : > { %vm2762_vm13 = vmor %vm2760_vm11, %vm2761_vm8 }
 0x72a   : > { %v2756_v6 = vmul.f32 %v6995_v28, %v2755_v12 }
 0x72c   : > { %v2757_v29 = vmul.f32 0.5, %v2756_v6 }
 0x72e   : > { %v2758_v16 = vsub.f32 1.5, %v2757_v29 }
 0x730   : > { %v2759_v30 = vmul.f32 %v6995_v28, %v2758_v16 }
 0x732   : > { %v2763_v23 = vsel %vm2762_vm13, %v6995_v28, %v2759_v30 }
 0x733   : > { %6873 = vpush %v2763_v23 }
 0x764   : > { %s6874_s8 = spop %6873 }
 0x765   : > { %v2765_v62 = vstv %s6874_s8  ;;  %s10266_s8 = sld [smem:[#allocation9_spill]] }
 0x766   : > { %v2766_v32 = vmul.f32 %v2765_v62, %v8382_v40  ;;  %v2767_v52 = vmul.f32 %v2765_v62, %v8385_v7  ;;  %v2768_v59 = vmul.f32 %v2765_v62, %v8388_v11  ;;  %v2769_v25 = vmul.f32 %v2765_v62, %v8391_v13 }
 0x768   : > { %v2790_v19 = vmul.f32 %v2773_v14, %v2766_v32  ;;  %v2791_v24 = vmul.f32 %v2778_v48, %v2767_v52  ;;  %v2792_v50 = vmul.f32 %v2783_v46, %v2768_v59  ;;  %v2793_v61 = vmul.f32 %v2788_v31, %v2769_v25 }
 0x76a   : > { %v8420_v17 = vadd.f32 %v2797_v10, %v2790_v19  ;;  %v8422_v58 = vadd.f32 %v2802_v33, %v2791_v24  ;;  %v8424_v0 = vadd.f32 %v2807_v38, %v2792_v50  ;;  %v8435_v13 = vadd.f32 %v2812_v42, %v2793_v61 }
 0x76c   : > { %v8427_v40 = vmul.f32 0.70710677, %v8420_v17  ;;  %v8430_v7 = vmul.f32 0.70710677, %v8422_v58  ;;  %v8433_v11 = vmul.f32 0.70710677, %v8424_v0 }
 0x76d   : > { %v8450_v21 = vmul.f32 0.70710677, %v8435_v13 }
 0x76e   : > { %v8438_v35 = vand.u32 2147483647, %v8427_v40  ;;  %v8441_v20 = vand.u32 2147483647, %v8430_v7  ;;  %v8444_v34 = vand.u32 2147483647, %v8433_v11 }
 0x76f   : > { %v8453_v22 = vand.u32 2147483647, %v8450_v21 }
 0x770   : > { %v2838_v9 = vmul.f32 0.3275911, %v8438_v35  ;;  %v2839_v54 = vmul.f32 0.3275911, %v8441_v20  ;;  %v2840_v3 = vmul.f32 0.3275911, %v8444_v34 }
 0x771   : > { %v2841_v26 = vmul.f32 0.3275911, %v8453_v22  ;;  %v2942_v48 = vsub.f32 0.0, %v8438_v35 }
 0x772   : > { %v2842_v41 = vadd.f32 1.0, %v2838_v9  ;;  %v2843_v8 = vadd.f32 1.0, %v2839_v54  ;;  %v2844_v18 = vadd.f32 1.0, %v2840_v3 }
 0x773   : > { %v8456_v12 = vadd.f32 1.0, %v2841_v26  ;;  %v2943_v26 = vsub.f32 0.0, %v8441_v20 }
 0x774   : > { %6996 = vrcp.f32 %v2842_v41  ;;  %v2855_v16 = vand.u32 2147483647, %v2842_v41  ;;  %v2857_v30 = vand.u32 2147483648, %v2842_v41  ;;  %v2870_v31 = vand.u32 2147483647, %v2843_v8 }
 0x775   : > { %6998 = vrcp.f32 %v2843_v8  ;;  %v2872_v38 = vand.u32 2147483648, %v2843_v8  ;;  %vm2851_vm12 = vweird.f32 %v2842_v41  ;;  %vm2866_vm1 = vweird.f32 %v2843_v8 }
 0x776   : > { %7000 = vrcp.f32 %v2844_v18  ;;  %vm2856_vm15 = vcmp.eq.f32.partialorder %v2855_v16, 8.507059e+37  ;;  %v2858_v59 = vor.u32 1.1754944e-38, %v2857_v30  ;;  %vm2871_vm5 = vcmp.eq.f32.partialorder %v2870_v31, 8.507059e+37 }
 0x777   : > { %7002 = vrcp.f32 %v8456_v12  ;;  %v2885_v19 = vand.u32 2147483647, %v2844_v18  ;;  %v2873_v10 = vor.u32 1.1754944e-38, %v2872_v38  ;;  %v2887_v33 = vand.u32 2147483648, %v2844_v18 }
 0x778   : > { %vm2881_vm8 = vweird.f32 %v2844_v18  ;;  %v2900_v30 = vand.u32 2147483647, %v8456_v12 }
 0x779   : > { %vm2886_vm11 = vcmp.eq.f32.partialorder %v2885_v19, 8.507059e+37  ;;  %v2888_v16 = vor.u32 1.1754944e-38, %v2887_v33  ;;  %v2946_v19 = vmul.f32 %v2942_v48, %v8438_v35 }
 0x77a   : > { %v6997_v55 = vpop.eup %6996 }
 0x77b   : > { %v6999_v27 = vpop.eup %6998  ;;  %v2847_v28 = vmul.f32 %v6997_v55, %v2842_v41  ;;  %vm2852_vm4 = vweird.f32 %v6997_v55  ;;  %v2950_v35 = vmul.f32 1.442695, %v2946_v19 }
 0x77c   : > { %v2862_v6 = vmul.f32 %v6999_v27, %v2843_v8  ;;  %v7001_v46 = vpop.eup %7000  ;;  %vm2867_vm2 = vweird.f32 %v6999_v27  ;;  %vm2853_vm3 = vmor %vm2851_vm12, %vm2852_vm4  ;;  %vm2896_vm12 = vweird.f32 %v8456_v12 }
 0x77d   : > { %v2848_v29 = vsub.f32 1.0, %v2847_v28  ;;  %v2877_v32 = vmul.f32 %v7001_v46, %v2844_v18  ;;  %v7003_v24 = vpop.eup %7002  ;;  %vm2868_vm9 = vmor %vm2866_vm1, %vm2867_vm2  ;;  %vm2882_vm14 = vweird.f32 %v7001_v46  ;;  %vm2828_vm1 = vcmp.ge.f32.partialorder %v8433_v11, 0.0 }
 0x77e   : > { %v2863_v23 = vsub.f32 1.0, %v2862_v6  ;;  %v2892_v3 = vmul.f32 %v7003_v24, %v8456_v12  ;;  %vm2883_vm13 = vmor %vm2881_vm8, %vm2882_vm14  ;;  %vm2897_vm4 = vweird.f32 %v7003_v24  ;;  %vm10035_vm14 = vcmask 64512  }
 0x77f   : > { %v2849_v42 = vmul.f32 %v6997_v55, %v2848_v29  ;;  %v2878_v14 = vsub.f32 1.0, %v2877_v32  ;;  %v2944_v32 = vsub.f32 0.0, %v8444_v34  ;;  %vm2898_vm2 = vmor %vm2896_vm12, %vm2897_vm4  ;;  %vm10187_vm8 = vcmp.eq.s32.totalorder %v7551_v36, 1 }
 0x780   : > { %v2864_v62 = vmul.f32 %v6999_v27, %v2863_v23  ;;  %vm10190_vm4 = vcmp.eq.s32.totalorder %v7572_v44, 1  ;;  %vm10191_vm12 = vcmp.eq.s32.totalorder %v7575_v45, 1 }
 0x781   : > { %v2850_v52 = vadd.f32 %v6997_v55, %v2849_v42  ;;  %v2879_v54 = vmul.f32 %v7001_v46, %v2878_v14 }
 0x782   : > { %v2865_v25 = vadd.f32 %v6999_v27, %v2864_v62  ;;  %v8469_v62 = vpop.f32.mrf.mxu3 }
 0x783   : > { %v2854_v50 = vsel %vm2853_vm3, %v6997_v55, %v2850_v52  ;;  %v2880_v6 = vadd.f32 %v7001_v46, %v2879_v54  ;;  %v2893_v55 = vsub.f32 1.0, %v2892_v3  ;;  %v2948_v3 = vmul.f32 %v2944_v32, %v8444_v34 }
 0x784   : > { %v8460_v61 = vsel %vm2856_vm15, %v2858_v59, %v2854_v50  ;;  %v2869_v9 = vsel %vm2868_vm9, %v6999_v27, %v2865_v25  ;;  %v2902_v27 = vand.u32 2147483648, %v8456_v12  ;;  %v2947_v50 = vmul.f32 %v2943_v26, %v8441_v20 }
 0x785   : > { %v2906_v41 = vmul.f32 1.0614054, %v8460_v61  ;;  %v2874_v8 = vsel %vm2871_vm5, %v2873_v10, %v2869_v9  ;;  %v2884_v31 = vsel %vm2883_vm13, %v7001_v46, %v2880_v6  ;;  %v2894_v42 = vmul.f32 %v7003_v24, %v2893_v55 }
 0x786   : > { %v2907_v28 = vmul.f32 1.0614054, %v2874_v8  ;;  %v2889_v18 = vsel %vm2886_vm11, %v2888_v16, %v2884_v31  ;;  %v2903_v46 = vor.u32 1.1754944e-38, %v2902_v27  ;;  %vm2901_vm15 = vcmp.eq.f32.partialorder %v2900_v30, 8.507059e+37 }
 0x787   : > { %v2910_v29 = vadd.f32 -1.4531521, %v2906_v41  ;;  %v2908_v59 = vmul.f32 1.0614054, %v2889_v18  ;;  %v2895_v25 = vadd.f32 %v7003_v24, %v2894_v42  ;;  %v2952_v48 = vmul.f32 1.442695, %v2947_v50 }
 0x788   : > { %v2911_v23 = vadd.f32 -1.4531521, %v2907_v28  ;;  %v2945_v28 = vsub.f32 0.0, %v8453_v22  ;;  %vm2827_vm3 = vcmp.ge.f32.partialorder %v8430_v7, 0.0  ;;  %vm2826_vm5 = vcmp.ge.f32.partialorder %v8427_v40, 0.0 }
 0x789   : > { %v2914_v38 = vmul.f32 %v2910_v29, %v8460_v61  ;;  %v2912_v33 = vadd.f32 -1.4531521, %v2908_v59  ;;  %v2899_v9 = vsel %vm2898_vm2, %v7003_v24, %v2895_v25  ;;  %v2954_v24 = vmul.f32 1.442695, %v2948_v3 }
 0x78a   : > { %v2915_v52 = vmul.f32 %v2911_v23, %v2874_v8  ;;  %v2904_v41 = vsel %vm2901_vm15, %v2903_v46, %v2899_v9  ;;  %v2949_v30 = vmul.f32 %v2945_v28, %v8453_v22  ;;  %7004 = vpow2.f32 %v2952_v48 }
 0x78b   : > { %v2918_v14 = vadd.f32 1.4214138, %v2914_v38  ;;  %v2916_v12 = vmul.f32 %v2912_v33, %v2889_v18  ;;  %v2909_v55 = vmul.f32 1.0614054, %v2904_v41  ;;  %v3015_v38 = vpop.f32.mrf.mxu3  ;;  %7006 = vpow2.f32 %v2950_v35 }
 0x78c   : > { %v2919_v10 = vadd.f32 1.4214138, %v2915_v52  ;;  %7008 = vpow2.f32 %v2954_v24  ;;  %v2956_v25 = vmul.f32 1.442695, %v2949_v30  ;;  %vm2829_vm9 = vcmp.ge.f32.partialorder %v8450_v21, 0.0 }
 0x78d   : > { %v2922_v54 = vmul.f32 %v2918_v14, %v8460_v61  ;;  %v2920_v26 = vadd.f32 1.4214138, %v2916_v12  ;;  %v2913_v16 = vadd.f32 -1.4531521, %v2909_v55  ;;  %v2831_v11 = vsel %vm2827_vm3, 1.0, %v10045_v15 }
 0x78e   : > { %v2923_v6 = vmul.f32 %v2919_v10, %v2874_v8  ;;  %7010 = vpow2.f32 %v2956_v25  ;;  %v2833_v7 = vsel %vm2829_vm9, 1.0, %v10045_v15  ;;  %v2820_v40 = vmul.f32 0.5, %v8424_v0 }
 0x78f   : > { %v2926_v29 = vadd.f32 -0.28449672, %v2922_v54  ;;  %v2924_v31 = vmul.f32 %v2920_v26, %v2889_v18  ;;  %v2917_v34 = vmul.f32 %v2913_v16, %v2904_v41  ;;  %v2832_v26 = vsel %vm2828_vm1, 1.0, %v10045_v15 }
 0x790   : > { %v2927_v20 = vadd.f32 -0.28449672, %v2923_v6  ;;  %v7005_v22 = vpop.eup %7004  ;;  %v2819_v25 = vmul.f32 0.5, %v8422_v58  ;;  %v3029_v58 = vld [vmem:[%s10186_s1 + $0x8] sm:$0xff]  ;;  %vm10188_vm11 = vcmp.eq.s32.totalorder %v7559_v39, 1  ;;  %vm10189_vm13 = vcmp.eq.s32.totalorder %v7566_v43, 1 }
 0x791   : > { %v2930_v27 = vmul.f32 %v2926_v29, %v8460_v61  ;;  %v2928_v52 = vadd.f32 -0.28449672, %v2924_v31  ;;  %v2921_v59 = vadd.f32 1.4214138, %v2917_v34  ;;  %v7007_v9 = vpop.eup %7006  ;;  %vm10192_vm2 = vcmp.eq.s32.totalorder %v7588_v47, 1 }
 0x792   : > { %v2931_v23 = vmul.f32 %v2927_v20, %v2874_v8  ;;  %v7009_v6 = vpop.eup %7008  ;;  %vm10193_vm15 = vcmp.eq.s32.totalorder %v7596_v49, 1  ;;  %vm10194_vm1 = vcmp.eq.s32.totalorder %v7604_v51, 1  ;;  %vm10195_vm3 = vcmp.eq.s32.totalorder %v7551_v36, 4294967295 }
 0x793   : > { %v2934_v42 = vadd.f32 0.2548296, %v2930_v27  ;;  %v2932_v19 = vmul.f32 %v2928_v52, %v2889_v18  ;;  %v2925_v50 = vmul.f32 %v2921_v59, %v2904_v41  ;;  %v3018_v35 = vpop.f32.mrf.mxu3  ;;  %vm10197_vm9 = vcmp.eq.s32.totalorder %v7559_v39, 4294967295 }
 0x794   : > { %v2935_v32 = vadd.f32 0.2548296, %v2931_v23  ;;  %v7011_v20 = vpop.eup %7010  ;;  %v2830_v23 = vsel %vm2826_vm5, 1.0, %v10045_v15  ;;  %vm10196_vm5 = vcmp.eq.s32.totalorder %v7624_v53, 1 }
 0x795   : > { %v2938_v46 = vmul.f32 %v2934_v42, %v8460_v61  ;;  %v2936_v10 = vadd.f32 0.2548296, %v2932_v19  ;;  %v2929_v33 = vadd.f32 -0.28449672, %v2925_v50  ;;  %v2818_v50 = vmul.f32 0.5, %v8420_v17  ;;  %v3031_v17 = vld [vmem:[%s10186_s1 + $0x18] sm:$0xff] }
 0x796   : > { %v2939_v14 = vmul.f32 %v2935_v32, %v2874_v8  ;;  %v2821_v32 = vmul.f32 0.5, %v8435_v13 }
 0x797   : > { %v2940_v3 = vmul.f32 %v2936_v10, %v2889_v18  ;;  %v2933_v28 = vmul.f32 %v2929_v33, %v2904_v41  ;;  %v2958_v12 = vmul.f32 %v7007_v9, %v2938_v46  ;;  %v3028_v9 = vld [vmem:[%s10186_s1] sm:$0xff] }
 0x798   : > { %v2959_v54 = vmul.f32 %v7005_v22, %v2939_v14 }
 0x799   : > { %v2960_v55 = vmul.f32 %v7009_v6, %v2940_v3  ;;  %v2937_v29 = vadd.f32 0.2548296, %v2933_v28  ;;  %v2962_v16 = vsub.f32 1.0, %v2958_v12  ;;  %v3044_v3 = vpop.permute.xlu0 %3043 }
 0x79a   : > { %v2963_v8 = vsub.f32 1.0, %v2959_v54  ;;  %v3030_v54 = vld [vmem:[%s10186_s1 + $0x10] sm:$0xff] }
 0x79b   : > { %v2964_v48 = vsub.f32 1.0, %v2960_v55  ;;  %v2941_v61 = vmul.f32 %v2937_v29, %v2904_v41  ;;  %v2966_v31 = vmul.f32 %v2962_v16, %v2830_v23  ;;  %v3021_v21 = vpop.f32.mrf.mxu3  ;;  %v3054_v29 = vpop.permute.xlu2 %3053 }
 0x79c   : > { %v2967_v24 = vmul.f32 %v2963_v8, %v2831_v11 }
 0x79d   : > { %v2968_v18 = vmul.f32 %v2964_v48, %v2832_v26  ;;  %v2961_v27 = vmul.f32 %v7011_v20, %v2941_v61  ;;  %v2970_v59 = vadd.f32 1.0, %v2966_v31  ;;  %v3049_v48 = vpop.permute.xlu1 %3048 }
 0x79e   : > { %v2971_v42 = vadd.f32 1.0, %v2967_v24 }
 0x79f   : > { %v2965_v30 = vsub.f32 1.0, %v2961_v27  ;;  %v2972_v41 = vadd.f32 1.0, %v2968_v18  ;;  %v2974_v33 = vmul.f32 %v2970_v59, %v2818_v50 }
 0x7a0   : > { %v2975_v46 = vmul.f32 %v2971_v42, %v2819_v25 }
 0x7a1   : > { %v2969_v34 = vmul.f32 %v2965_v30, %v2833_v7  ;;  %v2976_v14 = vmul.f32 %v2972_v41, %v2820_v40  ;;  %v3024_v13 = vadd.f32 %v8469_v62, %v2974_v33  ;;  %v3039_v12 = vpop.permute.xlu0 %3038  ;;  %v3182_v33 = vpop.f32.mrf.mxu2 }
 0x7a2   : > { %v3025_v0 = vadd.f32 %v3015_v38, %v2975_v46 }
 0x7a3   : > { %v2973_v52 = vadd.f32 1.0, %v2969_v34  ;;  %v3026_v22 = vadd.f32 %v3018_v35, %v2976_v14 }
 0x7a5   : > { %v2977_v19 = vmul.f32 %v2973_v52, %v2821_v32 }
 0x7a7   : > { %v3027_v10 = vadd.f32 %v3021_v21, %v2977_v19 }
 0x7a9   : > { %3080 = vmatpush.msrb.mxu0 %v3027_v10  ;;  %v3265_v20 = vpop.permute.xlu0 %3264 }
 0x7ab   : > { %3081 = vmatpush.msrb.mxu0 %v3026_v22 }
 0x7ad   : > { %3082 = vmatpush.msrb.mxu0 %v3025_v0  ;;  %v3158_v0 = vpop.permute.xlu2 %3157 }
 0x7af   : > { %3083 = vmatpush.msrb.mxu0 %v3024_v13 }
 0x7b0   : > { %6537 = vmatmul.msk.f32.vlgmr.msrb.gmra.mxu0 %vm2622_vm10, %v3028_v9 }
 0x7b1   : > { %v3148_v9 = vpop.permute.xlu0 %3147 }
 0x7b8   : > { %6538 = vmatmul.msk.f32.gmra.mxu0 %vm2622_vm10, %v3029_v58 }
 0x7c0   : > { %6539 = vmatmul.msk.f32.gmra.mxu0 %vm2622_vm10, %v3030_v54 }
 0x7c8   : > { %6540 = vmatmul.msk.f32.gmra.mxu0 %vm2622_vm10, %v3031_v17 }
 0x82d   : > { %v3085_v28 = vpop.f32.mrf.mxu0 }
 0x82e   : > { %v3086_v62 = vadd.f32 %v3085_v28, %v3039_v12 }
 0x835   : > { %v3088_v38 = vpop.f32.mrf.mxu0 }
 0x836   : > { %v3089_v6 = vadd.f32 %v3088_v38, %v3044_v3  ;;  %v3183_v3 = vadd.f32 %v3182_v33, %v3148_v9  ;;  %v3185_v38 = vpop.f32.mrf.mxu2 }
 0x838   : > { %3211 = vmatpush.msrb.mxu3 %v3089_v6 }
 0x83a   : > { %3212 = vmatpush.msrb.mxu3 %v3086_v62  ;;  %v3153_v62 = vpop.permute.xlu2 %3152 }
 0x83b   : > { %6541 = vmatmul.msk.f32.vlgmr.msrb.gmra.mxu3 %vm10055_vm0, %v8349_v2 }
 0x83d   : > { %v3091_v55 = vpop.f32.mrf.mxu0 }
 0x83e   : > { %v3092_v61 = vadd.f32 %v3091_v55, %v3049_v48 }
 0x845   : > { %v3094_v35 = vpop.f32.mrf.mxu0 }
 0x846   : > { %v3095_v8 = vadd.f32 %v3094_v35, %v3054_v29  ;;  %v3186_v29 = vadd.f32 %v3185_v38, %v3153_v62  ;;  %v3188_v35 = vpop.f32.mrf.mxu2  ;;  %v3404_v38 = vld [vmem:[%s10266_s8 + $0x8] sm:$0xff]  ;;  %v3406_v62 = vld [vmem:[%s10266_s8 + $0x18] sm:$0xff] }
 0x848   : > { %3282 = vmatpush.msra.mxu3 %v3095_v8 }
 0x84a   : > { %3283 = vmatpush.msra.mxu3 %v3092_v61  ;;  %v3189_v61 = vadd.f32 %v3188_v35, %v3158_v0  ;;  %v3403_v35 = vld [vmem:[%s10266_s8] sm:$0xff] }
 0x84b   : > { %6544 = vmatmul.msk.f32.vlgmr.msra.gmra.mxu3 %vm10055_vm0, %v3265_v20 }
 0x84e   : > { %v3191_v20 = vpop.f32.mrf.mxu2 }
 0x8be   : > { %v3214_v26 = vpop.f32.mrf.mxu3 }
 0x8bf   : > { %v3217_v16 = vrot.slane %v3214_v26, 4 }
 0x8c1   : > { %v3218_v18 = vmax.f32 %v3214_v26, %v3217_v16 }
 0x8c3   : > { %v3219_v27 = vrot.slane %v3218_v18, 2 }
 0x8c5   : > { %v3220_v11 = vmax.f32 %v3218_v18, %v3219_v27 }
 0x8c7   : > { %v3221_v24 = vrot.slane %v3220_v11, 1 }
 0x8c9   : > { %v3222_v30 = vmax.f32 %v3220_v11, %v3221_v24 }
 0x8cb   : > { %v3223_v23 = vsub.f32 %v3214_v26, %v3222_v30  ;;  %v3163_v26 = vpop.permute.xlu1 %3162  ;;  %v3334_v30 = vld [vmem:[%s10228_s2] sm:$0xff] }
 0x8cc   : > { %v3192_v16 = vadd.f32 %v3191_v20, %v3163_v26  ;;  %v3409_v20 = vld [vmem:[%s10266_s8 + $0x30] sm:$0xff] }
 0x8cd   : > { %v3224_v2 = vmul.f32 1.442695, %v3223_v23  ;;  %v3335_v23 = vld [vmem:[%s10228_s2 + $0x8] sm:$0xff] }
 0x8ce   : > { %v3285_v7 = vpop.f32.mrf.mxu3 }
 0x8cf   : > { %7012 = vpow2.f32 %v3224_v2  ;;  %v3288_v31 = vrot.slane %v3285_v7, 4  ;;  %v3336_v2 = vld [vmem:[%s10228_s2 + $0x10] sm:$0xff] }
 0x8d1   : > { %v3289_v41 = vmax.f32 %v3285_v7, %v3288_v31 }
 0x8d3   : > { %v3290_v34 = vrot.slane %v3289_v41, 2  ;;  %v3345_v31 = vpop.permute.xlu1 %3344 }
 0x8d5   : > { %v7013_v42 = vpop.eup %7012  ;;  %v3291_v40 = vmax.f32 %v3289_v41, %v3290_v34 }
 0x8d6   : > { %v3226_v32 = vrot.slane %v7013_v42, 4 }
 0x8d7   : > { %v3292_v52 = vrot.slane %v3291_v40, 1 }
 0x8d8   : > { %v3227_v21 = vadd.f32 %v7013_v42, %v3226_v32 }
 0x8d9   : > { %v3293_v59 = vmax.f32 %v3291_v40, %v3292_v52  ;;  %v3355_v52 = vpop.permute.xlu2 %3354 }
 0x8da   : > { %v3228_v25 = vrot.slane %v3227_v21, 2 }
 0x8db   : > { %v3294_v14 = vsub.f32 %v3285_v7, %v3293_v59  ;;  %v3337_v7 = vld [vmem:[%s10228_s2 + $0x18] sm:$0xff] }
 0x8dc   : > { %v3229_v19 = vadd.f32 %v3228_v25, %v3227_v21  ;;  %v3360_v25 = vpop.permute.xlu1 %3359 }
 0x8dd   : > { %v3295_v50 = vmul.f32 1.442695, %v3294_v14 }
 0x8de   : > { %v3230_v46 = vrot.slane %v3229_v19, 1 }
 0x8df   : > { %7014 = vpow2.f32 %v3295_v50 }
 0x8e0   : > { %v3231_v10 = vadd.f32 %v3230_v46, %v3229_v19 }
 0x8e2   : > { %7016 = vrcp.f32 %v3231_v10 }
 0x8e5   : > { %v7015_v22 = vpop.eup %7014 }
 0x8e6   : > { %v3297_v13 = vrot.slane %v7015_v22, 4 }
 0x8e8   : > { %v7017_v58 = vpop.eup %7016  ;;  %v3298_v54 = vadd.f32 %v7015_v22, %v3297_v13 }
 0x8e9   : > { %v3233_v17 = vmul.f32 %v7017_v58, %v7013_v42  ;;  %v3350_v42 = vpop.permute.xlu0 %3349 }
 0x8ea   : > { %v3299_v28 = vrot.slane %v3298_v54, 2 }
 0x8eb   : > { %3256 = vmatpush.msra.mxu1 %v3233_v17 }
 0x8ec   : > { %6542 = vmatmul.msk.f32.vlgmr.msra.gmra.mxu1 %vm10035_vm14, %v3183_v3  ;;  %v3300_v6 = vadd.f32 %v3299_v28, %v3298_v54 }
 0x8ed   : > { %6567 = vmatpush.msk.msrb.mxu1 %vm10187_vm8, %v10033_v37  ;;  %vm10198_vm8 = vcmp.eq.s32.totalorder %v7651_v56, 1 }
 0x8ee   : > { %v3301_v12 = vrot.slane %v3300_v6, 1 }
 0x8ef   : > { %6568 = vmatpush.msk.msrb.mxu1 %vm10188_vm11, %v10033_v37  ;;  %vm10199_vm11 = vcmp.eq.s32.totalorder %v7566_v43, 4294967295 }
 0x8f0   : > { %v3302_v55 = vadd.f32 %v3301_v12, %v3300_v6 }
 0x8f1   : > { %6569 = vmatpush.msk.msrb.mxu1 %vm10189_vm13, %v10033_v37  ;;  %vm10200_vm13 = vcmp.eq.s32.totalorder %v7660_v57, 1 }
 0x8f2   : > { %7018 = vrcp.f32 %v3302_v55 }
 0x8f3   : > { %6570 = vmatpush.msk.msrb.mxu1 %vm10190_vm4, %v10033_v37  ;;  %vm10201_vm4 = vcmp.eq.s32.totalorder %v7572_v44, 4294967295 }
 0x8f4   : > { %6543 = vmatmul.msk.f32.gmra.mxu1 %vm10035_vm14, %v3186_v29  ;;  %v3408_v29 = vld [vmem:[%s10266_s8 + $0x28] sm:$0xff] }
 0x8f5   : > { %6571 = vmatpush.msk.msrb.mxu1 %vm10191_vm12, %v10033_v37  ;;  %vm10202_vm12 = vcmp.eq.s32.totalorder %v7689_v60, 1 }
 0x8f7   : > { %6572 = vmatpush.msk.msrb.mxu1 %vm10192_vm2, %v10033_v37  ;;  %vm10203_vm2 = vcmp.eq.s32.totalorder %v7575_v45, 4294967295 }
 0x8f8   : > { %v7019_v8 = vpop.eup %7018 }
 0x8f9   : > { %v3304_v48 = vmul.f32 %v7019_v8, %v7015_v22  ;;  %6573 = vmatpush.msk.msrb.mxu1 %vm10193_vm15, %v10033_v37  ;;  %vm10204_vm15 = vcmp.eq.s32.totalorder %v7716_v63, 1  ;;  %v3410_v8 = vld [vmem:[%s10266_s8 + $0x38] sm:$0xff] }
 0x8fb   : > { %3326 = vmatpush.msrb.mxu3 %v3304_v48  ;;  %6574 = vmatpush.msk.msrb.mxu1 %vm10194_vm1, %v10033_v37  ;;  %vm10205_vm1 = vcmp.eq.s32.totalorder %v7588_v47, 4294967295  ;;  %v3405_v48 = vld [vmem:[%s10266_s8 + $0x10] sm:$0xff] }
 0x8fc   : > { %6545 = vmatmul.msk.f32.vlgmr.msrb.gmra.mxu3 %vm10035_vm14, %v3189_v61  ;;  %v3407_v61 = vld [vmem:[%s10266_s8 + $0x20] sm:$0xff]  ;;  %s10303_s8 = smov 112  }
 0x8fd   : > { %6583 = vmatpush.msk.msra.mxu3 %vm10195_vm3, %v10033_v37  ;;  %6575 = vmatpush.msk.msrb.mxu1 %vm10196_vm5, %v10033_v37  ;;  %vm10206_vm3 = vcmp.eq.s32.totalorder %v7719_v1, 1  ;;  %vm10207_vm5 = vcmp.eq.s32.totalorder %v7596_v49, 4294967295 }
 0x8ff   : > { %6584 = vmatpush.msk.msra.mxu3 %vm10197_vm9, %v10033_v37  ;;  %6576 = vmatpush.msk.msrb.mxu1 %vm10198_vm8, %v10033_v37  ;;  %vm10208_vm9 = vcmp.eq.s32.totalorder %v7737_v4, 1  ;;  %vm10209_vm8 = vcmp.eq.s32.totalorder %v7604_v51, 4294967295 }
 0x901   : > { %6585 = vmatpush.msk.msra.mxu3 %vm10199_vm11, %v10033_v37  ;;  %6577 = vmatpush.msk.msrb.mxu1 %vm10200_vm13, %v10033_v37  ;;  %vm10210_vm11 = vcmp.eq.s32.totalorder %v7759_v5, 1  ;;  %vm10211_vm13 = vcmp.eq.s32.totalorder %v7624_v53, 4294967295 }
 0x903   : > { %6586 = vmatpush.msk.msra.mxu3 %vm10201_vm4, %v10033_v37  ;;  %6578 = vmatpush.msk.msrb.mxu1 %vm10202_vm12, %v10033_v37  ;;  %vm10212_vm4 = vcmp.eq.s32.totalorder %v7651_v56, 4294967295  ;;  %vm10213_vm12 = vcmp.eq.s32.totalorder %v7660_v57, 4294967295 }
 0x904   : > { %6546 = vmatmul.msk.f32.gmra.mxu3 %vm10035_vm14, %v3192_v16 }
 0x905   : > { %6587 = vmatpush.msk.msra.mxu3 %vm10203_vm2, %v10033_v37  ;;  %6579 = vmatpush.msk.msrb.mxu1 %vm10204_vm15, %v10033_v37  ;;  %vm10214_vm2 = vcmp.eq.s32.totalorder %v7689_v60, 4294967295  ;;  %vm10215_vm15 = vcmp.eq.s32.totalorder %v7716_v63, 4294967295 }
 0x907   : > { %6588 = vmatpush.msk.msra.mxu3 %vm10205_vm1, %v10033_v37  ;;  %6580 = vmatpush.msk.msrb.mxu1 %vm10206_vm3, %v10033_v37  ;;  %vm10216_vm1 = vcmp.eq.s32.totalorder %v7719_v1, 4294967295  ;;  %vm10217_vm3 = vcmp.eq.s32.totalorder %v7737_v4, 4294967295 }
 0x909   : > { %6589 = vmatpush.msk.msra.mxu3 %vm10207_vm5, %v10033_v37  ;;  %6581 = vmatpush.msk.msrb.mxu1 %vm10208_vm9, %v10033_v37  ;;  %vm10218_vm5 = vcmp.eq.s32.totalorder %v7759_v5, 4294967295  ;;  %vm10219_vm9 = vcmp.eq.s32.totalorder %v7551_v36, 2 }
 0x90b   : > { %6590 = vmatpush.msk.msra.mxu3 %vm10209_vm8, %v10033_v37  ;;  %6582 = vmatpush.msk.msrb.mxu1 %vm10210_vm11, %v10033_v37  ;;  %vm10220_vm8 = vcmp.eq.s32.totalorder %v7559_v39, 2  ;;  %vm10221_vm11 = vcmp.eq.s32.totalorder %v7566_v43, 2 }
 0x90d   : > { %6591 = vmatpush.msk.msra.mxu3 %vm10211_vm13, %v10033_v37  ;;  %vm10222_vm13 = vcmp.eq.s32.totalorder %v7572_v44, 2 }
 0x90f   : > { %6592 = vmatpush.msk.msra.mxu3 %vm10212_vm4, %v10033_v37  ;;  %vm10223_vm4 = vcmp.eq.s32.totalorder %v7575_v45, 2 }
 0x911   : > { %6593 = vmatpush.msk.msra.mxu3 %vm10213_vm12, %v10033_v37  ;;  %vm10224_vm12 = vcmp.eq.s32.totalorder %v7588_v47, 2 }
 0x913   : > { %6594 = vmatpush.msk.msra.mxu3 %vm10214_vm2, %v10033_v37  ;;  %vm10225_vm2 = vcmp.eq.s32.totalorder %v7596_v49, 2 }
 0x915   : > { %6595 = vmatpush.msk.msra.mxu3 %vm10215_vm15, %v10033_v37  ;;  %vm10226_vm15 = vcmp.eq.s32.totalorder %v7604_v51, 2 }
 0x917   : > { %6596 = vmatpush.msk.msra.mxu3 %vm10216_vm1, %v10033_v37  ;;  %vm10227_vm1 = vcmp.eq.s32.totalorder %v7624_v53, 2 }
 0x919   : > { %6597 = vmatpush.msk.msra.mxu3 %vm10217_vm3, %v10033_v37  ;;  %vm10229_vm3 = vcmp.eq.s32.totalorder %v7651_v56, 2 }
 0x91b   : > { %6598 = vmatpush.msk.msra.mxu3 %vm10218_vm5, %v10033_v37  ;;  %vm10230_vm5 = vcmp.eq.s32.totalorder %v7660_v57, 2 }
 0x91d   : > { %6619 = vmatpush.msk.msrb.mxu3 %vm10219_vm9, %v10033_v37  ;;  %vm10231_vm9 = vcmp.eq.s32.totalorder %v7716_v63, 2 }
 0x91f   : > { %6620 = vmatpush.msk.msrb.mxu3 %vm10220_vm8, %v10033_v37  ;;  %vm10232_vm8 = vcmp.eq.s32.totalorder %v7719_v1, 2 }
 0x921   : > { %6621 = vmatpush.msk.msrb.mxu3 %vm10221_vm11, %v10033_v37  ;;  %vm10233_vm11 = vcmp.eq.s32.totalorder %v7759_v5, 2 }
 0x923   : > { %6622 = vmatpush.msk.msrb.mxu3 %vm10222_vm13, %v10033_v37  ;;  %vm10234_vm13 = vcmp.eq.s32.totalorder %v7551_v36, 4294967294 }
 0x925   : > { %6623 = vmatpush.msk.msrb.mxu3 %vm10223_vm4, %v10033_v37  ;;  %vm10235_vm4 = vcmp.eq.s32.totalorder %v7559_v39, 4294967294 }
 0x927   : > { %6624 = vmatpush.msk.msrb.mxu3 %vm10224_vm12, %v10033_v37  ;;  %vm10236_vm12 = vcmp.eq.s32.totalorder %v7566_v43, 4294967294 }
 0x929   : > { %6625 = vmatpush.msk.msrb.mxu3 %vm10225_vm2, %v10033_v37  ;;  %vm10237_vm2 = vcmp.eq.s32.totalorder %v7572_v44, 4294967294 }
 0x92b   : > { %6626 = vmatpush.msk.msrb.mxu3 %vm10226_vm15, %v10033_v37  ;;  %vm10238_vm15 = vcmp.eq.s32.totalorder %v7575_v45, 4294967294 }
 0x92d   : > { %6627 = vmatpush.msk.msrb.mxu3 %vm10227_vm1, %v10033_v37  ;;  %vm10239_vm1 = vcmp.eq.s32.totalorder %v7588_v47, 4294967294 }
 0x92f   : > { %6628 = vmatpush.msk.msrb.mxu3 %vm10229_vm3, %v10033_v37  ;;  %vm10240_vm3 = vcmp.eq.s32.totalorder %v7596_v49, 4294967294 }
 0x931   : > { %6629 = vmatpush.msk.msrb.mxu3 %vm10230_vm5, %v10033_v37  ;;  %vm10241_vm5 = vcmp.eq.s32.totalorder %v7604_v51, 4294967294 }
 0x933   : > { %6630 = vmatpush.msk.msrb.mxu3 %vm10054_vm7, %v10033_v37 }
 0x935   : > { %6631 = vmatpush.msk.msrb.mxu3 %vm10231_vm9, %v10033_v37  ;;  %vm10242_vm9 = vcmp.eq.s32.totalorder %v7624_v53, 4294967294 }
 0x937   : > { %6632 = vmatpush.msk.msrb.mxu3 %vm10232_vm8, %v10033_v37  ;;  %vm10243_vm8 = vcmp.eq.s32.totalorder %v7651_v56, 4294967294 }
 0x939   : > { %6633 = vmatpush.msk.msrb.mxu3 %vm10053_vm6, %v10033_v37 }
 0x93b   : > { %6634 = vmatpush.msk.msrb.mxu3 %vm10233_vm11, %v10033_v37  ;;  %vm10244_vm11 = vcmp.eq.s32.totalorder %v7660_v57, 4294967294 }
 0x969   : > { %v3258_v27 = vpop.f32.mrf.mxu1 }
 0x971   : > { %v3261_v24 = vpop.f32.mrf.mxu1 }
 0x97f   : > { %v3328_v18 = vpop.f32.mrf.mxu3 }
 0x987   : > { %v3331_v11 = vpop.f32.mrf.mxu3 }
 0x988   : > { %3386 = vmatpush.msra.mxu0 %v3331_v11  ;;  %v3534_v11 = vpop.permute.xlu0 %3533 }
 0x98a   : > { %3387 = vmatpush.msra.mxu0 %v3328_v18 }
 0x98c   : > { %3388 = vmatpush.msra.mxu0 %v3261_v24 }
 0x98e   : > { %3389 = vmatpush.msra.mxu0 %v3258_v27 }
 0x98f   : > { %6547 = vmatmul.msk.f32.vlgmr.msra.gmra.mxu0 %vm2622_vm10, %v3334_v30  ;;  %v3539_v30 = vpop.permute.xlu2 %3538 }
 0x990   : > { %6599 = vmatpush.msk.msrb.mxu0 %vm10234_vm13, %v10033_v37  ;;  %vm10245_vm13 = vcmp.eq.s32.totalorder %v7689_v60, 4294967294 }
 0x992   : > { %6600 = vmatpush.msk.msrb.mxu0 %vm10235_vm4, %v10033_v37  ;;  %vm10246_vm4 = vcmp.eq.s32.totalorder %v7716_v63, 4294967294 }
 0x994   : > { %6601 = vmatpush.msk.msrb.mxu0 %vm10236_vm12, %v10033_v37  ;;  %vm10247_vm12 = vcmp.eq.s32.totalorder %v7719_v1, 4294967294 }
 0x996   : > { %6602 = vmatpush.msk.msrb.mxu0 %vm10237_vm2, %v10033_v37  ;;  %vm10248_vm2 = vcmp.eq.s32.totalorder %v7737_v4, 4294967294 }
 0x997   : > { %6548 = vmatmul.msk.f32.gmra.mxu0 %vm2622_vm10, %v3335_v23 }
 0x998   : > { %6603 = vmatpush.msk.msrb.mxu0 %vm10238_vm15, %v10033_v37  ;;  %vm10249_vm15 = vcmp.eq.s32.totalorder %v7759_v5, 4294967294 }
 0x99a   : > { %6604 = vmatpush.msk.msrb.mxu0 %vm10239_vm1, %v10033_v37  ;;  %vm10250_vm1 = vcmp.eq.s32.totalorder %v7551_v36, 1 }
 0x99c   : > { %6605 = vmatpush.msk.msrb.mxu0 %vm10240_vm3, %v10033_v37  ;;  %vm10251_vm3 = vcmp.eq.s32.totalorder %v7559_v39, 1 }
 0x99e   : > { %6606 = vmatpush.msk.msrb.mxu0 %vm10241_vm5, %v10033_v37  ;;  %vm10252_vm5 = vcmp.eq.s32.totalorder %v7566_v43, 1 }
 0x99f   : > { %6549 = vmatmul.msk.f32.gmra.mxu0 %vm2622_vm10, %v3336_v2 }
 0x9a0   : > { %6607 = vmatpush.msk.msrb.mxu0 %vm10242_vm9, %v10033_v37  ;;  %vm10253_vm9 = vcmp.eq.s32.totalorder %v7572_v44, 1 }
 0x9a2   : > { %6608 = vmatpush.msk.msrb.mxu0 %vm10243_vm8, %v10033_v37  ;;  %vm10254_vm8 = vcmp.eq.s32.totalorder %v7575_v45, 1 }
 0x9a4   : > { %6609 = vmatpush.msk.msrb.mxu0 %vm10244_vm11, %v10033_v37  ;;  %vm10255_vm11 = vcmp.eq.s32.totalorder %v7588_v47, 1 }
 0x9a6   : > { %6610 = vmatpush.msk.msrb.mxu0 %vm10245_vm13, %v10033_v37  ;;  %vm10256_vm13 = vcmp.eq.s32.totalorder %v7596_v49, 1 }
 0x9a7   : > { %6550 = vmatmul.msk.f32.gmra.mxu0 %vm2622_vm10, %v3337_v7  ;;  %v3544_v7 = vpop.permute.xlu1 %3543 }
 0x9a8   : > { %6611 = vmatpush.msk.msrb.mxu0 %vm10246_vm4, %v10033_v37  ;;  %vm10257_vm4 = vcmp.eq.s32.totalorder %v7604_v51, 1 }
 0x9aa   : > { %6612 = vmatpush.msk.msrb.mxu0 %vm10247_vm12, %v10033_v37  ;;  %vm10258_vm12 = vcmp.eq.s32.totalorder %v7624_v53, 1 }
 0x9ac   : > { %6613 = vmatpush.msk.msrb.mxu0 %vm10248_vm2, %v10033_v37  ;;  %vm10259_vm2 = vcmp.eq.s32.totalorder %v7651_v56, 1 }
 0x9ae   : > { %6614 = vmatpush.msk.msrb.mxu0 %vm10249_vm15, %v10033_v37  ;;  %vm10260_vm15 = vcmp.eq.s32.totalorder %v7660_v57, 1 }
 0x9b0   : > { %6635 = vmatpush.msk.msra.mxu0 %vm10250_vm1, %v10033_v37  ;;  %vm10261_vm1 = vcmp.eq.s32.totalorder %v7689_v60, 1 }
 0x9b2   : > { %6636 = vmatpush.msk.msra.mxu0 %vm10251_vm3, %v10033_v37  ;;  %vm10262_vm3 = vcmp.eq.s32.totalorder %v7716_v63, 1 }
 0x9b4   : > { %6637 = vmatpush.msk.msra.mxu0 %vm10252_vm5, %v10033_v37  ;;  %vm10263_vm5 = vcmp.eq.s32.totalorder %v7719_v1, 1 }
 0x9b6   : > { %6638 = vmatpush.msk.msra.mxu0 %vm10253_vm9, %v10033_v37  ;;  %vm10264_vm9 = vcmp.eq.s32.totalorder %v7737_v4, 1 }
 0x9b8   : > { %6639 = vmatpush.msk.msra.mxu0 %vm10254_vm8, %v10033_v37  ;;  %vm10265_vm8 = vcmp.eq.s32.totalorder %v7759_v5, 1 }
 0x9ba   : > { %6640 = vmatpush.msk.msra.mxu0 %vm10255_vm11, %v10033_v37  ;;  %vm10267_vm11 = vcmp.eq.s32.totalorder %v7551_v36, 4294967294 }
 0x9bc   : > { %6641 = vmatpush.msk.msra.mxu0 %vm10256_vm13, %v10033_v37  ;;  %vm10268_vm13 = vcmp.eq.s32.totalorder %v7559_v39, 4294967294 }
 0x9be   : > { %6642 = vmatpush.msk.msra.mxu0 %vm10257_vm4, %v10033_v37  ;;  %vm10269_vm4 = vcmp.eq.s32.totalorder %v7566_v43, 4294967294 }
 0x9c0   : > { %6643 = vmatpush.msk.msra.mxu0 %vm10258_vm12, %v10033_v37  ;;  %vm10270_vm12 = vcmp.eq.s32.totalorder %v7572_v44, 4294967294 }
 0x9c2   : > { %6644 = vmatpush.msk.msra.mxu0 %vm10259_vm2, %v10033_v37  ;;  %vm10271_vm2 = vcmp.eq.s32.totalorder %v7575_v45, 4294967294 }
 0x9c4   : > { %6645 = vmatpush.msk.msra.mxu0 %vm10260_vm15, %v10033_v37  ;;  %vm10272_vm15 = vcmp.eq.s32.totalorder %v7588_v47, 4294967294 }
 0x9c6   : > { %6646 = vmatpush.msk.msra.mxu0 %vm10261_vm1, %v10033_v37  ;;  %vm10273_vm1 = vcmp.eq.s32.totalorder %v7596_v49, 4294967294 }
 0x9c8   : > { %6647 = vmatpush.msk.msra.mxu0 %vm10262_vm3, %v10033_v37  ;;  %vm10274_vm3 = vcmp.eq.s32.totalorder %v7604_v51, 4294967294 }
 0x9ca   : > { %6648 = vmatpush.msk.msra.mxu0 %vm10263_vm5, %v10033_v37  ;;  %vm10275_vm5 = vcmp.eq.s32.totalorder %v7624_v53, 4294967294 }
 0x9cc   : > { %6649 = vmatpush.msk.msra.mxu0 %vm10264_vm9, %v10033_v37  ;;  %vm10276_vm9 = vcmp.eq.s32.totalorder %v7651_v56, 4294967294 }
 0x9ce   : > { %6650 = vmatpush.msk.msra.mxu0 %vm10265_vm8, %v10033_v37  ;;  %vm10277_vm8 = vcmp.eq.s32.totalorder %v7660_v57, 4294967294 }
 0xa0c   : > { %v3391_v41 = vpop.f32.mrf.mxu0 }
 0xa0d   : > { %v8757_v34 = vadd.f32 %v3391_v41, %v3345_v31 }
 0xa0f   : > { %3431 = vmatmul.f32.vlgmr.msra.gmra.mxu2 %v8757_v34  ;;  %3460 = vmatmul.f32.vlgmr.msrb.gmra.mxu1 %v8757_v34 }
 0xa10   : > { %3489 = vmatmul.f32.vlgmr.msra.gmra.mxu3 %v8757_v34  ;;  %3518 = vmatmul.f32.vlgmr.msrb.gmra.mxu0 %v8757_v34 }
 0xa14   : > { %v3394_v40 = vpop.f32.mrf.mxu0 }
 0xa15   : > { %v8763_v32 = vadd.f32 %v3394_v40, %v3350_v42  ;;  %v3549_v40 = vpop.permute.xlu0 %3548 }
 0xa17   : > { %3434 = vmatmul.f32.gmra.mxu2 %v8763_v32  ;;  %3463 = vmatmul.f32.gmra.mxu1 %v8763_v32 }
 0xa18   : > { %3492 = vmatmul.f32.gmra.mxu3 %v8763_v32  ;;  %3521 = vmatmul.f32.gmra.mxu0 %v8763_v32 }
 0xa1c   : > { %v3397_v21 = vpop.f32.mrf.mxu0 }
 0xa1d   : > { %v8769_v59 = vadd.f32 %v3397_v21, %v3355_v52 }
 0xa1f   : > { %3437 = vmatmul.f32.gmra.mxu2 %v8769_v59  ;;  %3466 = vmatmul.f32.gmra.mxu1 %v8769_v59 }
 0xa20   : > { %3495 = vmatmul.f32.gmra.mxu3 %v8769_v59  ;;  %3524 = vmatmul.f32.gmra.mxu0 %v8769_v59 }
 0xa24   : > { %v3400_v14 = vpop.f32.mrf.mxu0 }
 0xa25   : > { %v8775_v19 = vadd.f32 %v3400_v14, %v3360_v25 }
 0xa27   : > { %3440 = vmatmul.f32.gmra.mxu2 %v8775_v19  ;;  %3469 = vmatmul.f32.gmra.mxu1 %v8775_v19 }
 0xa28   : > { %3498 = vmatmul.f32.gmra.mxu3 %v8775_v19  ;;  %3527 = vmatmul.f32.gmra.mxu0 %v8775_v19 }
 0xa8c   : > { %v3461_v22 = vpop.f32.mrf.mxu1 }
 0xa8d   : > { %v3519_v50 = vpop.f32.mrf.mxu0 }
 0xa92   : > { %v3432_v9 = vpop.f32.mrf.mxu2 }
 0xa93   : > { %v3490_v46 = vpop.f32.mrf.mxu3 }
 0xa94   : > { %v3464_v54 = vpop.f32.mrf.mxu1 }
 0xa95   : > { %v3522_v10 = vpop.f32.mrf.mxu0 }
 0xa9a   : > { %v3435_v3 = vpop.f32.mrf.mxu2 }
 0xa9b   : > { %v3493_v33 = vpop.f32.mrf.mxu3 }
 0xa9c   : > { %v3467_v28 = vpop.f32.mrf.mxu1 }
 0xa9d   : > { %v3525_v0 = vpop.f32.mrf.mxu0 }
 0xaa2   : > { %v3438_v6 = vpop.f32.mrf.mxu2 }
 0xaa3   : > { %v3496_v13 = vpop.f32.mrf.mxu3 }
 0xaa4   : > { %v3470_v12 = vpop.f32.mrf.mxu1 }
 0xaa5   : > { %v3528_v58 = vpop.f32.mrf.mxu0 }
 0xaa6   : > { %3604 = vmatpush.msra.mxu1 %v3528_v58 }
 0xaa8   : > { %3605 = vmatpush.msra.mxu1 %v3525_v0  ;;  %v3627_v0 = vld [vmem:[%s10180_s22 + $0x10] sm:$0xff] }
 0xaaa   : > { %3606 = vmatpush.msra.mxu1 %v3522_v10  ;;  %v3441_v55 = vpop.f32.mrf.mxu2 }
 0xaab   : > { %v3499_v17 = vpop.f32.mrf.mxu3 }
 0xaac   : > { %3563 = vmatpush.msrb.mxu2 %v3499_v17  ;;  %3607 = vmatpush.msra.mxu1 %v3519_v50 }
 0xaad   : > { %6615 = vmatmul.msk.f32.vlgmr.msra.gmra.mxu1 %vm2622_vm10, %v3404_v38 }
 0xaae   : > { %6667 = vmatpush.msk.msrb.mxu1 %vm10267_vm11, %v10033_v37  ;;  %3564 = vmatpush.msrb.mxu2 %v3496_v13  ;;  %vm10278_vm11 = vcmp.eq.s32.totalorder %v7689_v60, 4294967294  ;;  %v3916_v13 = vld [vmem:[%s10181_s28 + $0x10] sm:$0xff] }
 0xab0   : > { %6668 = vmatpush.msk.msrb.mxu1 %vm10268_vm13, %v10033_v37  ;;  %3565 = vmatpush.msrb.mxu2 %v3493_v33  ;;  %vm10279_vm13 = vcmp.eq.s32.totalorder %v7716_v63, 4294967294 }
 0xab2   : > { %6669 = vmatpush.msk.msrb.mxu1 %vm10269_vm4, %v10033_v37  ;;  %3566 = vmatpush.msrb.mxu2 %v3490_v46  ;;  %vm10280_vm4 = vcmp.eq.s32.totalorder %v7719_v1, 4294967294 }
 0xab4   : > { %6670 = vmatpush.msk.msrb.mxu1 %vm10270_vm12, %v10033_v37  ;;  %3567 = vmatpush.msrb.mxu2 %v8775_v19  ;;  %vm10281_vm12 = vcmp.eq.s32.totalorder %v7737_v4, 4294967294 }
 0xab5   : > { %6616 = vmatmul.msk.f32.gmra.mxu1 %vm2622_vm10, %v3406_v62 }
 0xab6   : > { %6671 = vmatpush.msk.msrb.mxu1 %vm10271_vm2, %v10033_v37  ;;  %3568 = vmatpush.msrb.mxu2 %v8769_v59  ;;  %vm10282_vm2 = vcmp.eq.s32.totalorder %v7759_v5, 4294967294 }
 0xab8   : > { %6672 = vmatpush.msk.msrb.mxu1 %vm10272_vm15, %v10033_v37  ;;  %3569 = vmatpush.msrb.mxu2 %v8763_v32  ;;  %vm10283_vm15 = vcmp.eq.s32.totalorder %v7551_v36, 4294967295 }
 0xaba   : > { %6673 = vmatpush.msk.msrb.mxu1 %vm10273_vm1, %v10033_v37  ;;  %3570 = vmatpush.msrb.mxu2 %v8757_v34  ;;  %vm10284_vm1 = vcmp.eq.s32.totalorder %v7559_v39, 4294967295 }
 0xabc   : > { %6674 = vmatpush.msk.msrb.mxu1 %vm10274_vm3, %v10033_v37  ;;  %3571 = vmatpush.msrb.mxu2 %v3470_v12  ;;  %vm10285_vm3 = vcmp.eq.s32.totalorder %v7566_v43, 4294967295 }
 0xabd   : > { %6617 = vmatmul.msk.f32.gmra.mxu1 %vm2622_vm10, %v3408_v29 }
 0xabe   : > { %6675 = vmatpush.msk.msrb.mxu1 %vm10275_vm5, %v10033_v37  ;;  %3572 = vmatpush.msrb.mxu2 %v3467_v28  ;;  %vm10286_vm5 = vcmp.eq.s32.totalorder %v7572_v44, 4294967295 }
 0xac0   : > { %6676 = vmatpush.msk.msrb.mxu1 %vm10276_vm9, %v10033_v37  ;;  %3573 = vmatpush.msrb.mxu2 %v3464_v54  ;;  %vm10287_vm9 = vcmp.eq.s32.totalorder %v7575_v45, 4294967295 }
 0xac2   : > { %6677 = vmatpush.msk.msrb.mxu1 %vm10277_vm8, %v10033_v37  ;;  %3574 = vmatpush.msrb.mxu2 %v3461_v22  ;;  %vm10288_vm8 = vcmp.eq.s32.totalorder %v7588_v47, 4294967295 }
 0xac4   : > { %6678 = vmatpush.msk.msrb.mxu1 %vm10278_vm11, %v10033_v37  ;;  %3575 = vmatpush.msrb.mxu2 %v3441_v55  ;;  %vm10289_vm11 = vcmp.eq.s32.totalorder %v7596_v49, 4294967295 }
 0xac5   : > { %6618 = vmatmul.msk.f32.gmra.mxu1 %vm2622_vm10, %v3410_v8 }
 0xac6   : > { %6679 = vmatpush.msk.msrb.mxu1 %vm10279_vm13, %v10033_v37  ;;  %3576 = vmatpush.msrb.mxu2 %v3438_v6  ;;  %vm10290_vm13 = vcmp.eq.s32.totalorder %v7604_v51, 4294967295 }
 0xac8   : > { %6680 = vmatpush.msk.msrb.mxu1 %vm10280_vm4, %v10033_v37  ;;  %3577 = vmatpush.msrb.mxu2 %v3435_v3  ;;  %vm10291_vm4 = vcmp.eq.s32.totalorder %v7624_v53, 4294967295 }
 0xaca   : > { %6681 = vmatpush.msk.msrb.mxu1 %vm10281_vm12, %v10033_v37  ;;  %3578 = vmatpush.msrb.mxu2 %v3432_v9  ;;  %vm10292_vm12 = vcmp.eq.s32.totalorder %v7651_v56, 4294967295 }
 0xacb   : > { %3579 = vmatmul.f32.vlgmr.msrb.gmra.mxu2 %v3403_v35 }
 0xacc   : > { %6682 = vmatpush.msk.msrb.mxu1 %vm10282_vm2, %v10033_v37  ;;  %6651 = vmatpush.msk.msra.mxu2 %vm10283_vm15, %v10033_v37  ;;  %vm10293_vm2 = vcmp.eq.s32.totalorder %v7660_v57, 4294967295  ;;  %vm10294_vm15 = vcmp.eq.s32.totalorder %v7689_v60, 4294967295 }
 0xace   : > { %6652 = vmatpush.msk.msra.mxu2 %vm10284_vm1, %v10033_v37  ;;  %vm10295_vm1 = vcmp.eq.s32.totalorder %v7716_v63, 4294967295 }
 0xad0   : > { %6653 = vmatpush.msk.msra.mxu2 %vm10285_vm3, %v10033_v37  ;;  %vm10296_vm3 = vcmp.eq.s32.totalorder %v7719_v1, 4294967295 }
 0xad2   : > { %6654 = vmatpush.msk.msra.mxu2 %vm10286_vm5, %v10033_v37  ;;  %vm10297_vm5 = vcmp.eq.s32.totalorder %v7737_v4, 4294967295 }
 0xad3   : > { %3582 = vmatmul.f32.gmra.mxu2 %v3405_v48 }
 0xad4   : > { %6655 = vmatpush.msk.msra.mxu2 %vm10287_vm9, %v10033_v37  ;;  %vm10298_vm9 = vcmp.eq.s32.totalorder %v7759_v5, 4294967295 }
 0xad6   : > { %6656 = vmatpush.msk.msra.mxu2 %vm10288_vm8, %v10033_v37 }
 0xad8   : > { %6657 = vmatpush.msk.msra.mxu2 %vm10289_vm11, %v10033_v37 }
 0xada   : > { %6658 = vmatpush.msk.msra.mxu2 %vm10290_vm13, %v10033_v37 }
 0xadb   : > { %3585 = vmatmul.f32.gmra.mxu2 %v3407_v61 }
 0xadc   : > { %6659 = vmatpush.msk.msra.mxu2 %vm10291_vm4, %v10033_v37 }
 0xade   : > { %6660 = vmatpush.msk.msra.mxu2 %vm10292_vm12, %v10033_v37 }
 0xae0   : > { %6661 = vmatpush.msk.msra.mxu2 %vm10293_vm2, %v10033_v37 }
 0xae2   : > { %6662 = vmatpush.msk.msra.mxu2 %vm10294_vm15, %v10033_v37 }
 0xae3   : > { %3588 = vmatmul.f32.gmra.mxu2 %v3409_v20 }
 0xae4   : > { %6663 = vmatpush.msk.msra.mxu2 %vm10295_vm1, %v10033_v37 }
 0xae6   : > { %6664 = vmatpush.msk.msra.mxu2 %vm10296_vm3, %v10033_v37 }
 0xae8   : > { %6665 = vmatpush.msk.msra.mxu2 %vm10297_vm5, %v10033_v37 }
 0xaea   : > { %6666 = vmatpush.msk.msra.mxu2 %vm10298_vm9, %v10033_v37 }
 0xb2a   : > { %v3609_v26 = vpop.f32.mrf.mxu1 }
 0xb32   : > { %v3612_v18 = vpop.f32.mrf.mxu1 }
 0xb3a   : > { %v3615_v24 = vpop.f32.mrf.mxu1 }
 0xb42   : > { %v3618_v14 = vpop.f32.mrf.mxu1 }
 0xb4e   : > { %v3580_v16 = vpop.f32.mrf.mxu2 }
 0xb4f   : > { %v3581_v31 = vadd.f32 %v3580_v16, %v3534_v11 }
 0xb51   : > { %v3610_v52 = vadd.f32 %v3609_v26, %v3581_v31 }
 0xb56   : > { %v3583_v27 = vpop.f32.mrf.mxu2 }
 0xb57   : > { %v3584_v2 = vadd.f32 %v3583_v27, %v3539_v30 }
 0xb59   : > { %v3613_v42 = vadd.f32 %v3612_v18, %v3584_v2  ;;  %v3624_v18 = vld [vmem:[%s10179_s16 + $0x18] sm:$0xff] }
 0xb5b   : > { %v3629_v50 = vadd.f32 %v3613_v42, %v3610_v52 }
 0xb5e   : > { %v3586_v23 = vpop.f32.mrf.mxu2 }
 0xb5f   : > { %v3587_v41 = vadd.f32 %v3586_v23, %v3544_v7 }
 0xb61   : > { %v3616_v21 = vadd.f32 %v3615_v24, %v3587_v41 }
 0xb63   : > { %v3630_v33 = vadd.f32 %v3629_v50, %v3616_v21  ;;  %v3701_v50 = vpop.permute.xlu0 %3700 }
 0xb66   : > { %v3589_v25 = vpop.f32.mrf.mxu2 }
 0xb67   : > { %v3590_v46 = vadd.f32 %v3589_v25, %v3549_v40 }
 0xb69   : > { %v3619_v10 = vadd.f32 %v3618_v14, %v3590_v46 }
 0xb6b   : > { %v3631_v22 = vadd.f32 %v3630_v33, %v3619_v10  ;;  %v3725_v46 = vpop.permute.xlu0 %3724 }
 0xb6d   : > { %3632 = vadd.xlane.f32.xlu2 %v3631_v22 }
 0xb85   : > { %3734 = vperm.xlu2 %6970, %v3627_v0  }
 0xb8d   : > { %4046 = vperm.xlu2 %6970, %v3916_v13  }
 0xbe0   : > { %v3633_v9 = vpop.xlane.xlu2 %3632 }
 0xbe1   : > { %v3634_v58 = vrot.slane %v3633_v9, 4 }
 0xbe3   : > { %v3635_v54 = vadd.f32 %v3634_v58, %v3633_v9 }
 0xbe5   : > { %v3636_v17 = vrot.slane %v3635_v54, 2 }
 0xbe7   : > { %v3637_v3 = vadd.f32 %v3636_v17, %v3635_v54 }
 0xbe9   : > { %v3638_v28 = vrot.slane %v3637_v3, 1 }
 0xbeb   : > { %v3639_v38 = vadd.f32 %v3638_v28, %v3637_v3 }
 0xbed   : > { %6875 = vpush %v3639_v38 }
 0xc1e   : > { %s6876_s1 = spop %6875 }
 0xc1f   : > { %s3649_s2 = smul.f32 %s6876_s1, %s8114_s26 }
 0xc21   : > { %v3650_v6 = vstv %s3649_s2 }
 0xc22   : > { %v3651_v12 = vsub.f32 %v3610_v52, %v3650_v6  ;;  %v3652_v62 = vsub.f32 %v3613_v42, %v3650_v6  ;;  %v3653_v55 = vsub.f32 %v3616_v21, %v3650_v6  ;;  %v3654_v29 = vsub.f32 %v3619_v10, %v3650_v6  ;;  %v3706_v10 = vpop.permute.xlu0 %3705 }
 0xc24   : > { %v3655_v35 = vmul.f32 %v3651_v12, %v3651_v12  ;;  %v3656_v8 = vmul.f32 %v3652_v62, %v3652_v62  ;;  %v3657_v48 = vmul.f32 %v3653_v55, %v3653_v55  ;;  %v3658_v20 = vmul.f32 %v3654_v29, %v3654_v29 }
 0xc26   : > { %v3659_v61 = vadd.f32 %v3656_v8, %v3655_v35  ;;  %v3735_v8 = vpop.permute.xlu2 %3734 }
 0xc28   : > { %v3660_v26 = vadd.f32 %v3659_v61, %v3657_v48 }
 0xc2a   : > { %v3661_v16 = vadd.f32 %v3660_v26, %v3658_v20  ;;  %v3730_v33 = vpop.permute.xlu0 %3729 }
 0xc2c   : > { %3662 = vadd.xlane.f32.xlu1 %v3661_v16 }
 0xc32   : > { %v3711_v22 = vpop.permute.xlu0 %3710 }
 0xc3a   : > { %v3740_v35 = vpop.permute.xlu0 %3739 }
 0xc45   : > { %3715 = vperm.xlu1 %6969, %v3624_v18  }
 0xc9f   : > { %v3663_v27 = vpop.xlane.xlu1 %3662 }
 0xca0   : > { %v3664_v11 = vrot.slane %v3663_v27, 4 }
 0xca2   : > { %v3665_v24 = vadd.f32 %v3664_v11, %v3663_v27 }
 0xca4   : > { %v3666_v30 = vrot.slane %v3665_v24, 2 }
 0xca6   : > { %v3667_v23 = vadd.f32 %v3666_v30, %v3665_v24 }
 0xca8   : > { %v3668_v2 = vrot.slane %v3667_v23, 1 }
 0xcaa   : > { %v3669_v7 = vadd.f32 %v3668_v2, %v3667_v23 }
 0xcac   : > { %6877 = vpush %v3669_v7 }
 0xcb7   : > { %v3716_v17 = vpop.permute.xlu1 %3715 }
 0xcdd   : > { %s6878_s1 = spop %6877 }
 0xcde   : > { %s3679_s2 = smul.f32 %s6878_s1, %s8114_s26 }
 0xce0   : > { %s3680_s6 = sadd.f32 1e-05, %s3679_s2 }
 0xce1   : > { %s10300_s2 = sld [smem:[#allocation35_spill]] }
 0xce2   : > { %v3681_v31 = vstv %s3680_s6  ;;  %s10299_s6 = sld [smem:[#allocation34_spill]] }
 0xce3   : > { %7020 = vrsqrt.f32 %v3681_v31  ;;  %vm3688_vm11 = vweird.f32 %v3681_v31 }
 0xce8   : > { %v4496_v37 = vld [vmem:[%s10299_s6 + $0x70] sm:$0xff] }
 0xce9   : > { %v7021_v41 = vpop.eup %7020 }
 0xcea   : > { %v3683_v42 = vmul.f32 %v7021_v41, %v3681_v31  ;;  %vm3689_vm8 = vweird.f32 %v7021_v41 }
 0xceb   : > { %vm3690_vm13 = vmor %vm3688_vm11, %vm3689_vm8 }
 0xcec   : > { %v3684_v40 = vmul.f32 %v7021_v41, %v3683_v42 }
 0xcee   : > { %v3685_v52 = vmul.f32 0.5, %v3684_v40 }
 0xcf0   : > { %v3686_v21 = vsub.f32 1.5, %v3685_v52 }
 0xcf2   : > { %v3687_v25 = vmul.f32 %v7021_v41, %v3686_v21 }
 0xcf4   : > { %v3691_v14 = vsel %vm3690_vm13, %v7021_v41, %v3687_v25 }
 0xcf5   : > { %6879 = vpush %v3691_v14 }
 0xd26   : > { %s6880_s1 = spop %6879 }
 0xd27   : > { %v3693_v0 = vstv %s6880_s1  ;;  %s10301_s1 = sld [smem:[#allocation13_spill]] }
 0xd28   : > { %v3694_v13 = vmul.f32 %v3693_v0, %v3651_v12  ;;  %v3695_v9 = vmul.f32 %v3693_v0, %v3652_v62  ;;  %v3696_v58 = vmul.f32 %v3693_v0, %v3653_v55  ;;  %v3697_v54 = vmul.f32 %v3693_v0, %v3654_v29 }
 0xd2a   : > { %v3718_v3 = vmul.f32 %v3701_v50, %v3694_v13  ;;  %v3719_v28 = vmul.f32 %v3706_v10, %v3695_v9  ;;  %v3720_v38 = vmul.f32 %v3711_v22, %v3696_v58  ;;  %v3721_v6 = vmul.f32 %v3716_v17, %v3697_v54 }
 0xd2c   : > { %v8898_v48 = vadd.f32 %v3725_v46, %v3718_v3  ;;  %v8900_v61 = vadd.f32 %v3730_v33, %v3719_v28  ;;  %v8902_v20 = vadd.f32 %v3735_v8, %v3720_v38  ;;  %v8904_v26 = vadd.f32 %v3740_v35, %v3721_v6 }
 0xd2e   : > { %v8907_v12 = vmul.f32 0.70710677, %v8898_v48  ;;  %v8910_v62 = vmul.f32 0.70710677, %v8900_v61  ;;  %v8913_v55 = vmul.f32 0.70710677, %v8902_v20 }
 0xd2f   : > { %v8916_v29 = vmul.f32 0.70710677, %v8904_v26 }
 0xd30   : > { %v8919_v16 = vand.u32 2147483647, %v8907_v12  ;;  %v8922_v18 = vand.u32 2147483647, %v8910_v62  ;;  %v8925_v27 = vand.u32 2147483647, %v8913_v55 }
 0xd31   : > { %v8928_v11 = vand.u32 2147483647, %v8916_v29 }
 0xd32   : > { %v3766_v24 = vmul.f32 0.3275911, %v8919_v16  ;;  %v3767_v30 = vmul.f32 0.3275911, %v8922_v18  ;;  %v3768_v23 = vmul.f32 0.3275911, %v8925_v27 }
 0xd33   : > { %v3769_v2 = vmul.f32 0.3275911, %v8928_v11  ;;  %v3870_v25 = vsub.f32 0.0, %v8919_v16  ;;  %v3871_v46 = vsub.f32 0.0, %v8922_v18 }
 0xd34   : > { %v3770_v7 = vadd.f32 1.0, %v3766_v24  ;;  %v3771_v31 = vadd.f32 1.0, %v3767_v30  ;;  %v3772_v41 = vadd.f32 1.0, %v3768_v23 }
 0xd35   : > { %v8934_v42 = vadd.f32 1.0, %v3769_v2 }
 0xd36   : > { %7022 = vrcp.f32 %v3770_v7  ;;  %v3785_v52 = vand.u32 2147483648, %v3770_v7  ;;  %v3800_v21 = vand.u32 2147483648, %v3771_v31  ;;  %vm3779_vm4 = vweird.f32 %v3770_v7 }
 0xd37   : > { %7024 = vrcp.f32 %v3771_v31  ;;  %vm3794_vm12 = vweird.f32 %v3771_v31  ;;  %vm3809_vm2 = vweird.f32 %v3772_v41  ;;  %v3815_v22 = vand.u32 2147483648, %v3772_v41 }
 0xd38   : > { %7026 = vrcp.f32 %v3772_v41  ;;  %vm3824_vm15 = vweird.f32 %v8934_v42  ;;  %v3830_v58 = vand.u32 2147483648, %v8934_v42  ;;  %v3783_v54 = vand.u32 2147483647, %v3770_v7 }
 0xd39   : > { %7028 = vrcp.f32 %v8934_v42  ;;  %v3786_v28 = vor.u32 1.1754944e-38, %v3785_v52  ;;  %v3801_v38 = vor.u32 1.1754944e-38, %v3800_v21  ;;  %v3798_v8 = vand.u32 2147483647, %v3771_v31  ;;  %v4497_v52 = vld [vmem:[%s10299_s6 + $0x78] sm:$0xff] }
 0xd3a   : > { %v3813_v23 = vand.u32 2147483647, %v3772_v41  ;;  %vm3784_vm5 = vcmp.eq.f32.partialorder %v3783_v54, 8.507059e+37  ;;  %4502 = vmatpush.msra.mxu1 %v4497_v52  ;;  %v3816_v54 = vor.u32 1.1754944e-38, %v3815_v22  ;;  %v3831_v22 = vor.u32 1.1754944e-38, %v3830_v58  ;;  %v4492_v52 = vld [vmem:[%s10299_s6 + $0x50] sm:$0xff] }
 0xd3b   : > { %vm3799_vm14 = vcmp.eq.f32.partialorder %v3798_v8, 8.507059e+37 }
 0xd3c   : > { %v7023_v40 = vpop.eup %7022  ;;  %4503 = vmatpush.msra.mxu1 %v4496_v37 }
 0xd3d   : > { %v7025_v14 = vpop.eup %7024  ;;  %v3775_v50 = vmul.f32 %v7023_v40, %v3770_v7  ;;  %vm3780_vm1 = vweird.f32 %v7023_v40 }
 0xd3e   : > { %v7027_v10 = vpop.eup %7026  ;;  %v3790_v33 = vmul.f32 %v7025_v14, %v3771_v31  ;;  %vm3795_vm3 = vweird.f32 %v7025_v14  ;;  %vm3781_vm8 = vmor %vm3779_vm4, %vm3780_vm1  ;;  %vm3814_vm1 = vcmp.eq.f32.partialorder %v3813_v23, 8.507059e+37  ;;  %v3875_v23 = vmul.f32 %v3871_v46, %v8922_v18 }
 0xd3f   : > { %v7029_v0 = vpop.eup %7028  ;;  %v3776_v13 = vsub.f32 1.0, %v3775_v50  ;;  %v3805_v9 = vmul.f32 %v7027_v10, %v3772_v41  ;;  %vm3810_vm9 = vweird.f32 %v7027_v10  ;;  %vm3796_vm13 = vmor %vm3794_vm12, %vm3795_vm3  ;;  %vm3756_vm3 = vcmp.ge.f32.partialorder %v8913_v55, 0.0 }
 0xd40   : > { %v3791_v17 = vsub.f32 1.0, %v3790_v33  ;;  %v3820_v3 = vmul.f32 %v7029_v0, %v8934_v42  ;;  %vm3825_vm11 = vweird.f32 %v7029_v0  ;;  %vm3811_vm4 = vmor %vm3809_vm2, %vm3810_vm9  ;;  %v3880_v46 = vmul.f32 1.442695, %v3875_v23 }
 0xd41   : > { %v3777_v6 = vmul.f32 %v7023_v40, %v3776_v13  ;;  %v3806_v35 = vsub.f32 1.0, %v3805_v9  ;;  %v3828_v13 = vand.u32 2147483647, %v8934_v42  ;;  %vm3826_vm12 = vmor %vm3824_vm15, %vm3825_vm11  ;;  %v3874_v42 = vmul.f32 %v3870_v25, %v8919_v16 }
 0xd42   : > { %v3792_v24 = vmul.f32 %v7025_v14, %v3791_v17  ;;  %v3821_v30 = vsub.f32 1.0, %v3820_v3  ;;  %v3872_v25 = vsub.f32 0.0, %v8925_v27  ;;  %vm3755_vm15 = vcmp.ge.f32.partialorder %v8910_v62, 0.0 }
 0xd43   : > { %v3807_v2 = vmul.f32 %v7027_v10, %v3806_v35  ;;  %v3778_v50 = vadd.f32 %v7023_v40, %v3777_v6  ;;  %v4495_v6 = vld [vmem:[%s10299_s6 + $0x68] sm:$0xff]  ;;  %vm3829_vm2 = vcmp.eq.f32.partialorder %v3828_v13, 8.507059e+37  ;;  %v3759_v62 = vsel %vm3755_vm15, 1.0, %v10045_v15 }
 0xd44   : > { %v3822_v33 = vmul.f32 %v7029_v0, %v3821_v30  ;;  %v3793_v21 = vadd.f32 %v7025_v14, %v3792_v24  ;;  %4504 = vmatpush.msra.mxu1 %v4495_v6  ;;  %vm10310_vm9 = vcmp.eq.s32.totalorder %v7551_v36, 2  ;;  %vm10312_vm11 = vcmp.eq.s32.totalorder %v7566_v43, 2 }
 0xd45   : > { %v3782_v9 = vsel %vm3781_vm8, %v7023_v40, %v3778_v50  ;;  %v3808_v17 = vadd.f32 %v7027_v10, %v3807_v2  ;;  %vm10311_vm8 = vcmp.eq.s32.totalorder %v7559_v39, 2  ;;  %vm10320_vm15 = vcmp.eq.s32.totalorder %v7651_v56, 2 }
 0xd46   : > { %v8948_v3 = vsel %vm3784_vm5, %v3786_v28, %v3782_v9  ;;  %v3797_v7 = vsel %vm3796_vm13, %v7025_v14, %v3793_v21  ;;  %v3823_v35 = vadd.f32 %v7029_v0, %v3822_v33  ;;  %v4494_v28 = vld [vmem:[%s10299_s6 + $0x60] sm:$0xff]  ;;  %v4493_v33 = vld [vmem:[%s10299_s6 + $0x58] sm:$0xff]  ;;  %v3878_v9 = vmul.f32 1.442695, %v3874_v42 }
 0xd47   : > { %v3834_v24 = vmul.f32 1.0614054, %v8948_v3  ;;  %v8954_v40 = vsel %vm3799_vm14, %v3801_v38, %v3797_v7  ;;  %v3812_v31 = vsel %vm3811_vm4, %v7027_v10, %v3808_v17  ;;  %4505 = vmatpush.msra.mxu1 %v4494_v28  ;;  %vm3754_vm14 = vcmp.ge.f32.partialorder %v8907_v12, 0.0 }
 0xd48   : > { %v3835_v8 = vmul.f32 1.0614054, %v8954_v40  ;;  %v8961_v14 = vsel %vm3814_vm1, %v3816_v54, %v3812_v31  ;;  %v3827_v41 = vsel %vm3826_vm12, %v7029_v0, %v3823_v35  ;;  %v4491_v54 = vld [vmem:[%s10299_s6 + $0x48] sm:$0xff]  ;;  %7030 = vpow2.f32 %v3878_v9 }
 0xd49   : > { %v3838_v30 = vadd.f32 -1.4531521, %v3834_v24  ;;  %v3836_v37 = vmul.f32 1.0614054, %v8961_v14  ;;  %v8964_v38 = vsel %vm3829_vm2, %v3831_v22, %v3827_v41  ;;  %4506 = vmatpush.msra.mxu1 %v4493_v33  ;;  %v4490_v24 = vld [vmem:[%s10299_s6 + $0x40] sm:$0xff]  ;;  %7032 = vpow2.f32 %v3880_v46 }
 0xd4a   : > { %v3839_v10 = vadd.f32 -1.4531521, %v3835_v8  ;;  %v3837_v58 = vmul.f32 1.0614054, %v8964_v38  ;;  %v3876_v8 = vmul.f32 %v3872_v25, %v8925_v27  ;;  %v3873_v27 = vsub.f32 0.0, %v8928_v11  ;;  %v4486_v25 = vld [vmem:[%s10299_s6 + $0x20] sm:$0xff] }
 0xd4b   : > { %v3842_v0 = vmul.f32 %v3838_v30, %v8948_v3  ;;  %v3840_v2 = vadd.f32 -1.4531521, %v3836_v37  ;;  %4507 = vmatpush.msra.mxu1 %v4492_v52  ;;  %v4487_v52 = vld [vmem:[%s10299_s6 + $0x28] sm:$0xff]  ;;  %vm3757_vm5 = vcmp.ge.f32.partialorder %v8916_v29, 0.0  ;;  %v7108_v29 = vld [vmem:[%s8267_s23] sm:$0xff]  ;;  %vm10313_vm13 = vcmp.eq.s32.totalorder %v7572_v44, 2 }
 0xd4c   : > { %v3843_v50 = vmul.f32 %v3839_v10, %v8954_v40  ;;  %v3841_v21 = vadd.f32 -1.4531521, %v3837_v58  ;;  %v4489_v10 = vld [vmem:[%s10299_s6 + $0x38] sm:$0xff]  ;;  %v4488_v58 = vld [vmem:[%s10299_s6 + $0x30] sm:$0xff]  ;;  %v3877_v46 = vmul.f32 %v3873_v27, %v8928_v11  ;;  %v4483_v11 = vld [vmem:[%s10299_s6 + $0x8] sm:$0xff]  ;;  %vm10314_vm4 = vcmp.eq.s32.totalorder %v7575_v45, 2 }
 0xd4d   : > { %v3846_v13 = vadd.f32 1.4214138, %v3842_v0  ;;  %v3844_v16 = vmul.f32 %v3840_v2, %v8961_v14  ;;  %4508 = vmatpush.msra.mxu1 %v4491_v54  ;;  %vm10315_vm1 = vcmp.eq.s32.totalorder %v7588_v47, 2  ;;  %vm10317_vm12 = vcmp.eq.s32.totalorder %v7596_v49, 2 }
 0xd4e   : > { %v3847_v17 = vadd.f32 1.4214138, %v3843_v50  ;;  %v3845_v18 = vmul.f32 %v3841_v21, %v8964_v38  ;;  %v3882_v50 = vmul.f32 1.442695, %v3876_v8  ;;  %v3746_v8 = vmul.f32 0.5, %v8898_v48 }
 0xd4f   : > { %v3850_v6 = vmul.f32 %v3846_v13, %v8948_v3  ;;  %v3848_v7 = vadd.f32 1.4214138, %v3844_v16  ;;  %4509 = vmatpush.msra.mxu1 %v4490_v24  ;;  %v7031_v13 = vpop.eup %7030  ;;  %vm10318_vm2 = vcmp.eq.s32.totalorder %v7604_v51, 2 }
 0xd50   : > { %v3851_v35 = vmul.f32 %v3847_v17, %v8954_v40  ;;  %v3849_v28 = vadd.f32 1.4214138, %v3845_v18  ;;  %v7033_v9 = vpop.eup %7032  ;;  %7034 = vpow2.f32 %v3882_v50  ;;  %v3760_v50 = vsel %vm3756_vm3, 1.0, %v10045_v15 }
 0xd51   : > { %v3854_v31 = vadd.f32 -0.28449672, %v3850_v6  ;;  %v3852_v22 = vmul.f32 %v3848_v7, %v8961_v14  ;;  %4510 = vmatpush.msra.mxu1 %v4489_v10  ;;  %v4485_v7 = vld [vmem:[%s10299_s6 + $0x18] sm:$0xff]  ;;  %vm10321_vm3 = vcmp.eq.s32.totalorder %v7660_v57, 2 }
 0xd52   : > { %v3855_v41 = vadd.f32 -0.28449672, %v3851_v35  ;;  %v3853_v2 = vmul.f32 %v3849_v28, %v8964_v38  ;;  %v4484_v35 = vld [vmem:[%s10299_s6 + $0x10] sm:$0xff]  ;;  %v3884_v28 = vmul.f32 1.442695, %v3877_v46 }
 0xd53   : > { %v3858_v30 = vmul.f32 %v3854_v31, %v8948_v3  ;;  %v3856_v37 = vadd.f32 -0.28449672, %v3852_v22  ;;  %4511 = vmatpush.msra.mxu1 %v4488_v58 }
 0xd54   : > { %v3859_v42 = vmul.f32 %v3855_v41, %v8954_v40  ;;  %v3857_v18 = vadd.f32 -0.28449672, %v3853_v2  ;;  %7036 = vpow2.f32 %v3884_v28  ;;  %v3747_v2 = vmul.f32 0.5, %v8900_v61 }
 0xd55   : > { %v3862_v23 = vadd.f32 0.2548296, %v3858_v30  ;;  %v3860_v0 = vmul.f32 %v3856_v37, %v8961_v14  ;;  %4512 = vmatpush.msra.mxu1 %v4487_v52 }
 0xd56   : > { %v3863_v33 = vadd.f32 0.2548296, %v3859_v42  ;;  %v3861_v22 = vmul.f32 %v3857_v18, %v8964_v38  ;;  %v7035_v30 = vpop.eup %7034 }
 0xd57   : > { %v3866_v21 = vmul.f32 %v3862_v23, %v8948_v3  ;;  %v3864_v54 = vadd.f32 0.2548296, %v3860_v0  ;;  %4513 = vmatpush.msra.mxu1 %v4486_v25 }
 0xd58   : > { %v3867_v16 = vmul.f32 %v3863_v33, %v8954_v40  ;;  %v3758_v40 = vsel %vm3754_vm14, 1.0, %v10045_v15  ;;  %v3865_v58 = vadd.f32 0.2548296, %v3861_v22  ;;  %vm10319_vm14 = vcmp.eq.s32.totalorder %v7624_v53, 2 }
 0xd59   : > { %v3886_v17 = vmul.f32 %v7031_v13, %v3866_v21  ;;  %v3868_v12 = vmul.f32 %v3864_v54, %v8961_v14  ;;  %4514 = vmatpush.msra.mxu1 %v4485_v7  ;;  %v4482_v14 = vld [vmem:[%s10299_s6] sm:$0xff]  ;;  %s10302_s6 = sld [smem:[#allocation37_spill]] }
 0xd5a   : > { %v3887_v6 = vmul.f32 %v7033_v9, %v3867_v16  ;;  %v3869_v0 = vmul.f32 %v3865_v58, %v8964_v38  ;;  %v7037_v27 = vpop.eup %7036  ;;  %v3748_v38 = vmul.f32 0.5, %v8902_v20  ;;  %v3761_v16 = vsel %vm3757_vm5, 1.0, %v10045_v15  ;;  %v4723_v58 = vld [vmem:[%s10304_s9 + $0x8] sm:$0xff] }
 0xd5b   : > { %v3890_v3 = vsub.f32 1.0, %v3886_v17  ;;  %4515 = vmatpush.msra.mxu1 %v4484_v35  ;;  %v3888_v10 = vmul.f32 %v7035_v30, %v3868_v12  ;;  %v3749_v17 = vmul.f32 0.5, %v8904_v26  ;;  %vm10322_vm5 = vcmp.eq.s32.totalorder %v7716_v63, 2 }
 0xd5c   : > { %v3891_v31 = vsub.f32 1.0, %v3887_v6  ;;  %v3889_v21 = vmul.f32 %v7037_v27, %v3869_v0  ;;  %v3913_v0 = vld [vmem:[%s10301_s1 + $0x38] sm:$0xff] }
 0xd5d   : > { %v3894_v24 = vmul.f32 %v3890_v3, %v3758_v40  ;;  %4516 = vmatpush.msra.mxu1 %v4483_v11  ;;  %v3892_v23 = vsub.f32 1.0, %v3888_v10  ;;  %v3909_v10 = vld [vmem:[%s10301_s1 + $0x18] sm:$0xff] }
 0xd5e   : > { %v3895_v42 = vmul.f32 %v3891_v31, %v3759_v62  ;;  %v3893_v13 = vsub.f32 1.0, %v3889_v21  ;;  %v6972_v31 = vld [vmem:[%s10300_s2] ss:$0 sm:$0xff]  ;;  %s10305_s2 = sld [smem:[#allocation18_spill]] }
 0xd5f   : > { %v3898_v41 = vadd.f32 1.0, %v3894_v24  ;;  %4517 = vmatpush.msra.mxu1 %v4482_v14  ;;  %v3896_v52 = vmul.f32 %v3892_v23, %v3760_v50  ;;  %v4529_v30 = vld [vmem:[%s10302_s6 + $0x18] sm:$0xff]  ;;  %v3906_v23 = vld [vmem:[%s10301_s1] sm:$0xff]  ;;  %v7110_v50 = vld [vmem:[%s8241_s18 + $0x70] sm:$0xff] }
 0xd60   : > { %v3899_v48 = vadd.f32 1.0, %v3895_v42  ;;  %v3897_v25 = vmul.f32 %v3893_v13, %v3761_v16  ;;  %v7112_v21 = vld [vmem:[%s8241_s18 + $0x60] sm:$0xff]  ;;  %v7115_v16 = vld [vmem:[%s8241_s18 + $0x48] sm:$0xff] }
 0xd61   : > { %v9008_v37 = vmul.f32 %v3898_v41, %v3746_v8  ;;  %v3900_v55 = vadd.f32 1.0, %v3896_v52  ;;  %v3907_v41 = vld [vmem:[%s10301_s1 + $0x8] sm:$0xff]  ;;  %v3908_v52 = vld [vmem:[%s10301_s1 + $0x10] sm:$0xff]  ;;  %v5005_v13 = vld [vmem:[%s10306_s10] sm:$0xff] }
 0xd62   : > { %v3903_v33 = vmul.f32 %v3899_v48, %v3747_v2  ;;  %v3901_v9 = vadd.f32 1.0, %v3897_v25  ;;  %v3911_v48 = vld [vmem:[%s10301_s1 + $0x28] sm:$0xff]  ;;  %v7109_v2 = vld [vmem:[%s8241_s18 + $0x78] sm:$0xff]  ;;  %v7116_v25 = vld [vmem:[%s8241_s18 + $0x40] sm:$0xff] }
 0xd63   : > { %3934 = vmatmul.f32.vlgmr.msrb.gmra.mxu3 %v9008_v37  ;;  %3963 = vmatmul.f32.vlgmr.msra.gmra.mxu0 %v9008_v37  ;;  %v3904_v61 = vmul.f32 %v3900_v55, %v3748_v38  ;;  %v7113_v55 = vld [vmem:[%s8241_s18 + $0x58] sm:$0xff]  ;;  %v7114_v38 = vld [vmem:[%s8241_s18 + $0x50] sm:$0xff] }
 0xd64   : > { %3992 = vmatmul.f32.vlgmr.msra.gmra.mxu2 %v9008_v37  ;;  %4021 = vmatmul.f32.vlgmr.msrb.gmra.mxu1 %v9008_v37  ;;  %v3905_v54 = vmul.f32 %v3901_v9, %v3749_v17  ;;  %v4798_v27 = vld [vmem:[%s10305_s2 + $0x18] sm:$0xff]  ;;  %v5009_v17 = vld [vmem:[%s10307_s11] sm:$0xff] }
 0xd65   : > { %v7117_v9 = vld [vmem:[%s8241_s18 + $0x38] sm:$0xff] }
 0xd6b   : > { %3937 = vmatmul.f32.gmra.mxu3 %v3903_v33  ;;  %3966 = vmatmul.f32.gmra.mxu0 %v3903_v33 }
 0xd6c   : > { %3995 = vmatmul.f32.gmra.mxu2 %v3903_v33  ;;  %4024 = vmatmul.f32.gmra.mxu1 %v3903_v33 }
 0xd73   : > { %3940 = vmatmul.f32.gmra.mxu3 %v3904_v61  ;;  %3969 = vmatmul.f32.gmra.mxu0 %v3904_v61 }
 0xd74   : > { %3998 = vmatmul.f32.gmra.mxu2 %v3904_v61  ;;  %4027 = vmatmul.f32.gmra.mxu1 %v3904_v61 }
 0xd7b   : > { %3943 = vmatmul.f32.gmra.mxu3 %v3905_v54  ;;  %3972 = vmatmul.f32.gmra.mxu0 %v3905_v54 }
 0xd7c   : > { %4001 = vmatmul.f32.gmra.mxu2 %v3905_v54  ;;  %4030 = vmatmul.f32.gmra.mxu1 %v3905_v54 }
 0xd84   : > { %4518 = vmatmul.f32.vlgmr.msra.gmra.mxu1 %v7108_v29  ;;  %v7119_v29 = vld [vmem:[%s8241_s18 + $0x28] sm:$0xff] }
 0xde0   : > { %v3964_v3 = vpop.f32.mrf.mxu0 }
 0xde1   : > { %v4022_v20 = vpop.f32.mrf.mxu1 }
 0xde6   : > { %v3935_v35 = vpop.f32.mrf.mxu3 }
 0xde7   : > { %v3993_v18 = vpop.f32.mrf.mxu2 }
 0xde8   : > { %v3967_v26 = vpop.f32.mrf.mxu0 }
 0xde9   : > { %v4025_v46 = vpop.f32.mrf.mxu1 }
 0xdee   : > { %v3938_v11 = vpop.f32.mrf.mxu3 }
 0xdef   : > { %v3996_v6 = vpop.f32.mrf.mxu2 }
 0xdf0   : > { %v3970_v8 = vpop.f32.mrf.mxu0 }
 0xdf1   : > { %v4028_v40 = vpop.f32.mrf.mxu1 }
 0xdf6   : > { %v3941_v62 = vpop.f32.mrf.mxu3 }
 0xdf7   : > { %v3999_v7 = vpop.f32.mrf.mxu2 }
 0xdf8   : > { %v3973_v42 = vpop.f32.mrf.mxu0 }
 0xdf9   : > { %v4031_v24 = vpop.f32.mrf.mxu1 }
 0xdfa   : > { %4107 = vmatpush.msrb.mxu0 %v4031_v24  ;;  %v10309_v24 = vmov 1.0  }
 0xdfc   : > { %4108 = vmatpush.msrb.mxu0 %v4028_v40  ;;  %v7123_v40 = vld [vmem:[%s8241_s18 + $0x8] sm:$0xff] }
 0xdfe   : > { %4109 = vmatpush.msrb.mxu0 %v4025_v46  ;;  %v3944_v14 = vpop.f32.mrf.mxu3  ;;  %v7121_v46 = vld [vmem:[%s8241_s18 + $0x18] sm:$0xff] }
 0xdff   : > { %v4002_v12 = vpop.f32.mrf.mxu2 }
 0xe00   : > { %4066 = vmatpush.msra.mxu3 %v4002_v12  ;;  %4110 = vmatpush.msrb.mxu0 %v4022_v20  ;;  %v3912_v20 = vld [vmem:[%s10301_s1 + $0x30] sm:$0xff] }
 0xe01   : > { %v4519_v22 = vpop.f32.mrf.mxu1  ;;  %6683 = vmatmul.msk.f32.vlgmr.msrb.gmra.mxu0 %vm2622_vm10, %v3907_v41  ;;  %v5007_v12 = vld [vmem:[%s10306_s10 + $0x10] sm:$0xff] }
 0xe02   : > { %v9025_v28 = vadd.f32 %v6972_v31, %v4519_v22  ;;  %4067 = vmatpush.msra.mxu3 %v3999_v7  ;;  %v4522_v7 = vld [vmem:[%s10308_s13] sm:$0xff]  ;;  %v4523_v31 = vld [vmem:[%s10308_s13 + $0x8] sm:$0xff]  ;;  %v4524_v22 = vld [vmem:[%s10308_s13 + $0x10] sm:$0xff] }
 0xe04   : > { %4648 = vrot.lane.b32.xlu0 %v9025_v28, %s10303_s8  ;;  %4068 = vmatpush.msra.mxu3 %v3996_v6  ;;  %v5006_v6 = vld [vmem:[%s10306_s10 + $0x8] sm:$0xff] }
 0xe06   : > { %4069 = vmatpush.msra.mxu3 %v3993_v18  ;;  %v7120_v18 = vld [vmem:[%s8241_s18 + $0x20] sm:$0xff] }
 0xe08   : > { %4070 = vmatpush.msra.mxu3 %v3905_v54  ;;  %v7118_v54 = vld [vmem:[%s8241_s18 + $0x30] sm:$0xff] }
 0xe09   : > { %6684 = vmatmul.msk.f32.gmra.mxu0 %vm2622_vm10, %v3909_v10  ;;  %v4037_v10 = vpop.permute.xlu0 %4036 }
 0xe0a   : > { %4071 = vmatpush.msra.mxu3 %v3904_v61  ;;  %v3910_v61 = vld [vmem:[%s10301_s1 + $0x20] sm:$0xff]  ;;  %s10316_s1 = sld [smem:[#allocation22_spill]] }
 0xe0c   : > { %4547 = vperm.xlu0 %6968, %v4529_v30   ;;  %4072 = vmatpush.msra.mxu3 %v3903_v33  ;;  %v7111_v33 = vld [vmem:[%s8241_s18 + $0x68] sm:$0xff] }
 0xe0e   : > { %4073 = vmatpush.msra.mxu3 %v9008_v37  ;;  %v4795_v37 = vld [vmem:[%s10305_s2] sm:$0xff] }
 0xe10   : > { %4074 = vmatpush.msra.mxu3 %v3973_v42  ;;  %v5298_v41 = vld [vmem:[%s10316_s1] sm:$0xff]  ;;  %v5299_v30 = vld [vmem:[%s10316_s1 + $0x8] sm:$0xff] }
 0xe11   : > { %6685 = vmatmul.msk.f32.gmra.mxu0 %vm2622_vm10, %v3911_v48  ;;  %v4042_v48 = vpop.permute.xlu0 %4041 }
 0xe12   : > { %4075 = vmatpush.msra.mxu3 %v3970_v8  ;;  %v4525_v8 = vld [vmem:[%s10308_s13 + $0x18] sm:$0xff] }
 0xe14   : > { %4733 = vperm.xlu0 %6968, %v4723_v58   ;;  %4076 = vmatpush.msra.mxu3 %v3967_v26  ;;  %v5010_v26 = vld [vmem:[%s10307_s11 + $0x8] sm:$0xff] }
 0xe16   : > { %4077 = vmatpush.msra.mxu3 %v3964_v3  ;;  %v7122_v3 = vld [vmem:[%s8241_s18 + $0x10] sm:$0xff] }
 0xe18   : > { %4078 = vmatpush.msra.mxu3 %v3944_v14 }
 0xe19   : > { %6686 = vmatmul.msk.f32.gmra.mxu0 %vm2622_vm10, %v3913_v0 }
 0xe1a   : > { %4079 = vmatpush.msra.mxu3 %v3941_v62 }
 0xe1c   : > { %4917 = vperm.xlu0 %6968, %v4795_v37   ;;  %4080 = vmatpush.msra.mxu3 %v3938_v11  ;;  %v5012_v11 = vld [vmem:[%s10307_s11 + $0x18] sm:$0xff] }
 0xe1e   : > { %4081 = vmatpush.msra.mxu3 %v3935_v35  ;;  %v7124_v35 = vld [vmem:[%s8241_s18] sm:$0xff] }
 0xe1f   : > { %4082 = vmatmul.f32.vlgmr.msra.gmra.mxu3 %v3906_v23 }
 0xe20   : > { %4550 = vmatpush.msrb.mxu3 %v7109_v2  ;;  %v4047_v2 = vpop.permute.xlu2 %4046 }
 0xe22   : > { %4551 = vmatpush.msrb.mxu3 %v7110_v50 }
 0xe24   : > { %4932 = vperm.xlu0 %6968, %v4798_v27   ;;  %4552 = vmatpush.msrb.mxu3 %v7111_v33 }
 0xe26   : > { %4553 = vmatpush.msrb.mxu3 %v7112_v21 }
 0xe27   : > { %4085 = vmatmul.f32.gmra.mxu3 %v3908_v52  ;;  %v4052_v52 = vpop.permute.xlu0 %4051 }
 0xe28   : > { %4554 = vmatpush.msrb.mxu3 %v7113_v55 }
 0xe2a   : > { %4555 = vmatpush.msrb.mxu3 %v7114_v38 }
 0xe2c   : > { %5084 = vperm.xlu0 %6968, %v5005_v13   ;;  %4556 = vmatpush.msrb.mxu3 %v7115_v16 }
 0xe2e   : > { %4557 = vmatpush.msrb.mxu3 %v7116_v25 }
 0xe2f   : > { %4088 = vmatmul.f32.gmra.mxu3 %v3910_v61 }
 0xe30   : > { %4558 = vmatpush.msrb.mxu3 %v7117_v9 }
 0xe32   : > { %4559 = vmatpush.msrb.mxu3 %v7118_v54  ;;  %v4124_v54 = vld [vmem:[%s10182_s15] sm:$0xff] }
 0xe34   : > { %5108 = vperm.xlu0 %6968, %v5009_v17   ;;  %4560 = vmatpush.msrb.mxu3 %v7119_v29  ;;  %v4420_v29 = vld [vmem:[%s10184_s5 + $0x18] sm:$0xff] }
 0xe36   : > { %4561 = vmatpush.msrb.mxu3 %v7120_v18  ;;  %v4527_v18 = vld [vmem:[%s10302_s6 + $0x8] sm:$0xff] }
 0xe37   : > { %4091 = vmatmul.f32.gmra.mxu3 %v3912_v20  ;;  %v4528_v20 = vld [vmem:[%s10302_s6 + $0x10] sm:$0xff] }
 0xe38   : > { %4562 = vmatpush.msrb.mxu3 %v7121_v46  ;;  %v4724_v46 = vld [vmem:[%s10304_s9 + $0x10] sm:$0xff] }
 0xe3a   : > { %4563 = vmatpush.msrb.mxu3 %v7122_v3 }
 0xe3c   : > { %5089 = vperm.xlu0 %6968, %v5006_v6   ;;  %4564 = vmatpush.msrb.mxu3 %v7123_v40  ;;  %v4796_v6 = vld [vmem:[%s10305_s2 + $0x8] sm:$0xff] }
 0xe3e   : > { %4565 = vmatpush.msrb.mxu3 %v7124_v35 }
 0xe3f   : > { %4566 = vmatmul.f32.vlgmr.msrb.gmra.mxu3 %v4522_v7 }
 0xe40   : > { %6701 = vmatpush.msk.msra.mxu3 %vm10310_vm9, %v10309_v24  ;;  %vm10323_vm9 = vcmp.eq.s32.totalorder %v7719_v1, 2 }
 0xe42   : > { %6702 = vmatpush.msk.msra.mxu3 %vm10311_vm8, %v10309_v24  ;;  %vm10324_vm8 = vcmp.eq.s32.totalorder %v7759_v5, 2 }
 0xe44   : > { %5113 = vperm.xlu0 %6968, %v5010_v26   ;;  %6703 = vmatpush.msk.msra.mxu3 %vm10312_vm11, %v10309_v24 }
 0xe46   : > { %6704 = vmatpush.msk.msra.mxu3 %vm10313_vm13, %v10309_v24 }
 0xe47   : > { %4569 = vmatmul.f32.gmra.mxu3 %v4523_v31 }
 0xe48   : > { %6705 = vmatpush.msk.msra.mxu3 %vm10314_vm4, %v10309_v24 }
 0xe4a   : > { %6706 = vmatpush.msk.msra.mxu3 %vm10315_vm1, %v10309_v24 }
 0xe4c   : > { %5094 = vperm.xlu0 %6968, %v5007_v12   ;;  %6707 = vmatpush.msk.msra.mxu3 %vm10317_vm12, %v10309_v24 }
 0xe4e   : > { %6708 = vmatpush.msk.msra.mxu3 %vm10318_vm2, %v10309_v24 }
 0xe4f   : > { %4572 = vmatmul.f32.gmra.mxu3 %v4524_v22 }
 0xe50   : > { %6709 = vmatpush.msk.msra.mxu3 %vm10319_vm14, %v10309_v24 }
 0xe52   : > { %6710 = vmatpush.msk.msra.mxu3 %vm10320_vm15, %v10309_v24 }
 0xe54   : > { %5123 = vperm.xlu0 %6968, %v5012_v11   ;;  %6711 = vmatpush.msk.msra.mxu3 %vm10321_vm3, %v10309_v24 }
 0xe56   : > { %6712 = vmatpush.msk.msra.mxu3 %vm10054_vm7, %v10309_v24 }
 0xe57   : > { %4575 = vmatmul.f32.gmra.mxu3 %v4525_v8 }
 0xe58   : > { %6713 = vmatpush.msk.msra.mxu3 %vm10322_vm5, %v10309_v24 }
 0xe5a   : > { %6714 = vmatpush.msk.msra.mxu3 %vm10323_vm9, %v10309_v24 }
 0xe5c   : > { %5420 = vperm.xlu0 %6968, %v5298_v41   ;;  %6715 = vmatpush.msk.msra.mxu3 %vm10053_vm6, %v10309_v24 }
 0xe5e   : > { %6716 = vmatpush.msk.msra.mxu3 %vm10324_vm8, %v10309_v24 }
 0xe64   : > { %5425 = vperm.xlu0 %6968, %v5299_v30  }
 0xe7e   : > { %v4112_v62 = vpop.f32.mrf.mxu0 }
 0xe86   : > { %v4115_v58 = vpop.f32.mrf.mxu0 }
 0xe8e   : > { %v4118_v37 = vpop.f32.mrf.mxu0 }
 0xe96   : > { %v4121_v38 = vpop.f32.mrf.mxu0 }
 0xea2   : > { %v4083_v42 = vpop.f32.mrf.mxu3 }
 0xea3   : > { %v4084_v27 = vadd.f32 %v4083_v42, %v4037_v10 }
 0xea5   : > { %v4113_v21 = vadd.f32 %v4112_v62, %v4084_v27  ;;  %v4722_v27 = vld [vmem:[%s10304_s9] sm:$0xff] }
 0xeaa   : > { %v4086_v14 = vpop.f32.mrf.mxu3 }
 0xeab   : > { %v4087_v0 = vadd.f32 %v4086_v14, %v4042_v48 }
 0xead   : > { %v4116_v33 = vadd.f32 %v4115_v58, %v4087_v0  ;;  %v4419_v0 = vld [vmem:[%s10184_s5 + $0x10] sm:$0xff]  ;;  %s10451_s5 = sld [smem:[#allocation23_spill]] }
 0xeaf   : > { %v4132_v16 = vadd.f32 %v4116_v33, %v4113_v21 }
 0xeb2   : > { %v4089_v23 = vpop.f32.mrf.mxu3 }
 0xeb3   : > { %v4090_v50 = vadd.f32 %v4089_v23, %v4047_v2  ;;  %v4129_v23 = vld [vmem:[%s10183_s3 + $0x8] sm:$0xff]  ;;  %v4526_v2 = vld [vmem:[%s10302_s6] sm:$0xff]  ;;  %s10452_s6 = sld [smem:[#allocation24_spill]] }
 0xeb5   : > { %v4119_v55 = vadd.f32 %v4118_v37, %v4090_v50  ;;  %v4725_v50 = vld [vmem:[%s10304_s9 + $0x18] sm:$0xff] }
 0xeb7   : > { %v4133_v25 = vadd.f32 %v4132_v16, %v4119_v55 }
 0xeba   : > { %v4092_v13 = vpop.f32.mrf.mxu3 }
 0xebb   : > { %v4093_v61 = vadd.f32 %v4092_v13, %v4052_v52 }
 0xebd   : > { %v4122_v9 = vadd.f32 %v4121_v38, %v4093_v61 }
 0xebf   : > { %v4134_v17 = vadd.f32 %v4133_v25, %v4122_v9 }
 0xec1   : > { %4135 = vadd.xlane.f32.xlu1 %v4134_v17 }
 0xeda   : > { %4203 = vperm.xlu1 %6969, %v4124_v54  }
 0xee2   : > { %4438 = vperm.xlu1 %6969, %v4420_v29  }
 0xeea   : > { %4542 = vperm.xlu1 %6969, %v4528_v20  }
 0xef2   : > { %4537 = vperm.xlu1 %6969, %v4527_v18  }
 0xefa   : > { %4738 = vperm.xlu1 %6969, %v4724_v46  }
 0xf02   : > { %4922 = vperm.xlu1 %6969, %v4796_v6   ;;  %v4219_v6 = vpop.permute.xlu0 %4218 }
 0xf34   : > { %v4136_v3 = vpop.xlane.xlu1 %4135 }
 0xf35   : > { %v4137_v40 = vrot.slane %v4136_v3, 4 }
 0xf37   : > { %v4138_v7 = vadd.f32 %v4137_v40, %v4136_v3  ;;  %v4214_v3 = vpop.permute.xlu0 %4213 }
 0xf39   : > { %v4139_v35 = vrot.slane %v4138_v7, 2 }
 0xf3b   : > { %v4140_v26 = vadd.f32 %v4139_v35, %v4138_v7 }
 0xf3d   : > { %v4141_v31 = vrot.slane %v4140_v26, 1 }
 0xf3f   : > { %v4142_v12 = vadd.f32 %v4141_v31, %v4140_v26  ;;  %v4243_v40 = vpop.permute.xlu0 %4242 }
 0xf41   : > { %6881 = vpush %v4142_v12 }
 0xf47   : > { %v4209_v7 = vpop.permute.xlu0 %4208 }
 0xf4f   : > { %v4238_v35 = vpop.permute.xlu0 %4237 }
 0xf72   : > { %s6882_s13 = spop %6881 }
 0xf73   : > { %s4152_s14 = smul.f32 %s6882_s13, %s8114_s26 }
 0xf75   : > { %v4153_v22 = vstv %s4152_s14 }
 0xf76   : > { %v4154_v11 = vsub.f32 %v4113_v21, %v4153_v22  ;;  %v4155_v8 = vsub.f32 %v4116_v33, %v4153_v22  ;;  %v4156_v41 = vsub.f32 %v4119_v55, %v4153_v22  ;;  %v4157_v30 = vsub.f32 %v4122_v9, %v4153_v22  ;;  %v4797_v33 = vld [vmem:[%s10305_s2 + $0x10] sm:$0xff] }
 0xf78   : > { %v4158_v62 = vmul.f32 %v4154_v11, %v4154_v11  ;;  %v4159_v42 = vmul.f32 %v4155_v8, %v4155_v8  ;;  %v4160_v10 = vmul.f32 %v4156_v41, %v4156_v41  ;;  %v4161_v14 = vmul.f32 %v4157_v30, %v4157_v30 }
 0xf7a   : > { %v4162_v58 = vadd.f32 %v4159_v42, %v4158_v62  ;;  %v4204_v42 = vpop.permute.xlu1 %4203 }
 0xf7c   : > { %v4163_v48 = vadd.f32 %v4162_v58, %v4160_v10 }
 0xf7e   : > { %v4164_v37 = vadd.f32 %v4163_v48, %v4161_v14 }
 0xf80   : > { %4165 = vadd.xlane.f32.xlu2 %v4164_v37  ;;  %v4228_v37 = vpop.permute.xlu0 %4227 }
 0xf98   : > { %4232 = vperm.xlu2 %6970, %v4129_v23  }
 0xfa0   : > { %4433 = vperm.xlu2 %6970, %v4419_v0  }
 0xfa8   : > { %4532 = vperm.xlu2 %6970, %v4526_v2  }
 0xfb0   : > { %4728 = vperm.xlu2 %6970, %v4722_v27  }
 0xfb8   : > { %4743 = vperm.xlu2 %6970, %v4725_v50  }
 0xfc0   : > { %4927 = vperm.xlu2 %6970, %v4797_v33  }
 0xff3   : > { %v4166_v52 = vpop.xlane.xlu2 %4165 }
 0xff4   : > { %v4167_v21 = vrot.slane %v4166_v52, 4 }
 0xff6   : > { %v4168_v55 = vadd.f32 %v4167_v21, %v4166_v52 }
 0xff8   : > { %v4169_v13 = vrot.slane %v4168_v55, 2 }
 0xffa   : > { %v4170_v38 = vadd.f32 %v4169_v13, %v4168_v55 }
 0xffb   : > { %v4233_v23 = vpop.permute.xlu2 %4232 }
 0xffc   : > { %v4171_v16 = vrot.slane %v4170_v38, 1 }
 0xffe   : > { %v4172_v61 = vadd.f32 %v4171_v16, %v4170_v38 }
0x1000   : > { %6883 = vpush %v4172_v61 }
0x1031   : > { %s6884_s13 = spop %6883 }
0x1032   : > { %s4182_s14 = smul.f32 %s6884_s13, %s8114_s26 }
0x1034   : > { %s4183_s3 = sadd.f32 1e-05, %s4182_s14 }
0x1035   : > { %s10378_s14 = sld [smem:[#allocation38_spill]] }
0x1036   : > { %v4184_v25 = vstv %s4183_s3  ;;  %s10327_s3 = sld [smem:[#allocation32_spill]] }
0x1037   : > { %7038 = vrsqrt.f32 %v4184_v25  ;;  %vm4191_vm13 = vweird.f32 %v4184_v25 }
0x103d   : > { %v7039_v9 = vpop.eup %7038 }
0x103e   : > { %v4186_v17 = vmul.f32 %v7039_v9, %v4184_v25  ;;  %vm4192_vm11 = vweird.f32 %v7039_v9 }
0x103f   : > { %vm4193_vm4 = vmor %vm4191_vm13, %vm4192_vm11 }
0x1040   : > { %v4187_v54 = vmul.f32 %v7039_v9, %v4186_v17 }
0x1042   : > { %v4188_v29 = vmul.f32 0.5, %v4187_v54 }
0x1044   : > { %v4189_v20 = vsub.f32 1.5, %v4188_v29 }
0x1046   : > { %v4190_v18 = vmul.f32 %v7039_v9, %v4189_v20 }
0x1048   : > { %v4194_v46 = vsel %vm4193_vm4, %v7039_v9, %v4190_v18 }
0x1049   : > { %6885 = vpush %v4194_v46 }
0x107a   : > { %s6886_s13 = spop %6885 }
0x107b   : > { %v4196_v26 = vstv %s6886_s13  ;;  %s10418_s13 = sld [smem:[#allocation17_spill]] }
0x107c   : > { %v4197_v31 = vmul.f32 %v4196_v26, %v4154_v11  ;;  %v4198_v12 = vmul.f32 %v4196_v26, %v4155_v8  ;;  %v4199_v22 = vmul.f32 %v4196_v26, %v4156_v41  ;;  %v4200_v62 = vmul.f32 %v4196_v26, %v4157_v30 }
0x107e   : > { %v4221_v10 = vmul.f32 %v4204_v42, %v4197_v31  ;;  %v4222_v58 = vmul.f32 %v4209_v7, %v4198_v12  ;;  %v4223_v14 = vmul.f32 %v4214_v3, %v4199_v22  ;;  %v4224_v48 = vmul.f32 %v4219_v6, %v4200_v62 }
0x1080   : > { %v9136_v0 = vadd.f32 %v4228_v37, %v4221_v10  ;;  %v9138_v2 = vadd.f32 %v4233_v23, %v4222_v58  ;;  %v9140_v27 = vadd.f32 %v4238_v35, %v4223_v14  ;;  %v9142_v50 = vadd.f32 %v4243_v40, %v4224_v48 }
0x1082   : > { %v9145_v11 = vmul.f32 0.70710677, %v9136_v0  ;;  %v9148_v8 = vmul.f32 0.70710677, %v9138_v2  ;;  %v9151_v41 = vmul.f32 0.70710677, %v9140_v27 }
0x1083   : > { %v9154_v30 = vmul.f32 0.70710677, %v9142_v50 }
0x1084   : > { %v9157_v33 = vand.u32 2147483647, %v9145_v11  ;;  %v9160_v52 = vand.u32 2147483647, %v9148_v8  ;;  %v9163_v21 = vand.u32 2147483647, %v9151_v41 }
0x1085   : > { %v9166_v55 = vand.u32 2147483647, %v9154_v30 }
0x1086   : > { %v4269_v13 = vmul.f32 0.3275911, %v9157_v33  ;;  %v4270_v38 = vmul.f32 0.3275911, %v9160_v52  ;;  %v4271_v16 = vmul.f32 0.3275911, %v9163_v21 }
0x1087   : > { %v4272_v61 = vmul.f32 0.3275911, %v9166_v55  ;;  %v4373_v46 = vsub.f32 0.0, %v9157_v33  ;;  %v4374_v40 = vsub.f32 0.0, %v9160_v52 }
0x1088   : > { %v4273_v25 = vadd.f32 1.0, %v4269_v13  ;;  %v4274_v9 = vadd.f32 1.0, %v4270_v38  ;;  %v4275_v17 = vadd.f32 1.0, %v4271_v16 }
0x1089   : > { %v9172_v54 = vadd.f32 1.0, %v4272_v61 }
0x108a   : > { %7040 = vrcp.f32 %v4273_v25  ;;  %v4318_v20 = vand.u32 2147483648, %v4275_v17  ;;  %vm4312_vm12 = vweird.f32 %v4275_v17  ;;  %v4316_v22 = vand.u32 2147483647, %v4275_v17 }
0x108b   : > { %7042 = vrcp.f32 %v4274_v9  ;;  %v4333_v29 = vand.u32 2147483648, %v9172_v54  ;;  %v4331_v35 = vand.u32 2147483647, %v9172_v54  ;;  %vm4327_vm1 = vweird.f32 %v9172_v54 }
0x108c   : > { %7044 = vrcp.f32 %v4275_v17  ;;  %v4319_v10 = vor.u32 1.1754944e-38, %v4318_v20  ;;  %vm4297_vm2 = vweird.f32 %v4274_v9  ;;  %v4303_v37 = vand.u32 2147483648, %v4274_v9 }
0x108d   : > { %7046 = vrcp.f32 %v9172_v54  ;;  %v4334_v12 = vor.u32 1.1754944e-38, %v4333_v29  ;;  %v4288_v23 = vand.u32 2147483648, %v4273_v25  ;;  %v4286_v16 = vand.u32 2147483647, %v4273_v25 }
0x108e   : > { %v4301_v29 = vand.u32 2147483647, %v4274_v9  ;;  %vm4282_vm5 = vweird.f32 %v4273_v25  ;;  %vm4317_vm0 = vcmp.eq.f32.partialorder %v4316_v22, 8.507059e+37  ;;  %v10325_v22 = vsub.f32 0.0, %v9163_v21 }
0x108f   : > { %v4289_v4 = vor.u32 1.1754944e-38, %v4288_v23  ;;  %vm4287_vm13 = vcmp.eq.f32.partialorder %v4286_v16, 8.507059e+37 }
0x1090   : > { %v7041_v18 = vpop.eup %7040  ;;  %vm4302_vm6 = vcmp.eq.f32.partialorder %v4301_v29, 8.507059e+37 }
0x1091   : > { %v7043_v6 = vpop.eup %7042  ;;  %v4278_v3 = vmul.f32 %v7041_v18, %v4273_v25  ;;  %vm4283_vm14 = vweird.f32 %v7041_v18 }
0x1092   : > { %v7045_v26 = vpop.eup %7044  ;;  %v4293_v31 = vmul.f32 %v7043_v6, %v4274_v9  ;;  %vm4298_vm15 = vweird.f32 %v7043_v6  ;;  %vm4284_vm8 = vmor %vm4282_vm5, %vm4283_vm14  ;;  %vm4332_vm14 = vcmp.eq.f32.partialorder %v4331_v35, 8.507059e+37  ;;  %vm10332_vm5 = vcmp.eq.s32.totalorder %v7559_v39, 1 }
0x1093   : > { %v7047_v62 = vpop.eup %7046  ;;  %v4308_v42 = vmul.f32 %v7045_v26, %v4275_v17  ;;  %v4279_v58 = vsub.f32 1.0, %v4278_v3  ;;  %vm4313_vm3 = vweird.f32 %v7045_v26  ;;  %vm4299_vm11 = vmor %vm4297_vm2, %vm4298_vm15  ;;  %vm10330_vm15 = vcmask 64512  }
0x1094   : > { %v4323_v14 = vmul.f32 %v7047_v62, %v9172_v54  ;;  %v4294_v48 = vsub.f32 1.0, %v4293_v31  ;;  %vm4328_vm9 = vweird.f32 %v7047_v62  ;;  %vm4314_vm4 = vmor %vm4312_vm12, %vm4313_vm3  ;;  %v4378_v54 = vmul.f32 %v4374_v40, %v9160_v52 }
0x1095   : > { %v4309_v13 = vsub.f32 1.0, %v4308_v42  ;;  %v4280_v38 = vmul.f32 %v7041_v18, %v4279_v58  ;;  %v4304_v42 = vor.u32 1.1754944e-38, %v4303_v37  ;;  %vm4329_vm7 = vmor %vm4327_vm1, %vm4328_vm9  ;;  %vm4260_vm1 = vcmp.ge.f32.partialorder %v9154_v30, 0.0 }
0x1096   : > { %v4324_v61 = vsub.f32 1.0, %v4323_v14  ;;  %v4295_v15 = vmul.f32 %v7043_v6, %v4294_v48  ;;  %v4252_v30 = vmul.f32 0.5, %v9142_v50  ;;  %vm10328_vm12 = vcmask 130048  }
0x1097   : > { %v4310_v7 = vmul.f32 %v7045_v26, %v4309_v13  ;;  %v4281_v5 = vadd.f32 %v7041_v18, %v4280_v38  ;;  %vm10329_vm2 = vmmov %vm10328_vm12  ;;  %vm10331_vm3 = vcmp.eq.s32.totalorder %v7551_v36, 1  ;;  %vm10333_vm9 = vcmp.eq.s32.totalorder %v7566_v43, 1 }
0x1098   : > { %v4325_v20 = vmul.f32 %v7047_v62, %v4324_v61  ;;  %v4296_v3 = vadd.f32 %v7043_v6, %v4295_v15 }
0x1099   : > { %v4311_v31 = vadd.f32 %v7045_v26, %v4310_v7  ;;  %v4285_v58 = vsel %vm4284_vm8, %v7041_v18, %v4281_v5  ;;  %v4376_v5 = vsub.f32 0.0, %v9166_v55  ;;  %vm10334_vm8 = vcmp.eq.s32.totalorder %v7572_v44, 1 }
0x109a   : > { %v4326_v1 = vadd.f32 %v7047_v62, %v4325_v20  ;;  %v4300_v14 = vsel %vm4299_vm11, %v7043_v6, %v4296_v3  ;;  %v4290_v48 = vsel %vm4287_vm13, %v4289_v4, %v4285_v58  ;;  %v4377_v6 = vmul.f32 %v4373_v46, %v9157_v33  ;;  %vm10335_vm11 = vmmov %vm10330_vm15 }
0x109b   : > { %v4315_v25 = vsel %vm4314_vm4, %v7045_v26, %v4311_v31  ;;  %v4305_v15 = vsel %vm4302_vm6, %v4304_v42, %v4300_v14  ;;  %v4337_v13 = vmul.f32 1.0614054, %v4290_v48  ;;  %v4383_v33 = vmul.f32 1.442695, %v4378_v54 }
0x109c   : > { %v4330_v23 = vsel %vm4329_vm7, %v7047_v62, %v4326_v1  ;;  %v4320_v9 = vsel %vm4317_vm0, %v4319_v10, %v4315_v25  ;;  %v4338_v7 = vmul.f32 1.0614054, %v4305_v15  ;;  %v4379_v1 = vmul.f32 %v10325_v22, %v9163_v21 }
0x109d   : > { %v4335_v18 = vsel %vm4332_vm14, %v4334_v12, %v4330_v23  ;;  %v4339_v37 = vmul.f32 1.0614054, %v4320_v9  ;;  %v4341_v17 = vadd.f32 -1.4531521, %v4337_v13  ;;  %v4380_v10 = vmul.f32 %v4376_v5, %v9166_v55 }
0x109e   : > { %v4340_v38 = vmul.f32 1.0614054, %v4335_v18  ;;  %v4342_v4 = vadd.f32 -1.4531521, %v4338_v7  ;;  %v4381_v29 = vmul.f32 1.442695, %v4377_v6 }
0x109f   : > { %v4343_v16 = vadd.f32 -1.4531521, %v4339_v37  ;;  %v4345_v26 = vmul.f32 %v4341_v17, %v4290_v48  ;;  %v4385_v42 = vmul.f32 1.442695, %v4379_v1  ;;  %v4387_v58 = vmul.f32 1.442695, %v4380_v10 }
0x10a0   : > { %v4344_v35 = vadd.f32 -1.4531521, %v4340_v38  ;;  %v4346_v62 = vmul.f32 %v4342_v4, %v4305_v15  ;;  %7048 = vpow2.f32 %v4381_v29  ;;  %vm4258_vm6 = vcmp.ge.f32.partialorder %v9148_v8, 0.0 }
0x10a1   : > { %v4347_v61 = vmul.f32 %v4343_v16, %v4320_v9  ;;  %v4349_v12 = vadd.f32 1.4214138, %v4345_v26  ;;  %7050 = vpow2.f32 %v4383_v33  ;;  %vm4259_vm7 = vcmp.ge.f32.partialorder %v9151_v41, 0.0 }
0x10a2   : > { %v4348_v20 = vmul.f32 %v4344_v35, %v4335_v18  ;;  %v4350_v3 = vadd.f32 1.4214138, %v4346_v62  ;;  %7052 = vpow2.f32 %v4385_v42  ;;  %vm4257_vm0 = vcmp.ge.f32.partialorder %v9145_v11, 0.0 }
0x10a3   : > { %v4351_v46 = vadd.f32 1.4214138, %v4347_v61  ;;  %v4353_v31 = vmul.f32 %v4349_v12, %v4290_v48  ;;  %7054 = vpow2.f32 %v4387_v58  ;;  %vm10336_vm13 = vcmp.eq.s32.totalorder %v7575_v45, 1 }
0x10a4   : > { %v4352_v52 = vadd.f32 1.4214138, %v4348_v20  ;;  %v4354_v40 = vmul.f32 %v4350_v3, %v4305_v15  ;;  %vm10337_vm4 = vcmp.eq.s32.totalorder %v7588_v47, 1  ;;  %vm10338_vm14 = vcmp.eq.s32.totalorder %v7596_v49, 1 }
0x10a5   : > { %v4355_v14 = vmul.f32 %v4351_v46, %v4320_v9  ;;  %v4357_v25 = vadd.f32 -0.28449672, %v4353_v31  ;;  %v10326_v46 = vmov -1.0  }
0x10a6   : > { %v4356_v13 = vmul.f32 %v4352_v52, %v4335_v18  ;;  %v4358_v21 = vadd.f32 -0.28449672, %v4354_v40  ;;  %v7049_v16 = vpop.eup %7048  ;;  %v4264_v8 = vsel %vm4260_vm1, 1.0, %v10326_v46  ;;  %v4261_v41 = vsel %vm4257_vm0, 1.0, %v10326_v46 }
0x10a7   : > { %v4359_v23 = vadd.f32 -0.28449672, %v4355_v14  ;;  %v4361_v55 = vmul.f32 %v4357_v25, %v4290_v48  ;;  %v7051_v1 = vpop.eup %7050  ;;  %v4251_v25 = vmul.f32 0.5, %v9140_v27  ;;  %vm10341_vm0 = vcmp.eq.s32.totalorder %v7551_v36, 4294967295 }
0x10a8   : > { %v4360_v7 = vadd.f32 -0.28449672, %v4356_v13  ;;  %v4362_v5 = vmul.f32 %v4358_v21, %v4305_v15  ;;  %v7053_v10 = vpop.eup %7052  ;;  %vm10342_vm1 = vcmp.eq.s32.totalorder %v7624_v53, 1 }
0x10a9   : > { %v4363_v37 = vmul.f32 %v4359_v23, %v4320_v9  ;;  %v4365_v17 = vadd.f32 0.2548296, %v4361_v55  ;;  %v7055_v29 = vpop.eup %7054  ;;  %v4250_v55 = vmul.f32 0.5, %v9138_v2  ;;  %v4414_v2 = vld [vmem:[%s10327_s3 + $0x8] sm:$0xff] }
0x10aa   : > { %v4364_v6 = vmul.f32 %v4360_v7, %v4335_v18  ;;  %v4366_v38 = vadd.f32 0.2548296, %v4362_v5 }
0x10ab   : > { %v4367_v4 = vadd.f32 0.2548296, %v4363_v37  ;;  %v4369_v54 = vmul.f32 %v4365_v17, %v4290_v48  ;;  %v4249_v17 = vmul.f32 0.5, %v9136_v0  ;;  %v4416_v0 = vld [vmem:[%s10327_s3 + $0x18] sm:$0xff] }
0x10ac   : > { %v4368_v26 = vadd.f32 0.2548296, %v4364_v6  ;;  %v4370_v22 = vmul.f32 %v4366_v38, %v4305_v15 }
0x10ad   : > { %v4371_v35 = vmul.f32 %v4367_v4, %v4320_v9  ;;  %v4389_v62 = vmul.f32 %v7049_v16, %v4369_v54  ;;  %v4262_v9 = vsel %vm4258_vm6, 1.0, %v10326_v46  ;;  %v4413_v4 = vld [vmem:[%s10327_s3] sm:$0xff]  ;;  %vm10339_vm6 = vcmp.eq.s32.totalorder %v7604_v51, 1 }
0x10ae   : > { %v4372_v61 = vmul.f32 %v4368_v26, %v4335_v18  ;;  %v4390_v12 = vmul.f32 %v7051_v1, %v4370_v22  ;;  %v4263_v18 = vsel %vm4259_vm7, 1.0, %v10326_v46  ;;  %v4439_v1 = vpop.permute.xlu1 %4438  ;;  %vm10340_vm7 = vmmov %vm10335_vm11 }
0x10af   : > { %v4391_v20 = vmul.f32 %v7053_v10, %v4371_v35  ;;  %v4393_v33 = vsub.f32 1.0, %v4389_v62  ;;  %v4434_v10 = vpop.permute.xlu2 %4433 }
0x10b0   : > { %v4392_v48 = vmul.f32 %v7055_v29, %v4372_v61  ;;  %v4394_v3 = vsub.f32 1.0, %v4390_v12 }
0x10b1   : > { %v4395_v15 = vsub.f32 1.0, %v4391_v20  ;;  %v4397_v58 = vmul.f32 %v4393_v33, %v4261_v41 }
0x10b2   : > { %v4396_v31 = vsub.f32 1.0, %v4392_v48  ;;  %v4398_v42 = vmul.f32 %v4394_v3, %v4262_v9 }
0x10b3   : > { %v4399_v52 = vmul.f32 %v4395_v15, %v4263_v18  ;;  %v4401_v7 = vadd.f32 1.0, %v4397_v58 }
0x10b4   : > { %v4400_v40 = vmul.f32 %v4396_v31, %v4264_v8  ;;  %v4402_v13 = vadd.f32 1.0, %v4398_v42 }
0x10b5   : > { %v4403_v11 = vadd.f32 1.0, %v4399_v52  ;;  %v4405_v6 = vmul.f32 %v4401_v7, %v4249_v17 }
0x10b6   : > { %v4404_v14 = vadd.f32 1.0, %v4400_v40  ;;  %v4406_v37 = vmul.f32 %v4402_v13, %v4250_v55  ;;  %v4543_v17 = vpop.permute.xlu1 %4542 }
0x10b7   : > { %v4407_v23 = vmul.f32 %v4403_v11, %v4251_v25  ;;  %v4409_v38 = vadd.f32 %v4405_v6, %v8757_v34  ;;  %v4533_v6 = vpop.permute.xlu2 %4532 }
0x10b8   : > { %v4408_v21 = vmul.f32 %v4404_v14, %v4252_v30  ;;  %v4410_v27 = vadd.f32 %v4406_v37, %v8763_v32 }
0x10b9   : > { %v4411_v50 = vadd.f32 %v4407_v23, %v8769_v59  ;;  %v4429_v59 = vpop.permute.xlu0 %4428 }
0x10ba   : > { %v4412_v5 = vadd.f32 %v4408_v21, %v8775_v19  ;;  %v4415_v19 = vld [vmem:[%s10327_s3 + $0x10] sm:$0xff] }
0x10bc   : > { %4465 = vmatpush.msrb.mxu2 %v4412_v5  ;;  %v4567_v5 = vpop.f32.mrf.mxu3 }
0x10be   : > { %4466 = vmatpush.msrb.mxu2 %v4411_v50 }
0x10c0   : > { %4467 = vmatpush.msrb.mxu2 %v4410_v27 }
0x10c1   : > { %v4424_v26 = vpop.permute.xlu0 %4423 }
0x10c2   : > { %4468 = vmatpush.msrb.mxu2 %v4409_v38 }
0x10c3   : > { %6687 = vmatmul.msk.f32.vlgmr.msrb.gmra.mxu2 %vm2622_vm10, %v4413_v4 }
0x10c9   : > { %v4649_v12 = vpop.permute.xlu0 %4648 }
0x10cb   : > { %6688 = vmatmul.msk.f32.gmra.mxu2 %vm2622_vm10, %v4414_v2  ;;  %v4568_v2 = vadd.f32 %v4567_v5, %v4533_v6 }
0x10d3   : > { %6689 = vmatmul.msk.f32.gmra.mxu2 %vm2622_vm10, %v4415_v19 }
0x10db   : > { %6690 = vmatmul.msk.f32.gmra.mxu2 %vm2622_vm10, %v4416_v0  ;;  %v4570_v0 = vpop.f32.mrf.mxu3 }
0x1146   : > { %v4470_v54 = vpop.f32.mrf.mxu2 }
0x1147   : > { %v4471_v22 = vadd.f32 %v4470_v54, %v4424_v26 }
0x114e   : > { %v4473_v16 = vpop.f32.mrf.mxu2 }
0x114f   : > { %v4474_v32 = vadd.f32 %v4473_v16, %v4429_v59  ;;  %v4538_v16 = vpop.permute.xlu1 %4537 }
0x1150   : > { %v4571_v26 = vadd.f32 %v4570_v0, %v4538_v16  ;;  %v4788_v0 = vld [vmem:[%s10418_s13 + $0x8] sm:$0xff]  ;;  %v4790_v16 = vld [vmem:[%s10418_s13 + $0x18] sm:$0xff] }
0x1151   : > { %4596 = vmatpush.msrb.mxu1 %v4474_v32 }
0x1153   : > { %4597 = vmatpush.msrb.mxu1 %v4471_v22  ;;  %v4573_v22 = vpop.f32.mrf.mxu3 }
0x1154   : > { %6691 = vmatmul.msk.f32.vlgmr.msrb.gmra.mxu1 %vm10328_vm12, %v9025_v28  ;;  %vm10343_vm12 = vcmp.eq.s32.totalorder %v7559_v39, 4294967295 }
0x1156   : > { %v4476_v34 = vpop.f32.mrf.mxu2 }
0x1157   : > { %v4477_v61 = vadd.f32 %v4476_v34, %v4434_v10  ;;  %v4548_v10 = vpop.permute.xlu0 %4547 }
0x115e   : > { %v4479_v35 = vpop.f32.mrf.mxu2 }
0x115f   : > { %v4480_v62 = vadd.f32 %v4479_v35, %v4439_v1  ;;  %v4574_v35 = vadd.f32 %v4573_v22, %v4543_v17  ;;  %v4787_v22 = vld [vmem:[%s10418_s13] sm:$0xff] }
0x1161   : > { %4666 = vmatpush.msra.mxu1 %v4480_v62  ;;  %v4576_v62 = vpop.f32.mrf.mxu3 }
0x1163   : > { %4667 = vmatpush.msra.mxu1 %v4477_v61  ;;  %v4577_v61 = vadd.f32 %v4576_v62, %v4548_v10 }
0x1164   : > { %6694 = vmatmul.msk.f32.vlgmr.msra.gmra.mxu1 %vm10329_vm2, %v4649_v12  ;;  %vm10344_vm2 = vcmp.eq.s32.totalorder %v7651_v56, 1  ;;  %v10353_v12 = vld [vmem:[#allocation45_spill] sm:$0xff] }
0x11d1   : > { %v4599_v29 = vpop.f32.mrf.mxu1 }
0x11d2   : > { %v4602_v20 = vrot.slane %v4599_v29, 4 }
0x11d4   : > { %v4603_v48 = vmax.f32 %v4599_v29, %v4602_v20  ;;  %v10359_v20 = vld [vmem:[#allocation47_spill] sm:$0xff] }
0x11d6   : > { %v4604_v3 = vrot.slane %v4603_v48, 2 }
0x11d8   : > { %v4605_v33 = vmax.f32 %v4603_v48, %v4604_v3 }
0x11da   : > { %v4606_v15 = vrot.slane %v4605_v33, 1 }
0x11dc   : > { %v4607_v9 = vmax.f32 %v4605_v33, %v4606_v15 }
0x11de   : > { %v4608_v31 = vsub.f32 %v4599_v29, %v4607_v9  ;;  %v10356_v29 = vld [vmem:[#allocation46_spill] sm:$0xff]  ;;  %v4718_v9 = vld [vmem:[%s10378_s14] sm:$0xff] }
0x11e0   : > { %v4609_v28 = vmul.f32 1.442695, %v4608_v31  ;;  %v4719_v31 = vld [vmem:[%s10378_s14 + $0x8] sm:$0xff] }
0x11e1   : > { %v4669_v18 = vpop.f32.mrf.mxu1 }
0x11e2   : > { %7056 = vpow2.f32 %v4609_v28  ;;  %v4672_v42 = vrot.slane %v4669_v18, 4  ;;  %v4720_v28 = vld [vmem:[%s10378_s14 + $0x10] sm:$0xff] }
0x11e4   : > { %v4673_v8 = vmax.f32 %v4669_v18, %v4672_v42  ;;  %v4729_v42 = vpop.permute.xlu2 %4728 }
0x11e6   : > { %v4674_v52 = vrot.slane %v4673_v8, 2 }
0x11e8   : > { %v7057_v41 = vpop.eup %7056  ;;  %v4675_v40 = vmax.f32 %v4673_v8, %v4674_v52 }
0x11e9   : > { %v4611_v58 = vrot.slane %v7057_v41, 4 }
0x11ea   : > { %v4676_v11 = vrot.slane %v4675_v40, 1 }
0x11eb   : > { %v4612_v30 = vadd.f32 %v7057_v41, %v4611_v58 }
0x11ec   : > { %v4677_v14 = vmax.f32 %v4675_v40, %v4676_v11  ;;  %v4739_v11 = vpop.permute.xlu1 %4738 }
0x11ed   : > { %v4613_v25 = vrot.slane %v4612_v30, 2 }
0x11ee   : > { %v4678_v13 = vsub.f32 %v4669_v18, %v4677_v14  ;;  %v4721_v18 = vld [vmem:[%s10378_s14 + $0x18] sm:$0xff] }
0x11ef   : > { %v4614_v21 = vadd.f32 %v4613_v25, %v4612_v30  ;;  %v4744_v25 = vpop.permute.xlu2 %4743 }
0x11f0   : > { %v4679_v23 = vmul.f32 1.442695, %v4678_v13 }
0x11f1   : > { %v4615_v55 = vrot.slane %v4614_v21, 1 }
0x11f2   : > { %7058 = vpow2.f32 %v4679_v23 }
0x11f3   : > { %v4616_v7 = vadd.f32 %v4615_v55, %v4614_v21 }
0x11f5   : > { %7060 = vrcp.f32 %v4616_v7 }
0x11f8   : > { %v7059_v37 = vpop.eup %7058 }
0x11f9   : > { %v4681_v50 = vrot.slane %v7059_v37, 4 }
0x11fb   : > { %v7061_v27 = vpop.eup %7060  ;;  %v4682_v38 = vadd.f32 %v7059_v37, %v4681_v50 }
0x11fc   : > { %v4618_v4 = vmul.f32 %v7061_v27, %v7057_v41  ;;  %v4734_v41 = vpop.permute.xlu0 %4733 }
0x11fd   : > { %v4683_v19 = vrot.slane %v4682_v38, 2 }
0x11fe   : > { %4640 = vmatpush.msra.mxu0 %v4618_v4 }
0x11ff   : > { %6692 = vmatmul.msk.f32.vlgmr.msra.gmra.mxu0 %vm10330_vm15, %v4568_v2  ;;  %v4684_v59 = vadd.f32 %v4683_v19, %v4682_v38  ;;  %vm10345_vm15 = vcmp.eq.s32.totalorder %v7566_v43, 4294967295 }
0x1200   : > { %6717 = vmatpush.msk.msrb.mxu0 %vm10331_vm3, %v10309_v24  ;;  %vm10346_vm3 = vcmp.eq.s32.totalorder %v7660_v57, 1 }
0x1201   : > { %v4685_v54 = vrot.slane %v4684_v59, 1 }
0x1202   : > { %6718 = vmatpush.msk.msrb.mxu0 %vm10332_vm5, %v10309_v24  ;;  %vm10347_vm5 = vcmp.eq.s32.totalorder %v7572_v44, 4294967295 }
0x1203   : > { %v4686_v32 = vadd.f32 %v4685_v54, %v4684_v59 }
0x1204   : > { %6719 = vmatpush.msk.msrb.mxu0 %vm10333_vm9, %v10309_v24  ;;  %vm10348_vm9 = vcmp.eq.s32.totalorder %v7689_v60, 1 }
0x1205   : > { %7062 = vrcp.f32 %v4686_v32 }
0x1206   : > { %6720 = vmatpush.msk.msrb.mxu0 %vm10334_vm8, %v10309_v24  ;;  %vm10349_vm8 = vmmov %vm10340_vm7 }
0x1207   : > { %6693 = vmatmul.msk.f32.gmra.mxu0 %vm10335_vm11, %v4571_v26  ;;  %vm10350_vm11 = vcmp.eq.s32.totalorder %v7575_v45, 4294967295  ;;  %v4792_v26 = vld [vmem:[%s10418_s13 + $0x28] sm:$0xff] }
0x1208   : > { %6721 = vmatpush.msk.msrb.mxu0 %vm10336_vm13, %v10309_v24  ;;  %vm10351_vm13 = vcmp.eq.s32.totalorder %v7716_v63, 1 }
0x120a   : > { %6722 = vmatpush.msk.msrb.mxu0 %vm10337_vm4, %v10309_v24  ;;  %vm10352_vm4 = vcmp.eq.s32.totalorder %v7588_v47, 4294967295 }
0x120b   : > { %v7063_v34 = vpop.eup %7062 }
0x120c   : > { %v4688_v1 = vmul.f32 %v7063_v34, %v7059_v37  ;;  %6723 = vmatpush.msk.msrb.mxu0 %vm10338_vm14, %v10309_v24  ;;  %vm10354_vm14 = vcmp.eq.s32.totalorder %v10353_v12, 1  ;;  %v4794_v34 = vld [vmem:[%s10418_s13 + $0x38] sm:$0xff] }
0x120e   : > { %4710 = vmatpush.msrb.mxu1 %v4688_v1  ;;  %6724 = vmatpush.msk.msrb.mxu0 %vm10339_vm6, %v10309_v24  ;;  %vm10355_vm6 = vcmp.eq.s32.totalorder %v7596_v49, 4294967295  ;;  %v4789_v1 = vld [vmem:[%s10418_s13 + $0x10] sm:$0xff] }
0x120f   : > { %6695 = vmatmul.msk.f32.vlgmr.msrb.gmra.mxu1 %vm10340_vm7, %v4574_v35  ;;  %vm10357_vm7 = vcmp.eq.s32.totalorder %v10356_v29, 1 }
0x1210   : > { %6733 = vmatpush.msk.msra.mxu1 %vm10341_vm0, %v10309_v24  ;;  %6725 = vmatpush.msk.msrb.mxu0 %vm10342_vm1, %v10309_v24  ;;  %vm10358_vm0 = vcmp.eq.s32.totalorder %v7604_v51, 4294967295  ;;  %vm10360_vm1 = vcmp.eq.s32.totalorder %v10359_v20, 1 }
0x1212   : > { %6734 = vmatpush.msk.msra.mxu1 %vm10343_vm12, %v10309_v24  ;;  %6726 = vmatpush.msk.msrb.mxu0 %vm10344_vm2, %v10309_v24  ;;  %vm10361_vm12 = vcmp.eq.s32.totalorder %v7624_v53, 4294967295  ;;  %vm10362_vm2 = vcmp.eq.s32.totalorder %v7651_v56, 4294967295 }
0x1214   : > { %6735 = vmatpush.msk.msra.mxu1 %vm10345_vm15, %v10309_v24  ;;  %6727 = vmatpush.msk.msrb.mxu0 %vm10346_vm3, %v10309_v24  ;;  %vm10363_vm15 = vcmp.eq.s32.totalorder %v7660_v57, 4294967295  ;;  %vm10364_vm3 = vcmp.eq.s32.totalorder %v7689_v60, 4294967295 }
0x1216   : > { %6736 = vmatpush.msk.msra.mxu1 %vm10347_vm5, %v10309_v24  ;;  %6728 = vmatpush.msk.msrb.mxu0 %vm10348_vm9, %v10309_v24  ;;  %vm10365_vm5 = vcmp.eq.s32.totalorder %v7716_v63, 4294967295  ;;  %vm10366_vm9 = vcmp.eq.s32.totalorder %v10353_v12, 4294967295 }
0x1217   : > { %6696 = vmatmul.msk.f32.gmra.mxu1 %vm10349_vm8, %v4577_v61  ;;  %vm10367_vm8 = vcmp.eq.s32.totalorder %v10356_v29, 4294967295 }
0x1218   : > { %6737 = vmatpush.msk.msra.mxu1 %vm10350_vm11, %v10309_v24  ;;  %6729 = vmatpush.msk.msrb.mxu0 %vm10351_vm13, %v10309_v24  ;;  %vm10368_vm11 = vcmp.eq.s32.totalorder %v10359_v20, 4294967295  ;;  %vm10369_vm13 = vcmp.eq.s32.totalorder %v7551_v36, 2 }
0x121a   : > { %6738 = vmatpush.msk.msra.mxu1 %vm10352_vm4, %v10309_v24  ;;  %6730 = vmatpush.msk.msrb.mxu0 %vm10354_vm14, %v10309_v24  ;;  %vm10370_vm4 = vcmp.eq.s32.totalorder %v7559_v39, 2  ;;  %vm10371_vm14 = vcmp.eq.s32.totalorder %v7566_v43, 2 }
0x121c   : > { %6739 = vmatpush.msk.msra.mxu1 %vm10355_vm6, %v10309_v24  ;;  %6731 = vmatpush.msk.msrb.mxu0 %vm10357_vm7, %v10309_v24  ;;  %vm10372_vm6 = vcmp.eq.s32.totalorder %v7572_v44, 2  ;;  %vm10373_vm7 = vcmp.eq.s32.totalorder %v7575_v45, 2 }
0x121e   : > { %6740 = vmatpush.msk.msra.mxu1 %vm10358_vm0, %v10309_v24  ;;  %6732 = vmatpush.msk.msrb.mxu0 %vm10360_vm1, %v10309_v24  ;;  %vm10374_vm0 = vcmp.eq.s32.totalorder %v7588_v47, 2  ;;  %vm10375_vm1 = vcmp.eq.s32.totalorder %v7596_v49, 2 }
0x1220   : > { %6741 = vmatpush.msk.msra.mxu1 %vm10361_vm12, %v10309_v24  ;;  %vm10376_vm12 = vcmp.eq.s32.totalorder %v7604_v51, 2 }
0x1222   : > { %6742 = vmatpush.msk.msra.mxu1 %vm10362_vm2, %v10309_v24  ;;  %vm10377_vm2 = vcmp.eq.s32.totalorder %v7624_v53, 2 }
0x1224   : > { %6743 = vmatpush.msk.msra.mxu1 %vm10363_vm15, %v10309_v24  ;;  %vm10379_vm15 = vcmp.eq.s32.totalorder %v7651_v56, 2 }
0x1226   : > { %6744 = vmatpush.msk.msra.mxu1 %vm10364_vm3, %v10309_v24  ;;  %vm10380_vm3 = vcmp.eq.s32.totalorder %v7660_v57, 2 }
0x1228   : > { %6745 = vmatpush.msk.msra.mxu1 %vm10365_vm5, %v10309_v24  ;;  %vm10381_vm5 = vcmp.eq.s32.totalorder %v7689_v60, 2 }
0x122a   : > { %6746 = vmatpush.msk.msra.mxu1 %vm10366_vm9, %v10309_v24  ;;  %vm10382_vm9 = vcmp.eq.s32.totalorder %v7716_v63, 2 }
0x122c   : > { %6747 = vmatpush.msk.msra.mxu1 %vm10367_vm8, %v10309_v24  ;;  %vm10383_vm8 = vcmp.eq.s32.totalorder %v10353_v12, 2 }
0x122e   : > { %6748 = vmatpush.msk.msra.mxu1 %vm10368_vm11, %v10309_v24  ;;  %vm10384_vm11 = vcmp.eq.s32.totalorder %v10356_v29, 2 }
0x1230   : > { %6769 = vmatpush.msk.msrb.mxu1 %vm10369_vm13, %v10309_v24  ;;  %vm10385_vm13 = vcmp.eq.s32.totalorder %v10359_v20, 2 }
0x1232   : > { %6770 = vmatpush.msk.msrb.mxu1 %vm10370_vm4, %v10309_v24  ;;  %vm10386_vm4 = vcmp.eq.s32.totalorder %v7551_v36, 4294967294 }
0x1234   : > { %6771 = vmatpush.msk.msrb.mxu1 %vm10371_vm14, %v10309_v24  ;;  %vm10387_vm14 = vcmp.eq.s32.totalorder %v7559_v39, 4294967294 }
0x1236   : > { %6772 = vmatpush.msk.msrb.mxu1 %vm10372_vm6, %v10309_v24  ;;  %vm10388_vm6 = vcmp.eq.s32.totalorder %v7566_v43, 4294967294 }
0x1238   : > { %6773 = vmatpush.msk.msrb.mxu1 %vm10373_vm7, %v10309_v24  ;;  %vm10389_vm7 = vcmp.eq.s32.totalorder %v7572_v44, 4294967294 }
0x123a   : > { %6774 = vmatpush.msk.msrb.mxu1 %vm10374_vm0, %v10309_v24  ;;  %vm10390_vm0 = vcmp.eq.s32.totalorder %v7575_v45, 4294967294 }
0x123c   : > { %6775 = vmatpush.msk.msrb.mxu1 %vm10375_vm1, %v10309_v24  ;;  %vm10391_vm1 = vcmp.eq.s32.totalorder %v7588_v47, 4294967294 }
0x123e   : > { %6776 = vmatpush.msk.msrb.mxu1 %vm10376_vm12, %v10309_v24  ;;  %vm10392_vm12 = vcmp.eq.s32.totalorder %v7596_v49, 4294967294 }
0x1240   : > { %6777 = vmatpush.msk.msrb.mxu1 %vm10377_vm2, %v10309_v24  ;;  %vm10393_vm2 = vcmp.eq.s32.totalorder %v7604_v51, 4294967294 }
0x1242   : > { %6778 = vmatpush.msk.msrb.mxu1 %vm10379_vm15, %v10309_v24  ;;  %vm10394_vm15 = vcmp.eq.s32.totalorder %v7624_v53, 4294967294 }
0x1244   : > { %6779 = vmatpush.msk.msrb.mxu1 %vm10380_vm3, %v10309_v24  ;;  %vm10395_vm3 = vcmp.eq.s32.totalorder %v7651_v56, 4294967294 }
0x1246   : > { %6780 = vmatpush.msk.msrb.mxu1 %vm10381_vm5, %v10309_v24  ;;  %vm10396_vm5 = vcmp.eq.s32.totalorder %v7660_v57, 4294967294 }
0x1248   : > { %6781 = vmatpush.msk.msrb.mxu1 %vm10382_vm9, %v10309_v24  ;;  %vm10397_vm9 = vcmp.eq.s32.totalorder %v7689_v60, 4294967294 }
0x124a   : > { %6782 = vmatpush.msk.msrb.mxu1 %vm10383_vm8, %v10309_v24  ;;  %vm10398_vm8 = vcmp.eq.s32.totalorder %v7716_v63, 4294967294 }
0x124c   : > { %6783 = vmatpush.msk.msrb.mxu1 %vm10384_vm11, %v10309_v24  ;;  %vm10399_vm11 = vcmp.eq.s32.totalorder %v10353_v12, 4294967294 }
0x124e   : > { %6784 = vmatpush.msk.msrb.mxu1 %vm10385_vm13, %v10309_v24  ;;  %vm10400_vm13 = vcmp.eq.s32.totalorder %v10356_v29, 4294967294 }
0x127c   : > { %v4642_v3 = vpop.f32.mrf.mxu0 }
0x1284   : > { %v4645_v15 = vpop.f32.mrf.mxu0 }
0x128c   : > { %v4712_v48 = vpop.f32.mrf.mxu1 }
0x1294   : > { %v4715_v33 = vpop.f32.mrf.mxu1 }
0x1295   : > { %4770 = vmatpush.msra.mxu2 %v4715_v33 }
0x1297   : > { %4771 = vmatpush.msra.mxu2 %v4712_v48 }
0x1299   : > { %4772 = vmatpush.msra.mxu2 %v4645_v15 }
0x129b   : > { %4773 = vmatpush.msra.mxu2 %v4642_v3 }
0x129c   : > { %6697 = vmatmul.msk.f32.vlgmr.msra.gmra.mxu2 %vm2622_vm10, %v4718_v9  ;;  %v5011_v9 = vld [vmem:[%s10307_s11 + $0x10] sm:$0xff] }
0x129d   : > { %6749 = vmatpush.msk.msrb.mxu2 %vm10386_vm4, %v10309_v24  ;;  %vm10401_vm4 = vcmp.eq.s32.totalorder %v10359_v20, 4294967294 }
0x129f   : > { %6750 = vmatpush.msk.msrb.mxu2 %vm10387_vm14, %v10309_v24  ;;  %vm10402_vm14 = vcmp.eq.s32.totalorder %v7551_v36, 1 }
0x12a1   : > { %6751 = vmatpush.msk.msrb.mxu2 %vm10388_vm6, %v10309_v24  ;;  %vm10403_vm6 = vcmp.eq.s32.totalorder %v7559_v39, 1 }
0x12a3   : > { %6752 = vmatpush.msk.msrb.mxu2 %vm10389_vm7, %v10309_v24  ;;  %vm10404_vm7 = vcmp.eq.s32.totalorder %v7566_v43, 1 }
0x12a4   : > { %6698 = vmatmul.msk.f32.gmra.mxu2 %vm2622_vm10, %v4719_v31  ;;  %v5300_v31 = vld [vmem:[%s10316_s1 + $0x10] sm:$0xff] }
0x12a5   : > { %6753 = vmatpush.msk.msrb.mxu2 %vm10390_vm0, %v10309_v24  ;;  %vm10405_vm0 = vcmp.eq.s32.totalorder %v7572_v44, 1 }
0x12a7   : > { %6754 = vmatpush.msk.msrb.mxu2 %vm10391_vm1, %v10309_v24  ;;  %vm10406_vm1 = vcmp.eq.s32.totalorder %v7575_v45, 1 }
0x12a9   : > { %6755 = vmatpush.msk.msrb.mxu2 %vm10392_vm12, %v10309_v24  ;;  %vm10407_vm12 = vcmp.eq.s32.totalorder %v7588_v47, 1 }
0x12ab   : > { %6756 = vmatpush.msk.msrb.mxu2 %vm10393_vm2, %v10309_v24  ;;  %vm10408_vm2 = vcmp.eq.s32.totalorder %v7596_v49, 1 }
0x12ac   : > { %6699 = vmatmul.msk.f32.gmra.mxu2 %vm2622_vm10, %v4720_v28 }
0x12ad   : > { %6757 = vmatpush.msk.msrb.mxu2 %vm10394_vm15, %v10309_v24  ;;  %vm10409_vm15 = vcmp.eq.s32.totalorder %v7604_v51, 1 }
0x12af   : > { %6758 = vmatpush.msk.msrb.mxu2 %vm10395_vm3, %v10309_v24  ;;  %vm10410_vm3 = vcmp.eq.s32.totalorder %v7624_v53, 1 }
0x12b1   : > { %6759 = vmatpush.msk.msrb.mxu2 %vm10396_vm5, %v10309_v24  ;;  %vm10411_vm5 = vcmp.eq.s32.totalorder %v7651_v56, 1 }
0x12b3   : > { %6760 = vmatpush.msk.msrb.mxu2 %vm10397_vm9, %v10309_v24  ;;  %vm10412_vm9 = vcmp.eq.s32.totalorder %v7660_v57, 1 }
0x12b4   : > { %6700 = vmatmul.msk.f32.gmra.mxu2 %vm2622_vm10, %v4721_v18 }
0x12b5   : > { %6761 = vmatpush.msk.msrb.mxu2 %vm10398_vm8, %v10309_v24  ;;  %vm10413_vm8 = vcmp.eq.s32.totalorder %v7689_v60, 1 }
0x12b7   : > { %6762 = vmatpush.msk.msrb.mxu2 %vm10399_vm11, %v10309_v24  ;;  %vm10414_vm11 = vcmp.eq.s32.totalorder %v7716_v63, 1 }
0x12b9   : > { %6763 = vmatpush.msk.msrb.mxu2 %vm10400_vm13, %v10309_v24  ;;  %vm10415_vm13 = vcmp.eq.s32.totalorder %v10353_v12, 1 }
0x12bb   : > { %6764 = vmatpush.msk.msrb.mxu2 %vm10401_vm4, %v10309_v24  ;;  %vm10416_vm4 = vcmp.eq.s32.totalorder %v10356_v29, 1 }
0x12bd   : > { %6785 = vmatpush.msk.msra.mxu2 %vm10402_vm14, %v10309_v24  ;;  %vm10417_vm14 = vcmp.eq.s32.totalorder %v10359_v20, 1 }
0x12bf   : > { %6786 = vmatpush.msk.msra.mxu2 %vm10403_vm6, %v10309_v24  ;;  %vm10419_vm6 = vcmp.eq.s32.totalorder %v7551_v36, 4294967294 }
0x12c1   : > { %6787 = vmatpush.msk.msra.mxu2 %vm10404_vm7, %v10309_v24  ;;  %vm10420_vm7 = vcmp.eq.s32.totalorder %v7559_v39, 4294967294 }
0x12c3   : > { %6788 = vmatpush.msk.msra.mxu2 %vm10405_vm0, %v10309_v24  ;;  %vm10421_vm0 = vcmp.eq.s32.totalorder %v7566_v43, 4294967294 }
0x12c5   : > { %6789 = vmatpush.msk.msra.mxu2 %vm10406_vm1, %v10309_v24  ;;  %vm10422_vm1 = vcmp.eq.s32.totalorder %v7572_v44, 4294967294 }
0x12c7   : > { %6790 = vmatpush.msk.msra.mxu2 %vm10407_vm12, %v10309_v24  ;;  %vm10423_vm12 = vcmp.eq.s32.totalorder %v7575_v45, 4294967294 }
0x12c9   : > { %6791 = vmatpush.msk.msra.mxu2 %vm10408_vm2, %v10309_v24  ;;  %vm10424_vm2 = vcmp.eq.s32.totalorder %v7588_v47, 4294967294 }
0x12cb   : > { %6792 = vmatpush.msk.msra.mxu2 %vm10409_vm15, %v10309_v24  ;;  %vm10425_vm15 = vcmp.eq.s32.totalorder %v7596_v49, 4294967294 }
0x12cd   : > { %6793 = vmatpush.msk.msra.mxu2 %vm10410_vm3, %v10309_v24  ;;  %vm10426_vm3 = vcmp.eq.s32.totalorder %v7604_v51, 4294967294 }
0x12cf   : > { %6794 = vmatpush.msk.msra.mxu2 %vm10411_vm5, %v10309_v24  ;;  %vm10427_vm5 = vcmp.eq.s32.totalorder %v7624_v53, 4294967294 }
0x12d1   : > { %6795 = vmatpush.msk.msra.mxu2 %vm10412_vm9, %v10309_v24  ;;  %vm10428_vm9 = vcmp.eq.s32.totalorder %v7551_v36, 4294967295  ;;  %v4791_v36 = vld [vmem:[%s10418_s13 + $0x20] sm:$0xff] }
0x12d3   : > { %6796 = vmatpush.msk.msra.mxu2 %vm10413_vm8, %v10309_v24  ;;  %vm10429_vm8 = vcmp.eq.s32.totalorder %v7651_v56, 4294967294 }
0x12d5   : > { %6797 = vmatpush.msk.msra.mxu2 %vm10414_vm11, %v10309_v24  ;;  %vm10430_vm11 = vcmp.eq.s32.totalorder %v7559_v39, 4294967295  ;;  %v4793_v39 = vld [vmem:[%s10418_s13 + $0x30] sm:$0xff] }
0x12d7   : > { %6798 = vmatpush.msk.msra.mxu2 %vm10415_vm13, %v10309_v24  ;;  %vm10431_vm13 = vcmp.eq.s32.totalorder %v7660_v57, 4294967294 }
0x12d9   : > { %6799 = vmatpush.msk.msra.mxu2 %vm10416_vm4, %v10309_v24  ;;  %vm10432_vm4 = vcmp.eq.s32.totalorder %v7566_v43, 4294967295 }
0x12db   : > { %6800 = vmatpush.msk.msra.mxu2 %vm10417_vm14, %v10309_v24  ;;  %vm10433_vm14 = vcmp.eq.s32.totalorder %v7689_v60, 4294967294 }
0x131f   : > { %v4775_v8 = vpop.f32.mrf.mxu2 }
0x1320   : > { %v9472_v52 = vadd.f32 %v4775_v8, %v4729_v42 }
0x1322   : > { %4815 = vmatmul.f32.vlgmr.msra.gmra.mxu3 %v9472_v52  ;;  %4844 = vmatmul.f32.vlgmr.msrb.gmra.mxu0 %v9472_v52 }
0x1323   : > { %4873 = vmatmul.f32.vlgmr.msra.gmra.mxu1 %v9472_v52  ;;  %4902 = vmatmul.f32.vlgmr.msrb.gmra.mxu2 %v9472_v52 }
0x1327   : > { %v4778_v40 = vpop.f32.mrf.mxu2 }
0x1328   : > { %v9478_v58 = vadd.f32 %v4778_v40, %v4734_v41 }
0x132a   : > { %4818 = vmatmul.f32.gmra.mxu3 %v9478_v58  ;;  %4847 = vmatmul.f32.gmra.mxu0 %v9478_v58 }
0x132b   : > { %4876 = vmatmul.f32.gmra.mxu1 %v9478_v58  ;;  %4905 = vmatmul.f32.gmra.mxu2 %v9478_v58 }
0x132f   : > { %v4781_v30 = vpop.f32.mrf.mxu2 }
0x1330   : > { %v9484_v14 = vadd.f32 %v4781_v30, %v4739_v11 }
0x1332   : > { %4821 = vmatmul.f32.gmra.mxu3 %v9484_v14  ;;  %4850 = vmatmul.f32.gmra.mxu0 %v9484_v14 }
0x1333   : > { %4879 = vmatmul.f32.gmra.mxu1 %v9484_v14  ;;  %4908 = vmatmul.f32.gmra.mxu2 %v9484_v14 }
0x1337   : > { %v4784_v13 = vpop.f32.mrf.mxu2 }
0x1338   : > { %v9490_v21 = vadd.f32 %v4784_v13, %v4744_v25 }
0x133a   : > { %4824 = vmatmul.f32.gmra.mxu3 %v9490_v21  ;;  %4853 = vmatmul.f32.gmra.mxu0 %v9490_v21 }
0x133b   : > { %4882 = vmatmul.f32.gmra.mxu1 %v9490_v21  ;;  %4911 = vmatmul.f32.gmra.mxu2 %v9490_v21 }
0x139f   : > { %v4845_v5 = vpop.f32.mrf.mxu0 }
0x13a0   : > { %v4874_v23 = vpop.f32.mrf.mxu1 }
0x13a5   : > { %v4816_v50 = vpop.f32.mrf.mxu3 }
0x13a6   : > { %v4903_v55 = vpop.f32.mrf.mxu2 }
0x13a7   : > { %v4848_v6 = vpop.f32.mrf.mxu0 }
0x13a8   : > { %v4877_v7 = vpop.f32.mrf.mxu1 }
0x13ad   : > { %v4819_v4 = vpop.f32.mrf.mxu3 }
0x13ae   : > { %v4906_v37 = vpop.f32.mrf.mxu2 }
0x13af   : > { %v4851_v2 = vpop.f32.mrf.mxu0 }
0x13b0   : > { %v4880_v17 = vpop.f32.mrf.mxu1 }
0x13b5   : > { %v4822_v59 = vpop.f32.mrf.mxu3 }
0x13b6   : > { %v4909_v27 = vpop.f32.mrf.mxu2 }
0x13b7   : > { %v4854_v54 = vpop.f32.mrf.mxu0 }
0x13b8   : > { %v4883_v38 = vpop.f32.mrf.mxu1 }
0x13b9   : > { %4947 = vmatpush.msrb.mxu3 %v4883_v38  ;;  %v5008_v38 = vld [vmem:[%s10306_s10 + $0x18] sm:$0xff] }
0x13bb   : > { %4948 = vmatpush.msrb.mxu3 %v4880_v17 }
0x13bd   : > { %4949 = vmatpush.msrb.mxu3 %v4877_v7  ;;  %v4825_v32 = vpop.f32.mrf.mxu3 }
0x13be   : > { %v4912_v19 = vpop.f32.mrf.mxu2 }
0x13bf   : > { %4950 = vmatpush.msrb.mxu3 %v4874_v23  ;;  %4988 = vmatpush.msra.mxu0 %v4912_v19  ;;  %v5510_v19 = vld [vmem:[%s10451_s5 + $0x10] sm:$0xff] }
0x13c1   : > { %4951 = vmatpush.msrb.mxu3 %v9490_v21  ;;  %4989 = vmatpush.msra.mxu0 %v4909_v27 }
0x13c3   : > { %4952 = vmatpush.msrb.mxu3 %v9484_v14  ;;  %4990 = vmatpush.msra.mxu0 %v4906_v37 }
0x13c5   : > { %4953 = vmatpush.msrb.mxu3 %v9478_v58  ;;  %4991 = vmatpush.msra.mxu0 %v4903_v55 }
0x13c6   : > { %6765 = vmatmul.msk.f32.vlgmr.msra.gmra.mxu0 %vm2622_vm10, %v4788_v0  ;;  %v5515_v0 = vld [vmem:[%s10452_s6 + $0x18] sm:$0xff] }
0x13c7   : > { %4954 = vmatpush.msrb.mxu3 %v9472_v52  ;;  %6817 = vmatpush.msk.msrb.mxu0 %vm10419_vm6, %v10309_v24  ;;  %vm10434_vm6 = vcmp.eq.s32.totalorder %v7572_v44, 4294967295 }
0x13c9   : > { %4955 = vmatpush.msrb.mxu3 %v4854_v54  ;;  %6818 = vmatpush.msk.msrb.mxu0 %vm10420_vm7, %v10309_v24  ;;  %vm10435_vm7 = vcmp.eq.s32.totalorder %v7716_v63, 4294967294  ;;  %v5514_v54 = vld [vmem:[%s10452_s6 + $0x10] sm:$0xff] }
0x13cb   : > { %4956 = vmatpush.msrb.mxu3 %v4851_v2  ;;  %6819 = vmatpush.msk.msrb.mxu0 %vm10421_vm0, %v10309_v24  ;;  %vm10436_vm0 = vcmp.eq.s32.totalorder %v7575_v45, 4294967295  ;;  %v5511_v2 = vld [vmem:[%s10451_s5 + $0x18] sm:$0xff] }
0x13cd   : > { %4957 = vmatpush.msrb.mxu3 %v4848_v6  ;;  %6820 = vmatpush.msk.msrb.mxu0 %vm10422_vm1, %v10309_v24  ;;  %vm10437_vm1 = vcmp.eq.s32.totalorder %v10353_v12, 4294967294 }
0x13ce   : > { %6766 = vmatmul.msk.f32.gmra.mxu0 %vm2622_vm10, %v4790_v16  ;;  %v5513_v16 = vld [vmem:[%s10452_s6 + $0x8] sm:$0xff] }
0x13cf   : > { %4958 = vmatpush.msrb.mxu3 %v4845_v5  ;;  %6821 = vmatpush.msk.msrb.mxu0 %vm10423_vm12, %v10309_v24  ;;  %vm10438_vm12 = vcmp.eq.s32.totalorder %v7588_v47, 4294967295 }
0x13d1   : > { %4959 = vmatpush.msrb.mxu3 %v4825_v32  ;;  %6822 = vmatpush.msk.msrb.mxu0 %vm10424_vm2, %v10309_v24  ;;  %vm10439_vm2 = vcmp.eq.s32.totalorder %v10356_v29, 4294967294 }
0x13d3   : > { %4960 = vmatpush.msrb.mxu3 %v4822_v59  ;;  %6823 = vmatpush.msk.msrb.mxu0 %vm10425_vm15, %v10309_v24  ;;  %vm10440_vm15 = vcmp.eq.s32.totalorder %v7596_v49, 4294967295  ;;  %v4918_v49 = vpop.permute.xlu0 %4917  ;;  %v5509_v59 = vld [vmem:[%s10451_s5 + $0x8] sm:$0xff] }
0x13d5   : > { %4961 = vmatpush.msrb.mxu3 %v4819_v4  ;;  %6824 = vmatpush.msk.msrb.mxu0 %vm10426_vm3, %v10309_v24  ;;  %vm10441_vm3 = vcmp.eq.s32.totalorder %v10359_v20, 4294967294  ;;  %v5301_v4 = vld [vmem:[%s10316_s1 + $0x18] sm:$0xff] }
0x13d6   : > { %6767 = vmatmul.msk.f32.gmra.mxu0 %vm2622_vm10, %v4792_v26 }
0x13d7   : > { %4962 = vmatpush.msrb.mxu3 %v4816_v50  ;;  %6825 = vmatpush.msk.msrb.mxu0 %vm10427_vm5, %v10309_v24  ;;  %vm10442_vm5 = vcmp.eq.s32.totalorder %v7604_v51, 4294967295 }
0x13d8   : > { %4963 = vmatmul.f32.vlgmr.msrb.gmra.mxu3 %v4787_v22 }
0x13d9   : > { %6801 = vmatpush.msk.msra.mxu3 %vm10428_vm9, %v10309_v24  ;;  %6826 = vmatpush.msk.msrb.mxu0 %vm10429_vm8, %v10309_v24  ;;  %vm10443_vm9 = vcmp.eq.s32.totalorder %v7624_v53, 4294967295  ;;  %vm10444_vm8 = vcmp.eq.s32.totalorder %v7651_v56, 4294967295  ;;  %v4923_v53 = vpop.permute.xlu1 %4922 }
0x13db   : > { %6802 = vmatpush.msk.msra.mxu3 %vm10430_vm11, %v10309_v24  ;;  %6827 = vmatpush.msk.msrb.mxu0 %vm10431_vm13, %v10309_v24  ;;  %vm10445_vm11 = vcmp.eq.s32.totalorder %v7660_v57, 4294967295  ;;  %vm10446_vm13 = vcmp.eq.s32.totalorder %v7689_v60, 4294967295  ;;  %v4928_v60 = vpop.permute.xlu2 %4927  ;;  %v4933_v10 = vpop.permute.xlu0 %4932 }
0x13dd   : > { %6803 = vmatpush.msk.msra.mxu3 %vm10432_vm4, %v10309_v24  ;;  %6828 = vmatpush.msk.msrb.mxu0 %vm10433_vm14, %v10309_v24  ;;  %vm10447_vm4 = vcmp.eq.s32.totalorder %v7716_v63, 4294967295  ;;  %vm10448_vm14 = vcmp.eq.s32.totalorder %v10353_v12, 4294967295 }
0x13de   : > { %6768 = vmatmul.msk.f32.gmra.mxu0 %vm2622_vm10, %v4794_v34 }
0x13df   : > { %6804 = vmatpush.msk.msra.mxu3 %vm10434_vm6, %v10309_v24  ;;  %6829 = vmatpush.msk.msrb.mxu0 %vm10435_vm7, %v10309_v24  ;;  %vm10449_vm6 = vcmp.eq.s32.totalorder %v10356_v29, 4294967295  ;;  %vm10450_vm7 = vcmp.eq.s32.totalorder %v10359_v20, 4294967295 }
0x13e0   : > { %4966 = vmatmul.f32.gmra.mxu3 %v4789_v1 }
0x13e1   : > { %6805 = vmatpush.msk.msra.mxu3 %vm10436_vm0, %v10309_v24  ;;  %6830 = vmatpush.msk.msrb.mxu0 %vm10437_vm1, %v10309_v24 }
0x13e3   : > { %6806 = vmatpush.msk.msra.mxu3 %vm10438_vm12, %v10309_v24  ;;  %6831 = vmatpush.msk.msrb.mxu0 %vm10439_vm2, %v10309_v24 }
0x13e5   : > { %6807 = vmatpush.msk.msra.mxu3 %vm10440_vm15, %v10309_v24  ;;  %6832 = vmatpush.msk.msrb.mxu0 %vm10441_vm3, %v10309_v24 }
0x13e7   : > { %6808 = vmatpush.msk.msra.mxu3 %vm10442_vm5, %v10309_v24 }
0x13e8   : > { %4969 = vmatmul.f32.gmra.mxu3 %v4791_v36 }
0x13e9   : > { %6809 = vmatpush.msk.msra.mxu3 %vm10443_vm9, %v10309_v24 }
0x13eb   : > { %6810 = vmatpush.msk.msra.mxu3 %vm10444_vm8, %v10309_v24 }
0x13ed   : > { %6811 = vmatpush.msk.msra.mxu3 %vm10445_vm11, %v10309_v24 }
0x13ef   : > { %6812 = vmatpush.msk.msra.mxu3 %vm10446_vm13, %v10309_v24 }
0x13f0   : > { %4972 = vmatmul.f32.gmra.mxu3 %v4793_v39 }
0x13f1   : > { %6813 = vmatpush.msk.msra.mxu3 %vm10447_vm4, %v10309_v24 }
0x13f3   : > { %6814 = vmatpush.msk.msra.mxu3 %vm10448_vm14, %v10309_v24 }
0x13f5   : > { %6815 = vmatpush.msk.msra.mxu3 %vm10449_vm6, %v10309_v24 }
0x13f7   : > { %6816 = vmatpush.msk.msra.mxu3 %vm10450_vm7, %v10309_v24 }
0x1443   : > { %v4993_v43 = vpop.f32.mrf.mxu0 }
0x144b   : > { %v4996_v45 = vpop.f32.mrf.mxu0 }
0x1453   : > { %v4999_v51 = vpop.f32.mrf.mxu0 }
0x145b   : > { %v4964_v44 = vpop.f32.mrf.mxu3  ;;  %v5002_v24 = vpop.f32.mrf.mxu0 }
0x145c   : > { %v4965_v63 = vadd.f32 %v4964_v44, %v4918_v49 }
0x145e   : > { %v4994_v61 = vadd.f32 %v4993_v43, %v4965_v63  ;;  %v5085_v63 = vpop.permute.xlu0 %5084 }
0x1463   : > { %v4967_v47 = vpop.f32.mrf.mxu3 }
0x1464   : > { %v4968_v57 = vadd.f32 %v4967_v47, %v4923_v53 }
0x1466   : > { %v4997_v62 = vadd.f32 %v4996_v45, %v4968_v57 }
0x1468   : > { %v5013_v20 = vadd.f32 %v4997_v62, %v4994_v61 }
0x146b   : > { %v4970_v56 = vpop.f32.mrf.mxu3 }
0x146c   : > { %v4971_v35 = vadd.f32 %v4970_v56, %v4928_v60 }
0x146e   : > { %v5000_v12 = vadd.f32 %v4999_v51, %v4971_v35  ;;  %v5109_v35 = vpop.permute.xlu0 %5108 }
0x1470   : > { %v5014_v3 = vadd.f32 %v5013_v20, %v5000_v12 }
0x1473   : > { %v4973_v29 = vpop.f32.mrf.mxu3 }
0x1474   : > { %v4974_v48 = vadd.f32 %v4973_v29, %v4933_v10 }
0x1476   : > { %v5003_v33 = vadd.f32 %v5002_v24, %v4974_v48 }
0x1478   : > { %v5015_v15 = vadd.f32 %v5014_v3, %v5003_v33 }
0x147a   : > { %5016 = vadd.xlane.f32.xlu1 %v5015_v15 }
0x1493   : > { %5118 = vperm.xlu1 %6969, %v5011_v9  }
0x149b   : > { %5430 = vperm.xlu1 %6969, %v5300_v31  }
0x14ed   : > { %v5017_v28 = vpop.xlane.xlu1 %5016 }
0x14ee   : > { %v5018_v18 = vrot.slane %v5017_v28, 4 }
0x14f0   : > { %v5019_v42 = vadd.f32 %v5018_v18, %v5017_v28 }
0x14f2   : > { %v5020_v8 = vrot.slane %v5019_v42, 2 }
0x14f4   : > { %v5021_v41 = vadd.f32 %v5020_v8, %v5019_v42 }
0x14f6   : > { %v5022_v40 = vrot.slane %v5021_v41, 1 }
0x14f8   : > { %v5023_v11 = vadd.f32 %v5022_v40, %v5021_v41 }
0x14fa   : > { %6887 = vpush %v5023_v11 }
0x1505   : > { %v5119_v18 = vpop.permute.xlu1 %5118 }
0x152b   : > { %s6888_s2 = spop %6887 }
0x152c   : > { %s5033_s3 = smul.f32 %s6888_s2, %s8114_s26  ;;  %s10453_s2 = sld [smem:[#allocation41_spill]] }
0x152e   : > { %v5034_v30 = vstv %s5033_s3 }
0x152f   : > { %v9611_v25 = vsub.f32 %v4994_v61, %v5034_v30  ;;  %v9613_v13 = vsub.f32 %v4997_v62, %v5034_v30  ;;  %v9615_v23 = vsub.f32 %v5000_v12, %v5034_v30  ;;  %v9617_v55 = vsub.f32 %v5003_v33, %v5034_v30  ;;  %v5090_v62 = vpop.permute.xlu0 %5089 }
0x1531   : > { %v5039_v7 = vmul.f32 %v9611_v25, %v9611_v25  ;;  %v5040_v5 = vmul.f32 %v9613_v13, %v9613_v13  ;;  %v5041_v37 = vmul.f32 %v9615_v23, %v9615_v23  ;;  %v5042_v50 = vmul.f32 %v9617_v55, %v9617_v55 }
0x1532   : > { %v5802_v32 = vld [vmem:[%s10453_s2 + $0x8] sm:$0xff]  ;;  %v5804_v26 = vld [vmem:[%s10453_s2 + $0x18] sm:$0xff] }
0x1533   : > { %v5043_v17 = vadd.f32 %v5040_v5, %v5039_v7 }
0x1535   : > { %v5044_v6 = vadd.f32 %v5043_v17, %v5041_v37 }
0x1537   : > { %v5045_v27 = vadd.f32 %v5044_v6, %v5042_v50  ;;  %v5114_v10 = vpop.permute.xlu0 %5113 }
0x1539   : > { %5046 = vadd.xlane.f32.xlu2 %v5045_v27 }
0x153f   : > { %v5095_v61 = vpop.permute.xlu0 %5094 }
0x1547   : > { %v5124_v28 = vpop.permute.xlu0 %5123 }
0x1551   : > { %5099 = vperm.xlu2 %6970, %v5008_v38  }
0x1559   : > { %5435 = vperm.xlu2 %6970, %v5301_v4  }
0x1561   : > { %5602 = vperm.xlu2 %6970, %v5511_v2  }
0x1569   : > { %5597 = vperm.xlu2 %6970, %v5510_v19  }
0x1571   : > { %5626 = vperm.xlu2 %6970, %v5515_v0  }
0x1579   : > { %5592 = vperm.xlu2 %6970, %v5509_v59  }
0x1581   : > { %5621 = vperm.xlu2 %6970, %v5514_v54  }
0x1589   : > { %5616 = vperm.xlu2 %6970, %v5513_v16  }
0x1591   : > { %5812 = vperm.xlu2 %6970, %v5802_v32  }
0x1599   : > { %5822 = vperm.xlu2 %6970, %v5804_v26  }
0x15ac   : > { %v5047_v22 = vpop.xlane.xlu2 %5046 }
0x15ad   : > { %v5048_v34 = vrot.slane %v5047_v22, 4 }
0x15af   : > { %v5049_v1 = vadd.f32 %v5048_v34, %v5047_v22 }
0x15b1   : > { %v5050_v36 = vrot.slane %v5049_v1, 2 }
0x15b3   : > { %v5051_v39 = vadd.f32 %v5050_v36, %v5049_v1 }
0x15b4   : > { %v5100_v3 = vpop.permute.xlu2 %5099 }
0x15b5   : > { %v5052_v43 = vrot.slane %v5051_v39, 1 }
0x15b7   : > { %v5053_v44 = vadd.f32 %v5052_v43, %v5051_v39 }
0x15b9   : > { %6889 = vpush %v5053_v44 }
0x15ea   : > { %s6890_s3 = spop %6889 }
0x15eb   : > { %s5063_s1 = smul.f32 %s6890_s3, %s8114_s26 }
0x15ed   : > { %s5064_s9 = sadd.f32 1e-05, %s5063_s1 }
0x15ee   : > { %s10455_s1 = sld [smem:[#allocation43_spill]] }
0x15ef   : > { %v5065_v45 = vstv %s5064_s9  ;;  %s10454_s9 = sld [smem:[#allocation42_spill]] }
0x15f0   : > { %7064 = vrsqrt.f32 %v5065_v45  ;;  %vm5072_vm1 = vweird.f32 %v5065_v45 }
0x15f6   : > { %v7065_v47 = vpop.eup %7064 }
0x15f7   : > { %v5067_v49 = vmul.f32 %v7065_v47, %v5065_v45  ;;  %vm5073_vm0 = vweird.f32 %v7065_v47 }
0x15f8   : > { %vm5074_vm12 = vmor %vm5072_vm1, %vm5073_vm0 }
0x15f9   : > { %v5068_v51 = vmul.f32 %v7065_v47, %v5067_v49 }
0x15fb   : > { %v5069_v53 = vmul.f32 0.5, %v5068_v51 }
0x15fd   : > { %v5070_v56 = vsub.f32 1.5, %v5069_v53 }
0x15ff   : > { %v5071_v57 = vmul.f32 %v7065_v47, %v5070_v56 }
0x1601   : > { %v5075_v60 = vsel %vm5074_vm12, %v7065_v47, %v5071_v57 }
0x1602   : > { %6891 = vpush %v5075_v60 }
0x1633   : > { %s6892_s3 = spop %6891 }
0x1634   : > { %v5077_v12 = vstv %s6892_s3  ;;  %s10456_s3 = sld [smem:[#allocation21_spill]] }
0x1635   : > { %v5078_v29 = vmul.f32 %v5077_v12, %v9611_v25  ;;  %v5079_v24 = vmul.f32 %v5077_v12, %v9613_v13  ;;  %v5080_v20 = vmul.f32 %v5077_v12, %v9615_v23  ;;  %v5081_v48 = vmul.f32 %v5077_v12, %v9617_v55 }
0x1637   : > { %v5102_v33 = vmul.f32 %v5085_v63, %v5078_v29  ;;  %v5103_v15 = vmul.f32 %v5090_v62, %v5079_v24  ;;  %v5104_v9 = vmul.f32 %v5095_v61, %v5080_v20  ;;  %v5105_v31 = vmul.f32 %v5100_v3, %v5081_v48  ;;  %v5881_v29 = vld [vmem:[%s10454_s9 + $0x78] sm:$0xff]  ;;  %v5880_v24 = vld [vmem:[%s10454_s9 + $0x70] sm:$0xff] }
0x1638   : > { %5886 = vmatpush.msra.mxu0 %v5881_v29 }
0x1639   : > { %v9642_v42 = vadd.f32 %v5109_v35, %v5102_v33  ;;  %v9644_v8 = vadd.f32 %v5114_v10, %v5103_v15  ;;  %v9646_v41 = vadd.f32 %v5119_v18, %v5104_v9  ;;  %v9648_v40 = vadd.f32 %v5124_v28, %v5105_v31  ;;  %v5879_v31 = vld [vmem:[%s10454_s9 + $0x68] sm:$0xff] }
0x163a   : > { %5887 = vmatpush.msra.mxu0 %v5880_v24 }
0x163b   : > { %v9651_v11 = vmul.f32 0.70710677, %v9642_v42  ;;  %v9654_v30 = vmul.f32 0.70710677, %v9644_v8  ;;  %v9657_v25 = vmul.f32 0.70710677, %v9646_v41 }
0x163c   : > { %v9660_v13 = vmul.f32 0.70710677, %v9648_v40  ;;  %5888 = vmatpush.msra.mxu0 %v5879_v31 }
0x163d   : > { %v9663_v23 = vand.u32 2147483647, %v9651_v11  ;;  %v9666_v55 = vand.u32 2147483647, %v9654_v30  ;;  %v9669_v7 = vand.u32 2147483647, %v9657_v25 }
0x163e   : > { %v9672_v5 = vand.u32 2147483647, %v9660_v13 }
0x163f   : > { %v5150_v37 = vmul.f32 0.3275911, %v9663_v23  ;;  %v5151_v17 = vmul.f32 0.3275911, %v9666_v55  ;;  %v5152_v50 = vmul.f32 0.3275911, %v9669_v7 }
0x1640   : > { %v5153_v6 = vmul.f32 0.3275911, %v9672_v5  ;;  %v5254_v54 = vsub.f32 0.0, %v9663_v23  ;;  %v5255_v26 = vsub.f32 0.0, %v9666_v55 }
0x1641   : > { %v5154_v27 = vadd.f32 1.0, %v5150_v37  ;;  %v5155_v38 = vadd.f32 1.0, %v5151_v17  ;;  %v5156_v4 = vadd.f32 1.0, %v5152_v50 }
0x1642   : > { %v9678_v2 = vadd.f32 1.0, %v5153_v6 }
0x1643   : > { %7066 = vrcp.f32 %v5154_v27  ;;  %v5169_v0 = vand.u32 2147483648, %v5154_v27  ;;  %v5184_v59 = vand.u32 2147483648, %v5155_v38  ;;  %vm5163_vm2 = vweird.f32 %v5154_v27 }
0x1644   : > { %7068 = vrcp.f32 %v5155_v38  ;;  %vm5178_vm15 = vweird.f32 %v5155_v38  ;;  %vm5193_vm3 = vweird.f32 %v5156_v4  ;;  %v5199_v1 = vand.u32 2147483648, %v5156_v4 }
0x1645   : > { %7070 = vrcp.f32 %v5156_v4  ;;  %vm5208_vm5 = vweird.f32 %v9678_v2  ;;  %v5214_v44 = vand.u32 2147483648, %v9678_v2  ;;  %v5167_v45 = vand.u32 2147483647, %v5154_v27 }
0x1646   : > { %7072 = vrcp.f32 %v9678_v2  ;;  %v5170_v51 = vor.u32 1.1754944e-38, %v5169_v0  ;;  %v5185_v53 = vor.u32 1.1754944e-38, %v5184_v59  ;;  %v5182_v60 = vand.u32 2147483647, %v5155_v38 }
0x1647   : > { %v5197_v62 = vand.u32 2147483647, %v5156_v4  ;;  %vm5168_vm11 = vcmp.eq.f32.partialorder %v5167_v45, 8.507059e+37  ;;  %v5212_v48 = vand.u32 2147483647, %v9678_v2  ;;  %v5200_v15 = vor.u32 1.1754944e-38, %v5199_v1 }
0x1648   : > { %vm5183_vm7 = vcmp.eq.f32.partialorder %v5182_v60, 8.507059e+37  ;;  %v5215_v6 = vor.u32 1.1754944e-38, %v5214_v44  ;;  %v5876_v44 = vld [vmem:[%s10454_s9 + $0x50] sm:$0xff] }
0x1649   : > { %v7067_v19 = vpop.eup %7066  ;;  %vm5198_vm1 = vcmp.eq.f32.partialorder %v5197_v62, 8.507059e+37 }
0x164a   : > { %v7069_v16 = vpop.eup %7068  ;;  %v5159_v32 = vmul.f32 %v7067_v19, %v5154_v27  ;;  %vm5164_vm9 = vweird.f32 %v7067_v19  ;;  %v5878_v27 = vld [vmem:[%s10454_s9 + $0x60] sm:$0xff] }
0x164b   : > { %v7071_v22 = vpop.eup %7070  ;;  %v5174_v34 = vmul.f32 %v7069_v16, %v5155_v38  ;;  %vm5179_vm8 = vweird.f32 %v7069_v16  ;;  %vm5165_vm4 = vmor %vm5163_vm2, %vm5164_vm9  ;;  %vm5213_vm2 = vcmp.eq.f32.partialorder %v5212_v48, 8.507059e+37  ;;  %5889 = vmatpush.msra.mxu0 %v5878_v27  ;;  %v5873_v48 = vld [vmem:[%s10454_s9 + $0x38] sm:$0xff]  ;;  %vm5141_vm9 = vcmp.ge.f32.partialorder %v9660_v13, 0.0  ;;  %v7125_v13 = vld [vmem:[%s8267_s23] sm:$0xff]  ;;  %s10457_s23 = sld [smem:[#allocation44_spill]] }
0x164c   : > { %v7073_v36 = vpop.eup %7072  ;;  %v5160_v39 = vsub.f32 1.0, %v5159_v32  ;;  %v5189_v43 = vmul.f32 %v7071_v22, %v5156_v4  ;;  %vm5194_vm13 = vweird.f32 %v7071_v22  ;;  %vm5180_vm6 = vmor %vm5178_vm15, %vm5179_vm8  ;;  %vm5138_vm15 = vcmp.ge.f32.partialorder %v9651_v11, 0.0 }
0x164d   : > { %v5175_v47 = vsub.f32 1.0, %v5174_v34  ;;  %v5204_v49 = vmul.f32 %v7073_v36, %v9678_v2  ;;  %vm5209_vm14 = vweird.f32 %v7073_v36  ;;  %vm5195_vm0 = vmor %vm5193_vm3, %vm5194_vm13  ;;  %v5258_v2 = vmul.f32 %v5254_v54, %v9663_v23 }
0x164e   : > { %v5161_v56 = vmul.f32 %v7067_v19, %v5160_v39  ;;  %v5190_v57 = vsub.f32 1.0, %v5189_v43  ;;  %vm5210_vm12 = vmor %vm5208_vm5, %vm5209_vm14  ;;  %v5259_v34 = vmul.f32 %v5255_v26, %v9666_v55  ;;  %v5877_v43 = vld [vmem:[%s10454_s9 + $0x58] sm:$0xff]  ;;  %v5256_v54 = vsub.f32 0.0, %v9669_v7 }
0x164f   : > { %v5176_v63 = vmul.f32 %v7069_v16, %v5175_v47  ;;  %v5205_v35 = vsub.f32 1.0, %v5204_v49  ;;  %5890 = vmatpush.msra.mxu0 %v5877_v43  ;;  %v5262_v49 = vmul.f32 1.442695, %v5258_v2  ;;  %vm5139_vm3 = vcmp.ge.f32.partialorder %v9654_v30, 0.0 }
0x1650   : > { %v5191_v10 = vmul.f32 %v7071_v22, %v5190_v57  ;;  %v5162_v61 = vadd.f32 %v7067_v19, %v5161_v56  ;;  %v5264_v26 = vmul.f32 1.442695, %v5259_v34  ;;  %v5869_v34 = vld [vmem:[%s10454_s9 + $0x18] sm:$0xff]  ;;  %v5143_v30 = vsel %vm5139_vm3, 1.0, %v10326_v46 }
0x1651   : > { %v5206_v12 = vmul.f32 %v7073_v36, %v5205_v35  ;;  %v5177_v20 = vadd.f32 %v7069_v16, %v5176_v63  ;;  %5891 = vmatpush.msra.mxu0 %v5876_v44  ;;  %v5874_v63 = vld [vmem:[%s10454_s9 + $0x40] sm:$0xff]  ;;  %7074 = vpow2.f32 %v5262_v49  ;;  %vm5140_vm5 = vcmp.ge.f32.partialorder %v9657_v25, 0.0 }
0x1652   : > { %v5166_v3 = vsel %vm5165_vm4, %v7067_v19, %v5162_v61  ;;  %v5192_v33 = vadd.f32 %v7071_v22, %v5191_v10  ;;  %v5260_v61 = vmul.f32 %v5256_v54, %v9669_v7  ;;  %7076 = vpow2.f32 %v5264_v26 }
0x1653   : > { %v9692_v9 = vsel %vm5168_vm11, %v5170_v51, %v5166_v3  ;;  %v5181_v28 = vsel %vm5180_vm6, %v7069_v16, %v5177_v20  ;;  %v5207_v18 = vadd.f32 %v7073_v36, %v5206_v12  ;;  %v5872_v3 = vld [vmem:[%s10454_s9 + $0x30] sm:$0xff]  ;;  %v5257_v7 = vsub.f32 0.0, %v9672_v5 }
0x1654   : > { %v5218_v37 = vmul.f32 1.0614054, %v9692_v9  ;;  %v9698_v17 = vsel %vm5183_vm7, %v5185_v53, %v5181_v28  ;;  %v5196_v50 = vsel %vm5195_vm0, %v7071_v22, %v5192_v33  ;;  %v5875_v53 = vld [vmem:[%s10454_s9 + $0x48] sm:$0xff]  ;;  %v5266_v28 = vmul.f32 1.442695, %v5260_v61 }
0x1655   : > { %v5219_v38 = vmul.f32 1.0614054, %v9698_v17  ;;  %v9705_v19 = vsel %vm5198_vm1, %v5200_v15, %v5196_v50  ;;  %v5211_v4 = vsel %vm5210_vm12, %v7073_v36, %v5207_v18  ;;  %5892 = vmatpush.msra.mxu0 %v5875_v53 }
0x1656   : > { %v5222_v0 = vadd.f32 -1.4531521, %v5218_v37  ;;  %v5220_v59 = vmul.f32 1.0614054, %v9705_v19  ;;  %v9708_v16 = vsel %vm5213_vm2, %v5215_v6, %v5211_v4  ;;  %v5871_v37 = vld [vmem:[%s10454_s9 + $0x28] sm:$0xff]  ;;  %7078 = vpow2.f32 %v5266_v28 }
0x1657   : > { %v5223_v32 = vadd.f32 -1.4531521, %v5219_v38  ;;  %v5221_v22 = vmul.f32 1.0614054, %v9708_v16  ;;  %5893 = vmatpush.msra.mxu0 %v5874_v63  ;;  %v7075_v6 = vpop.eup %7074  ;;  %v5870_v38 = vld [vmem:[%s10454_s9 + $0x20] sm:$0xff] }
0x1658   : > { %v5226_v1 = vmul.f32 %v5222_v0, %v9692_v9  ;;  %v5224_v36 = vadd.f32 -1.4531521, %v5220_v59  ;;  %v7077_v4 = vpop.eup %7076 }
0x1659   : > { %v5227_v39 = vmul.f32 %v5223_v32, %v9698_v17  ;;  %v5225_v45 = vadd.f32 -1.4531521, %v5221_v22  ;;  %5894 = vmatpush.msra.mxu0 %v5873_v48  ;;  %v5261_v32 = vmul.f32 %v5257_v7, %v9672_v5  ;;  %v5867_v5 = vld [vmem:[%s10454_s9 + $0x8] sm:$0xff] }
0x165a   : > { %v5230_v47 = vadd.f32 1.4214138, %v5226_v1  ;;  %v5228_v23 = vmul.f32 %v5224_v36, %v9705_v19  ;;  %v5868_v1 = vld [vmem:[%s10454_s9 + $0x10] sm:$0xff] }
0x165b   : > { %v5231_v51 = vadd.f32 1.4214138, %v5227_v39  ;;  %v5229_v55 = vmul.f32 %v5225_v45, %v9708_v16  ;;  %5895 = vmatpush.msra.mxu0 %v5872_v3  ;;  %v5268_v44 = vmul.f32 1.442695, %v5261_v32  ;;  %v5130_v45 = vmul.f32 0.5, %v9642_v42  ;;  %v5295_v32 = vld [vmem:[%s10456_s3 + $0x28] sm:$0xff] }
0x165c   : > { %v5234_v56 = vmul.f32 %v5230_v47, %v9692_v9  ;;  %v5232_v57 = vadd.f32 1.4214138, %v5228_v23  ;;  %v7079_v23 = vpop.eup %7078 }
0x165d   : > { %v5235_v60 = vmul.f32 %v5231_v51, %v9698_v17  ;;  %v5233_v10 = vadd.f32 1.4214138, %v5229_v55  ;;  %5896 = vmatpush.msra.mxu0 %v5871_v37  ;;  %7080 = vpow2.f32 %v5268_v44  ;;  %v6973_v37 = vld [vmem:[%s10455_s1] ss:$0 sm:$0xff]  ;;  %v5292_v44 = vld [vmem:[%s10456_s3 + $0x10] sm:$0xff] }
0x165e   : > { %v5238_v35 = vadd.f32 -0.28449672, %v5234_v56  ;;  %v5236_v62 = vmul.f32 %v5232_v57, %v9705_v19  ;;  %v5131_v56 = vmul.f32 0.5, %v9644_v8  ;;  %v5132_v8 = vmul.f32 0.5, %v9646_v41 }
0x165f   : > { %v5239_v12 = vadd.f32 -0.28449672, %v5235_v60  ;;  %v5237_v31 = vmul.f32 %v5233_v10, %v9708_v16  ;;  %5897 = vmatpush.msra.mxu0 %v5870_v38  ;;  %v5144_v60 = vsel %vm5140_vm5, 1.0, %v10326_v46  ;;  %v5145_v10 = vsel %vm5141_vm9, 1.0, %v10326_v46 }
0x1660   : > { %v5242_v29 = vmul.f32 %v5238_v35, %v9692_v9  ;;  %v5240_v24 = vadd.f32 -0.28449672, %v5236_v62 }
0x1661   : > { %v5243_v20 = vmul.f32 %v5239_v12, %v9698_v17  ;;  %v5241_v2 = vadd.f32 -0.28449672, %v5237_v31  ;;  %5898 = vmatpush.msra.mxu0 %v5869_v34  ;;  %v5297_v34 = vld [vmem:[%s10456_s3 + $0x38] sm:$0xff] }
0x1662   : > { %v5246_v33 = vadd.f32 0.2548296, %v5242_v29  ;;  %v5244_v15 = vmul.f32 %v5240_v24, %v9705_v19  ;;  %v5133_v24 = vmul.f32 0.5, %v9648_v40 }
0x1663   : > { %v5247_v18 = vadd.f32 0.2548296, %v5243_v20  ;;  %v5245_v43 = vmul.f32 %v5241_v2, %v9708_v16  ;;  %5899 = vmatpush.msra.mxu0 %v5868_v1  ;;  %v7081_v57 = vpop.eup %7080  ;;  %v5911_v2 = vld [vmem:[%s7469_s20 + $0x8] sm:$0xff] }
0x1664   : > { %v5250_v50 = vmul.f32 %v5246_v33, %v9692_v9  ;;  %v5248_v59 = vadd.f32 0.2548296, %v5244_v15 }
0x1665   : > { %v5251_v27 = vmul.f32 %v5247_v18, %v9698_v17  ;;  %v5142_v17 = vsel %vm5138_vm15, 1.0, %v10326_v46  ;;  %v5249_v53 = vadd.f32 0.2548296, %v5245_v43  ;;  %5900 = vmatpush.msra.mxu0 %v5867_v5  ;;  %v7128_v43 = vld [vmem:[%s8241_s18 + $0x68] sm:$0xff]  ;;  %v7129_v5 = vld [vmem:[%s8241_s18 + $0x60] sm:$0xff] }
0x1666   : > { %v5270_v0 = vmul.f32 %v7075_v6, %v5250_v50  ;;  %v5252_v11 = vmul.f32 %v5248_v59, %v9705_v19  ;;  %v5866_v19 = vld [vmem:[%s10454_s9] sm:$0xff]  ;;  %v5291_v50 = vld [vmem:[%s10456_s3 + $0x8] sm:$0xff]  ;;  %v5293_v59 = vld [vmem:[%s10456_s3 + $0x18] sm:$0xff] }
0x1667   : > { %v5271_v22 = vmul.f32 %v7077_v4, %v5251_v27  ;;  %v5253_v26 = vmul.f32 %v5249_v53, %v9708_v16  ;;  %5901 = vmatpush.msra.mxu0 %v5866_v19  ;;  %v7136_v53 = vld [vmem:[%s8241_s18 + $0x28] sm:$0xff]  ;;  %v5296_v19 = vld [vmem:[%s10456_s3 + $0x30] sm:$0xff] }
0x1668   : > { %v5274_v9 = vsub.f32 1.0, %v5270_v0  ;;  %v5272_v51 = vmul.f32 %v7079_v23, %v5252_v11  ;;  %v7127_v11 = vld [vmem:[%s8241_s18 + $0x70] sm:$0xff]  ;;  %v7132_v23 = vld [vmem:[%s8241_s18 + $0x48] sm:$0xff] }
0x1669   : > { %v5275_v39 = vsub.f32 1.0, %v5271_v22  ;;  %v5273_v62 = vmul.f32 %v7081_v57, %v5253_v26  ;;  %v7139_v26 = vld [vmem:[%s8241_s18 + $0x10] sm:$0xff]  ;;  %v5906_v57 = vld [vmem:[%s10457_s23] sm:$0xff] }
0x166a   : > { %v5278_v36 = vmul.f32 %v5274_v9, %v5142_v17  ;;  %v5276_v55 = vsub.f32 1.0, %v5272_v51  ;;  %v6107_v17 = vld [vmem:[%s7479_s27 + $0x8] sm:$0xff]  ;;  %v7135_v51 = vld [vmem:[%s8241_s18 + $0x30] sm:$0xff] }
0x166b   : > { %v5279_v49 = vmul.f32 %v5275_v39, %v5143_v30  ;;  %v5277_v16 = vsub.f32 1.0, %v5273_v62  ;;  %v7126_v39 = vld [vmem:[%s8241_s18 + $0x78] sm:$0xff]  ;;  %v5294_v30 = vld [vmem:[%s10456_s3 + $0x20] sm:$0xff]  ;;  %v5421_v62 = vpop.permute.xlu0 %5420 }
0x166c   : > { %v5282_v47 = vadd.f32 1.0, %v5278_v36  ;;  %v5280_v35 = vmul.f32 %v5276_v55, %v5144_v60  ;;  %v5290_v36 = vld [vmem:[%s10456_s3] sm:$0xff]  ;;  %v7138_v55 = vld [vmem:[%s8241_s18 + $0x18] sm:$0xff] }
0x166d   : > { %v5283_v42 = vadd.f32 1.0, %v5279_v49  ;;  %v5281_v12 = vmul.f32 %v5277_v16, %v5145_v10  ;;  %v7134_v49 = vld [vmem:[%s8241_s18 + $0x38] sm:$0xff]  ;;  %v7141_v60 = vld [vmem:[%s8241_s18] sm:$0xff] }
0x166e   : > { %v9752_v54 = vmul.f32 %v5282_v47, %v5130_v45  ;;  %v5284_v25 = vadd.f32 1.0, %v5280_v35  ;;  %v7130_v45 = vld [vmem:[%s8241_s18 + $0x58] sm:$0xff]  ;;  %v7131_v47 = vld [vmem:[%s8241_s18 + $0x50] sm:$0xff] }
0x166f   : > { %v9763_v63 = vmul.f32 %v5283_v42, %v5131_v56  ;;  %v5285_v29 = vadd.f32 1.0, %v5281_v12  ;;  %v7137_v42 = vld [vmem:[%s8241_s18 + $0x20] sm:$0xff]  ;;  %v7140_v56 = vld [vmem:[%s8241_s18 + $0x8] sm:$0xff] }
0x1670   : > { %5318 = vmatmul.f32.vlgmr.msrb.gmra.mxu1 %v9752_v54  ;;  %5347 = vmatmul.f32.vlgmr.msra.gmra.mxu2 %v9752_v54  ;;  %v5288_v61 = vmul.f32 %v5284_v25, %v5132_v8 }
0x1671   : > { %5376 = vmatmul.f32.vlgmr.msra.gmra.mxu3 %v9752_v54  ;;  %5405 = vmatmul.f32.vlgmr.msrb.gmra.mxu0 %v9752_v54  ;;  %v5289_v20 = vmul.f32 %v5285_v29, %v5133_v24  ;;  %v5431_v29 = vpop.permute.xlu1 %5430 }
0x1673   : > { %v5426_v10 = vpop.permute.xlu0 %5425 }
0x1678   : > { %5321 = vmatmul.f32.gmra.mxu1 %v9763_v63  ;;  %5350 = vmatmul.f32.gmra.mxu2 %v9763_v63 }
0x1679   : > { %5379 = vmatmul.f32.gmra.mxu3 %v9763_v63  ;;  %5408 = vmatmul.f32.gmra.mxu0 %v9763_v63 }
0x1680   : > { %5324 = vmatmul.f32.gmra.mxu1 %v5288_v61  ;;  %5353 = vmatmul.f32.gmra.mxu2 %v5288_v61 }
0x1681   : > { %5382 = vmatmul.f32.gmra.mxu3 %v5288_v61  ;;  %5411 = vmatmul.f32.gmra.mxu0 %v5288_v61 }
0x1688   : > { %5327 = vmatmul.f32.gmra.mxu1 %v5289_v20  ;;  %5356 = vmatmul.f32.gmra.mxu2 %v5289_v20 }
0x1689   : > { %5385 = vmatmul.f32.gmra.mxu3 %v5289_v20  ;;  %5414 = vmatmul.f32.gmra.mxu0 %v5289_v20 }
0x1691   : > { %5902 = vmatmul.f32.vlgmr.msra.gmra.mxu0 %v7125_v13 }
0x16ed   : > { %v5319_v28 = vpop.f32.mrf.mxu1 }
0x16ee   : > { %v5406_v48 = vpop.f32.mrf.mxu0 }
0x16f3   : > { %v5348_v15 = vpop.f32.mrf.mxu2 }
0x16f4   : > { %v5377_v41 = vpop.f32.mrf.mxu3 }
0x16f5   : > { %v5322_v4 = vpop.f32.mrf.mxu1 }
0x16f6   : > { %v5409_v3 = vpop.f32.mrf.mxu0 }
0x16fb   : > { %v5351_v40 = vpop.f32.mrf.mxu2 }
0x16fc   : > { %v5380_v33 = vpop.f32.mrf.mxu3 }
0x16fd   : > { %v5325_v22 = vpop.f32.mrf.mxu1 }
0x16fe   : > { %v5412_v31 = vpop.f32.mrf.mxu0 }
0x1703   : > { %v5354_v0 = vpop.f32.mrf.mxu2 }
0x1704   : > { %v5383_v7 = vpop.f32.mrf.mxu3 }
0x1705   : > { %v5328_v1 = vpop.f32.mrf.mxu1 }
0x1706   : > { %v5415_v18 = vpop.f32.mrf.mxu0 }
0x1707   : > { %5491 = vmatpush.msrb.mxu2 %v5415_v18  ;;  %6857 = vmatpush.msrb.mxu3 %v5415_v18 }
0x1709   : > { %5492 = vmatpush.msrb.mxu2 %v5412_v31  ;;  %6858 = vmatpush.msrb.mxu3 %v5412_v31 }
0x170b   : > { %5493 = vmatpush.msrb.mxu2 %v5409_v3  ;;  %6859 = vmatpush.msrb.mxu3 %v5409_v3  ;;  %v5357_v9 = vpop.f32.mrf.mxu2 }
0x170c   : > { %v5386_v6 = vpop.f32.mrf.mxu3 }
0x170d   : > { %5450 = vmatpush.msra.mxu1 %v5386_v6  ;;  %5494 = vmatpush.msrb.mxu2 %v5406_v48  ;;  %v5508_v6 = vld [vmem:[%s10451_s5] sm:$0xff] }
0x170e   : > { %6860 = vmatpush.msrb.mxu3 %v5406_v48  ;;  %v5903_v27 = vpop.f32.mrf.mxu0  ;;  %6833 = vmatmul.msk.f32.vlgmr.msrb.gmra.mxu2 %vm2622_vm10, %v5291_v50 }
0x170f   : > { %v9777_v38 = vadd.f32 %v6973_v37, %v5903_v27  ;;  %5451 = vmatpush.msra.mxu1 %v5383_v7  ;;  %6835 = vmatmul.msk.f32.vlgmr.msrb.gmra.mxu3 %vm2622_vm10, %v5295_v32  ;;  %v5908_v37 = vld [vmem:[%s10457_s23 + $0x10] sm:$0xff]  ;;  %v5801_v27 = vld [vmem:[%s10453_s2] sm:$0xff] }
0x1711   : > { %6032 = vrot.lane.b32.xlu2 %v9777_v38, %s10303_s8  ;;  %5452 = vmatpush.msra.mxu1 %v5380_v33 }
0x1713   : > { %5453 = vmatpush.msra.mxu1 %v5377_v41  ;;  %v5436_v41 = vpop.permute.xlu2 %5435 }
0x1715   : > { %5454 = vmatpush.msra.mxu1 %v5289_v20 }
0x1716   : > { %6834 = vmatmul.msk.f32.gmra.mxu2 %vm2622_vm10, %v5293_v59  ;;  %v6106_v59 = vld [vmem:[%s7479_s27] sm:$0xff] }
0x1717   : > { %5455 = vmatpush.msra.mxu1 %v5288_v61  ;;  %6836 = vmatmul.msk.f32.gmra.mxu3 %vm2622_vm10, %v5297_v34 }
0x1719   : > { %5921 = vperm.xlu2 %6970, %v5911_v2   ;;  %5456 = vmatpush.msra.mxu1 %v9763_v63  ;;  %v5907_v63 = vld [vmem:[%s10457_s23 + $0x8] sm:$0xff]  ;;  %v6109_v2 = vld [vmem:[%s7479_s27 + $0x18] sm:$0xff] }
0x171b   : > { %5457 = vmatpush.msra.mxu1 %v9752_v54  ;;  %v7133_v54 = vld [vmem:[%s8241_s18 + $0x40] sm:$0xff] }
0x171d   : > { %5458 = vmatpush.msra.mxu1 %v5357_v9 }
0x171f   : > { %5459 = vmatpush.msra.mxu1 %v5354_v0  ;;  %v5912_v0 = vld [vmem:[%s7469_s20 + $0x10] sm:$0xff] }
0x1721   : > { %6117 = vperm.xlu2 %6970, %v6107_v17   ;;  %5460 = vmatpush.msra.mxu1 %v5351_v40 }
0x1723   : > { %5461 = vmatpush.msra.mxu1 %v5348_v15 }
0x1725   : > { %5462 = vmatpush.msra.mxu1 %v5328_v1 }
0x1727   : > { %5463 = vmatpush.msra.mxu1 %v5325_v22 }
0x1729   : > { %5464 = vmatpush.msra.mxu1 %v5322_v4  ;;  %v5803_v4 = vld [vmem:[%s10453_s2 + $0x10] sm:$0xff] }
0x172b   : > { %5465 = vmatpush.msra.mxu1 %v5319_v28 }
0x172c   : > { %5466 = vmatmul.f32.vlgmr.msra.gmra.mxu1 %v5290_v36 }
0x172d   : > { %5934 = vmatpush.msrb.mxu1 %v7126_v39 }
0x172f   : > { %5935 = vmatpush.msrb.mxu1 %v7127_v11 }
0x1731   : > { %5936 = vmatpush.msrb.mxu1 %v7128_v43 }
0x1733   : > { %5937 = vmatpush.msrb.mxu1 %v7129_v5 }
0x1734   : > { %5469 = vmatmul.f32.gmra.mxu1 %v5292_v44 }
0x1735   : > { %5938 = vmatpush.msrb.mxu1 %v7130_v45 }
0x1737   : > { %5939 = vmatpush.msrb.mxu1 %v7131_v47 }
0x1739   : > { %5940 = vmatpush.msrb.mxu1 %v7132_v23  ;;  %v5909_v23 = vld [vmem:[%s10457_s23 + $0x18] sm:$0xff] }
0x173b   : > { %5941 = vmatpush.msrb.mxu1 %v7133_v54 }
0x173c   : > { %5472 = vmatmul.f32.gmra.mxu1 %v5294_v30 }
0x173d   : > { %5942 = vmatpush.msrb.mxu1 %v7134_v49 }
0x173f   : > { %5943 = vmatpush.msrb.mxu1 %v7135_v51 }
0x1741   : > { %5944 = vmatpush.msrb.mxu1 %v7136_v53 }
0x1743   : > { %5945 = vmatpush.msrb.mxu1 %v7137_v42  ;;  %v5910_v42 = vld [vmem:[%s7469_s20] sm:$0xff] }
0x1744   : > { %5475 = vmatmul.f32.gmra.mxu1 %v5296_v19  ;;  %v5512_v19 = vld [vmem:[%s10452_s6] sm:$0xff] }
0x1745   : > { %5946 = vmatpush.msrb.mxu1 %v7138_v55  ;;  %v5913_v55 = vld [vmem:[%s7469_s20 + $0x18] sm:$0xff] }
0x1747   : > { %5947 = vmatpush.msrb.mxu1 %v7139_v26  ;;  %v6108_v26 = vld [vmem:[%s7479_s27 + $0x10] sm:$0xff] }
0x1749   : > { %5948 = vmatpush.msrb.mxu1 %v7140_v56 }
0x174b   : > { %5949 = vmatpush.msrb.mxu1 %v7141_v60 }
0x174c   : > { %5950 = vmatmul.f32.vlgmr.msrb.gmra.mxu1 %v5906_v57 }
0x1754   : > { %5953 = vmatmul.f32.gmra.mxu1 %v5907_v63 }
0x175c   : > { %5956 = vmatmul.f32.gmra.mxu1 %v5908_v37 }
0x1764   : > { %5959 = vmatmul.f32.gmra.mxu1 %v5909_v23 }
0x1791   : > { %v5496_v25 = vpop.f32.mrf.mxu2 }
0x1792   : > { %v5502_v8 = vpop.f32.mrf.mxu3 }
0x1799   : > { %v5499_v24 = vpop.f32.mrf.mxu2 }
0x179a   : > { %v5505_v31 = vpop.f32.mrf.mxu3 }
0x17a9   : > { %v5467_v35 = vpop.f32.mrf.mxu1 }
0x17aa   : > { %v5468_v20 = vadd.f32 %v5467_v35, %v5421_v62 }
0x17ac   : > { %v5497_v3 = vadd.f32 %v5496_v25, %v5468_v20 }
0x17b1   : > { %v5470_v16 = vpop.f32.mrf.mxu1 }
0x17b2   : > { %v5471_v12 = vadd.f32 %v5470_v16, %v5426_v10 }
0x17b4   : > { %v5500_v48 = vadd.f32 %v5499_v24, %v5471_v12 }
0x17b6   : > { %v5516_v7 = vadd.f32 %v5500_v48, %v5497_v3 }
0x17b9   : > { %v5473_v61 = vpop.f32.mrf.mxu1 }
0x17ba   : > { %v5474_v13 = vadd.f32 %v5473_v61, %v5431_v29 }
0x17bc   : > { %v5503_v33 = vadd.f32 %v5502_v8, %v5474_v13  ;;  %v5603_v13 = vpop.permute.xlu2 %5602 }
0x17be   : > { %v5517_v18 = vadd.f32 %v5516_v7, %v5503_v33 }
0x17c1   : > { %v5476_v15 = vpop.f32.mrf.mxu1 }
0x17c2   : > { %v5477_v28 = vadd.f32 %v5476_v15, %v5436_v41 }
0x17c4   : > { %v5506_v40 = vadd.f32 %v5505_v31, %v5477_v28 }
0x17c6   : > { %v5518_v50 = vadd.f32 %v5517_v18, %v5506_v40 }
0x17c8   : > { %5519 = vadd.xlane.f32.xlu0 %v5518_v50 }
0x17dc   : > { %5587 = vperm.xlu0 %6968, %v5508_v6  }
0x17e4   : > { %5807 = vperm.xlu0 %6968, %v5801_v27  }
0x17ec   : > { %5817 = vperm.xlu0 %6968, %v5803_v4  }
0x17f4   : > { %5926 = vperm.xlu0 %6968, %v5912_v0  }
0x17fc   : > { %6112 = vperm.xlu0 %6968, %v6106_v59  }
0x1804   : > { %6127 = vperm.xlu0 %6968, %v6109_v2  }
0x183b   : > { %v5520_v32 = vpop.xlane.xlu0 %5519 }
0x183c   : > { %v5521_v22 = vrot.slane %v5520_v32, 4 }
0x183e   : > { %v5522_v9 = vadd.f32 %v5521_v22, %v5520_v32 }
0x1840   : > { %v5523_v17 = vrot.slane %v5522_v9, 2 }
0x1842   : > { %v5524_v34 = vadd.f32 %v5523_v17, %v5522_v9 }
0x1844   : > { %v5525_v1 = vrot.slane %v5524_v34, 1 }
0x1846   : > { %v5526_v36 = vadd.f32 %v5525_v1, %v5524_v34 }
0x1848   : > { %6893 = vpush %v5526_v36 }
0x1879   : > { %s6894_s18 = spop %6893 }
0x187a   : > { %s5536_s8 = smul.f32 %s6894_s18, %s8114_s26 }
0x187c   : > { %v5537_v39 = vstv %s5536_s8 }
0x187d   : > { %v5538_v11 = vsub.f32 %v5497_v3, %v5537_v39  ;;  %v5539_v43 = vsub.f32 %v5500_v48, %v5537_v39  ;;  %v5540_v44 = vsub.f32 %v5503_v33, %v5537_v39  ;;  %v5541_v5 = vsub.f32 %v5506_v40, %v5537_v39  ;;  %v5598_v48 = vpop.permute.xlu2 %5597  ;;  %v5588_v40 = vpop.permute.xlu0 %5587 }
0x187f   : > { %v5542_v45 = vmul.f32 %v5538_v11, %v5538_v11  ;;  %v5543_v47 = vmul.f32 %v5539_v43, %v5539_v43  ;;  %v5544_v30 = vmul.f32 %v5540_v44, %v5540_v44  ;;  %v5545_v49 = vmul.f32 %v5541_v5, %v5541_v5 }
0x1881   : > { %v5546_v54 = vadd.f32 %v5543_v47, %v5542_v45 }
0x1883   : > { %v5547_v51 = vadd.f32 %v5546_v54, %v5544_v30 }
0x1885   : > { %v5548_v53 = vadd.f32 %v5547_v51, %v5545_v49  ;;  %v5627_v41 = vpop.permute.xlu2 %5626 }
0x1887   : > { %5549 = vadd.xlane.f32.xlu1 %v5548_v53 }
0x188d   : > { %v5593_v3 = vpop.permute.xlu2 %5592 }
0x1895   : > { %v5622_v33 = vpop.permute.xlu2 %5621 }
0x189d   : > { %v5617_v4 = vpop.permute.xlu2 %5616 }
0x18a0   : > { %5611 = vperm.xlu1 %6969, %v5512_v19  }
0x18a8   : > { %5916 = vperm.xlu1 %6969, %v5910_v42  }
0x18b0   : > { %5931 = vperm.xlu1 %6969, %v5913_v55  }
0x18b8   : > { %6122 = vperm.xlu1 %6969, %v6108_v26  }
0x18fa   : > { %v5550_v56 = vpop.xlane.xlu1 %5549 }
0x18fb   : > { %v5551_v57 = vrot.slane %v5550_v56, 4 }
0x18fd   : > { %v5552_v60 = vadd.f32 %v5551_v57, %v5550_v56 }
0x18ff   : > { %v5553_v63 = vrot.slane %v5552_v60, 2 }
0x1901   : > { %v5554_v35 = vadd.f32 %v5553_v63, %v5552_v60 }
0x1903   : > { %v5555_v62 = vrot.slane %v5554_v35, 1 }
0x1905   : > { %v5556_v25 = vadd.f32 %v5555_v62, %v5554_v35 }
0x1907   : > { %6895 = vpush %v5556_v25 }
0x1912   : > { %v5612_v0 = vpop.permute.xlu1 %5611 }
0x1938   : > { %s6896_s1 = spop %6895 }
0x1939   : > { %s5566_s18 = smul.f32 %s6896_s1, %s8114_s26  ;;  %s10458_s1 = sld [smem:[#allocation40_spill]] }
0x193b   : > { %s5567_s8 = sadd.f32 1e-05, %s5566_s18  ;;  %s1631_s18 = scalar_lea.vmem %s7484_s4, %s7497_s0 }
0x193d   : > { %v5568_v16 = vstv %s5567_s8 }
0x193e   : > { %7082 = vrsqrt.f32 %v5568_v16  ;;  %vm5575_vm11 = vweird.f32 %v5568_v16 }
0x1944   : > { %v7083_v8 = vpop.eup %7082 }
0x1945   : > { %v5570_v10 = vmul.f32 %v7083_v8, %v5568_v16  ;;  %vm5576_vm8 = vweird.f32 %v7083_v8 }
0x1946   : > { %vm5577_vm13 = vmor %vm5575_vm11, %vm5576_vm8 }
0x1947   : > { %v5571_v61 = vmul.f32 %v7083_v8, %v5570_v10 }
0x1949   : > { %v5572_v12 = vmul.f32 0.5, %v5571_v61 }
0x194b   : > { %v5573_v29 = vsub.f32 1.5, %v5572_v12 }
0x194d   : > { %v5574_v24 = vmul.f32 %v7083_v8, %v5573_v29 }
0x194f   : > { %v5578_v20 = vsel %vm5577_vm13, %v7083_v8, %v5574_v24 }
0x1950   : > { %6897 = vpush %v5578_v20 }
0x1981   : > { %s6898_s26 = spop %6897 }
0x1982   : > { %v5580_v15 = vstv %s6898_s26 }
0x1983   : > { %v5581_v31 = vmul.f32 %v5580_v15, %v5538_v11  ;;  %v5582_v7 = vmul.f32 %v5580_v15, %v5539_v43  ;;  %v5583_v28 = vmul.f32 %v5580_v15, %v5540_v44  ;;  %v5584_v18 = vmul.f32 %v5580_v15, %v5541_v5 }
0x1985   : > { %v5605_v37 = vmul.f32 %v5588_v40, %v5581_v31  ;;  %v5606_v50 = vmul.f32 %v5593_v3, %v5582_v7  ;;  %v5607_v6 = vmul.f32 %v5598_v48, %v5583_v28  ;;  %v5608_v27 = vmul.f32 %v5603_v13, %v5584_v18 }
0x1987   : > { %v9827_v59 = vadd.f32 %v5612_v0, %v5605_v37  ;;  %v9829_v2 = vadd.f32 %v5617_v4, %v5606_v50  ;;  %v9831_v32 = vadd.f32 %v5622_v33, %v5607_v6  ;;  %v9833_v22 = vadd.f32 %v5627_v41, %v5608_v27 }
0x1989   : > { %v9836_v9 = vmul.f32 0.70710677, %v9827_v59  ;;  %v9839_v17 = vmul.f32 0.70710677, %v9829_v2  ;;  %v9842_v34 = vmul.f32 0.70710677, %v9831_v32 }
0x198a   : > { %v9845_v1 = vmul.f32 0.70710677, %v9833_v22 }
0x198b   : > { %v9848_v36 = vand.u32 2147483647, %v9836_v9  ;;  %v9851_v39 = vand.u32 2147483647, %v9839_v17  ;;  %v9854_v11 = vand.u32 2147483647, %v9842_v34 }
0x198c   : > { %v9857_v43 = vand.u32 2147483647, %v9845_v1 }
0x198d   : > { %v5653_v44 = vmul.f32 0.3275911, %v9848_v36  ;;  %v5654_v5 = vmul.f32 0.3275911, %v9851_v39  ;;  %v5655_v45 = vmul.f32 0.3275911, %v9854_v11 }
0x198e   : > { %v5656_v47 = vmul.f32 0.3275911, %v9857_v43  ;;  %v5757_v42 = vsub.f32 0.0, %v9848_v36  ;;  %v5758_v56 = vsub.f32 0.0, %v9851_v39  ;;  %v5759_v57 = vsub.f32 0.0, %v9854_v11 }
0x198f   : > { %v5657_v23 = vadd.f32 1.0, %v5653_v44  ;;  %v5658_v30 = vadd.f32 1.0, %v5654_v5  ;;  %v5659_v54 = vadd.f32 1.0, %v5655_v45 }
0x1990   : > { %v9863_v49 = vadd.f32 1.0, %v5656_v47 }
0x1991   : > { %7084 = vrcp.f32 %v5657_v23  ;;  %v5702_v53 = vand.u32 2147483648, %v5659_v54  ;;  %vm5696_vm14 = vweird.f32 %v5659_v54  ;;  %v5700_v25 = vand.u32 2147483647, %v5659_v54 }
0x1992   : > { %7086 = vrcp.f32 %v5658_v30  ;;  %v5717_v51 = vand.u32 2147483648, %v9863_v49  ;;  %v5715_v60 = vand.u32 2147483647, %v9863_v49  ;;  %vm5711_vm4 = vweird.f32 %v9863_v49 }
0x1993   : > { %7088 = vrcp.f32 %v5659_v54  ;;  %v5703_v61 = vor.u32 1.1754944e-38, %v5702_v53  ;;  %vm5681_vm6 = vweird.f32 %v5658_v30  ;;  %v5687_v24 = vand.u32 2147483648, %v5658_v30 }
0x1994   : > { %7090 = vrcp.f32 %v9863_v49  ;;  %v5718_v62 = vor.u32 1.1754944e-38, %v5717_v51  ;;  %v5672_v20 = vand.u32 2147483648, %v5657_v23  ;;  %v5670_v41 = vand.u32 2147483647, %v5657_v23 }
0x1995   : > { %v5685_v15 = vand.u32 2147483647, %v5658_v30  ;;  %vm5666_vm12 = vweird.f32 %v5657_v23  ;;  %v5688_v50 = vor.u32 1.1754944e-38, %v5687_v24  ;;  %vm5701_vm13 = vcmp.eq.f32.partialorder %v5700_v25, 8.507059e+37 }
0x1996   : > { %v5673_v40 = vor.u32 1.1754944e-38, %v5672_v20  ;;  %vm5671_vm5 = vcmp.eq.f32.partialorder %v5670_v41, 8.507059e+37  ;;  %v5760_v51 = vsub.f32 0.0, %v9857_v43  ;;  %v5763_v25 = vmul.f32 %v5759_v57, %v9854_v11 }
0x1997   : > { %v7085_v19 = vpop.eup %7084  ;;  %vm5686_vm8 = vcmp.eq.f32.partialorder %v5685_v15, 8.507059e+37 }
0x1998   : > { %v7087_v55 = vpop.eup %7086  ;;  %v5662_v26 = vmul.f32 %v7085_v19, %v5657_v23  ;;  %vm5667_vm7 = vweird.f32 %v7085_v19 }
0x1999   : > { %v7089_v63 = vpop.eup %7088  ;;  %v5677_v35 = vmul.f32 %v7087_v55, %v5658_v30  ;;  %vm5682_vm0 = vweird.f32 %v7087_v55  ;;  %vm5668_vm15 = vmor %vm5666_vm12, %vm5667_vm7  ;;  %vm5716_vm7 = vcmp.eq.f32.partialorder %v5715_v60, 8.507059e+37 }
0x199a   : > { %v7091_v16 = vpop.eup %7090  ;;  %v5663_v8 = vsub.f32 1.0, %v5662_v26  ;;  %v5692_v10 = vmul.f32 %v7089_v63, %v5659_v54  ;;  %vm5697_vm1 = vweird.f32 %v7089_v63  ;;  %vm5683_vm3 = vmor %vm5681_vm6, %vm5682_vm0  ;;  %vm5641_vm6 = vcmp.ge.f32.partialorder %v9836_v9, 0.0 }
0x199b   : > { %v5678_v12 = vsub.f32 1.0, %v5677_v35  ;;  %v5707_v29 = vmul.f32 %v7091_v16, %v9863_v49  ;;  %vm5712_vm2 = vweird.f32 %v7091_v16  ;;  %vm5698_vm9 = vmor %vm5696_vm14, %vm5697_vm1  ;;  %v5762_v49 = vmul.f32 %v5758_v56, %v9851_v39 }
0x199c   : > { %v5693_v13 = vsub.f32 1.0, %v5692_v10  ;;  %v5664_v48 = vmul.f32 %v7085_v19, %v5663_v8  ;;  %vm5713_vm11 = vmor %vm5711_vm4, %vm5712_vm2  ;;  %v5764_v10 = vmul.f32 %v5760_v51, %v9857_v43  ;;  %vm5642_vm4 = vcmp.ge.f32.partialorder %v9839_v17, 0.0 }
0x199d   : > { %v5708_v3 = vsub.f32 1.0, %v5707_v29  ;;  %v5679_v33 = vmul.f32 %v7087_v55, %v5678_v12  ;;  %vm5643_vm14 = vcmp.ge.f32.partialorder %v9842_v34, 0.0  ;;  %vm5644_vm0 = vcmp.ge.f32.partialorder %v9845_v1, 0.0 }
0x199e   : > { %v5694_v31 = vmul.f32 %v7089_v63, %v5693_v13  ;;  %v5665_v7 = vadd.f32 %v7085_v19, %v5664_v48  ;;  %v5769_v13 = vmul.f32 1.442695, %v5763_v25  ;;  %v5771_v48 = vmul.f32 1.442695, %v5764_v10 }
0x199f   : > { %v5709_v28 = vmul.f32 %v7091_v16, %v5708_v3  ;;  %v5680_v18 = vadd.f32 %v7087_v55, %v5679_v33  ;;  %v5648_v17 = vsel %vm5644_vm0, 1.0, %v10326_v46  ;;  %v5645_v34 = vsel %vm5641_vm6, 1.0, %v10326_v46 }
0x19a0   : > { %v5695_v37 = vadd.f32 %v7089_v63, %v5694_v31  ;;  %v5669_v6 = vsel %vm5668_vm15, %v7085_v19, %v5665_v7  ;;  %v5636_v1 = vmul.f32 0.5, %v9833_v22  ;;  %v5635_v10 = vmul.f32 0.5, %v9831_v32 }
0x19a1   : > { %v5710_v27 = vadd.f32 %v7091_v16, %v5709_v28  ;;  %v5684_v4 = vsel %vm5683_vm3, %v7087_v55, %v5680_v18  ;;  %v5674_v0 = vsel %vm5671_vm5, %v5673_v40, %v5669_v6  ;;  %v5761_v55 = vmul.f32 %v5757_v42, %v9848_v36 }
0x19a2   : > { %v5699_v44 = vsel %vm5698_vm9, %v7089_v63, %v5695_v37  ;;  %v5689_v5 = vsel %vm5686_vm8, %v5688_v50, %v5684_v4  ;;  %v5721_v45 = vmul.f32 1.0614054, %v5674_v0  ;;  %v5767_v36 = vmul.f32 1.442695, %v5762_v49 }
0x19a3   : > { %v5714_v47 = vsel %vm5713_vm11, %v7091_v16, %v5710_v27  ;;  %v5704_v23 = vsel %vm5701_vm13, %v5703_v61, %v5699_v44  ;;  %v5722_v30 = vmul.f32 1.0614054, %v5689_v5  ;;  %v5765_v12 = vmul.f32 1.442695, %v5761_v55 }
0x19a4   : > { %v5719_v53 = vsel %vm5716_vm7, %v5718_v62, %v5714_v47  ;;  %v5723_v19 = vmul.f32 1.0614054, %v5704_v23  ;;  %v5725_v54 = vadd.f32 -1.4531521, %v5721_v45  ;;  %vm10459_vm1 = vcmask 130048  }
0x19a5   : > { %v5724_v26 = vmul.f32 1.0614054, %v5719_v53  ;;  %v5726_v35 = vadd.f32 -1.4531521, %v5722_v30  ;;  %7092 = vpow2.f32 %v5765_v12  ;;  %vm10460_vm12 = vmmov %vm10459_vm1  ;;  %vm10461_vm2 = vcmask 64512  }
0x19a6   : > { %v5727_v8 = vadd.f32 -1.4531521, %v5723_v19  ;;  %v5729_v63 = vmul.f32 %v5725_v54, %v5674_v0  ;;  %7094 = vpow2.f32 %v5767_v36  ;;  %vm10462_vm15 = vmmov %vm10461_vm2 }
0x19a7   : > { %v5728_v60 = vadd.f32 -1.4531521, %v5724_v26  ;;  %v5730_v16 = vmul.f32 %v5726_v35, %v5689_v5  ;;  %7096 = vpow2.f32 %v5769_v13  ;;  %vm10463_vm3 = vmmov %vm10461_vm2 }
0x19a8   : > { %v5731_v61 = vmul.f32 %v5727_v8, %v5704_v23  ;;  %v5733_v62 = vadd.f32 1.4214138, %v5729_v63  ;;  %7098 = vpow2.f32 %v5771_v48  ;;  %vm10464_vm5 = vmmov %vm10461_vm2 }
0x19a9   : > { %v5732_v29 = vmul.f32 %v5728_v60, %v5719_v53  ;;  %v5734_v24 = vadd.f32 1.4214138, %v5730_v16 }
0x19aa   : > { %v5735_v42 = vadd.f32 1.4214138, %v5731_v61  ;;  %v5737_v20 = vmul.f32 %v5733_v62, %v5674_v0 }
0x19ab   : > { %v5736_v39 = vadd.f32 1.4214138, %v5732_v29  ;;  %v5738_v56 = vmul.f32 %v5734_v24, %v5689_v5  ;;  %v7093_v6 = vpop.eup %7092  ;;  %v5634_v29 = vmul.f32 0.5, %v9829_v2  ;;  %v5798_v2 = vld [vmem:[%s10458_s1 + $0x8] sm:$0xff] }
0x19ac   : > { %v5739_v41 = vmul.f32 %v5735_v42, %v5704_v23  ;;  %v5741_v3 = vadd.f32 -0.28449672, %v5737_v20  ;;  %v7095_v44 = vpop.eup %7094  ;;  %v5633_v42 = vmul.f32 0.5, %v9827_v59  ;;  %v5800_v59 = vld [vmem:[%s10458_s1 + $0x18] sm:$0xff] }
0x19ad   : > { %v5740_v11 = vmul.f32 %v5736_v39, %v5719_v53  ;;  %v5742_v57 = vadd.f32 -0.28449672, %v5738_v56  ;;  %v7097_v30 = vpop.eup %7096  ;;  %v5797_v39 = vld [vmem:[%s10458_s1] sm:$0xff]  ;;  %v5813_v56 = vpop.permute.xlu2 %5812 }
0x19ae   : > { %v5743_v33 = vadd.f32 -0.28449672, %v5739_v41  ;;  %v5745_v43 = vmul.f32 %v5741_v3, %v5674_v0  ;;  %v7099_v54 = vpop.eup %7098  ;;  %v5808_v41 = vpop.permute.xlu0 %5807 }
0x19af   : > { %v5744_v15 = vadd.f32 -0.28449672, %v5740_v11  ;;  %v5746_v31 = vmul.f32 %v5742_v57, %v5689_v5 }
0x19b0   : > { %v5747_v7 = vmul.f32 %v5743_v33, %v5704_v23  ;;  %v5749_v28 = vadd.f32 0.2548296, %v5745_v43 }
0x19b1   : > { %v5748_v18 = vmul.f32 %v5744_v15, %v5719_v53  ;;  %v5750_v40 = vadd.f32 0.2548296, %v5746_v31 }
0x19b2   : > { %v5751_v37 = vadd.f32 0.2548296, %v5747_v7  ;;  %v5753_v50 = vmul.f32 %v5749_v28, %v5674_v0 }
0x19b3   : > { %v5752_v27 = vadd.f32 0.2548296, %v5748_v18  ;;  %v5754_v4 = vmul.f32 %v5750_v40, %v5689_v5 }
0x19b4   : > { %v5755_v45 = vmul.f32 %v5751_v37, %v5704_v23  ;;  %v5773_v47 = vmul.f32 %v7093_v6, %v5753_v50  ;;  %v5646_v23 = vsel %vm5642_vm4, 1.0, %v10326_v46 }
0x19b5   : > { %v5756_v51 = vmul.f32 %v5752_v27, %v5719_v53  ;;  %v5774_v19 = vmul.f32 %v7095_v44, %v5754_v4  ;;  %v5647_v53 = vsel %vm5643_vm14, 1.0, %v10326_v46  ;;  %v5823_v11 = vpop.permute.xlu2 %5822 }
0x19b6   : > { %v5775_v55 = vmul.f32 %v7097_v30, %v5755_v45  ;;  %v5777_v35 = vsub.f32 1.0, %v5773_v47  ;;  %v5818_v43 = vpop.permute.xlu0 %5817 }
0x19b7   : > { %v5776_v0 = vmul.f32 %v7099_v54, %v5756_v51  ;;  %v5778_v26 = vsub.f32 1.0, %v5774_v19 }
0x19b8   : > { %v5779_v5 = vsub.f32 1.0, %v5775_v55  ;;  %v5781_v60 = vmul.f32 %v5777_v35, %v5645_v34  ;;  %v5917_v34 = vpop.permute.xlu1 %5916 }
0x19b9   : > { %v5780_v49 = vsub.f32 1.0, %v5776_v0  ;;  %v5782_v8 = vmul.f32 %v5778_v26, %v5646_v23 }
0x19ba   : > { %v5783_v63 = vmul.f32 %v5779_v5, %v5647_v53  ;;  %v5785_v24 = vadd.f32 1.0, %v5781_v60 }
0x19bb   : > { %v5784_v25 = vmul.f32 %v5780_v49, %v5648_v17  ;;  %v5786_v61 = vadd.f32 1.0, %v5782_v8  ;;  %v5951_v17 = vpop.f32.mrf.mxu1 }
0x19bc   : > { %v5787_v9 = vadd.f32 1.0, %v5783_v63  ;;  %v5789_v20 = vmul.f32 %v5785_v24, %v5633_v42 }
0x19bd   : > { %v5788_v16 = vadd.f32 1.0, %v5784_v25  ;;  %v5790_v46 = vmul.f32 %v5786_v61, %v5634_v29  ;;  %v6033_v31 = vpop.permute.xlu2 %6032 }
0x19be   : > { %v5791_v12 = vmul.f32 %v5787_v9, %v5635_v10  ;;  %v5793_v13 = vadd.f32 %v5789_v20, %v9472_v52 }
0x19bf   : > { %v5792_v62 = vmul.f32 %v5788_v16, %v5636_v1  ;;  %v5794_v32 = vadd.f32 %v5790_v46, %v9478_v58  ;;  %v5952_v1 = vadd.f32 %v5951_v17, %v5917_v34  ;;  %v5927_v46 = vpop.permute.xlu0 %5926 }
0x19c0   : > { %v5795_v22 = vadd.f32 %v5791_v12, %v9484_v14 }
0x19c1   : > { %v5796_v36 = vadd.f32 %v5792_v62, %v9490_v21  ;;  %v5799_v21 = vld [vmem:[%s10458_s1 + $0x10] sm:$0xff] }
0x19c3   : > { %5849 = vmatpush.msra.mxu3 %v5796_v36  ;;  %v5954_v62 = vpop.f32.mrf.mxu1 }
0x19c5   : > { %5850 = vmatpush.msra.mxu3 %v5795_v22  ;;  %v5922_v29 = vpop.permute.xlu2 %5921 }
0x19c6   : > { %v5955_v24 = vadd.f32 %v5954_v62, %v5922_v29 }
0x19c7   : > { %5851 = vmatpush.msra.mxu3 %v5794_v32 }
0x19c9   : > { %5852 = vmatpush.msra.mxu3 %v5793_v13  ;;  %v5932_v13 = vpop.permute.xlu1 %5931 }
0x19ca   : > { %6837 = vmatmul.msk.f32.vlgmr.msra.gmra.mxu3 %vm2622_vm10, %v5797_v39 }
0x19cb   : > { %v5957_v36 = vpop.f32.mrf.mxu1 }
0x19cc   : > { %v5958_v20 = vadd.f32 %v5957_v36, %v5927_v46 }
0x19d2   : > { %6838 = vmatmul.msk.f32.gmra.mxu3 %vm2622_vm10, %v5798_v2 }
0x19d3   : > { %v5960_v32 = vpop.f32.mrf.mxu1 }
0x19d4   : > { %v5961_v39 = vadd.f32 %v5960_v32, %v5932_v13 }
0x19da   : > { %6839 = vmatmul.msk.f32.gmra.mxu3 %vm2622_vm10, %v5799_v21 }
0x19e2   : > { %6840 = vmatmul.msk.f32.gmra.mxu3 %vm2622_vm10, %v5800_v59 }
0x1a4d   : > { %v5854_v14 = vpop.f32.mrf.mxu3 }
0x1a4e   : > { %v5855_v3 = vadd.f32 %v5854_v14, %v5808_v41  ;;  %v6105_v41 = vld [vmem:[%s7474_s12 + $0x18] sm:$0xff] }
0x1a55   : > { %v5857_v48 = vpop.f32.mrf.mxu3 }
0x1a56   : > { %v5858_v58 = vadd.f32 %v5857_v48, %v5813_v56  ;;  %v6102_v56 = vld [vmem:[%s7474_s12] sm:$0xff]  ;;  %v6103_v48 = vld [vmem:[%s7474_s12 + $0x8] sm:$0xff] }
0x1a58   : > { %5980 = vmatpush.msrb.mxu0 %v5858_v58  ;;  %v6104_v58 = vld [vmem:[%s7474_s12 + $0x10] sm:$0xff] }
0x1a5a   : > { %5981 = vmatpush.msrb.mxu0 %v5855_v3  ;;  %v6113_v3 = vpop.permute.xlu0 %6112 }
0x1a5b   : > { %6841 = vmatmul.msk.f32.vlgmr.msrb.gmra.mxu0 %vm10459_vm1, %v9777_v38 }
0x1a5d   : > { %v5860_v52 = vpop.f32.mrf.mxu3 }
0x1a5e   : > { %v5861_v15 = vadd.f32 %v5860_v52, %v5818_v43 }
0x1a65   : > { %v5863_v57 = vpop.f32.mrf.mxu3 }
0x1a66   : > { %v5864_v33 = vadd.f32 %v5863_v57, %v5823_v11  ;;  %v6118_v57 = vpop.permute.xlu2 %6117 }
0x1a68   : > { %6050 = vmatpush.msra.mxu0 %v5864_v33 }
0x1a6a   : > { %6051 = vmatpush.msra.mxu0 %v5861_v15  ;;  %v6123_v15 = vpop.permute.xlu1 %6122 }
0x1a6b   : > { %6844 = vmatmul.msk.f32.vlgmr.msra.gmra.mxu0 %vm10460_vm12, %v6033_v31 }
0x1ad8   : > { %v5983_v7 = vpop.f32.mrf.mxu0 }
0x1ad9   : > { %v5986_v28 = vrot.slane %v5983_v7, 4 }
0x1adb   : > { %v5987_v18 = vmax.f32 %v5983_v7, %v5986_v28  ;;  %v6128_v28 = vpop.permute.xlu0 %6127 }
0x1add   : > { %v5988_v40 = vrot.slane %v5987_v18, 2 }
0x1adf   : > { %v5989_v37 = vmax.f32 %v5987_v18, %v5988_v40 }
0x1ae1   : > { %v5990_v50 = vrot.slane %v5989_v37, 1 }
0x1ae3   : > { %v5991_v6 = vmax.f32 %v5989_v37, %v5990_v50 }
0x1ae5   : > { %v5992_v27 = vsub.f32 %v5983_v7, %v5991_v6 }
0x1ae7   : > { %v5993_v38 = vmul.f32 1.442695, %v5992_v27 }
0x1ae8   : > { %v6053_v4 = vpop.f32.mrf.mxu0 }
0x1ae9   : > { %7100 = vpow2.f32 %v5993_v38  ;;  %v6056_v44 = vrot.slane %v6053_v4, 4 }
0x1aeb   : > { %v6057_v45 = vmax.f32 %v6053_v4, %v6056_v44 }
0x1aed   : > { %v6058_v47 = vrot.slane %v6057_v45, 2 }
0x1aef   : > { %v7101_v30 = vpop.eup %7100  ;;  %v6059_v51 = vmax.f32 %v6057_v45, %v6058_v47 }
0x1af0   : > { %v5995_v19 = vrot.slane %v7101_v30, 4 }
0x1af1   : > { %v6060_v54 = vrot.slane %v6059_v51, 1 }
0x1af2   : > { %v5996_v55 = vadd.f32 %v7101_v30, %v5995_v19 }
0x1af3   : > { %v6061_v0 = vmax.f32 %v6059_v51, %v6060_v54 }
0x1af4   : > { %v5997_v26 = vrot.slane %v5996_v55, 2 }
0x1af5   : > { %v6062_v35 = vsub.f32 %v6053_v4, %v6061_v0 }
0x1af6   : > { %v5998_v5 = vadd.f32 %v5997_v26, %v5996_v55 }
0x1af7   : > { %v6063_v23 = vmul.f32 1.442695, %v6062_v35 }
0x1af8   : > { %v5999_v49 = vrot.slane %v5998_v5, 1 }
0x1af9   : > { %7102 = vpow2.f32 %v6063_v23 }
0x1afa   : > { %v6000_v53 = vadd.f32 %v5999_v49, %v5998_v5 }
0x1afc   : > { %7104 = vrcp.f32 %v6000_v53 }
0x1aff   : > { %v7103_v8 = vpop.eup %7102 }
0x1b00   : > { %v6065_v63 = vrot.slane %v7103_v8, 4 }
0x1b02   : > { %v7105_v25 = vpop.eup %7104  ;;  %v6066_v60 = vadd.f32 %v7103_v8, %v6065_v63 }
0x1b03   : > { %v6002_v9 = vmul.f32 %v7105_v25, %v7101_v30 }
0x1b04   : > { %v6067_v16 = vrot.slane %v6066_v60, 2 }
0x1b05   : > { %6024 = vmatpush.msra.mxu2 %v6002_v9 }
0x1b06   : > { %6842 = vmatmul.msk.f32.vlgmr.msra.gmra.mxu2 %vm10461_vm2, %v5952_v1  ;;  %v6068_v10 = vadd.f32 %v6067_v16, %v6066_v60 }
0x1b08   : > { %v6069_v61 = vrot.slane %v6068_v10, 1 }
0x1b0a   : > { %v6070_v12 = vadd.f32 %v6069_v61, %v6068_v10 }
0x1b0c   : > { %7106 = vrcp.f32 %v6070_v12 }
0x1b0e   : > { %6843 = vmatmul.msk.f32.gmra.mxu2 %vm10462_vm15, %v5955_v24 }
0x1b12   : > { %v7107_v42 = vpop.eup %7106 }
0x1b13   : > { %v6072_v22 = vmul.f32 %v7107_v42, %v7103_v8 }
0x1b15   : > { %6094 = vmatpush.msrb.mxu0 %v6072_v22 }
0x1b16   : > { %6845 = vmatmul.msk.f32.vlgmr.msrb.gmra.mxu0 %vm10463_vm3, %v5958_v20 }
0x1b1e   : > { %6846 = vmatmul.msk.f32.gmra.mxu0 %vm10464_vm5, %v5961_v39 }
0x1b89   : > { %v6026_v21 = vpop.f32.mrf.mxu2 }
0x1b91   : > { %v6029_v14 = vpop.f32.mrf.mxu2 }
0x1b93   : > { %v6096_v2 = vpop.f32.mrf.mxu0 }
0x1b9b   : > { %v6099_v59 = vpop.f32.mrf.mxu0 }
0x1b9c   : > { %6154 = vmatpush.msrb.mxu2 %v6099_v59 }
0x1b9e   : > { %6155 = vmatpush.msrb.mxu2 %v6096_v2 }
0x1ba0   : > { %6156 = vmatpush.msrb.mxu2 %v6029_v14 }
0x1ba2   : > { %6157 = vmatpush.msrb.mxu2 %v6026_v21 }
0x1ba3   : > { %6847 = vmatmul.msk.f32.vlgmr.msrb.gmra.mxu2 %vm2622_vm10, %v6102_v56 }
0x1bab   : > { %6848 = vmatmul.msk.f32.gmra.mxu2 %vm2622_vm10, %v6103_v48 }
0x1bb3   : > { %6849 = vmatmul.msk.f32.gmra.mxu2 %vm2622_vm10, %v6104_v58 }
0x1bbb   : > { %6850 = vmatmul.msk.f32.gmra.mxu2 %vm2622_vm10, %v6105_v41 }
0x1c26   : > { %v6159_v52 = vpop.f32.mrf.mxu2 }
0x1c27   : > { %v6160_v11 = vadd.f32 %v6159_v52, %v6113_v3 }
0x1c29   : > { %6171 = vst [vmem:[%s1631_s18] sm:$0xff] %v6160_v11 }
0x1c2e   : > { %v6162_v33 = vpop.f32.mrf.mxu2 }
0x1c2f   : > { %v6163_v43 = vadd.f32 %v6162_v33, %v6118_v57 }
0x1c31   : > { %6172 = vst [vmem:[%s1631_s18 + $0x8] sm:$0xff] %v6163_v43 }
0x1c36   : > { %v6165_v31 = vpop.f32.mrf.mxu2 }
0x1c37   : > { %v6166_v7 = vadd.f32 %v6165_v31, %v6123_v15 }
0x1c39   : > { %6173 = vst [vmem:[%s1631_s18 + $0x10] sm:$0xff] %v6166_v7 }
0x1c3e   : > { %v6168_v18 = vpop.f32.mrf.mxu2 }
0x1c3f   : > { %v6169_v40 = vadd.f32 %v6168_v18, %v6128_v28 }
0x1c41   : > { %6174 = vst [vmem:[%s1631_s18 + $0x18] sm:$0xff] %v6169_v40 }
0x1c42 PF: > { %s117_s7 = sadd.s32 1, %s7148_s7  }
0x1c43   : > { %p114_p4 = scmp.ge.s32.totalorder %s117_s7, 4  }
0x1c45   :  { %116 = sbr.rel (!%p114_p4) target bundleno = 100 (0x64), region = 324 }

</bundles_post_ra>
